<compile_context>
chip_gen: v6e
topology: v6e:2x2x1
jax: 0.10.0
libtpu: 0.0.40
codegen_flags: <defaults>
</compile_context>

<pallas_src>
import functools

import jax
import jax.numpy as jnp
from jax.experimental import pallas as pl
from jax.experimental.pallas import tpu as pltpu


# --------------------------------------------------------------------------- #
# Device-aware tiling helpers
# --------------------------------------------------------------------------- #
def _vmem_capacity_bytes():
    try:
        return int(pltpu.get_tpu_info().vmem_capacity_bytes)
    except Exception:
        return 128 * 1024 * 1024


def _vmem_limit_bytes():
    """Scoped-VMEM limit handed to Mosaic: 3/4 of physical, capped at 96 MiB."""
    return min(_vmem_capacity_bytes() * 3 // 4, 96 * 1024 * 1024)


def _tile_budget_bytes():
    """Budget used for *sizing* tiles: half of physical VMEM (v7x-safe)."""
    return min(_vmem_capacity_bytes() // 2, 64 * 1024 * 1024)


def _max_rows(W, cin, cout, *, acc_cout, extra_per_n=0):
    """Upper bound on n = TH*W from a conservative per-grid-step VMEM estimate."""
    per_n = (
        4 * cin            # mid input tile (bf16, double-buffered)
        + 4 * cout         # output tile (double-buffered, <= f32)
        + 14 * cin         # padded slab + column-shifted slabs + (., 3*Cin) slab
        + 4 * acc_cout     # f32 accumulator
        + extra_per_n
    )
    fixed = (
        4 * 9 * cin * cout     # 3x3 weight slab (bf16, double-buffered)
        + 16 * W * cin         # two 1-row halos (bf16, double-buffered)
        + (2 << 20)            # bias / masks / compiler scratch slack
    )
    return max((_tile_budget_bytes() - fixed) // per_n, 8)


def _pick_row_tile(H, W, *, n_max, lane_mult, batch):
    """Pick TH dividing H.  Prefers the largest tile with n = TH*W a multiple
    of 256 that fits n_max, then lane_mult-aligned tiles, then TH == H."""
    cands = [d for d in range(1, H + 1)
             if H % d == 0 and ((d * W) % lane_mult == 0 or d == H)]
    fitting = [d for d in cands if d * W <= n_max]
    if not fitting:
        return min(cands)                 # even one aligned row tile is large
    pref = [d for d in fitting if (d * W) % 256 == 0] or fitting
    th = max(pref)
    # v7x has two TensorCores per chip: keep >= 2 parallel grid steps when the
    # batch axis alone does not provide them.
    if batch == 1 and th == H:
        split = [d for d in pref if d < H and d * W >= 1024]
        if split:
            th = max(split)
    return th


# --------------------------------------------------------------------------- #
# Kernels
# --------------------------------------------------------------------------- #
def _conv3x3_columns(top_ref, mid_ref, bot_ref, *, th, w):
    """Build the (M2, 3*Cin) column-tap slab for one row tile.

    top_ref: (1, 1, W, Cin)  image row rt*TH - 1 (clamped; zeroed when rt == 0)
    mid_ref: (1, TH*W, Cin)  image rows [rt*TH, rt*TH + TH), width-major
    bot_ref: (1, 1, W, Cin)  image row rt*TH + TH (clamped; zeroed on last tile)

    Returns xcols with M2 = (TH+2)*W rows; the Cin-wide channel blocks are the
    kx = 0/1/2 taps (left neighbour, centre, right neighbour), with the taps
    that fall outside the image width zeroed (conv zero padding).
    """
    rt = pl.program_id(1)
    nrt = pl.num_programs(1)
    dt = mid_ref.dtype
    cin = mid_ref.shape[-1]
    n = th * w
    m2 = n + 2 * w

    # 1-row halos, zeroed at the image border.
    top = top_ref[0, 0] * (rt > 0).astype(dt)
    bot = bot_ref[0, 0] * (rt < nrt - 1).astype(dt)
    zrow = jnp.zeros((1, cin), dt)
    # Padded slab: element k of the haloed row slab is xpad[k + 1]; its left /
    # right neighbours along the flattened width-major index are xpad[k] and
    # xpad[k + 2].
    xpad = jnp.concatenate([zrow, top, mid_ref[0], bot, zrow], axis=0)

    xl = xpad[0:m2, :]            # left neighbour  (aligned view)
    xc = xpad[1:m2 + 1, :]        # centre          (one sublane-shift relayout)
    xr = xpad[2:m2 + 2, :]        # right neighbour (one sublane-shift relayout)
    # TODO(synk): produce xl/xr with pltpu.roll (XLU slot) instead of the two
    # shifted-slice relayouts once the sublane-axis roll path is validated.

    # Zero the taps that fall outside the image width: the left tap is invalid
    # at x == 0, the right tap at x == W - 1 (this also kills the cross-row
    # wrap of the flattened +-1 shifts).
    col = jax.lax.broadcasted_iota(jnp.int32, (m2, 1), 0) % w
    xl = xl * (col != 0).astype(dt)
    xr = xr * (col != w - 1).astype(dt)
    return jnp.concatenate([xl, xc, xr], axis=-1)       # (M2, 3*Cin)


def _conv3x3_acc(top_ref, mid_ref, bot_ref, w_ref, b_ref, *, th, w):
    """bias + 3x3 conv for one row tile as 3 dy-grouped K=3*Cin MXU matmuls.

    w_ref: (3, 3*Cin, Cout)  axis 0 is the kernel row ky; along axis 1 the Cin
           blocks are ordered kx = 0, 1, 2 (matching _conv3x3_columns).
    b_ref: (1, Cout) f32.
    Returns (TH*W, Cout) f32.
    """
    n = th * w
    xcols = _conv3x3_columns(top_ref, mid_ref, bot_ref, th=th, w=w)
    # Row offsets 0, W, 2W select the ky = 0/1/2 input rows for every output
    # pixel of the tile; each matmul covers all three kx taps at once (K=3*Cin).
    acc = b_ref[...] + jnp.dot(xcols[0:n, :], w_ref[0],
                               preferred_element_type=jnp.float32)
    acc = acc + jnp.dot(xcols[w:w + n, :], w_ref[1],
                        preferred_element_type=jnp.float32)
    acc = acc + jnp.dot(xcols[2 * w:2 * w + n, :], w_ref[2],
                        preferred_element_type=jnp.float32)
    return acc


def _conv3x3_kernel(top_ref, mid_ref, bot_ref, w_ref, b_ref, o_ref, *, th, w,
                    relu):
    acc = _conv3x3_acc(top_ref, mid_ref, bot_ref, w_ref, b_ref, th=th, w=w)
    if relu:
        acc = jnp.maximum(acc, 0.0)
    o_ref[0] = acc.astype(o_ref.dtype)


def _conv3x3_relu_1x1_kernel(top_ref, mid_ref, bot_ref, w3_ref, b3_ref,
                             w4_ref, b4_ref, o_ref, *, th, w):
    """Fused conv3x3 + ReLU + conv1x1 with a lane-dense (Cout, TH*W) output."""
    acc = _conv3x3_acc(top_ref, mid_ref, bot_ref, w3_ref, b3_ref, th=th, w=w)
    y = jnp.maximum(acc, 0.0).astype(w4_ref.dtype)       # (n, Chid) bf16
    # (Cout, Chid) x (n, Chid) contracting the last dims -> (Cout, n): the
    # result comes out of the MXU already "transposed", so the store below is
    # lane-dense (lane axis = TH*W) and no separate transpose pass is needed.
    zt = jax.lax.dot_general(w4_ref[...], y, (((1,), (1,)), ((), ())),
                             preferred_element_type=jnp.float32)
    o_ref[0] = (zt + b4_ref[...]).astype(o_ref.dtype)


# --------------------------------------------------------------------------- #
# pallas_call wrappers
# --------------------------------------------------------------------------- #
def conv3x3(x_nhwc, w9r, bias, *, relu=True, out_dtype=jnp.bfloat16):
    """Conv2d(k=3, s=1, p=1) (+ ReLU). NHWC bf16 in -> NHWC `out_dtype` out."""
    B, H, W, Cin = x_nhwc.shape
    Cout = w9r.shape[-1]
    n_max = _max_rows(W, Cin, Cout, acc_cout=Cout)
    th = _pick_row_tile(H, W, n_max=n_max, lane_mult=8, batch=B)
    n_rt = H // th
    xf = x_nhwc.reshape(B, H * W, Cin)       # free width-major flattened view

    kernel = functools.partial(_conv3x3_kernel, th=th, w=W, relu=relu)
    out = pl.pallas_call(
        kernel,
        out_shape=jax.ShapeDtypeStruct((B, H * W, Cout), out_dtype),
        grid=(B, n_rt),
        in_specs=[
            pl.BlockSpec((1, 1, W, Cin),
                         lambda b, rt: (b, jnp.maximum(rt * th - 1, 0), 0, 0)),
            pl.BlockSpec((1, th * W, Cin), lambda b, rt: (b, rt, 0)),
            pl.BlockSpec((1, 1, W, Cin),
                         lambda b, rt: (b, jnp.minimum((rt + 1) * th, H - 1), 0, 0)),
            pl.BlockSpec((3, 3 * Cin, Cout), lambda b, rt: (0, 0, 0)),
            pl.BlockSpec((1, Cout), lambda b, rt: (0, 0)),
        ],
        out_specs=pl.BlockSpec((1, th * W, Cout), lambda b, rt: (b, rt, 0)),
        compiler_params=pltpu.CompilerParams(
            dimension_semantics=("parallel", "parallel"),
            vmem_limit_bytes=_vmem_limit_bytes(),
        ),
    )(x_nhwc, xf, x_nhwc, w9r, bias)
    return out.reshape(B, H, W, Cout)


def conv3x3_relu_conv1x1(x_nhwc, w9r, b3, w4t, b4t):
    """Fused conv(k=3) + ReLU + conv(k=1). Returns NCHW float32."""
    B, H, W, Cin = x_nhwc.shape
    Chid = w9r.shape[-1]
    Cout = w4t.shape[0]
    n_max = _max_rows(W, Cin, Chid, acc_cout=Chid, extra_per_n=2 * Chid)
    th = _pick_row_tile(H, W, n_max=n_max, lane_mult=128, batch=B)
    n_rt = H // th
    xf = x_nhwc.reshape(B, H * W, Cin)

    kernel = functools.partial(_conv3x3_relu_1x1_kernel, th=th, w=W)
    out = pl.pallas_call(
        kernel,
        out_shape=jax.ShapeDtypeStruct((B, Cout, H * W), jnp.float32),
        grid=(B, n_rt),
        in_specs=[
            pl.BlockSpec((1, 1, W, Cin),
                         lambda b, rt: (b, jnp.maximum(rt * th - 1, 0), 0, 0)),
            pl.BlockSpec((1, th * W, Cin), lambda b, rt: (b, rt, 0)),
            pl.BlockSpec((1, 1, W, Cin),
                         lambda b, rt: (b, jnp.minimum((rt + 1) * th, H - 1), 0, 0)),
            pl.BlockSpec((3, 3 * Cin, Chid), lambda b, rt: (0, 0, 0)),
            pl.BlockSpec((1, Chid), lambda b, rt: (0, 0)),
            pl.BlockSpec((Cout, Chid), lambda b, rt: (0, 0)),
            pl.BlockSpec((Cout, 1), lambda b, rt: (0, 0)),
        ],
        out_specs=pl.BlockSpec((1, Cout, th * W), lambda b, rt: (b, 0, rt)),
        compiler_params=pltpu.CompilerParams(
            dimension_semantics=("parallel", "parallel"),
            vmem_limit_bytes=_vmem_limit_bytes(),
        ),
    )(x_nhwc, xf, x_nhwc, w9r, b3, w4t, b4t)
    return out.reshape(B, Cout, H, W)


# --------------------------------------------------------------------------- #
# Module glue
# --------------------------------------------------------------------------- #
def _prep_conv3x3(w, b):
    # PyTorch Conv2d weight (Cout, Cin, 3, 3) -> (3, 3*Cin, Cout): axis 0 is the
    # kernel row ky; along axis 1 the Cin blocks are ordered kx = 0, 1, 2 to
    # match the [left | centre | right] channel blocks built in-kernel.
    cout, cin, kh, kw = w.shape
    w9r = jnp.transpose(w, (2, 3, 1, 0)).reshape(kh, kw * cin, cout)
    return w9r.astype(jnp.bfloat16), b.reshape(1, cout).astype(jnp.float32)


def _prep_conv1x1(w, b):
    cout, cin = w.shape[0], w.shape[1]
    w4t = w.reshape(cout, cin)               # used directly as the matmul LHS
    return w4t.astype(jnp.bfloat16), b.reshape(cout, 1).astype(jnp.float32)


def upsample2x_bilinear(x, out_shape):
    # Matches F.interpolate(scale 2, mode='bilinear', align_corners=False):
    # half-pixel centres; antialias is a no-op for upsampling.
    # TODO(synk): fuse this fixed 2x upsample into the consumer conv's input
    # stage (upsample the low-res row tile + halo in VMEM) so the 4x-sized
    # intermediate never round-trips HBM.
    return jax.image.resize(x, out_shape, method="bilinear")


def pup_head_forward(x, params):
    """x: (B, N, dim) tokens, N = h*h. Returns NCHW (B, out_chan, 16h, 16h)."""
    B, N, c = x.shape
    h = int(round(N ** 0.5))
    if h * h != N:
        raise ValueError("PUPHead expects a square token grid")
    xs = x.reshape(B, h, h, c).astype(jnp.bfloat16)      # NHWC, bf16 activations

    w0, b0 = _prep_conv3x3(params["w0"], params["b0"])
    w1, b1 = _prep_conv3x3(params["w1"], params["b1"])
    w2, b2 = _prep_conv3x3(params["w2"], params["b2"])
    w3, b3 = _prep_conv3x3(params["w3"], params["b3"])
    w4, b4 = _prep_conv1x1(params["w4"], params["b4"])

    xs = conv3x3(xs, w0, b0, relu=True)
    xs = upsample2x_bilinear(xs, (B, 2 * h, 2 * h, xs.shape[-1]))
    xs = conv3x3(xs, w1, b1, relu=True)
    xs = upsample2x_bilinear(xs, (B, 4 * h, 4 * h, xs.shape[-1]))
    xs = conv3x3(xs, w2, b2, relu=True)
    xs = upsample2x_bilinear(xs, (B, 8 * h, 8 * h, xs.shape[-1]))
    # conv_3 + ReLU + conv_4 fused: the hidden-dim intermediate never hits HBM
    # and the output is already NCHW-flat + lane-dense.
    y = conv3x3_relu_conv1x1(xs, w3, b3, w4, b4)         # (B, out_chan, 8h, 8h)
    y = upsample2x_bilinear(y, (B, y.shape[1], 16 * h, 16 * h))   # final 2x, NCHW
    return y


# --------------------------------------------------------------------------- #
# Test
# --------------------------------------------------------------------------- #
def _init_conv(kw, kb, cout, cin, k):
    # Deterministic, PyTorch-Conv2d-like uniform(-1/sqrt(fan_in), 1/sqrt(fan_in)).
    scale = 1.0 / (cin * k * k) ** 0.5
    w = jax.random.uniform(kw, (cout, cin, k, k), jnp.float32, -scale, scale)
    b = jax.random.uniform(kb, (cout,), jnp.float32, -scale, scale)
    return w, b


if __name__ == "__main__":
    B, N, dim = 2, 16, 32          # h = w = 4
    hidden, out_chan = 64, 1       # (module default hidden=512 shrunk for the test)

    key = jax.random.PRNGKey(0)
    keys = jax.random.split(key, 11)
    params = {}
    params["w0"], params["b0"] = _init_conv(keys[0], keys[1], hidden, dim, 3)
    params["w1"], params["b1"] = _init_conv(keys[2], keys[3], hidden, hidden, 3)
    params["w2"], params["b2"] = _init_conv(keys[4], keys[5], hidden, hidden, 3)
    params["w3"], params["b3"] = _init_conv(keys[6], keys[7], hidden, hidden, 3)
    params["w4"], params["b4"] = _init_conv(keys[8], keys[9], out_chan, hidden, 1)

    x = jax.random.normal(keys[10], (B, N, dim), jnp.float32)

    y = jax.jit(pup_head_forward)(x, params)
    jax.block_until_ready(y)

    h = int(N ** 0.5)
    assert y.shape == (B, out_chan, 16 * h, 16 * h), y.shape
    assert y.dtype == jnp.float32
    assert bool(jnp.isfinite(y).all())
    print("KERNEL_OK")
</pallas_src>

<mosaic_0001>
module attributes {stable_mosaic.version = 11 : i64} {
  func.func @_conv3x3_kernel(%arg0: i32, %arg1: i32, %arg2: memref<1x1x4x32xbf16, #tpu.memory_space<vmem>>, %arg3: memref<1x16x32xbf16, #tpu.memory_space<vmem>>, %arg4: memref<1x1x4x32xbf16, #tpu.memory_space<vmem>>, %arg5: memref<3x96x64xbf16, #tpu.memory_space<vmem>>, %arg6: memref<1x64xf32, #tpu.memory_space<vmem>>, %arg7: memref<1x16x64xbf16, #tpu.memory_space<vmem>>) attributes {dimension_semantics = [#tpu.dimension_semantics<parallel>, #tpu.dimension_semantics<parallel>], iteration_bounds = array<i64: 2, 1>, scalar_prefetch = 0 : i64, scratch_operands = 0 : i64, tpu.core_type = #tpu.core_type<tc>, window_params = [{transform_indices = @transform_0, window_bounds = array<i64: 1, 1, 4, 32>}, {transform_indices = @transform_1, window_bounds = array<i64: 1, 16, 32>}, {transform_indices = @transform_2, window_bounds = array<i64: 1, 1, 4, 32>}, {pipeline_mode = #tpu.pipeline_mode<synchronous>, transform_indices = @transform_3, window_bounds = array<i64: 3, 96, 64>}, {pipeline_mode = #tpu.pipeline_mode<synchronous>, transform_indices = @transform_4, window_bounds = array<i64: 1, 64>}, {transform_indices = @transform_5, window_bounds = array<i64: 1, 16, 64>}]} {
    %c0 = arith.constant 0 : index
    %c0_0 = arith.constant 0 : index
    %c0_1 = arith.constant 0 : index
    %c0_2 = arith.constant 0 : index
    %0 = vector.load %arg2[%c0, %c0_0, %c0_1, %c0_2] : memref<1x1x4x32xbf16, #tpu.memory_space<vmem>>, vector<1x1x4x32xbf16>
    %1 = vector.shape_cast %0 : vector<1x1x4x32xbf16> to vector<4x32xbf16>
    %c0_i32 = arith.constant 0 : i32
    %2 = arith.cmpi sgt, %arg1, %c0_i32 : i32
    %3 = arith.extui %2 : i1 to i32
    %4 = arith.sitofp %3 : i32 to f32
    %5 = arith.truncf %4 : f32 to bf16
    %6 = vector.broadcast %5 : bf16 to vector<4x32xbf16>
    %7 = arith.mulf %1, %6 : vector<4x32xbf16>
    %c0_3 = arith.constant 0 : index
    %c0_4 = arith.constant 0 : index
    %c0_5 = arith.constant 0 : index
    %c0_6 = arith.constant 0 : index
    %8 = vector.load %arg4[%c0_3, %c0_4, %c0_5, %c0_6] : memref<1x1x4x32xbf16, #tpu.memory_space<vmem>>, vector<1x1x4x32xbf16>
    %9 = vector.shape_cast %8 : vector<1x1x4x32xbf16> to vector<4x32xbf16>
    %c0_i32_7 = arith.constant 0 : i32
    %10 = arith.cmpi slt, %arg1, %c0_i32_7 : i32
    %11 = arith.extui %10 : i1 to i32
    %12 = arith.sitofp %11 : i32 to f32
    %13 = arith.truncf %12 : f32 to bf16
    %14 = vector.broadcast %13 : bf16 to vector<4x32xbf16>
    %15 = arith.mulf %9, %14 : vector<4x32xbf16>
    %cst = arith.constant 0.000000e+00 : bf16
    %16 = vector.broadcast %cst : bf16 to vector<1x32xbf16>
    %c0_8 = arith.constant 0 : index
    %c0_9 = arith.constant 0 : index
    %c0_10 = arith.constant 0 : index
    %17 = vector.load %arg3[%c0_8, %c0_9, %c0_10] : memref<1x16x32xbf16, #tpu.memory_space<vmem>>, vector<1x16x32xbf16>
    %18 = vector.shape_cast %17 : vector<1x16x32xbf16> to vector<16x32xbf16>
    %19 = tpu.concatenate %16, %7, %18, %15, %16 in 0 : vector<1x32xbf16>, vector<4x32xbf16>, vector<16x32xbf16>, vector<4x32xbf16>, vector<1x32xbf16> -> vector<26x32xbf16>
    %20 = vector.extract_strided_slice %19 {offsets = [0, 0], sizes = [24, 32], strides = [1, 1]} : vector<26x32xbf16> to vector<24x32xbf16>
    %21 = vector.extract_strided_slice %19 {offsets = [1, 0], sizes = [24, 32], strides = [1, 1]} : vector<26x32xbf16> to vector<24x32xbf16>
    %22 = vector.extract_strided_slice %19 {offsets = [2, 0], sizes = [24, 32], strides = [1, 1]} : vector<26x32xbf16> to vector<24x32xbf16>
    %23 = tpu.iota {dimensions = array<i32: 0>} : vector<24x1xi32>
    %c4_i32 = arith.constant 4 : i32
    %c0_i32_11 = arith.constant 0 : i32
    %24 = arith.cmpi eq, %c4_i32, %c0_i32_11 : i32
    %c1_i32 = arith.constant 1 : i32
    %25 = arith.select %24, %c1_i32, %c4_i32 : i32
    %26 = vector.broadcast %25 : i32 to vector<24x1xi32>
    %27 = arith.remsi %23, %26 : vector<24x1xi32>
    %c0_i32_12 = arith.constant 0 : i32
    %28 = vector.broadcast %c0_i32_12 : i32 to vector<24x1xi32>
    %29 = arith.cmpi ne, %27, %28 : vector<24x1xi32>
    %c0_i32_13 = arith.constant 0 : i32
    %30 = vector.broadcast %c0_i32_13 : i32 to vector<24x1xi32>
    %31 = arith.cmpi slt, %27, %30 : vector<24x1xi32>
    %c0_i32_14 = arith.constant 0 : i32
    %32 = arith.cmpi slt, %25, %c0_i32_14 : i32
    %33 = vector.broadcast %32 : i1 to vector<24x1xi1>
    %34 = vector.broadcast %33 : vector<24x1xi1> to vector<24x1xi1>
    %35 = arith.xori %31, %34 : vector<24x1xi1>
    %36 = arith.andi %35, %29 : vector<24x1xi1>
    %37 = vector.broadcast %25 : i32 to vector<24x1xi32>
    %38 = arith.addi %27, %37 : vector<24x1xi32>
    %39 = arith.select %36, %38, %27 : vector<24x1xi1>, vector<24x1xi32>
    %c0_i32_15 = arith.constant 0 : i32
    %40 = vector.broadcast %c0_i32_15 : i32 to vector<24x1xi32>
    %41 = arith.cmpi ne, %39, %40 : vector<24x1xi32>
    %42 = arith.extui %41 : vector<24x1xi1> to vector<24x1xi32>
    %43 = arith.sitofp %42 : vector<24x1xi32> to vector<24x1xf32>
    %44 = arith.truncf %43 : vector<24x1xf32> to vector<24x1xbf16>
    %45 = vector.broadcast %44 : vector<24x1xbf16> to vector<24x32xbf16>
    %46 = arith.mulf %20, %45 : vector<24x32xbf16>
    %c3_i32 = arith.constant 3 : i32
    %47 = vector.broadcast %c3_i32 : i32 to vector<24x1xi32>
    %48 = arith.cmpi ne, %39, %47 : vector<24x1xi32>
    %49 = arith.extui %48 : vector<24x1xi1> to vector<24x1xi32>
    %50 = arith.sitofp %49 : vector<24x1xi32> to vector<24x1xf32>
    %51 = arith.truncf %50 : vector<24x1xf32> to vector<24x1xbf16>
    %52 = vector.broadcast %51 : vector<24x1xbf16> to vector<24x32xbf16>
    %53 = arith.mulf %22, %52 : vector<24x32xbf16>
    %54 = tpu.concatenate %46, %21, %53 in 1 : vector<24x32xbf16>, vector<24x32xbf16>, vector<24x32xbf16> -> vector<24x96xbf16>
    %c0_16 = arith.constant 0 : index
    %c0_17 = arith.constant 0 : index
    %55 = vector.load %arg6[%c0_16, %c0_17] : memref<1x64xf32, #tpu.memory_space<vmem>>, vector<1x64xf32>
    %56 = vector.extract_strided_slice %54 {offsets = [0, 0], sizes = [16, 96], strides = [1, 1]} : vector<24x96xbf16> to vector<16x96xbf16>
    %c0_18 = arith.constant 0 : index
    %c0_19 = arith.constant 0 : index
    %c0_20 = arith.constant 0 : index
    %57 = vector.load %arg5[%c0_18, %c0_19, %c0_20] : memref<3x96x64xbf16, #tpu.memory_space<vmem>>, vector<1x96x64xbf16>
    %58 = vector.shape_cast %57 : vector<1x96x64xbf16> to vector<96x64xbf16>
    %cst_21 = arith.constant dense<0.000000e+00> : vector<16x64xf32>
    %59 = tpu.matmul %56, %58, %cst_21 {dimension_numbers = #tpu.dot_dimension_numbers<[1], [0], [0], [1], [0, 0, 1, 1], [], []>} : vector<16x96xbf16>, vector<96x64xbf16>, vector<16x64xf32> -> vector<16x64xf32>
    %60 = vector.broadcast %55 : vector<1x64xf32> to vector<16x64xf32>
    %61 = arith.addf %60, %59 : vector<16x64xf32>
    %62 = vector.extract_strided_slice %54 {offsets = [4, 0], sizes = [16, 96], strides = [1, 1]} : vector<24x96xbf16> to vector<16x96xbf16>
    %c1 = arith.constant 1 : index
    %c0_22 = arith.constant 0 : index
    %c0_23 = arith.constant 0 : index
    %63 = vector.load %arg5[%c1, %c0_22, %c0_23] : memref<3x96x64xbf16, #tpu.memory_space<vmem>>, vector<1x96x64xbf16>
    %64 = vector.shape_cast %63 : vector<1x96x64xbf16> to vector<96x64xbf16>
    %cst_24 = arith.constant dense<0.000000e+00> : vector<16x64xf32>
    %65 = tpu.matmul %62, %64, %cst_24 {dimension_numbers = #tpu.dot_dimension_numbers<[1], [0], [0], [1], [0, 0, 1, 1], [], []>} : vector<16x96xbf16>, vector<96x64xbf16>, vector<16x64xf32> -> vector<16x64xf32>
    %66 = arith.addf %61, %65 : vector<16x64xf32>
    %67 = vector.extract_strided_slice %54 {offsets = [8, 0], sizes = [16, 96], strides = [1, 1]} : vector<24x96xbf16> to vector<16x96xbf16>
    %c2 = arith.constant 2 : index
    %c0_25 = arith.constant 0 : index
    %c0_26 = arith.constant 0 : index
    %68 = vector.load %arg5[%c2, %c0_25, %c0_26] : memref<3x96x64xbf16, #tpu.memory_space<vmem>>, vector<1x96x64xbf16>
    %69 = vector.shape_cast %68 : vector<1x96x64xbf16> to vector<96x64xbf16>
    %cst_27 = arith.constant dense<0.000000e+00> : vector<16x64xf32>
    %70 = tpu.matmul %67, %69, %cst_27 {dimension_numbers = #tpu.dot_dimension_numbers<[1], [0], [0], [1], [0, 0, 1, 1], [], []>} : vector<16x96xbf16>, vector<96x64xbf16>, vector<16x64xf32> -> vector<16x64xf32>
    %71 = arith.addf %66, %70 : vector<16x64xf32>
    %cst_28 = arith.constant 0.000000e+00 : f32
    %72 = vector.broadcast %cst_28 : f32 to vector<16x64xf32>
    %73 = arith.maximumf %71, %72 : vector<16x64xf32>
    %74 = arith.truncf %73 : vector<16x64xf32> to vector<16x64xbf16>
    %c0_29 = arith.constant 0 : index
    %c0_30 = arith.constant 0 : index
    %c0_31 = arith.constant 0 : index
    %75 = vector.load %arg7[%c0_29, %c0_30, %c0_31] : memref<1x16x64xbf16, #tpu.memory_space<vmem>>, vector<1x16x64xbf16>
    %76 = vector.shape_cast %75 : vector<1x16x64xbf16> to vector<16x64xbf16>
    %77 = vector.shape_cast %74 : vector<16x64xbf16> to vector<1x16x64xbf16>
    tpu.vector_store %arg7[%c0_29, %c0_30, %c0_31], %77 {strides = array<i32>} : memref<1x16x64xbf16, #tpu.memory_space<vmem>>, vector<1x16x64xbf16>,
    return
  }
  func.func @transform_0(%arg0: i32, %arg1: i32) -> (i32, i32, i32, i32) {
    %c4_i32 = arith.constant 4 : i32
    %0 = arith.muli %arg1, %c4_i32 : i32
    %c1_i32 = arith.constant 1 : i32
    %1 = arith.subi %0, %c1_i32 : i32
    %c0_i32 = arith.constant 0 : i32
    %2 = arith.maxsi %1, %c0_i32 : i32
    %c0_i32_0 = arith.constant 0 : i32
    %c0_i32_1 = arith.constant 0 : i32
    %c0_i32_2 = arith.constant 0 : i32
    return %arg0, %2, %c0_i32_0, %c0_i32_1 : i32, i32, i32, i32
  }
  func.func @transform_1(%arg0: i32, %arg1: i32) -> (i32, i32, i32) {
    %c0_i32 = arith.constant 0 : i32
    %c0_i32_0 = arith.constant 0 : i32
    return %arg0, %arg1, %c0_i32 : i32, i32, i32
  }
  func.func @transform_2(%arg0: i32, %arg1: i32) -> (i32, i32, i32, i32) {
    %c1_i32 = arith.constant 1 : i32
    %0 = arith.addi %arg1, %c1_i32 : i32
    %c4_i32 = arith.constant 4 : i32
    %1 = arith.muli %0, %c4_i32 : i32
    %c3_i32 = arith.constant 3 : i32
    %2 = arith.minsi %1, %c3_i32 : i32
    %c0_i32 = arith.constant 0 : i32
    %c0_i32_0 = arith.constant 0 : i32
    %c0_i32_1 = arith.constant 0 : i32
    return %arg0, %2, %c0_i32, %c0_i32_0 : i32, i32, i32, i32
  }
  func.func @transform_3(%arg0: i32, %arg1: i32) -> (i32, i32, i32) {
    %c0_i32 = arith.constant 0 : i32
    %c0_i32_0 = arith.constant 0 : i32
    %c0_i32_1 = arith.constant 0 : i32
    %c0_i32_2 = arith.constant 0 : i32
    return %c0_i32, %c0_i32_0, %c0_i32_1 : i32, i32, i32
  }
  func.func @transform_4(%arg0: i32, %arg1: i32) -> (i32, i32) {
    %c0_i32 = arith.constant 0 : i32
    %c0_i32_0 = arith.constant 0 : i32
    %c0_i32_1 = arith.constant 0 : i32
    return %c0_i32, %c0_i32_0 : i32, i32
  }
  func.func @transform_5(%arg0: i32, %arg1: i32) -> (i32, i32, i32) {
    %c0_i32 = arith.constant 0 : i32
    %c0_i32_0 = arith.constant 0 : i32
    return %arg0, %arg1, %c0_i32 : i32, i32, i32
  }
}

module attributes {stable_mosaic.version = 11 : i64} {
  func.func @_conv3x3_kernel(%arg0: i32, %arg1: i32, %arg2: memref<1x1x8x64xbf16, #tpu.memory_space<vmem>>, %arg3: memref<1x64x64xbf16, #tpu.memory_space<vmem>>, %arg4: memref<1x1x8x64xbf16, #tpu.memory_space<vmem>>, %arg5: memref<3x192x64xbf16, #tpu.memory_space<vmem>>, %arg6: memref<1x64xf32, #tpu.memory_space<vmem>>, %arg7: memref<1x64x64xbf16, #tpu.memory_space<vmem>>) attributes {dimension_semantics = [#tpu.dimension_semantics<parallel>, #tpu.dimension_semantics<parallel>], iteration_bounds = array<i64: 2, 1>, scalar_prefetch = 0 : i64, scratch_operands = 0 : i64, tpu.core_type = #tpu.core_type<tc>, window_params = [{transform_indices = @transform_0, window_bounds = array<i64: 1, 1, 8, 64>}, {transform_indices = @transform_1, window_bounds = array<i64: 1, 64, 64>}, {transform_indices = @transform_2, window_bounds = array<i64: 1, 1, 8, 64>}, {pipeline_mode = #tpu.pipeline_mode<synchronous>, transform_indices = @transform_3, window_bounds = array<i64: 3, 192, 64>}, {pipeline_mode = #tpu.pipeline_mode<synchronous>, transform_indices = @transform_4, window_bounds = array<i64: 1, 64>}, {transform_indices = @transform_5, window_bounds = array<i64: 1, 64, 64>}]} {
    %c0 = arith.constant 0 : index
    %c0_0 = arith.constant 0 : index
    %c0_1 = arith.constant 0 : index
    %c0_2 = arith.constant 0 : index
    %0 = vector.load %arg2[%c0, %c0_0, %c0_1, %c0_2] : memref<1x1x8x64xbf16, #tpu.memory_space<vmem>>, vector<1x1x8x64xbf16>
    %1 = vector.shape_cast %0 : vector<1x1x8x64xbf16> to vector<8x64xbf16>
    %c0_i32 = arith.constant 0 : i32
    %2 = arith.cmpi sgt, %arg1, %c0_i32 : i32
    %3 = arith.extui %2 : i1 to i32
    %4 = arith.sitofp %3 : i32 to f32
    %5 = arith.truncf %4 : f32 to bf16
    %6 = vector.broadcast %5 : bf16 to vector<8x64xbf16>
    %7 = arith.mulf %1, %6 : vector<8x64xbf16>
    %c0_3 = arith.constant 0 : index
    %c0_4 = arith.constant 0 : index
    %c0_5 = arith.constant 0 : index
    %c0_6 = arith.constant 0 : index
    %8 = vector.load %arg4[%c0_3, %c0_4, %c0_5, %c0_6] : memref<1x1x8x64xbf16, #tpu.memory_space<vmem>>, vector<1x1x8x64xbf16>
    %9 = vector.shape_cast %8 : vector<1x1x8x64xbf16> to vector<8x64xbf16>
    %c0_i32_7 = arith.constant 0 : i32
    %10 = arith.cmpi slt, %arg1, %c0_i32_7 : i32
    %11 = arith.extui %10 : i1 to i32
    %12 = arith.sitofp %11 : i32 to f32
    %13 = arith.truncf %12 : f32 to bf16
    %14 = vector.broadcast %13 : bf16 to vector<8x64xbf16>
    %15 = arith.mulf %9, %14 : vector<8x64xbf16>
    %cst = arith.constant 0.000000e+00 : bf16
    %16 = vector.broadcast %cst : bf16 to vector<1x64xbf16>
    %c0_8 = arith.constant 0 : index
    %c0_9 = arith.constant 0 : index
    %c0_10 = arith.constant 0 : index
    %17 = vector.load %arg3[%c0_8, %c0_9, %c0_10] : memref<1x64x64xbf16, #tpu.memory_space<vmem>>, vector<1x64x64xbf16>
    %18 = vector.shape_cast %17 : vector<1x64x64xbf16> to vector<64x64xbf16>
    %19 = tpu.concatenate %16, %7, %18, %15, %16 in 0 : vector<1x64xbf16>, vector<8x64xbf16>, vector<64x64xbf16>, vector<8x64xbf16>, vector<1x64xbf16> -> vector<82x64xbf16>
    %20 = vector.extract_strided_slice %19 {offsets = [0, 0], sizes = [80, 64], strides = [1, 1]} : vector<82x64xbf16> to vector<80x64xbf16>
    %21 = vector.extract_strided_slice %19 {offsets = [1, 0], sizes = [80, 64], strides = [1, 1]} : vector<82x64xbf16> to vector<80x64xbf16>
    %22 = vector.extract_strided_slice %19 {offsets = [2, 0], sizes = [80, 64], strides = [1, 1]} : vector<82x64xbf16> to vector<80x64xbf16>
    %23 = tpu.iota {dimensions = array<i32: 0>} : vector<80x1xi32>
    %c8_i32 = arith.constant 8 : i32
    %c0_i32_11 = arith.constant 0 : i32
    %24 = arith.cmpi eq, %c8_i32, %c0_i32_11 : i32
    %c1_i32 = arith.constant 1 : i32
    %25 = arith.select %24, %c1_i32, %c8_i32 : i32
    %26 = vector.broadcast %25 : i32 to vector<80x1xi32>
    %27 = arith.remsi %23, %26 : vector<80x1xi32>
    %c0_i32_12 = arith.constant 0 : i32
    %28 = vector.broadcast %c0_i32_12 : i32 to vector<80x1xi32>
    %29 = arith.cmpi ne, %27, %28 : vector<80x1xi32>
    %c0_i32_13 = arith.constant 0 : i32
    %30 = vector.broadcast %c0_i32_13 : i32 to vector<80x1xi32>
    %31 = arith.cmpi slt, %27, %30 : vector<80x1xi32>
    %c0_i32_14 = arith.constant 0 : i32
    %32 = arith.cmpi slt, %25, %c0_i32_14 : i32
    %33 = vector.broadcast %32 : i1 to vector<80x1xi1>
    %34 = vector.broadcast %33 : vector<80x1xi1> to vector<80x1xi1>
    %35 = arith.xori %31, %34 : vector<80x1xi1>
    %36 = arith.andi %35, %29 : vector<80x1xi1>
    %37 = vector.broadcast %25 : i32 to vector<80x1xi32>
    %38 = arith.addi %27, %37 : vector<80x1xi32>
    %39 = arith.select %36, %38, %27 : vector<80x1xi1>, vector<80x1xi32>
    %c0_i32_15 = arith.constant 0 : i32
    %40 = vector.broadcast %c0_i32_15 : i32 to vector<80x1xi32>
    %41 = arith.cmpi ne, %39, %40 : vector<80x1xi32>
    %42 = arith.extui %41 : vector<80x1xi1> to vector<80x1xi32>
    %43 = arith.sitofp %42 : vector<80x1xi32> to vector<80x1xf32>
    %44 = arith.truncf %43 : vector<80x1xf32> to vector<80x1xbf16>
    %45 = vector.broadcast %44 : vector<80x1xbf16> to vector<80x64xbf16>
    %46 = arith.mulf %20, %45 : vector<80x64xbf16>
    %c7_i32 = arith.constant 7 : i32
    %47 = vector.broadcast %c7_i32 : i32 to vector<80x1xi32>
    %48 = arith.cmpi ne, %39, %47 : vector<80x1xi32>
    %49 = arith.extui %48 : vector<80x1xi1> to vector<80x1xi32>
    %50 = arith.sitofp %49 : vector<80x1xi32> to vector<80x1xf32>
    %51 = arith.truncf %50 : vector<80x1xf32> to vector<80x1xbf16>
    %52 = vector.broadcast %51 : vector<80x1xbf16> to vector<80x64xbf16>
    %53 = arith.mulf %22, %52 : vector<80x64xbf16>
    %54 = tpu.concatenate %46, %21, %53 in 1 : vector<80x64xbf16>, vector<80x64xbf16>, vector<80x64xbf16> -> vector<80x192xbf16>
    %c0_16 = arith.constant 0 : index
    %c0_17 = arith.constant 0 : index
    %55 = vector.load %arg6[%c0_16, %c0_17] : memref<1x64xf32, #tpu.memory_space<vmem>>, vector<1x64xf32>
    %56 = vector.extract_strided_slice %54 {offsets = [0, 0], sizes = [64, 192], strides = [1, 1]} : vector<80x192xbf16> to vector<64x192xbf16>
    %c0_18 = arith.constant 0 : index
    %c0_19 = arith.constant 0 : index
    %c0_20 = arith.constant 0 : index
    %57 = vector.load %arg5[%c0_18, %c0_19, %c0_20] : memref<3x192x64xbf16, #tpu.memory_space<vmem>>, vector<1x192x64xbf16>
    %58 = vector.shape_cast %57 : vector<1x192x64xbf16> to vector<192x64xbf16>
    %cst_21 = arith.constant dense<0.000000e+00> : vector<64x64xf32>
    %59 = tpu.matmul %56, %58, %cst_21 {dimension_numbers = #tpu.dot_dimension_numbers<[1], [0], [0], [1], [0, 0, 1, 1], [], []>} : vector<64x192xbf16>, vector<192x64xbf16>, vector<64x64xf32> -> vector<64x64xf32>
    %60 = vector.broadcast %55 : vector<1x64xf32> to vector<64x64xf32>
    %61 = arith.addf %60, %59 : vector<64x64xf32>
    %62 = vector.extract_strided_slice %54 {offsets = [8, 0], sizes = [64, 192], strides = [1, 1]} : vector<80x192xbf16> to vector<64x192xbf16>
    %c1 = arith.constant 1 : index
    %c0_22 = arith.constant 0 : index
    %c0_23 = arith.constant 0 : index
    %63 = vector.load %arg5[%c1, %c0_22, %c0_23] : memref<3x192x64xbf16, #tpu.memory_space<vmem>>, vector<1x192x64xbf16>
    %64 = vector.shape_cast %63 : vector<1x192x64xbf16> to vector<192x64xbf16>
    %cst_24 = arith.constant dense<0.000000e+00> : vector<64x64xf32>
    %65 = tpu.matmul %62, %64, %cst_24 {dimension_numbers = #tpu.dot_dimension_numbers<[1], [0], [0], [1], [0, 0, 1, 1], [], []>} : vector<64x192xbf16>, vector<192x64xbf16>, vector<64x64xf32> -> vector<64x64xf32>
    %66 = arith.addf %61, %65 : vector<64x64xf32>
    %67 = vector.extract_strided_slice %54 {offsets = [16, 0], sizes = [64, 192], strides = [1, 1]} : vector<80x192xbf16> to vector<64x192xbf16>
    %c2 = arith.constant 2 : index
    %c0_25 = arith.constant 0 : index
    %c0_26 = arith.constant 0 : index
    %68 = vector.load %arg5[%c2, %c0_25, %c0_26] : memref<3x192x64xbf16, #tpu.memory_space<vmem>>, vector<1x192x64xbf16>
    %69 = vector.shape_cast %68 : vector<1x192x64xbf16> to vector<192x64xbf16>
    %cst_27 = arith.constant dense<0.000000e+00> : vector<64x64xf32>
    %70 = tpu.matmul %67, %69, %cst_27 {dimension_numbers = #tpu.dot_dimension_numbers<[1], [0], [0], [1], [0, 0, 1, 1], [], []>} : vector<64x192xbf16>, vector<192x64xbf16>, vector<64x64xf32> -> vector<64x64xf32>
    %71 = arith.addf %66, %70 : vector<64x64xf32>
    %cst_28 = arith.constant 0.000000e+00 : f32
    %72 = vector.broadcast %cst_28 : f32 to vector<64x64xf32>
    %73 = arith.maximumf %71, %72 : vector<64x64xf32>
    %74 = arith.truncf %73 : vector<64x64xf32> to vector<64x64xbf16>
    %c0_29 = arith.constant 0 : index
    %c0_30 = arith.constant 0 : index
    %c0_31 = arith.constant 0 : index
    %75 = vector.load %arg7[%c0_29, %c0_30, %c0_31] : memref<1x64x64xbf16, #tpu.memory_space<vmem>>, vector<1x64x64xbf16>
    %76 = vector.shape_cast %75 : vector<1x64x64xbf16> to vector<64x64xbf16>
    %77 = vector.shape_cast %74 : vector<64x64xbf16> to vector<1x64x64xbf16>
    tpu.vector_store %arg7[%c0_29, %c0_30, %c0_31], %77 {strides = array<i32>} : memref<1x64x64xbf16, #tpu.memory_space<vmem>>, vector<1x64x64xbf16>,
    return
  }
  func.func @transform_0(%arg0: i32, %arg1: i32) -> (i32, i32, i32, i32) {
    %c8_i32 = arith.constant 8 : i32
    %0 = arith.muli %arg1, %c8_i32 : i32
    %c1_i32 = arith.constant 1 : i32
    %1 = arith.subi %0, %c1_i32 : i32
    %c0_i32 = arith.constant 0 : i32
    %2 = arith.maxsi %1, %c0_i32 : i32
    %c0_i32_0 = arith.constant 0 : i32
    %c0_i32_1 = arith.constant 0 : i32
    %c0_i32_2 = arith.constant 0 : i32
    return %arg0, %2, %c0_i32_0, %c0_i32_1 : i32, i32, i32, i32
  }
  func.func @transform_1(%arg0: i32, %arg1: i32) -> (i32, i32, i32) {
    %c0_i32 = arith.constant 0 : i32
    %c0_i32_0 = arith.constant 0 : i32
    return %arg0, %arg1, %c0_i32 : i32, i32, i32
  }
  func.func @transform_2(%arg0: i32, %arg1: i32) -> (i32, i32, i32, i32) {
    %c1_i32 = arith.constant 1 : i32
    %0 = arith.addi %arg1, %c1_i32 : i32
    %c8_i32 = arith.constant 8 : i32
    %1 = arith.muli %0, %c8_i32 : i32
    %c7_i32 = arith.constant 7 : i32
    %2 = arith.minsi %1, %c7_i32 : i32
    %c0_i32 = arith.constant 0 : i32
    %c0_i32_0 = arith.constant 0 : i32
    %c0_i32_1 = arith.constant 0 : i32
    return %arg0, %2, %c0_i32, %c0_i32_0 : i32, i32, i32, i32
  }
  func.func @transform_3(%arg0: i32, %arg1: i32) -> (i32, i32, i32) {
    %c0_i32 = arith.constant 0 : i32
    %c0_i32_0 = arith.constant 0 : i32
    %c0_i32_1 = arith.constant 0 : i32
    %c0_i32_2 = arith.constant 0 : i32
    return %c0_i32, %c0_i32_0, %c0_i32_1 : i32, i32, i32
  }
  func.func @transform_4(%arg0: i32, %arg1: i32) -> (i32, i32) {
    %c0_i32 = arith.constant 0 : i32
    %c0_i32_0 = arith.constant 0 : i32
    %c0_i32_1 = arith.constant 0 : i32
    return %c0_i32, %c0_i32_0 : i32, i32
  }
  func.func @transform_5(%arg0: i32, %arg1: i32) -> (i32, i32, i32) {
    %c0_i32 = arith.constant 0 : i32
    %c0_i32_0 = arith.constant 0 : i32
    return %arg0, %arg1, %c0_i32 : i32, i32, i32
  }
}

module attributes {stable_mosaic.version = 11 : i64} {
  func.func @_conv3x3_kernel(%arg0: i32, %arg1: i32, %arg2: memref<1x1x16x64xbf16, #tpu.memory_space<vmem>>, %arg3: memref<1x256x64xbf16, #tpu.memory_space<vmem>>, %arg4: memref<1x1x16x64xbf16, #tpu.memory_space<vmem>>, %arg5: memref<3x192x64xbf16, #tpu.memory_space<vmem>>, %arg6: memref<1x64xf32, #tpu.memory_space<vmem>>, %arg7: memref<1x256x64xbf16, #tpu.memory_space<vmem>>) attributes {dimension_semantics = [#tpu.dimension_semantics<parallel>, #tpu.dimension_semantics<parallel>], iteration_bounds = array<i64: 2, 1>, scalar_prefetch = 0 : i64, scratch_operands = 0 : i64, tpu.core_type = #tpu.core_type<tc>, window_params = [{transform_indices = @transform_0, window_bounds = array<i64: 1, 1, 16, 64>}, {transform_indices = @transform_1, window_bounds = array<i64: 1, 256, 64>}, {transform_indices = @transform_2, window_bounds = array<i64: 1, 1, 16, 64>}, {pipeline_mode = #tpu.pipeline_mode<synchronous>, transform_indices = @transform_3, window_bounds = array<i64: 3, 192, 64>}, {pipeline_mode = #tpu.pipeline_mode<synchronous>, transform_indices = @transform_4, window_bounds = array<i64: 1, 64>}, {transform_indices = @transform_5, window_bounds = array<i64: 1, 256, 64>}]} {
    %c0 = arith.constant 0 : index
    %c0_0 = arith.constant 0 : index
    %c0_1 = arith.constant 0 : index
    %c0_2 = arith.constant 0 : index
    %0 = vector.load %arg2[%c0, %c0_0, %c0_1, %c0_2] : memref<1x1x16x64xbf16, #tpu.memory_space<vmem>>, vector<1x1x16x64xbf16>
    %1 = vector.shape_cast %0 : vector<1x1x16x64xbf16> to vector<16x64xbf16>
    %c0_i32 = arith.constant 0 : i32
    %2 = arith.cmpi sgt, %arg1, %c0_i32 : i32
    %3 = arith.extui %2 : i1 to i32
    %4 = arith.sitofp %3 : i32 to f32
    %5 = arith.truncf %4 : f32 to bf16
    %6 = vector.broadcast %5 : bf16 to vector<16x64xbf16>
    %7 = arith.mulf %1, %6 : vector<16x64xbf16>
    %c0_3 = arith.constant 0 : index
    %c0_4 = arith.constant 0 : index
    %c0_5 = arith.constant 0 : index
    %c0_6 = arith.constant 0 : index
    %8 = vector.load %arg4[%c0_3, %c0_4, %c0_5, %c0_6] : memref<1x1x16x64xbf16, #tpu.memory_space<vmem>>, vector<1x1x16x64xbf16>
    %9 = vector.shape_cast %8 : vector<1x1x16x64xbf16> to vector<16x64xbf16>
    %c0_i32_7 = arith.constant 0 : i32
    %10 = arith.cmpi slt, %arg1, %c0_i32_7 : i32
    %11 = arith.extui %10 : i1 to i32
    %12 = arith.sitofp %11 : i32 to f32
    %13 = arith.truncf %12 : f32 to bf16
    %14 = vector.broadcast %13 : bf16 to vector<16x64xbf16>
    %15 = arith.mulf %9, %14 : vector<16x64xbf16>
    %cst = arith.constant 0.000000e+00 : bf16
    %16 = vector.broadcast %cst : bf16 to vector<1x64xbf16>
    %c0_8 = arith.constant 0 : index
    %c0_9 = arith.constant 0 : index
    %c0_10 = arith.constant 0 : index
    %17 = vector.load %arg3[%c0_8, %c0_9, %c0_10] : memref<1x256x64xbf16, #tpu.memory_space<vmem>>, vector<1x256x64xbf16>
    %18 = vector.shape_cast %17 : vector<1x256x64xbf16> to vector<256x64xbf16>
    %19 = tpu.concatenate %16, %7, %18, %15, %16 in 0 : vector<1x64xbf16>, vector<16x64xbf16>, vector<256x64xbf16>, vector<16x64xbf16>, vector<1x64xbf16> -> vector<290x64xbf16>
    %20 = vector.extract_strided_slice %19 {offsets = [0, 0], sizes = [288, 64], strides = [1, 1]} : vector<290x64xbf16> to vector<288x64xbf16>
    %21 = vector.extract_strided_slice %19 {offsets = [1, 0], sizes = [288, 64], strides = [1, 1]} : vector<290x64xbf16> to vector<288x64xbf16>
    %22 = vector.extract_strided_slice %19 {offsets = [2, 0], sizes = [288, 64], strides = [1, 1]} : vector<290x64xbf16> to vector<288x64xbf16>
    %23 = tpu.iota {dimensions = array<i32: 0>} : vector<288x1xi32>
    %c16_i32 = arith.constant 16 : i32
    %c0_i32_11 = arith.constant 0 : i32
    %24 = arith.cmpi eq, %c16_i32, %c0_i32_11 : i32
    %c1_i32 = arith.constant 1 : i32
    %25 = arith.select %24, %c1_i32, %c16_i32 : i32
    %26 = vector.broadcast %25 : i32 to vector<288x1xi32>
    %27 = arith.remsi %23, %26 : vector<288x1xi32>
    %c0_i32_12 = arith.constant 0 : i32
    %28 = vector.broadcast %c0_i32_12 : i32 to vector<288x1xi32>
    %29 = arith.cmpi ne, %27, %28 : vector<288x1xi32>
    %c0_i32_13 = arith.constant 0 : i32
    %30 = vector.broadcast %c0_i32_13 : i32 to vector<288x1xi32>
    %31 = arith.cmpi slt, %27, %30 : vector<288x1xi32>
    %c0_i32_14 = arith.constant 0 : i32
    %32 = arith.cmpi slt, %25, %c0_i32_14 : i32
    %33 = vector.broadcast %32 : i1 to vector<288x1xi1>
    %34 = vector.broadcast %33 : vector<288x1xi1> to vector<288x1xi1>
    %35 = arith.xori %31, %34 : vector<288x1xi1>
    %36 = arith.andi %35, %29 : vector<288x1xi1>
    %37 = vector.broadcast %25 : i32 to vector<288x1xi32>
    %38 = arith.addi %27, %37 : vector<288x1xi32>
    %39 = arith.select %36, %38, %27 : vector<288x1xi1>, vector<288x1xi32>
    %c0_i32_15 = arith.constant 0 : i32
    %40 = vector.broadcast %c0_i32_15 : i32 to vector<288x1xi32>
    %41 = arith.cmpi ne, %39, %40 : vector<288x1xi32>
    %42 = arith.extui %41 : vector<288x1xi1> to vector<288x1xi32>
    %43 = arith.sitofp %42 : vector<288x1xi32> to vector<288x1xf32>
    %44 = arith.truncf %43 : vector<288x1xf32> to vector<288x1xbf16>
    %45 = vector.broadcast %44 : vector<288x1xbf16> to vector<288x64xbf16>
    %46 = arith.mulf %20, %45 : vector<288x64xbf16>
    %c15_i32 = arith.constant 15 : i32
    %47 = vector.broadcast %c15_i32 : i32 to vector<288x1xi32>
    %48 = arith.cmpi ne, %39, %47 : vector<288x1xi32>
    %49 = arith.extui %48 : vector<288x1xi1> to vector<288x1xi32>
    %50 = arith.sitofp %49 : vector<288x1xi32> to vector<288x1xf32>
    %51 = arith.truncf %50 : vector<288x1xf32> to vector<288x1xbf16>
    %52 = vector.broadcast %51 : vector<288x1xbf16> to vector<288x64xbf16>
    %53 = arith.mulf %22, %52 : vector<288x64xbf16>
    %54 = tpu.concatenate %46, %21, %53 in 1 : vector<288x64xbf16>, vector<288x64xbf16>, vector<288x64xbf16> -> vector<288x192xbf16>
    %c0_16 = arith.constant 0 : index
    %c0_17 = arith.constant 0 : index
    %55 = vector.load %arg6[%c0_16, %c0_17] : memref<1x64xf32, #tpu.memory_space<vmem>>, vector<1x64xf32>
    %56 = vector.extract_strided_slice %54 {offsets = [0, 0], sizes = [256, 192], strides = [1, 1]} : vector<288x192xbf16> to vector<256x192xbf16>
    %c0_18 = arith.constant 0 : index
    %c0_19 = arith.constant 0 : index
    %c0_20 = arith.constant 0 : index
    %57 = vector.load %arg5[%c0_18, %c0_19, %c0_20] : memref<3x192x64xbf16, #tpu.memory_space<vmem>>, vector<1x192x64xbf16>
    %58 = vector.shape_cast %57 : vector<1x192x64xbf16> to vector<192x64xbf16>
    %cst_21 = arith.constant dense<0.000000e+00> : vector<256x64xf32>
    %59 = tpu.matmul %56, %58, %cst_21 {dimension_numbers = #tpu.dot_dimension_numbers<[1], [0], [0], [1], [0, 0, 1, 1], [], []>} : vector<256x192xbf16>, vector<192x64xbf16>, vector<256x64xf32> -> vector<256x64xf32>
    %60 = vector.broadcast %55 : vector<1x64xf32> to vector<256x64xf32>
    %61 = arith.addf %60, %59 : vector<256x64xf32>
    %62 = vector.extract_strided_slice %54 {offsets = [16, 0], sizes = [256, 192], strides = [1, 1]} : vector<288x192xbf16> to vector<256x192xbf16>
    %c1 = arith.constant 1 : index
    %c0_22 = arith.constant 0 : index
    %c0_23 = arith.constant 0 : index
    %63 = vector.load %arg5[%c1, %c0_22, %c0_23] : memref<3x192x64xbf16, #tpu.memory_space<vmem>>, vector<1x192x64xbf16>
    %64 = vector.shape_cast %63 : vector<1x192x64xbf16> to vector<192x64xbf16>
    %cst_24 = arith.constant dense<0.000000e+00> : vector<256x64xf32>
    %65 = tpu.matmul %62, %64, %cst_24 {dimension_numbers = #tpu.dot_dimension_numbers<[1], [0], [0], [1], [0, 0, 1, 1], [], []>} : vector<256x192xbf16>, vector<192x64xbf16>, vector<256x64xf32> -> vector<256x64xf32>
    %66 = arith.addf %61, %65 : vector<256x64xf32>
    %67 = vector.extract_strided_slice %54 {offsets = [32, 0], sizes = [256, 192], strides = [1, 1]} : vector<288x192xbf16> to vector<256x192xbf16>
    %c2 = arith.constant 2 : index
    %c0_25 = arith.constant 0 : index
    %c0_26 = arith.constant 0 : index
    %68 = vector.load %arg5[%c2, %c0_25, %c0_26] : memref<3x192x64xbf16, #tpu.memory_space<vmem>>, vector<1x192x64xbf16>
    %69 = vector.shape_cast %68 : vector<1x192x64xbf16> to vector<192x64xbf16>
    %cst_27 = arith.constant dense<0.000000e+00> : vector<256x64xf32>
    %70 = tpu.matmul %67, %69, %cst_27 {dimension_numbers = #tpu.dot_dimension_numbers<[1], [0], [0], [1], [0, 0, 1, 1], [], []>} : vector<256x192xbf16>, vector<192x64xbf16>, vector<256x64xf32> -> vector<256x64xf32>
    %71 = arith.addf %66, %70 : vector<256x64xf32>
    %cst_28 = arith.constant 0.000000e+00 : f32
    %72 = vector.broadcast %cst_28 : f32 to vector<256x64xf32>
    %73 = arith.maximumf %71, %72 : vector<256x64xf32>
    %74 = arith.truncf %73 : vector<256x64xf32> to vector<256x64xbf16>
    %c0_29 = arith.constant 0 : index
    %c0_30 = arith.constant 0 : index
    %c0_31 = arith.constant 0 : index
    %75 = vector.load %arg7[%c0_29, %c0_30, %c0_31] : memref<1x256x64xbf16, #tpu.memory_space<vmem>>, vector<1x256x64xbf16>
    %76 = vector.shape_cast %75 : vector<1x256x64xbf16> to vector<256x64xbf16>
    %77 = vector.shape_cast %74 : vector<256x64xbf16> to vector<1x256x64xbf16>
    tpu.vector_store %arg7[%c0_29, %c0_30, %c0_31], %77 {strides = array<i32>} : memref<1x256x64xbf16, #tpu.memory_space<vmem>>, vector<1x256x64xbf16>,
    return
  }
  func.func @transform_0(%arg0: i32, %arg1: i32) -> (i32, i32, i32, i32) {
    %c16_i32 = arith.constant 16 : i32
    %0 = arith.muli %arg1, %c16_i32 : i32
    %c1_i32 = arith.constant 1 : i32
    %1 = arith.subi %0, %c1_i32 : i32
    %c0_i32 = arith.constant 0 : i32
    %2 = arith.maxsi %1, %c0_i32 : i32
    %c0_i32_0 = arith.constant 0 : i32
    %c0_i32_1 = arith.constant 0 : i32
    %c0_i32_2 = arith.constant 0 : i32
    return %arg0, %2, %c0_i32_0, %c0_i32_1 : i32, i32, i32, i32
  }
  func.func @transform_1(%arg0: i32, %arg1: i32) -> (i32, i32, i32) {
    %c0_i32 = arith.constant 0 : i32
    %c0_i32_0 = arith.constant 0 : i32
    return %arg0, %arg1, %c0_i32 : i32, i32, i32
  }
  func.func @transform_2(%arg0: i32, %arg1: i32) -> (i32, i32, i32, i32) {
    %c1_i32 = arith.constant 1 : i32
    %0 = arith.addi %arg1, %c1_i32 : i32
    %c16_i32 = arith.constant 16 : i32
    %1 = arith.muli %0, %c16_i32 : i32
    %c15_i32 = arith.constant 15 : i32
    %2 = arith.minsi %1, %c15_i32 : i32
    %c0_i32 = arith.constant 0 : i32
    %c0_i32_0 = arith.constant 0 : i32
    %c0_i32_1 = arith.constant 0 : i32
    return %arg0, %2, %c0_i32, %c0_i32_0 : i32, i32, i32, i32
  }
  func.func @transform_3(%arg0: i32, %arg1: i32) -> (i32, i32, i32) {
    %c0_i32 = arith.constant 0 : i32
    %c0_i32_0 = arith.constant 0 : i32
    %c0_i32_1 = arith.constant 0 : i32
    %c0_i32_2 = arith.constant 0 : i32
    return %c0_i32, %c0_i32_0, %c0_i32_1 : i32, i32, i32
  }
  func.func @transform_4(%arg0: i32, %arg1: i32) -> (i32, i32) {
    %c0_i32 = arith.constant 0 : i32
    %c0_i32_0 = arith.constant 0 : i32
    %c0_i32_1 = arith.constant 0 : i32
    return %c0_i32, %c0_i32_0 : i32, i32
  }
  func.func @transform_5(%arg0: i32, %arg1: i32) -> (i32, i32, i32) {
    %c0_i32 = arith.constant 0 : i32
    %c0_i32_0 = arith.constant 0 : i32
    return %arg0, %arg1, %c0_i32 : i32, i32, i32
  }
}

module attributes {stable_mosaic.version = 11 : i64} {
  func.func @_conv3x3_relu_1x1_kernel(%arg0: i32, %arg1: i32, %arg2: memref<1x1x32x64xbf16, #tpu.memory_space<vmem>>, %arg3: memref<1x1024x64xbf16, #tpu.memory_space<vmem>>, %arg4: memref<1x1x32x64xbf16, #tpu.memory_space<vmem>>, %arg5: memref<3x192x64xbf16, #tpu.memory_space<vmem>>, %arg6: memref<1x64xf32, #tpu.memory_space<vmem>>, %arg7: memref<1x64xbf16, #tpu.memory_space<vmem>>, %arg8: memref<1x1xf32, #tpu.memory_space<vmem>>, %arg9: memref<1x1x1024xf32, #tpu.memory_space<vmem>>) attributes {dimension_semantics = [#tpu.dimension_semantics<parallel>, #tpu.dimension_semantics<parallel>], iteration_bounds = array<i64: 2, 1>, scalar_prefetch = 0 : i64, scratch_operands = 0 : i64, tpu.core_type = #tpu.core_type<tc>, window_params = [{transform_indices = @transform_0, window_bounds = array<i64: 1, 1, 32, 64>}, {transform_indices = @transform_1, window_bounds = array<i64: 1, 1024, 64>}, {transform_indices = @transform_2, window_bounds = array<i64: 1, 1, 32, 64>}, {pipeline_mode = #tpu.pipeline_mode<synchronous>, transform_indices = @transform_3, window_bounds = array<i64: 3, 192, 64>}, {pipeline_mode = #tpu.pipeline_mode<synchronous>, transform_indices = @transform_4, window_bounds = array<i64: 1, 64>}, {pipeline_mode = #tpu.pipeline_mode<synchronous>, transform_indices = @transform_5, window_bounds = array<i64: 1, 64>}, {pipeline_mode = #tpu.pipeline_mode<synchronous>, transform_indices = @transform_6, window_bounds = array<i64: 1, 1>}, {transform_indices = @transform_7, window_bounds = array<i64: 1, 1, 1024>}]} {
    %c0 = arith.constant 0 : index
    %c0_0 = arith.constant 0 : index
    %c0_1 = arith.constant 0 : index
    %c0_2 = arith.constant 0 : index
    %0 = vector.load %arg2[%c0, %c0_0, %c0_1, %c0_2] : memref<1x1x32x64xbf16, #tpu.memory_space<vmem>>, vector<1x1x32x64xbf16>
    %1 = vector.shape_cast %0 : vector<1x1x32x64xbf16> to vector<32x64xbf16>
    %c0_i32 = arith.constant 0 : i32
    %2 = arith.cmpi sgt, %arg1, %c0_i32 : i32
    %3 = arith.extui %2 : i1 to i32
    %4 = arith.sitofp %3 : i32 to f32
    %5 = arith.truncf %4 : f32 to bf16
    %6 = vector.broadcast %5 : bf16 to vector<32x64xbf16>
    %7 = arith.mulf %1, %6 : vector<32x64xbf16>
    %c0_3 = arith.constant 0 : index
    %c0_4 = arith.constant 0 : index
    %c0_5 = arith.constant 0 : index
    %c0_6 = arith.constant 0 : index
    %8 = vector.load %arg4[%c0_3, %c0_4, %c0_5, %c0_6] : memref<1x1x32x64xbf16, #tpu.memory_space<vmem>>, vector<1x1x32x64xbf16>
    %9 = vector.shape_cast %8 : vector<1x1x32x64xbf16> to vector<32x64xbf16>
    %c0_i32_7 = arith.constant 0 : i32
    %10 = arith.cmpi slt, %arg1, %c0_i32_7 : i32
    %11 = arith.extui %10 : i1 to i32
    %12 = arith.sitofp %11 : i32 to f32
    %13 = arith.truncf %12 : f32 to bf16
    %14 = vector.broadcast %13 : bf16 to vector<32x64xbf16>
    %15 = arith.mulf %9, %14 : vector<32x64xbf16>
    %cst = arith.constant 0.000000e+00 : bf16
    %16 = vector.broadcast %cst : bf16 to vector<1x64xbf16>
    %c0_8 = arith.constant 0 : index
    %c0_9 = arith.constant 0 : index
    %c0_10 = arith.constant 0 : index
    %17 = vector.load %arg3[%c0_8, %c0_9, %c0_10] : memref<1x1024x64xbf16, #tpu.memory_space<vmem>>, vector<1x1024x64xbf16>
    %18 = vector.shape_cast %17 : vector<1x1024x64xbf16> to vector<1024x64xbf16>
    %19 = tpu.concatenate %16, %7, %18, %15, %16 in 0 : vector<1x64xbf16>, vector<32x64xbf16>, vector<1024x64xbf16>, vector<32x64xbf16>, vector<1x64xbf16> -> vector<1090x64xbf16>
    %20 = vector.extract_strided_slice %19 {offsets = [0, 0], sizes = [1088, 64], strides = [1, 1]} : vector<1090x64xbf16> to vector<1088x64xbf16>
    %21 = vector.extract_strided_slice %19 {offsets = [1, 0], sizes = [1088, 64], strides = [1, 1]} : vector<1090x64xbf16> to vector<1088x64xbf16>
    %22 = vector.extract_strided_slice %19 {offsets = [2, 0], sizes = [1088, 64], strides = [1, 1]} : vector<1090x64xbf16> to vector<1088x64xbf16>
    %23 = tpu.iota {dimensions = array<i32: 0>} : vector<1088x1xi32>
    %c32_i32 = arith.constant 32 : i32
    %c0_i32_11 = arith.constant 0 : i32
    %24 = arith.cmpi eq, %c32_i32, %c0_i32_11 : i32
    %c1_i32 = arith.constant 1 : i32
    %25 = arith.select %24, %c1_i32, %c32_i32 : i32
    %26 = vector.broadcast %25 : i32 to vector<1088x1xi32>
    %27 = arith.remsi %23, %26 : vector<1088x1xi32>
    %c0_i32_12 = arith.constant 0 : i32
    %28 = vector.broadcast %c0_i32_12 : i32 to vector<1088x1xi32>
    %29 = arith.cmpi ne, %27, %28 : vector<1088x1xi32>
    %c0_i32_13 = arith.constant 0 : i32
    %30 = vector.broadcast %c0_i32_13 : i32 to vector<1088x1xi32>
    %31 = arith.cmpi slt, %27, %30 : vector<1088x1xi32>
    %c0_i32_14 = arith.constant 0 : i32
    %32 = arith.cmpi slt, %25, %c0_i32_14 : i32
    %33 = vector.broadcast %32 : i1 to vector<1088x1xi1>
    %34 = vector.broadcast %33 : vector<1088x1xi1> to vector<1088x1xi1>
    %35 = arith.xori %31, %34 : vector<1088x1xi1>
    %36 = arith.andi %35, %29 : vector<1088x1xi1>
    %37 = vector.broadcast %25 : i32 to vector<1088x1xi32>
    %38 = arith.addi %27, %37 : vector<1088x1xi32>
    %39 = arith.select %36, %38, %27 : vector<1088x1xi1>, vector<1088x1xi32>
    %c0_i32_15 = arith.constant 0 : i32
    %40 = vector.broadcast %c0_i32_15 : i32 to vector<1088x1xi32>
    %41 = arith.cmpi ne, %39, %40 : vector<1088x1xi32>
    %42 = arith.extui %41 : vector<1088x1xi1> to vector<1088x1xi32>
    %43 = arith.sitofp %42 : vector<1088x1xi32> to vector<1088x1xf32>
    %44 = arith.truncf %43 : vector<1088x1xf32> to vector<1088x1xbf16>
    %45 = vector.broadcast %44 : vector<1088x1xbf16> to vector<1088x64xbf16>
    %46 = arith.mulf %20, %45 : vector<1088x64xbf16>
    %c31_i32 = arith.constant 31 : i32
    %47 = vector.broadcast %c31_i32 : i32 to vector<1088x1xi32>
    %48 = arith.cmpi ne, %39, %47 : vector<1088x1xi32>
    %49 = arith.extui %48 : vector<1088x1xi1> to vector<1088x1xi32>
    %50 = arith.sitofp %49 : vector<1088x1xi32> to vector<1088x1xf32>
    %51 = arith.truncf %50 : vector<1088x1xf32> to vector<1088x1xbf16>
    %52 = vector.broadcast %51 : vector<1088x1xbf16> to vector<1088x64xbf16>
    %53 = arith.mulf %22, %52 : vector<1088x64xbf16>
    %54 = tpu.concatenate %46, %21, %53 in 1 : vector<1088x64xbf16>, vector<1088x64xbf16>, vector<1088x64xbf16> -> vector<1088x192xbf16>
    %c0_16 = arith.constant 0 : index
    %c0_17 = arith.constant 0 : index
    %55 = vector.load %arg6[%c0_16, %c0_17] : memref<1x64xf32, #tpu.memory_space<vmem>>, vector<1x64xf32>
    %56 = vector.extract_strided_slice %54 {offsets = [0, 0], sizes = [1024, 192], strides = [1, 1]} : vector<1088x192xbf16> to vector<1024x192xbf16>
    %c0_18 = arith.constant 0 : index
    %c0_19 = arith.constant 0 : index
    %c0_20 = arith.constant 0 : index
    %57 = vector.load %arg5[%c0_18, %c0_19, %c0_20] : memref<3x192x64xbf16, #tpu.memory_space<vmem>>, vector<1x192x64xbf16>
    %58 = vector.shape_cast %57 : vector<1x192x64xbf16> to vector<192x64xbf16>
    %cst_21 = arith.constant dense<0.000000e+00> : vector<1024x64xf32>
    %59 = tpu.matmul %56, %58, %cst_21 {dimension_numbers = #tpu.dot_dimension_numbers<[1], [0], [0], [1], [0, 0, 1, 1], [], []>} : vector<1024x192xbf16>, vector<192x64xbf16>, vector<1024x64xf32> -> vector<1024x64xf32>
    %60 = vector.broadcast %55 : vector<1x64xf32> to vector<1024x64xf32>
    %61 = arith.addf %60, %59 : vector<1024x64xf32>
    %62 = vector.extract_strided_slice %54 {offsets = [32, 0], sizes = [1024, 192], strides = [1, 1]} : vector<1088x192xbf16> to vector<1024x192xbf16>
    %c1 = arith.constant 1 : index
    %c0_22 = arith.constant 0 : index
    %c0_23 = arith.constant 0 : index
    %63 = vector.load %arg5[%c1, %c0_22, %c0_23] : memref<3x192x64xbf16, #tpu.memory_space<vmem>>, vector<1x192x64xbf16>
    %64 = vector.shape_cast %63 : vector<1x192x64xbf16> to vector<192x64xbf16>
    %cst_24 = arith.constant dense<0.000000e+00> : vector<1024x64xf32>
    %65 = tpu.matmul %62, %64, %cst_24 {dimension_numbers = #tpu.dot_dimension_numbers<[1], [0], [0], [1], [0, 0, 1, 1], [], []>} : vector<1024x192xbf16>, vector<192x64xbf16>, vector<1024x64xf32> -> vector<1024x64xf32>
    %66 = arith.addf %61, %65 : vector<1024x64xf32>
    %67 = vector.extract_strided_slice %54 {offsets = [64, 0], sizes = [1024, 192], strides = [1, 1]} : vector<1088x192xbf16> to vector<1024x192xbf16>
    %c2 = arith.constant 2 : index
    %c0_25 = arith.constant 0 : index
    %c0_26 = arith.constant 0 : index
    %68 = vector.load %arg5[%c2, %c0_25, %c0_26] : memref<3x192x64xbf16, #tpu.memory_space<vmem>>, vector<1x192x64xbf16>
    %69 = vector.shape_cast %68 : vector<1x192x64xbf16> to vector<192x64xbf16>
    %cst_27 = arith.constant dense<0.000000e+00> : vector<1024x64xf32>
    %70 = tpu.matmul %67, %69, %cst_27 {dimension_numbers = #tpu.dot_dimension_numbers<[1], [0], [0], [1], [0, 0, 1, 1], [], []>} : vector<1024x192xbf16>, vector<192x64xbf16>, vector<1024x64xf32> -> vector<1024x64xf32>
    %71 = arith.addf %66, %70 : vector<1024x64xf32>
    %cst_28 = arith.constant 0.000000e+00 : f32
    %72 = vector.broadcast %cst_28 : f32 to vector<1024x64xf32>
    %73 = arith.maximumf %71, %72 : vector<1024x64xf32>
    %74 = arith.truncf %73 : vector<1024x64xf32> to vector<1024x64xbf16>
    %c0_29 = arith.constant 0 : index
    %c0_30 = arith.constant 0 : index
    %75 = vector.load %arg7[%c0_29, %c0_30] : memref<1x64xbf16, #tpu.memory_space<vmem>>, vector<1x64xbf16>
    %cst_31 = arith.constant dense<0.000000e+00> : vector<1x1024xf32>
    %76 = tpu.matmul %75, %74, %cst_31 {dimension_numbers = #tpu.dot_dimension_numbers<[1], [1], [0], [0], [0, 0, 1, 0], [], []>} : vector<1x64xbf16>, vector<1024x64xbf16>, vector<1x1024xf32> -> vector<1x1024xf32>
    %c0_32 = arith.constant 0 : index
    %c0_33 = arith.constant 0 : index
    %77 = vector.load %arg8[%c0_32, %c0_33] : memref<1x1xf32, #tpu.memory_space<vmem>>, vector<1x1xf32>
    %78 = vector.broadcast %77 : vector<1x1xf32> to vector<1x1024xf32>
    %79 = arith.addf %76, %78 : vector<1x1024xf32>
    %c0_34 = arith.constant 0 : index
    %c0_35 = arith.constant 0 : index
    %c0_36 = arith.constant 0 : index
    %80 = vector.load %arg9[%c0_34, %c0_35, %c0_36] : memref<1x1x1024xf32, #tpu.memory_space<vmem>>, vector<1x1x1024xf32>
    %81 = vector.shape_cast %80 : vector<1x1x1024xf32> to vector<1x1024xf32>
    %82 = vector.shape_cast %79 : vector<1x1024xf32> to vector<1x1x1024xf32>
    tpu.vector_store %arg9[%c0_34, %c0_35, %c0_36], %82 {strides = array<i32>} : memref<1x1x1024xf32, #tpu.memory_space<vmem>>, vector<1x1x1024xf32>,
    return
  }
  func.func @transform_0(%arg0: i32, %arg1: i32) -> (i32, i32, i32, i32) {
    %c32_i32 = arith.constant 32 : i32
    %0 = arith.muli %arg1, %c32_i32 : i32
    %c1_i32 = arith.constant 1 : i32
    %1 = arith.subi %0, %c1_i32 : i32
    %c0_i32 = arith.constant 0 : i32
    %2 = arith.maxsi %1, %c0_i32 : i32
    %c0_i32_0 = arith.constant 0 : i32
    %c0_i32_1 = arith.constant 0 : i32
    %c0_i32_2 = arith.constant 0 : i32
    return %arg0, %2, %c0_i32_0, %c0_i32_1 : i32, i32, i32, i32
  }
  func.func @transform_1(%arg0: i32, %arg1: i32) -> (i32, i32, i32) {
    %c0_i32 = arith.constant 0 : i32
    %c0_i32_0 = arith.constant 0 : i32
    return %arg0, %arg1, %c0_i32 : i32, i32, i32
  }
  func.func @transform_2(%arg0: i32, %arg1: i32) -> (i32, i32, i32, i32) {
    %c1_i32 = arith.constant 1 : i32
    %0 = arith.addi %arg1, %c1_i32 : i32
    %c32_i32 = arith.constant 32 : i32
    %1 = arith.muli %0, %c32_i32 : i32
    %c31_i32 = arith.constant 31 : i32
    %2 = arith.minsi %1, %c31_i32 : i32
    %c0_i32 = arith.constant 0 : i32
    %c0_i32_0 = arith.constant 0 : i32
    %c0_i32_1 = arith.constant 0 : i32
    return %arg0, %2, %c0_i32, %c0_i32_0 : i32, i32, i32, i32
  }
  func.func @transform_3(%arg0: i32, %arg1: i32) -> (i32, i32, i32) {
    %c0_i32 = arith.constant 0 : i32
    %c0_i32_0 = arith.constant 0 : i32
    %c0_i32_1 = arith.constant 0 : i32
    %c0_i32_2 = arith.constant 0 : i32
    return %c0_i32, %c0_i32_0, %c0_i32_1 : i32, i32, i32
  }
  func.func @transform_4(%arg0: i32, %arg1: i32) -> (i32, i32) {
    %c0_i32 = arith.constant 0 : i32
    %c0_i32_0 = arith.constant 0 : i32
    %c0_i32_1 = arith.constant 0 : i32
    return %c0_i32, %c0_i32_0 : i32, i32
  }
  func.func @transform_5(%arg0: i32, %arg1: i32) -> (i32, i32) {
    %c0_i32 = arith.constant 0 : i32
    %c0_i32_0 = arith.constant 0 : i32
    %c0_i32_1 = arith.constant 0 : i32
    return %c0_i32, %c0_i32_0 : i32, i32
  }
  func.func @transform_6(%arg0: i32, %arg1: i32) -> (i32, i32) {
    %c0_i32 = arith.constant 0 : i32
    %c0_i32_0 = arith.constant 0 : i32
    %c0_i32_1 = arith.constant 0 : i32
    return %c0_i32, %c0_i32_0 : i32, i32
  }
  func.func @transform_7(%arg0: i32, %arg1: i32) -> (i32, i32, i32) {
    %c0_i32 = arith.constant 0 : i32
    %c0_i32_0 = arith.constant 0 : i32
    return %arg0, %c0_i32, %arg1 : i32, i32, i32
  }
}

</mosaic_0001>

<bundles_post_ra>
// kernel: pup_head_forward.4
= control target key start
LH: loop header
LB: loop body
LE: loop exit
PB: predicated region body
PF: predicated region fallthrough
CT: control target
= control target key end

     0   :  { %10 = vsyncpa [#allocation3], 0  ;;  %s1358_s18 = smov 0   ;;  %s1360_s19 = smov 0   ;;  %s1563_s0 = inlined_call_operand.vmem [shape: bf16[2,4,4,32], index: 0, kind: input, shape index: {}, may-alias: {0,1,2}]   ;;  %s1564_s1 = inlined_call_operand.vmem [shape: bf16[2,16,32], index: 1, kind: input, shape index: {}, may-alias: {0,1,2}]   ;;  %s1565_s2 = inlined_call_operand.vmem [shape: bf16[2,4,4,32], index: 2, kind: input, shape index: {}, may-alias: {0,1,2}]   ;;  %s1566_s3 = inlined_call_operand.vmem [shape: bf16[3,96,64], index: 3, kind: input, shape index: {}]   ;;  %s1567_s4 = inlined_call_operand.hbm [shape: f32[1,64], index: 4, kind: input, shape index: {}]   ;;  %s1568_s5 = inlined_call_operand.vmem [shape: bf16[2,16,64], index: 5, kind: output, shape index: {}]  }
   0x1   :  { %s1362_s20 = smov 0  }
   0x2 LB: > { %s1060_s21 = sadd.s32 4294967295, %s1320_s20   ;;  %s28_s22 = sadd.s32 1, %s1316_s19  ;;  %s1320_s20 = sphi %s1362_s20, %s16_s20   ;;  %s1316_s19 = sphi %s1360_s19, %s1580_s19   ;;  %s1312_s18 = sphi %s1358_s18, %s1579_s18  }
   0x3   : > { %p30_p0 = scmp.ge.s32.totalorder %s28_s22, 2  ;;  %p1062_p1 = scmp.ge.s32.totalorder %s1320_s20, 1 }
   0x4   : > { %p203_p2 = scmp.lt.s32.totalorder %s1320_s20, 3  ;;  %p1383_p4 = scmp.eq.s32.totalorder %s1060_s21, 0 }
   0x5   : > { %s1582_s22 = smov (%p30_p0, %s28_s22), 0  ;;  %s1322_s25 = smov [#allocation2]  }
   0x6   : > { %p1379_p3 = pnand %p1062_p1, %p203_p2  ;;  %s219_s26 = sshll.u32 %s1322_s25, 4  ;;  %s220_s26 = int_to_ptr.vmem [resolvable:$true] %s219_s26 }
   0x7   : > { %s1279_s27 = scalar_lea.vmem %s220_s26, 16  ;;  %s1286_s28 = scalar_lea.vmem %s220_s26, 32 }
   0x8   : > { %p1213_p5 = pneg %p1379_p3  ;;  %p1280_p8 = scmp.ne.s32.totalorder %s220_s26, %s1279_s27 }
   0x9   : > { %p1287_p11 = scmp.lt.s32.totalorder %s220_s26, %s220_s26  ;;  %p1288_p12 = scmp.lt.s32.totalorder %s1286_s28, %s1279_s27 }
   0xa   : > { %p1214_p6 = pnand %p1383_p4, %p1213_p5 }
   0xb   : > { %p1289_p13 = por %p1288_p12, %p1287_p11 }
   0xc   : > { %p1270_p7 = pneg %p1214_p6 }
   0xe   : > { %p1282_p9 = pnand %p1280_p8, %p1270_p7 }
  0x10   : > { %p1283_p10 = pneg %p1282_p9 }
  0x12   : > { %p1290_p0 = pnand %p1289_p13, %p1283_p10 }
  0x14   : > { %1293 = shalt.err (!%p1290_p0)
}
  0x15   : > { %1216 = dma.hbm_to_vmem [thread:$0]  (!%p1214_p6), %s1567_s4, 16, %s220_s26, [#allocation3]  }
  0x16   : > { %283 = sbr.rel (%p1379_p3) target bundleno = 403 (0x193), region = 40 }
  0x1b   : > { %1307 = dma.done.wait (%p1383_p4), [#allocation3], 16  }
  0x1c   : > { %1309 = vsyncadd (%p1383_p4), [#allocation3], 4294967280  ;;  %p347_p1 = scmp.lt.s32.totalorder %s1312_s18, 1  ;;  %v440_v0 = vlaneseq  ;;  %v1323_v1 = vmov 1983009808   ;;  %vm487_vm0 = vcmask 1042432  }
  0x1d   : > { %v438_v2 = vunpack.c.l.s4 %v1323_v1  ;;  %vm488_vm1 = vsmask.f32 2304  ;;  %v1324_v5 = vmov 0.0   ;;  %vm492_vm2 = vcmask 1044480   ;;  %v1250_v24 = vld [vmem:[%s1566_s3 + $0x28] sm:$0xff]   ;;  %v1251_v25 = vld [vmem:[%s1566_s3 + $0x20] sm:$0xff]  }
  0x1e   : > { %s1584_s18 = smov (!%p347_p1, %s1312_s18), 1  ;;  %v1402_v3 = vshrl.u32 %v440_v0, 7  ;;  %1161 = vmatprep.subr.bf16.mxu0 %v1324_v5  ;;  %1177 = vmatprep.subr.bf16.mxu1 %v1324_v5  ;;  %vm493_vm3 = vsmask.f32 4352  ;;  %vm483_vm4 = vcmask 1040384   ;;  %vm1440_vm9 = vmand %vm487_vm0, %vm488_vm1  ;;  %v1252_v38 = vld [vmem:[%s1566_s3 + $0x58] sm:$0xff]  }
  0x1f   : > { %v439_v4 = vunpack.c.0.s8 %v438_v2  ;;  %s1406_s6 = sshll.u32 %s1584_s18, 3  ;;  %vm484_vm5 = vsmask.f32 256  ;;  %1162 = vmatpush3.bf16.msra.mxu0 %v1250_v24  ;;  %vm1446_vm10 = vmand %vm492_vm2, %vm493_vm3  ;;  %1178 = vmatpush3.bf16.msra.mxu1 %v1252_v38  ;;  %v1254_v44 = vld [vmem:[%s1566_s3 + $0x50] sm:$0xff]   ;;  %v1253_v46 = vld [vmem:[%s1566_s3 + $0x18] sm:$0xff]   ;;  %vm1325_vm0 = vmmov 0  }
  0x20   : > { %v1409_v6 = vadd.s32 8, %v1402_v3  ;;  %v499_v7 = vadd.s32 16, %v1402_v3  ;;  %v504_v8 = vand.u32 3, %v1402_v3  ;;  %s367_s9 = scalar_lea.vmem %s1564_s1, %s1406_s6  ;;  %s1135_s10 = sadd.s32 6, %s1406_s6  ;;  %1163 = vmatprep.subr.bf16.mxu0 %v1324_v5  ;;  %vm1456_vm11 = vmand %vm483_vm4, %vm484_vm5  ;;  %1179 = vmatprep.subr.bf16.mxu1 %v1324_v5  ;;  %v1256_v51 = vld [vmem:[%s1566_s3 + $0x48] sm:$0xff]   ;;  %v1255_v60 = vld [vmem:[%s1566_s3 + $0x10] sm:$0xff]  }
  0x21   : > { %s380_s13 = scalar_lea.vmem %s1565_s2, %s1135_s10  ;;  %v442_v9 = vsub.s32 %v439_v4, %v1402_v3  ;;  %s354_s16 = scalar_lea.vmem %s1563_s0, %s1406_s6  ;;  %v1249_v14 = vld [vmem:[%s367_s9] sm:$0xff]   ;;  %vm569_vm15 = vsmask.f32 7424  ;;  %1173 = vmatprep.mubr.msk.bf16.mxu0 %vm1325_vm0, %v1324_v5  ;;  %vm591_vm1 = vcmask 1046528   ;;  %1189 = vmatprep.mubr.msk.bf16.mxu1 %vm1325_vm0, %v1324_v5  ;;  %vm599_vm2 = vcmask 261120   ;;  %v1262_v24 = vld [vmem:[%s1566_s3 + $0x88] sm:$0xff]  }
  0x22   : > { %v511_v10 = vand.u32 3, %v1409_v6  ;;  %v518_v11 = vand.u32 3, %v499_v7  ;;  %vm549_vm6 = vcmp.ne.s32.totalorder %v504_v8, 3  ;;  %v415_v12 = vld [vmem:[%s380_s13] sm:$0x3]  ;;  %v458_v20 = vshrl.u32 %v1249_v14, 16  ;;  %s393_s15 = scalar_lea.vmem %s1568_s5, %s1406_s6 }
  0x23   : > { %v433_v13 = vmul.bf16 0.0, %v415_v12  ;;  %v396_v15 = vld [vmem:[%s354_s16] sm:$0x3]  ;;  %v1079_v17 = vsel %vm549_vm6, 1.0, %v1324_v5  ;;  %v461_v21 = vshll.u32 %v1249_v14, 16  ;;  %1164 = vmatpush3.bf16.msra.mxu0 %v1251_v25  ;;  %vm1475_vm13 = vcmp.ne.s32.totalorder %v504_v8, 0  ;;  %1180 = vmatpush3.bf16.msra.mxu1 %v1254_v44 }
  0x24   : > { %vm550_vm7 = vcmp.ne.s32.totalorder %v511_v10, 3  ;;  %vm551_vm8 = vcmp.ne.s32.totalorder %v518_v11, 3  ;;  %v414_v16 = vmul.bf16 0.0, %v396_v15  ;;  %v460_v28 = vrot.slane %v458_v20, 5  ;;  %1165 = vmatprep.subr.bf16.mxu0 %v1324_v5  ;;  %1181 = vmatprep.subr.bf16.mxu1 %v1324_v5  ;;  %v1258_v4 = vld [vmem:[%s1566_s3 + $0x40] sm:$0xff]   ;;  %v1257_v6 = vld [vmem:[%s1566_s3 + $0x8] sm:$0xff]  }
  0x25   : > { %v1080_v18 = vsel %vm550_vm7, 1.0, %v1324_v5  ;;  %v1081_v19 = vsel %vm551_vm8, 1.0, %v1324_v5  ;;  %v473_v22 = vrot.slane %v433_v13, %v442_v9  ;;  %v463_v29 = vrot.slane %v461_v21, 6  ;;  %s1326_s14 = smov 32   ;;  %v1259_v14 = vld [vmem:[%s1566_s3] sm:$0xff]   ;;  %s1327_s21 = smov 64  }
  0x26   : > { %v558_v23 = vpack.c.bf16 %v1080_v18, %v1079_v17  ;;  %v443_v26 = vrot.slane %v414_v16, %v442_v9  ;;  %v559_v27 = vpack.c.bf16 %v1081_v19, %v1081_v19  ;;  %vm538_vm12 = vcmp.ne.s32.totalorder %v518_v11, 0  ;;  %v1260_v16 = vld [vmem:[%s1566_s3 + $0x38] sm:$0xff]   ;;  %v1261_v18 = vld [vmem:[%s1566_s3 + $0x30] sm:$0xff]   ;;  %v1263_v32 = vld [vmem:[%s1566_s3 + $0x80] sm:$0xff]  }
  0x27   : > { %v475_v30 = vshrl.u32 %v473_v22, 16  ;;  %v478_v31 = vshll.u32 %v473_v22, 16  ;;  %v464_v39 = vor.u32 %v463_v29, %v460_v28  ;;  %v1078_v49 = vsel %vm538_vm12, 1.0, %v1324_v5  ;;  %1166 = vmatpush3.bf16.msra.mxu0 %v1253_v46  ;;  %1182 = vmatpush3.bf16.msra.mxu1 %v1256_v51  ;;  %v1267_v38 = vld [vmem:[%s1566_s3 + $0x60] sm:$0xff]  }
  0x28   : > { %v445_v34 = vshrl.u32 %v443_v26, 16  ;;  %v448_v35 = vshll.u32 %v443_v26, 16  ;;  %v562_v36 = vrot.slane %v558_v23, 7  ;;  %v563_v37 = vrot.slane %v559_v27, 7  ;;  %1167 = vmatprep.subr.bf16.mxu0 %v1324_v5  ;;  %1183 = vmatprep.subr.bf16.mxu1 %v1324_v5 }
  0x29   : > { %v477_v40 = vrot.slane %v475_v30, 5  ;;  %v480_v41 = vrot.slane %v478_v31, 6  ;;  %v546_v52 = vpack.c.bf16 %v1078_v49, %v1078_v49  ;;  %vm537_vm14 = vcmp.ne.s32.totalorder %v511_v10, 0 }
  0x2a   : > { %v447_v43 = vrot.slane %v445_v34, 7  ;;  %v564_v48 = vsel %vm483_vm4, %v562_v36, %v563_v37  ;;  %v1076_v2 = vsel %vm1475_vm13, 1.0, %v1324_v5  ;;  %v1077_v7 = vsel %vm537_vm14, 1.0, %v1324_v5  ;;  %v1266_v37 = vld [vmem:[%s1566_s3 + $0x68] sm:$0xff]  }
  0x2b   : > { %v481_v45 = vor.u32 %v480_v41, %v477_v40  ;;  %1168 = vmatpush3.bf16.msra.mxu0 %v1255_v60  ;;  %v545_v9 = vpack.c.bf16 %v1077_v7, %v1076_v2  ;;  %1184 = vmatpush3.bf16.msra.mxu1 %v1258_v4  ;;  %vm606_vm3 = vcmask 523264   ;;  %vm660_vm4 = vcmask 785408  }
  0x2c   : > { %v450_v47 = vor.u32 %v448_v35, %v447_v43  ;;  %1169 = vmatprep.subr.bf16.mxu0 %v1324_v5  ;;  %1185 = vmatprep.subr.bf16.mxu1 %v1324_v5  ;;  %vm727_vm5 = vcmask 1045504   ;;  %vm826_vm6 = vcmask 1043456   ;;  %v1264_v35 = vld [vmem:[%s1566_s3 + $0x78] sm:$0xff]   ;;  %vm922_vm7 = vcmask 519168  }
  0x2d   : > { %v491_v50 = vsel %vm1440_vm9, %v464_v39, %v481_v45 }
  0x2e   : > { %v495_v54 = vsel %vm1446_vm10, %v491_v50, 0  ;;  %v486_v55 = vsel %vm1456_vm11, 0, %v450_v47  ;;  %v1089_v47 = vld [vmem:[#allocation2] ss:$0 sm:$0xff] }
  0x2f   : > { %v578_v56 = vshll.u32 %v495_v54, 16  ;;  %v582_v57 = vshrl.u32 %v495_v54, 16  ;;  %v490_v58 = vsel %vm1440_vm9, %v486_v55, %v464_v39  ;;  %v568_v59 = vmul.bf16 %v564_v48, %v495_v54  ;;  %1170 = vmatpush3.bf16.msra.mxu0 %v1257_v6  ;;  %1186 = vmatpush3.bf16.msra.mxu1 %v1260_v16 }
  0x30   : > { %v571_v61 = vshrl.u32 %v490_v58, 16  ;;  %v573_v62 = vshll.u32 %v490_v58, 16  ;;  %v567_v63 = vmul.bf16 %v562_v36, %v490_v58  ;;  %v548_v0 = vmul.bf16 %v546_v52, %v495_v54  ;;  %1171 = vmatprep.subr.bf16.mxu0 %v1324_v5  ;;  %1187 = vmatprep.subr.bf16.mxu1 %v1324_v5  ;;  %v1265_v36 = vld [vmem:[%s1566_s3 + $0x70] sm:$0xff]  }
  0x31   : > { %v580_v1 = vrot.slane %v578_v56, 1  ;;  %v593_v11 = vrot.slane %v568_v59, 1  ;;  %v547_v13 = vmul.bf16 %v545_v9, %v490_v58 }
  0x32   : > { %v575_v3 = vrot.slane %v573_v62, 1  ;;  %v592_v12 = vrot.slane %v567_v63, 1 }
  0x33   : > { %v584_v8 = vor.u32 %v582_v57, %v580_v1  ;;  %1172 = vmatpush3.bf16.msra.mxu0 %v1259_v14  ;;  %1188 = vmatpush3.bf16.msra.mxu1 %v1261_v18 }
  0x34   : > { %v576_v10 = vor.u32 %v575_v3, %v571_v61  ;;  %v594_v17 = vsel %vm591_vm1, %v592_v12, %v593_v11  ;;  %1193 = vmatprep.subr.bf16.mxu0 %v1324_v5 }
  0x35   : > { %587 = vrot.lane.b32.xlu1 %v584_v8, %s1326_s14 }
  0x36   : > { %v581_v15 = vsel %vm569_vm15, %v576_v10, %v580_v1 }
  0x37   : > { %585 = vrot.lane.b32.xlu0 %v581_v15, %s1326_s14 }
  0x39   : > { %597 = vrot.lane.b32.xlu1 %v593_v11, %s1327_s21 }
  0x3b   : > { %595 = vrot.lane.b32.xlu0 %v594_v17, %s1327_s21 }
  0xa7   : > { %v588_v19 = vpop.permute.xlu1 %587 }
  0xa8   : > { %v605_v20 = vsel %vm599_vm2, %v548_v0, %v588_v19 }
  0xa9   : > { %v586_v21 = vpop.permute.xlu0 %585 }
  0xaa   : > { %v602_v25 = vsel %vm599_vm2, %v547_v13, %v586_v21 }
  0xab   : > { %v598_v22 = vpop.permute.xlu1 %597 }
  0xac   : > { %v610_v23 = vsel %vm606_vm3, %v605_v20, %v598_v22 }
  0xad   : > { %v729_v26 = vrot.slane %v610_v23, 2  ;;  %v828_v27 = vrot.slane %v610_v23, 4  ;;  %v596_v28 = vpop.permute.xlu0 %595 }
  0xae   : > { %v608_v29 = vsel %vm606_vm3, %v602_v25, %v596_v28 }
  0xaf   : > { %v728_v30 = vrot.slane %v608_v29, 2  ;;  %v827_v31 = vrot.slane %v608_v29, 4  ;;  %1174 = vmatmul.mubr.msk.bf16.vlgmr.msra.gmra.mxu0 %vm660_vm4, %v608_v29 }
  0xb0   : > { %1194 = vmatpush3.bf16.msra.mxu0 %v1262_v24  ;;  %1205 = vmatprep.mubr.msk.bf16.mxu0 %vm1325_vm0, %v1324_v5 }
  0xb1   : > { %v730_v33 = vsel %vm727_vm5, %v728_v30, %v729_v26  ;;  %1195 = vmatprep.subr.bf16.mxu0 %v1324_v5  ;;  %v829_v34 = vsel %vm826_vm6, %v827_v31, %v828_v27 }
  0xb2   : > { %1190 = vmatmul.mubr.msk.bf16.vlgmr.msra.gmra.mxu1 %vm660_vm4, %v730_v33 }
  0xb4   : > { %1196 = vmatpush3.bf16.msra.mxu0 %v1263_v32 }
  0xb5   : > { %1197 = vmatprep.subr.bf16.mxu0 %v1324_v5 }
  0xb8   : > { %1198 = vmatpush3.bf16.msra.mxu0 %v1264_v35 }
  0xb9   : > { %1199 = vmatprep.subr.bf16.mxu0 %v1324_v5 }
  0xbc   : > { %1200 = vmatpush3.bf16.msra.mxu0 %v1265_v36 }
  0xbd   : > { %1201 = vmatprep.subr.bf16.mxu0 %v1324_v5 }
  0xc0   : > { %1202 = vmatpush3.bf16.msra.mxu0 %v1266_v37 }
  0xc1   : > { %1203 = vmatprep.subr.bf16.mxu0 %v1324_v5 }
  0xc4   : > { %1204 = vmatpush3.bf16.msra.mxu0 %v1267_v38 }
  0xc7   : > { %1206 = vmatmul.mubr.msk.bf16.vlgmr.msra.gmra.mxu0 %vm660_vm4, %v829_v34 }
 0x16f   : > { %v697_v39 = vpop.f32.mrf.mxu0 }
 0x170   : > { %v710_v48 = vadd.f32 %v1089_v47, %v697_v39 }
 0x171   : > { %v1175_v40 = vpop.f32.mrf.mxu0 }
 0x172   : > { %v804_v41 = vpop.f32.mrf.mxu1 }
 0x173   : > { %v700_v42 = vpop.f32.mrf.mxu0  ;;  %v811_v49 = vadd.f32 %v804_v41, %v710_v48 }
 0x174   : > { %v1191_v43 = vpop.f32.mrf.mxu1  ;;  %v711_v50 = vadd.f32 %v1089_v47, %v700_v42 }
 0x175   : > { %v1176_v44 = vpop.f32.mrf.mxu0 }
 0x176   : > { %v807_v45 = vpop.f32.mrf.mxu1 }
 0x177   : > { %v812_v5 = vadd.f32 %v807_v45, %v711_v50 }
 0x178   : > { %v1192_v46 = vpop.f32.mrf.mxu1 }
 0x187   : > { %v903_v51 = vpop.f32.mrf.mxu0 }
 0x188   : > { %v910_v52 = vadd.f32 %v903_v51, %v811_v49 }
 0x189   : > { %v1207_v53 = vpop.f32.mrf.mxu0 }
 0x18a   : > { %v912_v54 = vmax.f32 %v910_v52, 0.0 }
 0x18b   : > { %v906_v55 = vpop.f32.mrf.mxu0 }
 0x18c   : > { %v1137_v56 = vpack.c.bf16 %v912_v54, %v912_v54  ;;  %v911_v57 = vadd.f32 %v906_v55, %v812_v5 }
 0x18d   : > { %v1208_v58 = vpop.f32.mrf.mxu0 }
 0x18e   : > { %923 = vst.msk [vmem:[%s393_s15] sm:$0xf] %vm922_vm7, %v1137_v56  ;;  %v913_v59 = vmax.f32 %v911_v57, 0.0 }
 0x190   : > { %v1138_v60 = vpack.c.bf16 %v913_v59, %v913_v59 }
 0x192   : > { %924 = vst.msk [vmem:[%s393_s15 + $0x4] sm:$0xf] %vm922_vm7, %v1138_v60 }
 0x193 PF: > { %s16_s20 = sadd.s32 1, %s1320_s20   ;;  %s1579_s18 = smov %s1316_s19 }
 0x194   : > { %p13_p2 = scmp.ge.s32.totalorder %s16_s20, 4   ;;  %s1580_s19 = smov %s1582_s22 }
 0x196   :  { %15 = sbr.rel (!%p13_p2) target bundleno = 2 (0x2), region = 83 }
 0x19b   :  { %955 = vsyncpa [#allocation3], 1 }
 0x19c   :  { %957 = vsyncpa [#allocation3 + $0x1], 1 }

// kernel: pup_head_forward.5
= control target key start
LH: loop header
LB: loop body
LE: loop exit
PB: predicated region body
PF: predicated region fallthrough
CT: control target
= control target key end

     0   :  { %s1900_s18 = smov 0   ;;  %s1902_s19 = smov 0   ;;  %s2346_s0 = inlined_call_operand.vmem [shape: bf16[2,8,8,64], index: 0, kind: input, shape index: {}, may-alias: {0,1,2}]   ;;  %s2347_s1 = inlined_call_operand.vmem [shape: bf16[2,64,64], index: 1, kind: input, shape index: {}, may-alias: {0,1,2}]   ;;  %s2348_s2 = inlined_call_operand.vmem [shape: bf16[2,8,8,64], index: 2, kind: input, shape index: {}, may-alias: {0,1,2}]   ;;  %s2349_s3 = inlined_call_operand.vmem [shape: bf16[3,192,64], index: 3, kind: input, shape index: {}]   ;;  %s2350_s4 = inlined_call_operand.vmem [shape: f32[1,64], index: 4, kind: input, shape index: {}]   ;;  %s2351_s5 = inlined_call_operand.vmem [shape: bf16[2,64,64], index: 5, kind: output, shape index: {}]  }
   0x1   :  { %s1904_s20 = smov 0  }
   0x2 LB: > { %s27_s21 = sadd.s32 1, %s1861_s19  ;;  %p1596_p0 = scmp.ge.s32.totalorder %s1865_s20, 1  ;;  %s1865_s20 = sphi %s1904_s20, %s15_s20   ;;  %s1861_s19 = sphi %s1902_s19, %s2359_s19   ;;  %s1857_s18 = sphi %s1900_s18, %s2358_s18  }
   0x3   : > { %p29_p1 = scmp.ge.s32.totalorder %s27_s21, 2  ;;  %p270_p2 = scmp.lt.s32.totalorder %s1865_s20, 3 }
   0x5   : > { %s2361_s21 = smov (%p29_p1, %s27_s21), 0  ;;  %p271_p3 = pnand %p1596_p0, %p270_p2 }
   0x6   : > { %p334_p4 = scmp.lt.s32.totalorder (!%p271_p3), %s1857_s18, 1  ;;  %s1868_s9 = smov (!%p271_p3), 64  }
   0x7   : > { %274 = sbr.rel (%p271_p3) target bundleno = 419 (0x1a3), region = 40 }
   0xc   : > { %v523_v0 = vlaneseq  ;;  %s2363_s18 = smov (!%p334_p4, %s1857_s18), 1  ;;  %v1867_v2 = vmov 0   ;;  %vm514_vm0 = vcmask 1040384   ;;  %vm515_vm1 = vsmask.f32 256  ;;  %v1807_v3 = vld [vmem:[%s2349_s3 + $0x38] sm:$0xff]  }
   0xd   : > { %958 = vmatprep.subr.bf16.mxu0 %v1867_v2  ;;  %1174 = vmatprep.subr.bf16.mxu1 %v1867_v2  ;;  %s1925_s24 = sshll.u32 %s2363_s18, 5  ;;  %vm460_vm2 = vsmask.f32 4352  ;;  %vm518_vm3 = vcmask 1044480   ;;  %v1808_v7 = vld [vmem:[%s2349_s3 + $0x30] sm:$0xff]   ;;  %v1809_v9 = vld [vmem:[%s2349_s3 + $0x98] sm:$0xff]   ;;  %vm1965_vm4 = vmand %vm514_vm0, %vm515_vm1 }
   0xe   : > { %v1918_v1 = vshrl.u32 %v523_v0, 7  ;;  %s341_s29 = scalar_lea.vmem %s2346_s0, %s1925_s24  ;;  %s354_s7 = scalar_lea.vmem %s2347_s1, %s1925_s24  ;;  %959 = vmatpush1.bf16.msra.mxu0 %v1807_v3  ;;  %1175 = vmatpush1.bf16.msra.mxu1 %v1809_v9  ;;  %v1810_v34 = vld [vmem:[%s2349_s3 + $0x28] sm:$0xff]   ;;  %vm755_vm5 = vsmask.f32 7424  ;;  %v1811_v40 = vld [vmem:[%s2349_s3 + $0x90] sm:$0xff]   ;;  %vm1974_vm6 = vmand %vm518_vm3, %vm460_vm2  ;;  %vm816_vm15 = vcmask 1046528  }
   0xf   : > { %v383_v10 = vld [vmem:[%s341_s29] sm:$0xf]  ;;  %960 = vmatprep.subr.bf16.mxu0 %v1867_v2  ;;  %v1804_v13 = vld [vmem:[%s354_s7 + $0x8] sm:$0xff]   ;;  %s1741_s10 = sadd.s32 28, %s1925_s24  ;;  %1176 = vmatprep.subr.bf16.mxu1 %v1867_v2  ;;  %v1805_v19 = vld [vmem:[%s354_s7 + $0x10] sm:$0xff]   ;;  %s2319_s26 = scalar_lea.vmem %s2351_s5, %s1925_s24 }
  0x10   : > { %v1928_v4 = vadd.s32 48, %v1918_v1  ;;  %v1931_v5 = vadd.s32 56, %v1918_v1  ;;  %v1934_v6 = vadd.s32 64, %v1918_v1  ;;  %v1948_v8 = vadd.s32 72, %v1918_v1  ;;  %v1803_v12 = vld [vmem:[%s354_s7] sm:$0xff]   ;;  %s367_s13 = scalar_lea.vmem %s2348_s2, %s1741_s10  ;;  %v1806_v20 = vld [vmem:[%s354_s7 + $0x18] sm:$0xff]  }
  0x11   : > { %v401_v11 = vmul.bf16 0.0, %v383_v10  ;;  %v462_v15 = vshrl.u32 %v1803_v12, 16  ;;  %v465_v16 = vshll.u32 %v1803_v12, 16  ;;  %v470_v17 = vshrl.u32 %v1804_v13, 16  ;;  %v402_v21 = vld [vmem:[%s367_s13] sm:$0xf] }
  0x12   : > { %961 = vmatpush1.bf16.msra.mxu0 %v1808_v7  ;;  %v473_v18 = vshll.u32 %v1804_v13, 16  ;;  %v479_v28 = vshrl.u32 %v1805_v19, 16  ;;  %v482_v29 = vshll.u32 %v1805_v19, 16  ;;  %v488_v32 = vshrl.u32 %v1806_v20, 16  ;;  %v1812_v46 = vld [vmem:[%s2349_s3 + $0x20] sm:$0xff]   ;;  %1177 = vmatpush1.bf16.msra.mxu1 %v1811_v40  ;;  %v1813_v51 = vld [vmem:[%s2349_s3 + $0x88] sm:$0xff]  }
  0x13   : > { %v1605_v14 = vcombine.low %v401_v11, %v401_v11  ;;  %962 = vmatprep.subr.bf16.mxu0 %v1867_v2  ;;  %v464_v24 = vrot.slane %v462_v15, 3  ;;  %v467_v25 = vrot.slane %v465_v16, 4  ;;  %v472_v26 = vrot.slane %v470_v17, 3  ;;  %1178 = vmatprep.subr.bf16.mxu1 %v1867_v2  ;;  %v1814_v56 = vld [vmem:[%s2349_s3 + $0x18] sm:$0xff]   ;;  %v1815_v3 = vld [vmem:[%s2349_s3 + $0x80] sm:$0xff]   ;;  %v1816_v16 = vld [vmem:[%s2349_s3 + $0x10] sm:$0xff]  }
  0x14   : > { %v475_v27 = vrot.slane %v473_v18, 4  ;;  %v491_v33 = vshll.u32 %v1806_v20, 16  ;;  %v481_v37 = vrot.slane %v479_v28, 3  ;;  %v484_v38 = vrot.slane %v482_v29, 4  ;;  %v1817_v28 = vld [vmem:[%s2349_s3 + $0x78] sm:$0xff]   ;;  %v1818_v36 = vld [vmem:[%s2349_s3 + $0x8] sm:$0xff]  }
  0x15   : > { %v433_v22 = vshrl.u32 %v1605_v14, 16  ;;  %v436_v23 = vshll.u32 %v1605_v14, 16  ;;  %v468_v31 = vor.u32 %v467_v25, %v464_v24  ;;  %v420_v39 = vmul.bf16 0.0, %v402_v21 }
  0x16   : > { %v476_v35 = vor.u32 %v475_v27, %v472_v26  ;;  %v490_v43 = vrot.slane %v488_v32, 3  ;;  %v493_v44 = vrot.slane %v491_v33, 4  ;;  %v580_v45 = vand.u32 7, %v1928_v4  ;;  %963 = vmatpush1.bf16.msra.mxu0 %v1810_v34  ;;  %1179 = vmatpush1.bf16.msra.mxu1 %v1813_v51 }
  0x17   : > { %v435_v30 = vrot.slane %v433_v22, 7  ;;  %v485_v48 = vor.u32 %v484_v38, %v481_v37  ;;  %v1610_v49 = vcombine.low %v420_v39, %v420_v39  ;;  %v587_v50 = vand.u32 7, %v1931_v5  ;;  %964 = vmatprep.subr.bf16.mxu0 %v1867_v2  ;;  %1180 = vmatprep.subr.bf16.mxu1 %v1867_v2  ;;  %v1831_v5 = vld [vmem:[%s2349_s3 + $0xa0] sm:$0xff]  }
  0x18   : > { %v1983_v47 = vsel %vm460_vm2, %v468_v31, %v476_v35  ;;  %v494_v54 = vor.u32 %v493_v44, %v490_v43  ;;  %v594_v20 = vand.u32 7, %v1934_v6  ;;  %vm2030_vm7 = vcmp.ne.s32.totalorder %v580_v45, 7 }
  0x19   : > { %v438_v41 = vor.u32 %v436_v23, %v435_v30  ;;  %v764_v53 = vshll.u32 %v1983_v47, 16  ;;  %v768_v55 = vshrl.u32 %v1983_v47, 16  ;;  %v2003_v58 = vsel %vm460_vm2, %v476_v35, %v485_v48 }
  0x1a   : > { %v505_v59 = vshrl.u32 %v1610_v49, 16  ;;  %v508_v60 = vshll.u32 %v1610_v49, 16  ;;  %v2008_v0 = vsel %vm460_vm2, %v485_v48, %v494_v54  ;;  %965 = vmatpush1.bf16.msra.mxu0 %v1812_v46  ;;  %v772_v7 = vshll.u32 %v2003_v58, 16  ;;  %1181 = vmatpush1.bf16.msra.mxu1 %v1815_v3 }
  0x1b   : > { %v517_v52 = vsel %vm1965_vm4, 0, %v438_v41  ;;  %v766_v63 = vrot.slane %v764_v53, 1  ;;  %v776_v9 = vshrl.u32 %v2003_v58, 16  ;;  %v780_v10 = vshll.u32 %v2008_v0, 16  ;;  %966 = vmatprep.subr.bf16.mxu0 %v1867_v2  ;;  %1182 = vmatprep.subr.bf16.mxu1 %v1867_v2  ;;  %v1819_v41 = vld [vmem:[%s2349_s3 + $0x70] sm:$0xff]  }
  0x1c   : > { %v2000_v57 = vsel %vm1974_vm6, %v517_v52, %v468_v31  ;;  %v507_v11 = vrot.slane %v505_v59, 3  ;;  %v510_v14 = vrot.slane %v508_v60, 4  ;;  %v784_v15 = vshrl.u32 %v2008_v0, 16 }
  0x1d   : > { %v757_v61 = vshrl.u32 %v2000_v57, 16  ;;  %v759_v62 = vshll.u32 %v2000_v57, 16  ;;  %v770_v13 = vor.u32 %v768_v55, %v766_v63  ;;  %v774_v17 = vrot.slane %v772_v7, 1  ;;  %v1822_v7 = vld [vmem:[%s2349_s3 + $0x58] sm:$0xff]  }
  0x1e   : > { %v782_v18 = vrot.slane %v780_v10, 1  ;;  %v2024_v19 = vsel %vm1965_vm4, %v507_v11, 0  ;;  %v511_v22 = vor.u32 %v510_v14, %v507_v11  ;;  %v601_v23 = vand.u32 7, %v1948_v8  ;;  %967 = vmatpush1.bf16.msra.mxu0 %v1814_v56  ;;  %1183 = vmatpush1.bf16.msra.mxu1 %v1817_v28  ;;  %v1823_v10 = vld [vmem:[%s2349_s3 + $0x60] sm:$0xff]  }
  0x1f   : > { %v761_v12 = vrot.slane %v759_v62, 1  ;;  %v778_v25 = vor.u32 %v776_v9, %v774_v17  ;;  %v775_v26 = vsel %vm755_vm5, %v770_v13, %v774_v17  ;;  %vm701_vm8 = vcmp.ne.s32.totalorder %v587_v50, 7  ;;  %968 = vmatprep.subr.bf16.mxu0 %v1867_v2  ;;  %1184 = vmatprep.subr.bf16.mxu1 %v1867_v2 }
  0x20   : > { %v786_v27 = vor.u32 %v784_v15, %v782_v18  ;;  %v2044_v30 = vsel %vm1974_vm6, %v494_v54, %v511_v22  ;;  %vm702_vm9 = vcmp.ne.s32.totalorder %v594_v20, 7  ;;  %vm703_vm10 = vcmp.ne.s32.totalorder %v601_v23, 7  ;;  %v1820_v54 = vld [vmem:[%s2349_s3] sm:$0xff]  }
  0x21   : > { %v762_v21 = vor.u32 %v761_v12, %v757_v61  ;;  %v783_v31 = vsel %vm755_vm5, %v778_v25, %v782_v18  ;;  %v788_v32 = vshll.u32 %v2044_v30, 16  ;;  %v1869_v33 = vmov 0.0   ;;  %v1821_v61 = vld [vmem:[%s2349_s3 + $0x68] sm:$0xff]  }
  0x22   : > { %v1627_v34 = vsel %vm2030_vm7, 1.0, %v1869_v33  ;;  %v1628_v35 = vsel %vm701_vm8, 1.0, %v1869_v33  ;;  %804 = vrot.lane.b32.xlu1 %v783_v31, %s1868_s9  ;;  %v1629_v37 = vsel %vm702_vm9, 1.0, %v1869_v33  ;;  %v1630_v38 = vsel %vm703_vm10, 1.0, %v1869_v33  ;;  %969 = vmatpush1.bf16.msra.mxu0 %v1816_v16  ;;  %v1824_v16 = vld [vmem:[%s2349_s3 + $0x50] sm:$0xff]  }
  0x23   : > { %v767_v29 = vsel %vm755_vm5, %v762_v21, %v766_v63  ;;  %v727_v39 = vpack.c.bf16 %v1628_v35, %v1627_v34  ;;  %v792_v40 = vshrl.u32 %v2044_v30, 16  ;;  %v790_v42 = vrot.slane %v788_v32, 1  ;;  %970 = vmatprep.subr.bf16.mxu0 %v1867_v2  ;;  %1185 = vmatpush1.bf16.msra.mxu1 %v1819_v41  ;;  %v1825_v21 = vld [vmem:[%s2349_s3 + $0xb8] sm:$0xff]   ;;  %v1827_v35 = vld [vmem:[%s2349_s3 + $0xb0] sm:$0xff]  }
  0x24   : > { %800 = vrot.lane.b32.xlu0 %v767_v29, %s1868_s9  ;;  %v728_v43 = vpack.c.bf16 %v1630_v38, %v1629_v37  ;;  %v796_v44 = vshll.u32 %v2024_v19, 16  ;;  %v525_v48 = vadd.s32 8, %v1918_v1  ;;  %v526_v55 = vadd.s32 16, %v1918_v1  ;;  %1186 = vmatprep.subr.bf16.mxu1 %v1867_v2  ;;  %v1826_v29 = vld [vmem:[%s2349_s3 + $0x48] sm:$0xff]  }
  0x25   : > { %v2070_v46 = vrot.slane %v727_v39, 7  ;;  %v791_v49 = vsel %vm755_vm5, %v786_v27, %v790_v42  ;;  %v794_v52 = vor.u32 %v792_v40, %v790_v42  ;;  %v527_v62 = vadd.s32 24, %v1918_v1 }
  0x26   : > { %v741_v51 = vrot.slane %v728_v43, 7  ;;  %v798_v53 = vrot.slane %v796_v44, 1  ;;  %806 = vrot.lane.b32.xlu1 %v791_v49, %s1868_s9  ;;  %971 = vmatpush1.bf16.msra.mxu0 %v1818_v36  ;;  %v538_v63 = vand.u32 7, %v1918_v1  ;;  %v545_v9 = vand.u32 7, %v525_v48  ;;  %v1828_v44 = vld [vmem:[%s2349_s3 + $0x40] sm:$0xff]  }
  0x27   : > { %972 = vmatprep.subr.bf16.mxu0 %v1867_v2  ;;  %1187 = vmatpush1.bf16.msra.mxu1 %v1821_v61  ;;  %v552_v11 = vand.u32 7, %v526_v55  ;;  %v559_v12 = vand.u32 7, %v527_v62  ;;  %v528_v25 = vadd.s32 32, %v1918_v1  ;;  %v529_v28 = vadd.s32 40, %v1918_v1 }
  0x28   : > { %802 = vrot.lane.b32.xlu0 %v775_v26, %s1868_s9  ;;  %v2083_v56 = vsel %vm514_vm0, %v2070_v46, %v741_v51  ;;  %v754_v59 = vmul.bf16 %v741_v51, %v2024_v19  ;;  %v799_v60 = vsel %vm755_vm5, %v794_v52, %v798_v53  ;;  %vm694_vm11 = vcmp.ne.s32.totalorder %v538_v63, 7  ;;  %1188 = vmatprep.subr.bf16.mxu1 %v1867_v2  ;;  %v1829_v52 = vld [vmem:[%s2349_s3 + $0xa8] sm:$0xff]  }
  0x29   : > { %v753_v3 = vmul.bf16 %v2083_v56, %v2044_v30  ;;  %vm695_vm12 = vcmp.ne.s32.totalorder %v545_v9, 7  ;;  %v1621_v14 = vsel %vm694_vm11, 1.0, %v1869_v33  ;;  %vm696_vm13 = vcmp.ne.s32.totalorder %v552_v11, 7 }
  0x2a   : > { %973 = vmatpush1.bf16.msra.mxu0 %v1820_v54  ;;  %v2104_v13 = vrot.slane %v754_v59, 1  ;;  %vm697_vm14 = vcmp.ne.s32.totalorder %v559_v12, 7  ;;  %v1622_v15 = vsel %vm695_vm12, 1.0, %v1869_v33  ;;  %v1623_v17 = vsel %vm696_vm13, 1.0, %v1869_v33 }
  0x2b   : > { %982 = vmatprep.subr.bf16.mxu0 %v1867_v2  ;;  %v1624_v18 = vsel %vm697_vm14, 1.0, %v1869_v33  ;;  %v724_v19 = vpack.c.bf16 %v1622_v15, %v1621_v14  ;;  %vm654_vm1 = vcmp.ne.s32.totalorder %v538_v63, 0  ;;  %1189 = vmatpush1.bf16.msra.mxu1 %v1823_v10  ;;  %vm655_vm2 = vcmp.ne.s32.totalorder %v545_v9, 0 }
  0x2c   : > { %808 = vrot.lane.b32.xlu0 %v799_v60, %s1868_s9  ;;  %v725_v22 = vpack.c.bf16 %v1624_v18, %v1623_v17  ;;  %v1611_v24 = vsel %vm654_vm1, 1.0, %v1869_v33  ;;  %1198 = vmatprep.subr.bf16.mxu1 %v1867_v2  ;;  %v1612_v27 = vsel %vm655_vm2, 1.0, %v1869_v33  ;;  %vm656_vm3 = vcmp.ne.s32.totalorder %v552_v11, 0 }
  0x2d   : > { %v734_v26 = vrot.slane %v724_v19, 7  ;;  %v684_v32 = vpack.c.bf16 %v1612_v27, %v1611_v24  ;;  %v566_v34 = vand.u32 7, %v528_v25  ;;  %vm657_vm4 = vcmp.ne.s32.totalorder %v559_v12, 0  ;;  %v1832_v27 = vld [vmem:[%s2349_s3 + $0xf0] sm:$0xff]  }
  0x2e   : > { %983 = vmatpush2.bf16.msra.mxu0 %v1822_v7  ;;  %v735_v31 = vrot.slane %v725_v22, 7  ;;  %v573_v37 = vand.u32 7, %v529_v28  ;;  %v1613_v38 = vsel %vm656_vm3, 1.0, %v1869_v33  ;;  %v1614_v1 = vsel %vm657_vm4, 1.0, %v1869_v33 }
  0x2f   : > { %984 = vmatprep.subr.bf16.mxu0 %v1867_v2  ;;  %v749_v36 = vmul.bf16 %v734_v26, %v2000_v57  ;;  %1199 = vmatpush2.bf16.msra.mxu1 %v1825_v21  ;;  %v2135_v40 = vmul.bf16 %v684_v32, %v2000_v57  ;;  %vm658_vm5 = vcmp.ne.s32.totalorder %v566_v34, 0  ;;  %vm698_vm6 = vcmp.ne.s32.totalorder %v566_v34, 7  ;;  %v1830_v21 = vld [vmem:[%s2349_s3 + $0xf8] sm:$0xff]  }
  0x30   : > { %v736_v39 = vsel %vm514_vm0, %v734_v26, %v735_v31  ;;  %1200 = vmatprep.subr.bf16.mxu1 %v1867_v2  ;;  %vm659_vm7 = vcmp.ne.s32.totalorder %v573_v37, 0  ;;  %v1615_v43 = vsel %vm658_vm5, 1.0, %v1869_v33  ;;  %vm699_vm8 = vcmp.ne.s32.totalorder %v573_v37, 7  ;;  %v1833_v37 = vld [vmem:[%s2349_s3 + $0xe8] sm:$0xff]  }
  0x31   : > { %v750_v41 = vmul.bf16 %v736_v39, %v1983_v47  ;;  %v817_v42 = vrot.slane %v749_v36, 1  ;;  %v1616_v48 = vsel %vm659_vm7, 1.0, %v1869_v33  ;;  %v1625_v57 = vsel %vm698_vm6, 1.0, %v1869_v33 }
  0x32   : > { %985 = vmatpush2.bf16.msra.mxu0 %v1824_v16  ;;  %v685_v49 = vpack.c.bf16 %v1614_v1, %v1613_v38  ;;  %vm828_vm9 = vcmask 523264   ;;  %v686_v53 = vpack.c.bf16 %v1616_v48, %v1615_v43  ;;  %v1626_v54 = vsel %vm699_vm8, 1.0, %v1869_v33 }
  0x33   : > { %986 = vmatprep.subr.bf16.mxu0 %v1867_v2  ;;  %v818_v51 = vrot.slane %v750_v41, 1  ;;  %1201 = vmatpush2.bf16.msra.mxu1 %v1827_v35  ;;  %v726_v55 = vpack.c.bf16 %v1626_v54, %v1625_v57  ;;  %vm660_vm10 = vcmp.ne.s32.totalorder %v580_v45, 0  ;;  %vm661_vm11 = vcmp.ne.s32.totalorder %v587_v50, 0  ;;  %v1835_v57 = vld [vmem:[%s2349_s3 + $0xd8] sm:$0xff]   ;;  %v1840_v54 = vld [vmem:[%s2349_s3 + $0x110] sm:$0xff]  }
  0x34   : > { %v690_v59 = vmul.bf16 %v685_v49, %v1983_v47  ;;  %1202 = vmatprep.subr.bf16.mxu1 %v1867_v2  ;;  %v691_v61 = vmul.bf16 %v686_v53, %v2003_v58  ;;  %v1617_v62 = vsel %vm660_vm10, 1.0, %v1869_v33  ;;  %v1618_v63 = vsel %vm661_vm11, 1.0, %v1869_v33  ;;  %v1836_v49 = vld [vmem:[%s2349_s3 + $0xd0] sm:$0xff]   ;;  %v1839_v53 = vld [vmem:[%s2349_s3 + $0x118] sm:$0xff]  }
  0x35   : > { %v819_v60 = vsel %vm816_vm15, %v817_v42, %v818_v51  ;;  %v737_v7 = vrot.slane %v726_v55, 7  ;;  %v687_v47 = vpack.c.bf16 %v1618_v63, %v1617_v62  ;;  %v824_v4 = vrot.slane %v753_v3, 1  ;;  %v1841_v55 = vld [vmem:[%s2349_s3 + $0x108] sm:$0xff]  }
  0x36   : > { %987 = vmatpush2.bf16.msra.mxu0 %v1826_v29  ;;  %1643 = vmatprep.mubr.msk.bf16.mxu0 %vm828_vm9, %v819_v60  ;;  %vm662_vm12 = vcmp.ne.s32.totalorder %v594_v20, 0  ;;  %vm663_vm13 = vcmp.ne.s32.totalorder %v601_v23, 0  ;;  %vm1460_vm14 = vcmask 519168  }
  0x37   : > { %988 = vmatprep.subr.bf16.mxu0 %v1867_v2  ;;  %1203 = vmatpush2.bf16.msra.mxu1 %v1829_v52  ;;  %v738_v45 = vsel %vm514_vm0, %v735_v31, %v737_v7  ;;  %v740_v50 = vsel %vm514_vm0, %v737_v7, %v2070_v46  ;;  %v692_v56 = vmul.bf16 %v687_v47, %v2008_v0  ;;  %v1619_v6 = vsel %vm662_vm12, 1.0, %v1869_v33  ;;  %v1838_v52 = vld [vmem:[%s2349_s3 + $0xc0] sm:$0xff]  }
  0x38   : > { %1204 = vmatprep.subr.bf16.mxu1 %v1867_v2  ;;  %v751_v8 = vmul.bf16 %v738_v45, %v2003_v58  ;;  %v752_v20 = vmul.bf16 %v740_v50, %v2008_v0  ;;  %v1620_v23 = vsel %vm663_vm13, 1.0, %v1869_v33  ;;  %v2183_v3 = vsel %vm816_vm15, %v824_v4, %v2104_v13 }
  0x39   : > { %v688_v9 = vpack.c.bf16 %v1620_v23, %v1619_v6  ;;  %v1071_v46 = vrot.slane %v819_v60, 4  ;;  %v1084_v14 = vrot.slane %v2183_v3, 4  ;;  %vm1067_vm0 = vcmask 1043456  }
  0x3a   : > { %989 = vmatpush2.bf16.msra.mxu0 %v1828_v44  ;;  %v820_v10 = vrot.slane %v751_v8, 1  ;;  %v822_v11 = vrot.slane %v752_v20, 1  ;;  %v1834_v44 = vld [vmem:[%s2349_s3 + $0xe0] sm:$0xff]  }
  0x3b   : > { %1347 = vmatprep.subr.bf16.mxu0 %v1867_v2  ;;  %1205 = vmatpush2.bf16.msra.mxu1 %v1831_v5  ;;  %v693_v12 = vmul.bf16 %v688_v9, %v2044_v30 }
  0x3c   : > { %v2188_v15 = vsel %vm816_vm15, %v818_v51, %v820_v10  ;;  %1752 = vmatprep.subr.bf16.mxu1 %v1867_v2  ;;  %v2192_v58 = vsel %vm816_vm15, %v820_v10, %v822_v11  ;;  %v2195_v0 = vsel %vm816_vm15, %v822_v11, %v824_v4  ;;  %v1837_v51 = vld [vmem:[%s2349_s3 + $0xc8] sm:$0xff]  }
  0x3d   : > { %v1072_v33 = vrot.slane %v2188_v15, 4  ;;  %v1076_v13 = vrot.slane %v2192_v58, 4  ;;  %v1080_v30 = vrot.slane %v2195_v0, 4 }
  0x3f   : > { %v1073_v16 = vsel %vm1067_vm0, %v1071_v46, %v1072_v33  ;;  %v1077_v17 = vsel %vm1067_vm0, %v1072_v33, %v1076_v13  ;;  %v1081_v18 = vsel %vm1067_vm0, %v1076_v13, %v1080_v30  ;;  %v2204_v19 = vsel %vm1067_vm0, %v1080_v30, %v1084_v14 }
  0x40   : > { %1684 = vmatprep.mubr.msk.bf16.mxu1 %vm828_vm9, %v1073_v16 }
  0x94   : > { %v805_v25 = vpop.permute.xlu1 %804 }
  0x95   : > { %v2213_v26 = vsel %vm828_vm9, %v691_v61, %v805_v25 }
  0x96   : > { %v801_v22 = vpop.permute.xlu0 %800  ;;  %v1074_v28 = vrot.slane %v2213_v26, 4 }
  0x97   : > { %v831_v24 = vsel %vm828_vm9, %v2135_v40, %v801_v22 }
  0x98   : > { %991 = vmatmul.mubr.bf16.vlgmr.msra.gmra.mxu0 %v831_v24  ;;  %v807_v32 = vpop.permute.xlu1 %806  ;;  %v1068_v34 = vrot.slane %v831_v24, 4 }
  0x99   : > { %1348 = vmatpush1.bf16.msra.mxu0 %v1830_v21  ;;  %1644 = vmatprep.mubr.msk.bf16.mxu0 %vm828_vm9, %v2188_v15  ;;  %v2227_v36 = vsel %vm828_vm9, %v692_v56, %v807_v32 }
  0x9a   : > { %v803_v29 = vpop.permute.xlu0 %802  ;;  %1349 = vmatprep.subr.bf16.mxu0 %v1867_v2  ;;  %v1078_v38 = vrot.slane %v2227_v36, 4 }
  0x9b   : > { %v2223_v31 = vsel %vm828_vm9, %v690_v59, %v803_v29  ;;  %v1842_v59 = vld [vmem:[%s2349_s3 + $0x100] sm:$0xff]  }
  0x9c   : > { %v1069_v35 = vrot.slane %v2223_v31, 4  ;;  %v1079_v41 = vsel %vm1067_vm0, %v1074_v28, %v1078_v38 }
  0x9d   : > { %1350 = vmatpush1.bf16.msra.mxu0 %v1832_v27 }
  0x9e   : > { %v1070_v1 = vsel %vm1067_vm0, %v1068_v34, %v1069_v35  ;;  %1351 = vmatprep.subr.bf16.mxu0 %v1867_v2  ;;  %v1075_v39 = vsel %vm1067_vm0, %v1069_v35, %v1074_v28  ;;  %v809_v40 = vpop.permute.xlu0 %808 }
  0x9f   : > { %1207 = vmatmul.mubr.bf16.vlgmr.msra.gmra.mxu1 %v1070_v1  ;;  %v2238_v42 = vsel %vm828_vm9, %v693_v12, %v809_v40 }
  0xa0   : > { %1764 = vmatpush1.bf16.msra.mxu1 %v1830_v21  ;;  %999 = vmatmul.mubr.bf16.gmra.mxu0 %v2223_v31  ;;  %v1082_v43 = vrot.slane %v2238_v42, 4 }
  0xa1   : > { %1352 = vmatpush1.bf16.msra.mxu0 %v1833_v37  ;;  %1753 = vmatprep.subr.bf16.mxu1 %v1867_v2 }
  0xa2   : > { %1353 = vmatprep.subr.bf16.mxu0 %v1867_v2  ;;  %1685 = vmatprep.mubr.msk.bf16.mxu1 %vm828_vm9, %v1077_v17  ;;  %v1083_v48 = vsel %vm1067_vm0, %v1078_v38, %v1082_v43 }
  0xa3   : > { %1645 = vmatprep.mubr.msk.bf16.mxu0 %vm828_vm9, %v2192_v58 }
  0xa4   : > { %1765 = vmatpush1.bf16.msra.mxu1 %v1832_v27 }
  0xa5   : > { %1354 = vmatpush1.bf16.msra.mxu0 %v1834_v44  ;;  %1754 = vmatprep.subr.bf16.mxu1 %v1867_v2 }
  0xa6   : > { %1355 = vmatprep.subr.bf16.mxu0 %v1867_v2 }
  0xa7   : > { %1215 = vmatmul.mubr.bf16.gmra.mxu1 %v1075_v39 }
  0xa8   : > { %1766 = vmatpush1.bf16.msra.mxu1 %v1833_v37  ;;  %1007 = vmatmul.mubr.bf16.gmra.mxu0 %v2213_v26 }
  0xa9   : > { %1356 = vmatpush1.bf16.msra.mxu0 %v1835_v57  ;;  %1755 = vmatprep.subr.bf16.mxu1 %v1867_v2 }
  0xaa   : > { %1357 = vmatprep.subr.bf16.mxu0 %v1867_v2  ;;  %1686 = vmatprep.mubr.msk.bf16.mxu1 %vm828_vm9, %v1081_v18 }
  0xab   : > { %1646 = vmatprep.mubr.msk.bf16.mxu0 %vm828_vm9, %v2195_v0 }
  0xac   : > { %1767 = vmatpush1.bf16.msra.mxu1 %v1834_v44 }
  0xad   : > { %1358 = vmatpush1.bf16.msra.mxu0 %v1836_v49  ;;  %1756 = vmatprep.subr.bf16.mxu1 %v1867_v2 }
  0xae   : > { %1359 = vmatprep.subr.bf16.mxu0 %v1867_v2 }
  0xaf   : > { %1223 = vmatmul.mubr.bf16.gmra.mxu1 %v1079_v41 }
  0xb0   : > { %1768 = vmatpush1.bf16.msra.mxu1 %v1835_v57  ;;  %1015 = vmatmul.mubr.bf16.gmra.mxu0 %v2227_v36 }
  0xb1   : > { %1360 = vmatpush1.bf16.msra.mxu0 %v1837_v51  ;;  %1757 = vmatprep.subr.bf16.mxu1 %v1867_v2 }
  0xb2   : > { %1361 = vmatprep.subr.bf16.mxu0 %v1867_v2  ;;  %1687 = vmatprep.mubr.msk.bf16.mxu1 %vm828_vm9, %v2204_v19  ;;  %v1647_v19 = vld [vmem:[%s2350_s4] ss:$0 sm:$0xff] }
  0xb3   : > { %1724 = vmatprep.mubr.msk.bf16.mxu0 %vm828_vm9, %v2188_v15 }
  0xb4   : > { %1769 = vmatpush1.bf16.msra.mxu1 %v1836_v49 }
  0xb5   : > { %1362 = vmatpush1.bf16.msra.mxu0 %v1838_v52  ;;  %1758 = vmatprep.subr.bf16.mxu1 %v1867_v2 }
  0xb6   : > { %1371 = vmatprep.subr.bf16.mxu0 %v1867_v2 }
  0xb7   : > { %1231 = vmatmul.mubr.bf16.gmra.mxu1 %v1083_v48 }
  0xb8   : > { %1770 = vmatpush1.bf16.msra.mxu1 %v1837_v51  ;;  %1726 = vmatprep.mubr.msk.bf16.mxu1 %vm828_vm9, %v2195_v0 }
  0xb9   : > { %1372 = vmatpush2.bf16.msra.mxu0 %v1839_v53  ;;  %1759 = vmatprep.subr.bf16.mxu1 %v1867_v2 }
  0xba   : > { %1373 = vmatprep.subr.bf16.mxu0 %v1867_v2 }
  0xbc   : > { %1771 = vmatpush1.bf16.msra.mxu1 %v1838_v52 }
  0xbd   : > { %1374 = vmatpush2.bf16.msra.mxu0 %v1840_v54  ;;  %1760 = vmatprep.subr.bf16.mxu1 %v1867_v2 }
  0xbe   : > { %1375 = vmatprep.subr.bf16.mxu0 %v1867_v2 }
  0xc0   : > { %1772 = vmatpush2.bf16.msra.mxu1 %v1839_v53 }
  0xc1   : > { %1376 = vmatpush2.bf16.msra.mxu0 %v1841_v55  ;;  %1761 = vmatprep.subr.bf16.mxu1 %v1867_v2 }
  0xc2   : > { %1377 = vmatprep.subr.bf16.mxu0 %v1867_v2 }
  0xc4   : > { %1773 = vmatpush2.bf16.msra.mxu1 %v1840_v54 }
  0xc5   : > { %1378 = vmatpush2.bf16.msra.mxu0 %v1842_v59  ;;  %1762 = vmatprep.subr.bf16.mxu1 %v1867_v2 }
  0xc8   : > { %1774 = vmatpush2.bf16.msra.mxu1 %v1841_v55  ;;  %1380 = vmatmul.mubr.bf16.vlgmr.msra.gmra.mxu0 %v2223_v31 }
  0xc9   : > { %1763 = vmatprep.subr.bf16.mxu1 %v1867_v2  ;;  %1725 = vmatprep.mubr.msk.bf16.mxu0 %vm828_vm9, %v2192_v58 }
  0xcc   : > { %1775 = vmatpush2.bf16.msra.mxu1 %v1842_v59 }
  0xcf   : > { %1396 = vmatmul.mubr.bf16.vlgmr.msra.gmra.mxu1 %v2227_v36 }
  0xd0   : > { %1388 = vmatmul.mubr.bf16.gmra.mxu0 %v2213_v26  ;;  %1727 = vmatprep.mubr.msk.bf16.mxu1 %vm828_vm9, %v2183_v3 }
  0xd7   : > { %1404 = vmatmul.mubr.bf16.gmra.mxu1 %v2238_v42 }
 0x158   : > { %v992_v60 = vpop.f32.mrf.mxu0 }
 0x159   : > { %v1029_v21 = vadd.f32 %v1647_v19, %v992_v60 }
 0x15a   : > { %v994_v61 = vpop.f32.mrf.mxu0 }
 0x15c   : > { %v995_v62 = vpop.f32.mrf.mxu0 }
 0x15d   : > { %v1030_v25 = vadd.f32 %v1647_v19, %v995_v62 }
 0x15e   : > { %v997_v63 = vpop.f32.mrf.mxu0 }
 0x15f   : > { %v1208_v7 = vpop.f32.mrf.mxu1 }
 0x160   : > { %v1000_v47 = vpop.f32.mrf.mxu0  ;;  %v1239_v22 = vadd.f32 %v1208_v7, %v1029_v21 }
 0x161   : > { %v1210_v2 = vpop.f32.mrf.mxu1  ;;  %v1031_v34 = vadd.f32 %v1647_v19, %v1000_v47 }
 0x162   : > { %v1002_v4 = vpop.f32.mrf.mxu0 }
 0x163   : > { %v1211_v5 = vpop.f32.mrf.mxu1 }
 0x164   : > { %v1003_v45 = vpop.f32.mrf.mxu0  ;;  %v1240_v29 = vadd.f32 %v1211_v5, %v1030_v25 }
 0x165   : > { %v1213_v50 = vpop.f32.mrf.mxu1  ;;  %v1032_v44 = vadd.f32 %v1647_v19, %v1003_v45 }
 0x166   : > { %v1005_v56 = vpop.f32.mrf.mxu0 }
 0x167   : > { %v1216_v6 = vpop.f32.mrf.mxu1 }
 0x168   : > { %v1008_v8 = vpop.f32.mrf.mxu0  ;;  %v1241_v39 = vadd.f32 %v1216_v6, %v1031_v34 }
 0x169   : > { %v1218_v20 = vpop.f32.mrf.mxu1  ;;  %v1033_v27 = vadd.f32 %v1647_v19, %v1008_v8 }
 0x16a   : > { %v1010_v23 = vpop.f32.mrf.mxu0 }
 0x16b   : > { %v1219_v9 = vpop.f32.mrf.mxu1 }
 0x16c   : > { %v1011_v3 = vpop.f32.mrf.mxu0  ;;  %v1242_v55 = vadd.f32 %v1219_v9, %v1032_v44 }
 0x16d   : > { %v1221_v10 = vpop.f32.mrf.mxu1  ;;  %v1034_v38 = vadd.f32 %v1647_v19, %v1011_v3 }
 0x16e   : > { %v1013_v11 = vpop.f32.mrf.mxu0 }
 0x16f   : > { %v1224_v46 = vpop.f32.mrf.mxu1 }
 0x170   : > { %v1016_v12 = vpop.f32.mrf.mxu0  ;;  %v1243_v37 = vadd.f32 %v1224_v46, %v1033_v27 }
 0x171   : > { %v1226_v14 = vpop.f32.mrf.mxu1  ;;  %v1035_v52 = vadd.f32 %v1647_v19, %v1016_v12 }
 0x172   : > { %v1018_v15 = vpop.f32.mrf.mxu0 }
 0x173   : > { %v1227_v58 = vpop.f32.mrf.mxu1 }
 0x174   : > { %v1019_v0 = vpop.f32.mrf.mxu0  ;;  %v1244_v51 = vadd.f32 %v1227_v58, %v1034_v38 }
 0x175   : > { %v1229_v33 = vpop.f32.mrf.mxu1  ;;  %v1036_v5 = vadd.f32 %v1647_v19, %v1019_v0 }
 0x176   : > { %v1021_v13 = vpop.f32.mrf.mxu0 }
 0x177   : > { %v1232_v30 = vpop.f32.mrf.mxu1 }
 0x178   : > { %v1245_v4 = vadd.f32 %v1232_v30, %v1035_v52 }
 0x179   : > { %v1234_v16 = vpop.f32.mrf.mxu1 }
 0x17b   : > { %v1235_v17 = vpop.f32.mrf.mxu1 }
 0x17c   : > { %v1246_v3 = vadd.f32 %v1235_v17, %v1036_v5 }
 0x17d   : > { %v1237_v18 = vpop.f32.mrf.mxu1 }
 0x188   : > { %v1381_v24 = vpop.f32.mrf.mxu0 }
 0x189   : > { %v1412_v26 = vadd.f32 %v1381_v24, %v1239_v22 }
 0x18a   : > { %v1383_v28 = vpop.f32.mrf.mxu0 }
 0x18b   : > { %v1420_v31 = vmax.f32 %v1412_v26, 0.0 }
 0x18c   : > { %v1384_v32 = vpop.f32.mrf.mxu0 }
 0x18d   : > { %v1743_v35 = vpack.c.bf16 %v1420_v31, %v1420_v31  ;;  %v1413_v36 = vadd.f32 %v1384_v32, %v1240_v29 }
 0x18e   : > { %v1386_v1 = vpop.f32.mrf.mxu0 }
 0x18f   : > { %1461 = vst.msk [vmem:[%s2319_s26] sm:$0xf] %vm1460_vm14, %v1743_v35  ;;  %v1421_v40 = vmax.f32 %v1413_v36, 0.0  ;;  %v1397_v41 = vpop.f32.mrf.mxu1 }
 0x190   : > { %v1416_v42 = vadd.f32 %v1397_v41, %v1243_v37  ;;  %v1389_v43 = vpop.f32.mrf.mxu0 }
 0x191   : > { %v1744_v48 = vpack.c.bf16 %v1421_v40, %v1421_v40  ;;  %v1414_v57 = vadd.f32 %v1389_v43, %v1241_v39  ;;  %v1399_v49 = vpop.f32.mrf.mxu1 }
 0x192   : > { %v1424_v53 = vmax.f32 %v1416_v42, 0.0  ;;  %v1391_v54 = vpop.f32.mrf.mxu0 }
 0x193   : > { %1462 = vst.msk [vmem:[%s2319_s26 + $0x4] sm:$0xf] %vm1460_vm14, %v1744_v48  ;;  %v1422_v59 = vmax.f32 %v1414_v57, 0.0  ;;  %v1400_v60 = vpop.f32.mrf.mxu1 }
 0x194   : > { %v1747_v61 = vpack.c.bf16 %v1424_v53, %v1424_v53  ;;  %v1417_v62 = vadd.f32 %v1400_v60, %v1244_v51  ;;  %v1392_v63 = vpop.f32.mrf.mxu0 }
 0x195   : > { %v1745_v7 = vpack.c.bf16 %v1422_v59, %v1422_v59  ;;  %v1415_v47 = vadd.f32 %v1392_v63, %v1242_v55  ;;  %v1402_v2 = vpop.f32.mrf.mxu1 }
 0x196   : > { %1465 = vst.msk [vmem:[%s2319_s26 + $0x10] sm:$0xf] %vm1460_vm14, %v1747_v61  ;;  %v1425_v45 = vmax.f32 %v1417_v62, 0.0  ;;  %v1394_v50 = vpop.f32.mrf.mxu0 }
 0x197   : > { %1463 = vst.msk [vmem:[%s2319_s26 + $0x8] sm:$0xf] %vm1460_vm14, %v1745_v7  ;;  %v1423_v56 = vmax.f32 %v1415_v47, 0.0  ;;  %v1405_v6 = vpop.f32.mrf.mxu1 }
 0x198   : > { %v1748_v8 = vpack.c.bf16 %v1425_v45, %v1425_v45  ;;  %v1418_v20 = vadd.f32 %v1405_v6, %v1245_v4 }
 0x199   : > { %v1746_v23 = vpack.c.bf16 %v1423_v56, %v1423_v56  ;;  %v1407_v9 = vpop.f32.mrf.mxu1 }
 0x19a   : > { %1466 = vst.msk [vmem:[%s2319_s26 + $0x14] sm:$0xf] %vm1460_vm14, %v1748_v8  ;;  %v1426_v10 = vmax.f32 %v1418_v20, 0.0 }
 0x19b   : > { %1464 = vst.msk [vmem:[%s2319_s26 + $0xc] sm:$0xf] %vm1460_vm14, %v1746_v23  ;;  %v1408_v11 = vpop.f32.mrf.mxu1 }
 0x19c   : > { %v1749_v46 = vpack.c.bf16 %v1426_v10, %v1426_v10  ;;  %v1419_v12 = vadd.f32 %v1408_v11, %v1246_v3 }
 0x19d   : > { %v1410_v14 = vpop.f32.mrf.mxu1 }
 0x19e   : > { %1467 = vst.msk [vmem:[%s2319_s26 + $0x18] sm:$0xf] %vm1460_vm14, %v1749_v46  ;;  %v1427_v15 = vmax.f32 %v1419_v12, 0.0 }
 0x1a0   : > { %v1750_v58 = vpack.c.bf16 %v1427_v15, %v1427_v15 }
 0x1a2   : > { %1468 = vst.msk [vmem:[%s2319_s26 + $0x1c] sm:$0xf] %vm1460_vm14, %v1750_v58 }
 0x1a3 PF: > { %s15_s20 = sadd.s32 1, %s1865_s20   ;;  %s2358_s18 = smov %s1861_s19 }
 0x1a4   : > { %p12_p5 = scmp.ge.s32.totalorder %s15_s20, 4   ;;  %s2359_s19 = smov %s2361_s21 }
 0x1a6   :  { %14 = sbr.rel (!%p12_p5) target bundleno = 2 (0x2), region = 78 }

// kernel: pup_head_forward.6
= control target key start
LH: loop header
LB: loop body
LE: loop exit
PB: predicated region body
PF: predicated region fallthrough
CT: control target
= control target key end

     0   :  { %s3553_s18 = smov 0   ;;  %s3555_s19 = smov 0   ;;  %s4650_s0 = inlined_call_operand.vmem [shape: bf16[2,16,16,64], index: 0, kind: input, shape index: {}, may-alias: {0,1,2}]   ;;  %s4651_s1 = inlined_call_operand.vmem [shape: bf16[2,256,64], index: 1, kind: input, shape index: {}, may-alias: {0,1,2}]   ;;  %s4652_s2 = inlined_call_operand.vmem [shape: bf16[2,16,16,64], index: 2, kind: input, shape index: {}, may-alias: {0,1,2}]   ;;  %s4653_s3 = inlined_call_operand.vmem [shape: bf16[3,192,64], index: 3, kind: input, shape index: {}]   ;;  %s4654_s4 = inlined_call_operand.vmem [shape: f32[1,64], index: 4, kind: input, shape index: {}]   ;;  %s4655_s5 = inlined_call_operand.vmem [shape: bf16[2,256,64], index: 5, kind: output, shape index: {}]  }
   0x1   :  { %s3557_s20 = smov 0  }
   0x2 LB: > { %s27_s21 = sadd.s32 1, %s3513_s19  ;;  %p3123_p0 = scmp.ge.s32.totalorder %s3517_s20, 1  ;;  %s3517_s20 = sphi %s3557_s20, %s15_s20   ;;  %s3513_s19 = sphi %s3555_s19, %s4671_s19   ;;  %s3509_s18 = sphi %s3553_s18, %s4670_s18  }
   0x3   : > { %p29_p1 = scmp.ge.s32.totalorder %s27_s21, 2  ;;  %p272_p2 = scmp.lt.s32.totalorder %s3517_s20, 3 }
   0x5   : > { %s4673_s21 = smov (%p29_p1, %s27_s21), 0  ;;  %p273_p3 = pnand %p3123_p0, %p272_p2 }
   0x6   : > { %p338_p4 = scmp.lt.s32.totalorder (!%p273_p3), %s3509_s18, 1  ;;  %s3520_s12 = smov (!%p273_p3), 64  }
   0x7   : > { %276 = sbr.rel (%p273_p3) target bundleno = 540 (0x21c), region = 40 }
   0xc   : > { %v722_v0 = vlaneseq  ;;  %s4675_s18 = smov (!%p338_p4, %s3509_s18), 1  ;;  %v3519_v1 = vmov 0   ;;  %v3459_v2 = vld [vmem:[%s4653_s3 + $0x38] sm:$0xff]   ;;  %v3460_v4 = vld [vmem:[%s4653_s3 + $0x30] sm:$0xff]   ;;  %vm557_vm0 = vsmask.f32 256 }
   0xd   : > { %3391 = vmatprep.subr.bf16.mxu1 %v3519_v1  ;;  %2012 = vmatprep.subr.bf16.mxu0 %v3519_v1  ;;  %s3578_s24 = sshll.u32 %s4675_s18, 7  ;;  %v3461_v6 = vld [vmem:[%s4653_s3 + $0x28] sm:$0xff]   ;;  %vm716_vm1 = vcmask 1040384   ;;  %v3462_v19 = vld [vmem:[%s4653_s3 + $0x20] sm:$0xff]   ;;  %vm1552_vm2 = vsmask.f32 7424 }
   0xe   : > { %v3576_v3 = vshrl.u32 %v722_v0, 7  ;;  %3403 = vmatpush1.bf16.msra.mxu1 %v3459_v2  ;;  %2013 = vmatpush1.bf16.msra.mxu0 %v3459_v2  ;;  %s3587_s29 = scalar_lea.vmem %s4651_s1, %s3578_s24  ;;  %s346_s7 = scalar_lea.vmem %s4650_s0, %s3578_s24  ;;  %vm3641_vm3 = vmand %vm716_vm1, %vm557_vm0  ;;  %vm1756_vm7 = vcmask 1046528   ;;  %vm1794_vm9 = vcmask 523264  }
   0xf   : > { %3392 = vmatprep.subr.bf16.mxu1 %v3519_v1  ;;  %2014 = vmatprep.subr.bf16.mxu0 %v3519_v1  ;;  %v3602_v7 = vld [vmem:[%s3587_s29 + $0x30] sm:$0xff]   ;;  %v3444_v8 = vld [vmem:[%s3587_s29 + $0x38] sm:$0xff]   ;;  %v3445_v9 = vld [vmem:[%s3587_s29 + $0x40] sm:$0xff]   ;;  %s3356_s8 = sadd.s32 120, %s3578_s24  ;;  %s4515_s26 = scalar_lea.vmem %s4655_s5, %s3578_s24 }
  0x10   : > { %v3592_v5 = vadd.s32 120, %v3576_v3  ;;  %v3607_v10 = vadd.s32 136, %v3576_v3  ;;  %v3610_v11 = vadd.s32 152, %v3576_v3  ;;  %v389_v13 = vld [vmem:[%s346_s7] sm:$0xf]  ;;  %v606_v15 = vshrl.u32 %v3602_v7, 16  ;;  %s373_s11 = scalar_lea.vmem %s4652_s2, %s3356_s8 }
  0x11   : > { %v390_v14 = vld [vmem:[%s346_s7 + $0x4] sm:$0xf]  ;;  %v614_v16 = vshrl.u32 %v3444_v8, 16  ;;  %v617_v17 = vshll.u32 %v3444_v8, 16  ;;  %v622_v18 = vshrl.u32 %v3445_v9, 16  ;;  %v625_v20 = vshll.u32 %v3445_v9, 16 }
  0x12   : > { %3404 = vmatpush1.bf16.msra.mxu1 %v3460_v4  ;;  %2015 = vmatpush1.bf16.msra.mxu0 %v3460_v4  ;;  %v868_v12 = vand.u32 15, %v3592_v5  ;;  %v408_v21 = vmul.bf16 0.0, %v389_v13  ;;  %v409_v22 = vmul.bf16 0.0, %v390_v14  ;;  %v3446_v23 = vld [vmem:[%s3587_s29] sm:$0xff]   ;;  %v3620_v24 = vrot.slane %v606_v15, 7  ;;  %v3447_v27 = vld [vmem:[%s3587_s29 + $0x48] sm:$0xff]  }
  0x13   : > { %3393 = vmatprep.subr.bf16.mxu1 %v3519_v1  ;;  %2016 = vmatprep.subr.bf16.mxu0 %v3519_v1  ;;  %v616_v25 = vrot.slane %v614_v16, 7  ;;  %v624_v26 = vrot.slane %v622_v18, 7  ;;  %v559_v29 = vshrl.u32 %v3446_v23, 16  ;;  %v562_v30 = vshll.u32 %v3446_v23, 16  ;;  %v3448_v35 = vld [vmem:[%s3587_s29 + $0x8] sm:$0xff]   ;;  %v3449_v39 = vld [vmem:[%s3587_s29 + $0x50] sm:$0xff]  }
  0x14   : > { %v3132_v28 = vcombine.low %v408_v21, %v409_v22  ;;  %v630_v33 = vshrl.u32 %v3447_v27, 16  ;;  %v633_v34 = vshll.u32 %v3447_v27, 16  ;;  %v566_v43 = vshrl.u32 %v3448_v35, 16  ;;  %v3450_v57 = vld [vmem:[%s3587_s29 + $0x10] sm:$0xff]   ;;  %v3452_v22 = vld [vmem:[%s3587_s29 + $0x18] sm:$0xff]  }
  0x15   : > { %v619_v31 = vor.u32 %v617_v17, %v616_v25  ;;  %v627_v32 = vor.u32 %v625_v20, %v624_v26  ;;  %v561_v38 = vrot.slane %v559_v29, 7  ;;  %v569_v56 = vshll.u32 %v3448_v35, 16  ;;  %v3451_v17 = vld [vmem:[%s3587_s29 + $0x58] sm:$0xff]  }
  0x16   : > { %3405 = vmatpush1.bf16.msra.mxu1 %v3461_v6  ;;  %2017 = vmatpush1.bf16.msra.mxu0 %v3461_v6  ;;  %v469_v36 = vshrl.u32 %v3132_v28, 16  ;;  %v472_v37 = vshll.u32 %v3132_v28, 16  ;;  %v632_v42 = vrot.slane %v630_v33, 7  ;;  %v3646_v52 = vrot.slane %v566_v43, 7 }
  0x17   : > { %3394 = vmatprep.subr.bf16.mxu1 %v3519_v1  ;;  %2018 = vmatprep.subr.bf16.mxu0 %v3519_v1  ;;  %v3629_v40 = vsel %vm557_vm0, %v3620_v24, %v619_v31  ;;  %v3632_v41 = vsel %vm557_vm0, %v616_v25, %v627_v32  ;;  %v564_v48 = vor.u32 %v562_v30, %v561_v38  ;;  %v638_v60 = vshrl.u32 %v3449_v39, 16  ;;  %v3453_v32 = vld [vmem:[%s3587_s29 + $0x60] sm:$0xff]  }
  0x18   : > { %v1617_v44 = vshll.u32 %v3629_v40, 16  ;;  %v1621_v45 = vshrl.u32 %v3629_v40, 16  ;;  %v1625_v46 = vshll.u32 %v3632_v41, 16  ;;  %v471_v47 = vrot.slane %v469_v36, 7 }
  0x19   : > { %v635_v50 = vor.u32 %v633_v34, %v632_v42  ;;  %v1629_v51 = vshrl.u32 %v3632_v41, 16  ;;  %v641_v61 = vshll.u32 %v3449_v39, 16  ;;  %v571_v9 = vor.u32 %v569_v56, %v3646_v52 }
  0x1a   : > { %3406 = vmatpush1.bf16.msra.mxu1 %v3462_v19  ;;  %2019 = vmatpush1.bf16.msra.mxu0 %v3462_v19  ;;  %v3648_v53 = vrot.slane %v1617_v44, 1  ;;  %v1627_v54 = vrot.slane %v1625_v46, 1  ;;  %v474_v55 = vor.u32 %v472_v37, %v471_v47  ;;  %v3653_v58 = vsel %vm3641_vm3, %v471_v47, %v564_v48  ;;  %v3454_v37 = vld [vmem:[%s3587_s29 + $0x20] sm:$0xff]   ;;  %v3463_v46 = vld [vmem:[%s4653_s3 + $0x18] sm:$0xff]  }
  0x1b   : > { %3395 = vmatprep.subr.bf16.mxu1 %v3519_v1  ;;  %2020 = vmatprep.subr.bf16.mxu0 %v3519_v1  ;;  %v3656_v59 = vsel %vm557_vm0, %v624_v26, %v635_v50  ;;  %v1561_v0 = vshll.u32 %v3653_v58, 16  ;;  %v1565_v15 = vshrl.u32 %v3653_v58, 16  ;;  %v640_v16 = vrot.slane %v638_v60, 7 }
  0x1c   : > { %v1623_v62 = vor.u32 %v1621_v45, %v3648_v53  ;;  %v3661_v63 = vsel %vm3641_vm3, 0, %v474_v55  ;;  %v1631_v2 = vor.u32 %v1629_v51, %v1627_v54  ;;  %v1633_v8 = vshll.u32 %v3656_v59, 16  ;;  %v3689_v45 = vld [vmem:[%s3587_s29 + $0x68] sm:$0xff]   ;;  %v3464_v51 = vld [vmem:[%s4653_s3 + $0x10] sm:$0xff]  }
  0x1d   : > { %v1554_v4 = vshrl.u32 %v3661_v63, 16  ;;  %v1556_v6 = vshll.u32 %v3661_v63, 16  ;;  %v1563_v14 = vrot.slane %v1561_v0, 1  ;;  %v3673_v20 = vsel %vm557_vm0, %v561_v38, %v571_v9 }
  0x1e   : > { %v1628_v13 = vsel %vm1552_vm2, %v1623_v62, %v1627_v54  ;;  %v1635_v19 = vrot.slane %v1633_v8, 1  ;;  %v1637_v21 = vshrl.u32 %v3656_v59, 16  ;;  %v1569_v25 = vshll.u32 %v3673_v20, 16  ;;  %3407 = vmatpush1.bf16.msra.mxu1 %v3463_v46  ;;  %2021 = vmatpush1.bf16.msra.mxu0 %v3463_v46 }
  0x1f   : > { %1717 = vrot.lane.b32.xlu0 %v1628_v13, %s3520_s12  ;;  %v1558_v18 = vrot.slane %v1556_v6, 1  ;;  %v1567_v23 = vor.u32 %v1565_v15, %v1563_v14  ;;  %v643_v26 = vor.u32 %v641_v61, %v640_v16  ;;  %v574_v27 = vshrl.u32 %v3450_v57, 16  ;;  %3396 = vmatprep.subr.bf16.mxu1 %v3519_v1 }
  0x20   : > { %v1636_v29 = vsel %vm1552_vm2, %v1631_v2, %v1635_v19  ;;  %v1639_v30 = vor.u32 %v1637_v21, %v1635_v19  ;;  %v577_v31 = vshll.u32 %v3450_v57, 16  ;;  %v1571_v33 = vrot.slane %v1569_v25, 1  ;;  %2022 = vmatprep.subr.bf16.mxu0 %v3519_v1  ;;  %v3465_v21 = vld [vmem:[%s4653_s3 + $0x8] sm:$0xff]  }
  0x21   : > { %v1559_v28 = vor.u32 %v1558_v18, %v1554_v4  ;;  %1719 = vrot.lane.b32.xlu1 %v1636_v29, %s3520_s12  ;;  %v3682_v34 = vsel %vm557_vm0, %v632_v42, %v643_v26  ;;  %v576_v35 = vrot.slane %v574_v27, 7  ;;  %v1573_v36 = vshrl.u32 %v3673_v20, 16 }
  0x22   : > { %v1641_v39 = vshll.u32 %v3682_v34, 16  ;;  %v646_v43 = vshrl.u32 %v3451_v17, 16  ;;  %v649_v44 = vshll.u32 %v3451_v17, 16  ;;  %v1572_v42 = vsel %vm1552_vm2, %v1567_v23, %v1571_v33  ;;  %3408 = vmatpush1.bf16.msra.mxu1 %v3464_v51  ;;  %2023 = vmatpush1.bf16.msra.mxu0 %v3464_v51 }
  0x23   : > { %v1564_v38 = vsel %vm1552_vm2, %v1559_v28, %v1563_v14  ;;  %v579_v47 = vor.u32 %v577_v31, %v576_v35  ;;  %v1575_v48 = vor.u32 %v1573_v36, %v1571_v33  ;;  %v1645_v50 = vshrl.u32 %v3682_v34, 16  ;;  %3397 = vmatprep.subr.bf16.mxu1 %v3519_v1  ;;  %2024 = vmatprep.subr.bf16.mxu0 %v3519_v1 }
  0x24   : > { %1701 = vrot.lane.b32.xlu0 %v1564_v38, %s3520_s12  ;;  %v1643_v54 = vrot.slane %v1641_v39, 1  ;;  %v648_v55 = vrot.slane %v646_v43, 7  ;;  %v582_v56 = vshrl.u32 %v3452_v22, 16  ;;  %v585_v57 = vshll.u32 %v3452_v22, 16 }
  0x25   : > { %1703 = vrot.lane.b32.xlu1 %v1572_v42, %s3520_s12  ;;  %v3703_v60 = vsel %vm557_vm0, %v3646_v52, %v579_v47  ;;  %v654_v61 = vshrl.u32 %v3453_v32, 16  ;;  %v657_v62 = vshll.u32 %v3453_v32, 16  ;;  %v590_v0 = vshrl.u32 %v3454_v37, 16 }
  0x26   : > { %v1644_v2 = vsel %vm1552_vm2, %v1639_v30, %v1643_v54  ;;  %v1577_v4 = vshll.u32 %v3703_v60, 16  ;;  %v651_v6 = vor.u32 %v649_v44, %v648_v55  ;;  %v1647_v8 = vor.u32 %v1645_v50, %v1643_v54  ;;  %v3456_v30 = vld [vmem:[%s3587_s29 + $0x28] sm:$0xff]   ;;  %3409 = vmatpush1.bf16.msra.mxu1 %v3465_v21  ;;  %2025 = vmatpush1.bf16.msra.mxu0 %v3465_v21 }
  0x27   : > { %v584_v9 = vrot.slane %v582_v56, 7  ;;  %v1581_v13 = vshrl.u32 %v3703_v60, 16  ;;  %v656_v52 = vrot.slane %v654_v61, 7  ;;  %v3711_v14 = vrot.slane %v590_v0, 7  ;;  %3398 = vmatprep.subr.bf16.mxu1 %v3519_v1  ;;  %2026 = vmatprep.subr.bf16.mxu0 %v3519_v1  ;;  %v3467_v0 = vld [vmem:[%s4653_s3 + $0x58] sm:$0xff]  }
  0x28   : > { %1721 = vrot.lane.b32.xlu0 %v1644_v2, %s3520_s12  ;;  %v1579_v15 = vrot.slane %v1577_v4, 1  ;;  %v3714_v17 = vsel %vm557_vm0, %v640_v16, %v651_v6  ;;  %v593_v18 = vshll.u32 %v3454_v37, 16  ;;  %v662_v19 = vshrl.u32 %v3689_v45, 16  ;;  %v3457_v37 = vld [vmem:[%s3587_s29 + $0x70] sm:$0xff]  }
  0x29   : > { %v1649_v22 = vshll.u32 %v3714_v17, 16  ;;  %v587_v23 = vor.u32 %v585_v57, %v584_v9  ;;  %v659_v25 = vor.u32 %v657_v62, %v656_v52  ;;  %v1653_v26 = vshrl.u32 %v3714_v17, 16 }
  0x2a   : > { %v1580_v16 = vsel %vm1552_vm2, %v1575_v48, %v1579_v15  ;;  %v1583_v27 = vor.u32 %v1581_v13, %v1579_v15  ;;  %v595_v28 = vor.u32 %v593_v18, %v3711_v14  ;;  %v3726_v29 = vrot.slane %v662_v19, 7  ;;  %v3458_v48 = vld [vmem:[%s3587_s29 + $0x78] sm:$0xff]  }
  0x2b   : > { %1705 = vrot.lane.b32.xlu1 %v1580_v16, %s3520_s12  ;;  %v1651_v31 = vrot.slane %v1649_v22, 1  ;;  %v3731_v32 = vsel %vm557_vm0, %v576_v35, %v587_v23  ;;  %v3734_v33 = vsel %vm557_vm0, %v648_v55, %v659_v25  ;;  %v665_v36 = vshll.u32 %v3689_v45, 16  ;;  %v3466_v35 = vld [vmem:[%s4653_s3] sm:$0xff]  }
  0x2c   : > { %v1585_v38 = vshll.u32 %v3731_v32, 16  ;;  %v1657_v39 = vshll.u32 %v3734_v33, 16  ;;  %v3741_v43 = vsel %vm557_vm0, %v584_v9, %v595_v28  ;;  %v1589_v44 = vshrl.u32 %v3731_v32, 16  ;;  %3410 = vmatpush1.bf16.msra.mxu1 %v3466_v35  ;;  %2027 = vmatpush1.bf16.msra.mxu0 %v3466_v35 }
  0x2d   : > { %v1652_v46 = vsel %vm1552_vm2, %v1647_v8, %v1651_v31  ;;  %v1655_v42 = vor.u32 %v1653_v26, %v1651_v31  ;;  %v1593_v45 = vshll.u32 %v3741_v43, 16  ;;  %v667_v47 = vor.u32 %v665_v36, %v3726_v29  ;;  %3399 = vmatprep.subr.bf16.mxu1 %v3519_v1  ;;  %2036 = vmatprep.subr.bf16.mxu0 %v3519_v1 }
  0x2e   : > { %1723 = vrot.lane.b32.xlu0 %v1652_v46, %s3520_s12  ;;  %v1587_v50 = vrot.slane %v1585_v38, 1  ;;  %v1659_v51 = vrot.slane %v1657_v39, 1  ;;  %v1661_v54 = vshrl.u32 %v3734_v33, 16  ;;  %v598_v55 = vshrl.u32 %v3456_v30, 16 }
  0x2f   : > { %v1595_v56 = vrot.slane %v1593_v45, 1  ;;  %v3756_v57 = vsel %vm557_vm0, %v656_v52, %v667_v47  ;;  %v601_v61 = vshll.u32 %v3456_v30, 16  ;;  %v1597_v62 = vshrl.u32 %v3741_v43, 16  ;;  %v3468_v30 = vld [vmem:[%s4653_s3 + $0x50] sm:$0xff]  }
  0x30   : > { %v1588_v2 = vsel %vm1552_vm2, %v1583_v27, %v1587_v50  ;;  %v1660_v4 = vsel %vm1552_vm2, %v1655_v42, %v1659_v51  ;;  %v1591_v6 = vor.u32 %v1589_v44, %v1587_v50  ;;  %v1663_v8 = vor.u32 %v1661_v54, %v1659_v51  ;;  %3411 = vmatpush2.bf16.msra.mxu1 %v3467_v0 }
  0x31   : > { %1707 = vrot.lane.b32.xlu1 %v1588_v2, %s3520_s12  ;;  %v1665_v9 = vshll.u32 %v3756_v57, 16  ;;  %v600_v13 = vrot.slane %v598_v55, 7  ;;  %v1599_v52 = vor.u32 %v1597_v62, %v1595_v56  ;;  %v670_v15 = vshrl.u32 %v3457_v37, 16  ;;  %2037 = vmatpush2.bf16.msra.mxu0 %v3467_v0  ;;  %v3470_v0 = vld [vmem:[%s4653_s3 + $0x40] sm:$0xff]  }
  0x32   : > { %1725 = vrot.lane.b32.xlu0 %v1660_v4, %s3520_s12  ;;  %v1596_v18 = vsel %vm1552_vm2, %v1591_v6, %v1595_v56  ;;  %v673_v19 = vshll.u32 %v3457_v37, 16  ;;  %v1669_v21 = vshrl.u32 %v3756_v57, 16  ;;  %v609_v22 = vshll.u32 %v3602_v7, 16  ;;  %3400 = vmatprep.subr.bf16.mxu1 %v3519_v1 }
  0x33   : > { %v1667_v23 = vrot.slane %v1665_v9, 1  ;;  %v603_v25 = vor.u32 %v601_v61, %v600_v13  ;;  %v672_v26 = vrot.slane %v670_v15, 7  ;;  %v678_v16 = vshrl.u32 %v3458_v48, 16  ;;  %2038 = vmatprep.subr.bf16.mxu0 %v3519_v1 }
  0x34   : > { %v611_v27 = vor.u32 %v609_v22, %v3620_v24  ;;  %v681_v28 = vshll.u32 %v3458_v48, 16  ;;  %v882_v31 = vand.u32 15, %v3607_v10  ;;  %v896_v7 = vand.u32 15, %v3610_v11  ;;  %3412 = vmatpush2.bf16.msra.mxu1 %v3468_v30 }
  0x35   : > { %1709 = vrot.lane.b32.xlu1 %v1596_v18, %s3520_s12  ;;  %v1668_v36 = vsel %vm1552_vm2, %v1663_v8, %v1667_v23  ;;  %v3782_v37 = vsel %vm557_vm0, %v3711_v14, %v603_v25  ;;  %v675_v38 = vor.u32 %v673_v19, %v672_v26  ;;  %v1671_v24 = vor.u32 %v1669_v21, %v1667_v23 }
  0x36   : > { %1727 = vrot.lane.b32.xlu0 %v1668_v36, %s3520_s12  ;;  %v1601_v39 = vshll.u32 %v3782_v37, 16  ;;  %v3787_v44 = vsel %vm557_vm0, %v600_v13, %v611_v27  ;;  %v1605_v10 = vshrl.u32 %v3782_v37, 16  ;;  %v3790_v11 = vrot.slane %v678_v16, 7  ;;  %3401 = vmatprep.subr.bf16.mxu1 %v3519_v1 }
  0x37   : > { %v3794_v35 = vsel %vm557_vm0, %v3726_v29, %v675_v38  ;;  %v1609_v14 = vshll.u32 %v3787_v44, 16  ;;  %v1613_v46 = vshrl.u32 %v3787_v44, 16  ;;  %vm1350_vm4 = vcmp.ne.s32.totalorder %v868_v12, 15  ;;  %v3469_v29 = vld [vmem:[%s4653_s3 + $0x48] sm:$0xff]   ;;  %2039 = vmatpush2.bf16.msra.mxu0 %v3468_v30 }
  0x38   : > { %v1603_v42 = vrot.slane %v1601_v39, 1  ;;  %v1673_v45 = vshll.u32 %v3794_v35, 16  ;;  %v683_v47 = vor.u32 %v681_v28, %v3790_v11  ;;  %v1677_v48 = vshrl.u32 %v3794_v35, 16  ;;  %2040 = vmatprep.subr.bf16.mxu0 %v3519_v1  ;;  %3413 = vmatpush2.bf16.msra.mxu1 %v3469_v29 }
  0x39   : > { %v1611_v50 = vrot.slane %v1609_v14, 1  ;;  %vm1352_vm5 = vcmp.ne.s32.totalorder %v882_v31, 15  ;;  %vm1354_vm6 = vcmp.ne.s32.totalorder %v896_v7, 15  ;;  %v3521_v51 = vmov 0.0   ;;  %3402 = vmatprep.subr.bf16.mxu1 %v3519_v1 }
  0x3a   : > { %v3175_v5 = vsel %vm1350_vm4, 1.0, %v3521_v51  ;;  %v1604_v12 = vsel %vm1552_vm2, %v1599_v52, %v1603_v42  ;;  %v1675_v54 = vrot.slane %v1673_v45, 1  ;;  %v1607_v55 = vor.u32 %v1605_v10, %v1603_v42 }
  0x3b   : > { %v3812_v56 = vsel %vm557_vm0, %v672_v26, %v683_v47  ;;  %1711 = vrot.lane.b32.xlu1 %v1604_v12, %s3520_s12  ;;  %v1615_v62 = vor.u32 %v1613_v46, %v1611_v50  ;;  %v3176_v2 = vsel %vm1352_vm5, 1.0, %v3521_v51  ;;  %v3177_v4 = vsel %vm1354_vm6, 1.0, %v3521_v51  ;;  %2041 = vmatpush2.bf16.msra.mxu0 %v3469_v29 }
  0x3c   : > { %v1681_v61 = vshll.u32 %v3812_v56, 16  ;;  %v1676_v6 = vsel %vm1552_vm2, %v1671_v24, %v1675_v54  ;;  %v1612_v8 = vsel %vm1552_vm2, %v1607_v55, %v1611_v50  ;;  %v1679_v9 = vor.u32 %v1677_v48, %v1675_v54  ;;  %2042 = vmatprep.subr.bf16.mxu0 %v3519_v1  ;;  %3414 = vmatpush2.bf16.msra.mxu1 %v3470_v0 }
  0x3d   : > { %v3522_v13 = vmov 1.0   ;;  %1729 = vrot.lane.b32.xlu0 %v1676_v6, %s3520_s12  ;;  %v724_v26 = vadd.s32 8, %v3576_v3  ;;  %v1620_v16 = vsel %vm1552_vm2, %v1615_v62, %v3648_v53  ;;  %v726_v27 = vadd.s32 24, %v3576_v3  ;;  %2311 = vmatprep.subr.bf16.mxu1 %v3519_v1 }
  0x3e   : > { %v3825_v52 = vpack.c.bf16 %v3175_v5, %v3522_v13  ;;  %v3828_v15 = vrot.slane %v1681_v61, 1  ;;  %v1451_v18 = vpack.c.bf16 %v3176_v2, %v3522_v13  ;;  %v1452_v19 = vpack.c.bf16 %v3177_v4, %v3522_v13 }
  0x3f   : > { %1713 = vrot.lane.b32.xlu1 %v1612_v8, %s3520_s12  ;;  %v744_v28 = vadd.s32 168, %v3576_v3  ;;  %v770_v7 = vand.u32 15, %v724_v26  ;;  %2043 = vmatpush2.bf16.msra.mxu0 %v3470_v0  ;;  %v784_v38 = vand.u32 15, %v726_v27  ;;  %v728_v29 = vadd.s32 40, %v3576_v3 }
  0x40   : > { %v1492_v21 = vrot.slane %v3825_v52, 7  ;;  %v1684_v22 = vsel %vm1552_vm2, %v1679_v9, %v3828_v15  ;;  %v1494_v23 = vrot.slane %v1451_v18, 7  ;;  %v1496_v25 = vrot.slane %v1452_v19, 7  ;;  %2604 = vmatprep.subr.bf16.mxu0 %v3519_v1 }
  0x41   : > { %1731 = vrot.lane.b32.xlu0 %v1684_v22, %s3520_s12  ;;  %vm1336_vm8 = vcmp.ne.s32.totalorder %v770_v7, 15  ;;  %v910_v24 = vand.u32 15, %v744_v28  ;;  %vm1338_vm10 = vcmp.ne.s32.totalorder %v784_v38, 15  ;;  %v798_v54 = vand.u32 15, %v728_v29 }
  0x42   : > { %v1495_v30 = vsel %vm716_vm1, %v1492_v21, %v1494_v23  ;;  %v1497_v31 = vsel %vm716_vm1, %v1494_v23, %v1496_v25  ;;  %v3168_v14 = vsel %vm1336_vm8, 1.0, %v3521_v51  ;;  %v3169_v46 = vsel %vm1338_vm10, 1.0, %v3521_v51 }
  0x43   : > { %v1541_v36 = vmul.bf16 %v1495_v30, %v3629_v40  ;;  %v1542_v53 = vmul.bf16 %v1497_v31, %v3632_v41  ;;  %1715 = vrot.lane.b32.xlu1 %v1620_v16, %s3520_s12  ;;  %vm1356_vm11 = vcmp.ne.s32.totalorder %v910_v24, 15  ;;  %v1443_v45 = vpack.c.bf16 %v3168_v14, %v3522_v13 }
  0x44   : > { %v1444_v47 = vpack.c.bf16 %v3169_v46, %v3522_v13  ;;  %v3178_v48 = vsel %vm1356_vm11, 1.0, %v3521_v51  ;;  %v746_v55 = vadd.s32 184, %v3576_v3  ;;  %vm1340_vm12 = vcmp.ne.s32.totalorder %v798_v54, 15 }
  0x45   : > { %v3853_v39 = vrot.slane %v1541_v36, 1  ;;  %v1774_v10 = vrot.slane %v1542_v53, 1  ;;  %v1479_v50 = vrot.slane %v1443_v45, 7  ;;  %v1453_v12 = vpack.c.bf16 %v3178_v48, %v3522_v13 }
  0x46   : > { %v1480_v5 = vrot.slane %v1444_v47, 7  ;;  %v3170_v8 = vsel %vm1340_vm12, 1.0, %v3521_v51  ;;  %v924_v9 = vand.u32 15, %v746_v55  ;;  %v730_v23 = vadd.s32 56, %v3576_v3 }
  0x47   : > { %v3859_v42 = vsel %vm1756_vm7, %v3853_v39, %v1774_v10  ;;  %v1533_v62 = vmul.bf16 %v1479_v50, %v3661_v63  ;;  %v1498_v0 = vrot.slane %v1453_v12, 7  ;;  %v1445_v22 = vpack.c.bf16 %v3170_v8, %v3522_v13 }
  0x48   : > { %3206 = vmatprep.mubr.msk.bf16.mxu1 %vm1794_vm9, %v3859_v42  ;;  %v1481_v61 = vsel %vm716_vm1, %v1479_v50, %v1480_v5  ;;  %vm1358_vm13 = vcmp.ne.s32.totalorder %v924_v9, 15  ;;  %v748_v46 = vadd.s32 200, %v3576_v3  ;;  %v743_v49 = vadd.s32 160, %v3576_v3 }
  0x49   : > { %v1534_v2 = vmul.bf16 %v1481_v61, %v3653_v58  ;;  %v1757_v4 = vrot.slane %v1533_v62, 1  ;;  %v1499_v6 = vsel %vm716_vm1, %v1496_v25, %v1498_v0  ;;  %v1482_v27 = vrot.slane %v1445_v22, 7 }
  0x4a   : > { %v1543_v19 = vmul.bf16 %v1499_v6, %v3656_v59  ;;  %v3179_v28 = vsel %vm1358_vm13, 1.0, %v3521_v51  ;;  %v812_v25 = vand.u32 15, %v730_v23  ;;  %v938_v50 = vand.u32 15, %v748_v46 }
  0x4b   : > { %v1758_v18 = vrot.slane %v1534_v2, 1  ;;  %v1483_v31 = vsel %vm716_vm1, %v1480_v5, %v1482_v27  ;;  %v1454_v7 = vpack.c.bf16 %v3179_v28, %v3522_v13 }
  0x4c   : > { %v1776_v16 = vrot.slane %v1543_v19, 1  ;;  %v1535_v36 = vmul.bf16 %v1483_v31, %v3673_v20  ;;  %vm1342_vm14 = vcmp.ne.s32.totalorder %v812_v25, 15  ;;  %vm1360_vm15 = vcmp.ne.s32.totalorder %v938_v50, 15 }
  0x4d   : > { %v1759_v26 = vsel %vm1756_vm7, %v1757_v4, %v1758_v18  ;;  %v1500_v53 = vrot.slane %v1454_v7, 7  ;;  %v3171_v38 = vsel %vm1342_vm14, 1.0, %v3521_v51  ;;  %v3180_v62 = vsel %vm1360_vm15, 1.0, %v3521_v51 }
  0x4e   : > { %3198 = vmatprep.mubr.msk.bf16.mxu0 %vm1794_vm9, %v1759_v26  ;;  %v3881_v30 = vsel %vm1756_vm7, %v1774_v10, %v1776_v16  ;;  %v1760_v24 = vrot.slane %v1535_v36, 1  ;;  %v1446_v14 = vpack.c.bf16 %v3171_v38, %v3522_v13  ;;  %v732_v10 = vadd.s32 72, %v3576_v3 }
  0x4f   : > { %v1501_v45 = vsel %vm716_vm1, %v1498_v0, %v1500_v53  ;;  %v3902_v2 = vpack.c.bf16 %v3180_v62, %v3522_v13  ;;  %v736_v31 = vadd.s32 104, %v3576_v3  ;;  %v739_v50 = vadd.s32 128, %v3576_v3 }
  0x50   : > { %v3892_v47 = vsel %vm1756_vm7, %v1758_v18, %v1760_v24  ;;  %v1544_v48 = vmul.bf16 %v1501_v45, %v3682_v34  ;;  %v1484_v29 = vrot.slane %v1446_v14, 7  ;;  %v826_v5 = vand.u32 15, %v732_v10  ;;  %v410_v45 = vld [vmem:[%s373_s11] sm:$0xf]  ;;  %v411_v10 = vld [vmem:[%s373_s11 + $0x4] sm:$0xf] }
  0x51   : > { %v1502_v9 = vrot.slane %v3902_v2, 7  ;;  %v854_v7 = vand.u32 15, %v736_v31  ;;  %v429_v52 = vmul.bf16 0.0, %v410_v45  ;;  %v750_v45 = vadd.s32 216, %v3576_v3  ;;  %v3479_v2 = vld [vmem:[%s4653_s3 + $0x78] sm:$0xff]  }
  0x52   : > { %v1778_v12 = vrot.slane %v1544_v48, 1  ;;  %v1485_v54 = vsel %vm716_vm1, %v1482_v27, %v1484_v29  ;;  %vm1344_vm0 = vcmp.ne.s32.totalorder %v826_v5, 15 }
  0x53   : > { %v1536_v55 = vmul.bf16 %v1485_v54, %v3703_v60  ;;  %v3172_v4 = vsel %vm1344_vm0, 1.0, %v3521_v51  ;;  %v1503_v19 = vsel %vm716_vm1, %v1500_v53, %v1502_v9  ;;  %vm1348_vm4 = vcmp.ne.s32.totalorder %v854_v7, 15 }
  0x54   : > { %v3898_v61 = vsel %vm1756_vm7, %v1776_v16, %v1778_v12  ;;  %v3906_v6 = vpack.c.bf16 %v3172_v4, %v3522_v13  ;;  %v1545_v22 = vmul.bf16 %v1503_v19, %v3714_v17  ;;  %v3174_v36 = vsel %vm1348_vm4, 1.0, %v3521_v51 }
  0x55   : > { %v1762_v0 = vrot.slane %v1536_v55, 1  ;;  %v3936_v53 = vpack.c.bf16 %v3174_v36, %v3522_v13  ;;  %v875_v54 = vand.u32 15, %v739_v50  ;;  %v741_v55 = vadd.s32 144, %v3576_v3 }
  0x56   : > { %v1486_v18 = vrot.slane %v3906_v6, 7  ;;  %v3921_v16 = vrot.slane %v1545_v22, 1  ;;  %v3481_v6 = vld [vmem:[%s4653_s3 + $0x70] sm:$0xff]  }
  0x57   : > { %v3909_v8 = vsel %vm1756_vm7, %v1760_v24, %v1762_v0  ;;  %v1490_v38 = vrot.slane %v3936_v53, 7  ;;  %vm1207_vm5 = vcmp.ne.s32.totalorder %v875_v54, 0  ;;  %v734_v54 = vadd.s32 88, %v3576_v3  ;;  %v3485_v53 = vld [vmem:[%s4653_s3 + $0x60] sm:$0xff]  }
  0x58   : > { %v1487_v23 = vsel %vm716_vm1, %v1484_v29, %v1486_v18  ;;  %v3927_v28 = vsel %vm1756_vm7, %v1778_v12, %v3921_v16  ;;  %v430_v29 = vmul.bf16 0.0, %v411_v10 }
  0x59   : > { %v1537_v26 = vmul.bf16 %v1487_v23, %v3731_v32  ;;  %v1493_v24 = vsel %vm716_vm1, %v1490_v38, %v1492_v21  ;;  %v889_v23 = vand.u32 15, %v741_v55 }
  0x5a   : > { %v1540_v14 = vmul.bf16 %v1493_v24, %v3787_v44  ;;  %v3149_v21 = vcombine.low %v429_v52, %v430_v29  ;;  %v3158_v24 = vsel %vm1207_vm5, 1.0, %v3521_v51 }
  0x5b   : > { %v3923_v27 = vrot.slane %v1537_v26, 1  ;;  %vm1209_vm8 = vcmp.ne.s32.totalorder %v889_v23, 0  ;;  %v3471_v23 = vld [vmem:[%s4653_s3 + $0x98] sm:$0xff]  }
  0x5c   : > { %v3949_v46 = vrot.slane %v1540_v14, 1  ;;  %v708_v5 = vshrl.u32 %v3149_v21, 16  ;;  %v711_v12 = vshll.u32 %v3149_v21, 16  ;;  %v725_v14 = vadd.s32 16, %v3576_v3 }
  0x5d   : > { %v3931_v25 = vsel %vm1756_vm7, %v1762_v0, %v3923_v27  ;;  %v1685_v0 = vshrl.u32 %v3812_v56, 16 }
  0x5e   : > { %v3954_v48 = vsel %vm1756_vm7, %v3949_v46, %v3853_v39  ;;  %v710_v62 = vrot.slane %v708_v5, 7  ;;  %v763_v39 = vand.u32 15, %v3576_v3  ;;  %v777_v21 = vand.u32 15, %v725_v14 }
  0x5f   : > { %v1687_v31 = vor.u32 %v1685_v0, %v3828_v15  ;;  %v3159_v5 = vsel %vm1209_vm8, 1.0, %v3521_v51 }
  0x60   : > { %v713_v4 = vor.u32 %v711_v12, %v710_v62  ;;  %v3961_v19 = vsel %vm3641_vm3, %v710_v62, 0  ;;  %vm1191_vm6 = vcmp.ne.s32.totalorder %v763_v39, 0  ;;  %v952_v12 = vand.u32 15, %v750_v45 }
  0x61   : > { %v1697_v22 = vshll.u32 %v3961_v19, 16  ;;  %v3150_v50 = vsel %vm1191_vm6, 1.0, %v3521_v51  ;;  %v903_v62 = vand.u32 15, %v743_v49  ;;  %v1308_v39 = vpack.c.bf16 %v3522_v13, %v3159_v5 }
  0x62   : > { %v3968_v26 = vsel %vm3641_vm3, %v3790_v11, %v713_v4  ;;  %v1307_v11 = vpack.c.bf16 %v3522_v13, %v3158_v24  ;;  %v1299_v4 = vpack.c.bf16 %v3522_v13, %v3150_v50  ;;  %vm1193_vm3 = vcmp.ne.s32.totalorder %v777_v21, 0 }
  0x63   : > { %v1689_v7 = vshll.u32 %v3968_v26, 16  ;;  %v1693_v36 = vshrl.u32 %v3968_v26, 16  ;;  %v1699_v52 = vrot.slane %v1697_v22, 1  ;;  %v727_v22 = vadd.s32 32, %v3576_v3 }
  0x64   : > { %v1325_v0 = vmul.bf16 %v1307_v11, %v3629_v40  ;;  %vm1362_vm10 = vcmp.ne.s32.totalorder %v952_v12, 15  ;;  %v745_v24 = vadd.s32 176, %v3576_v3  ;;  %v3151_v14 = vsel %vm1193_vm3, 1.0, %v3521_v51 }
  0x65   : > { %v1691_v10 = vrot.slane %v1689_v7, 1  ;;  %v752_v7 = vadd.s32 232, %v3576_v3  ;;  %v1317_v45 = vmul.bf16 %v1299_v4, %v3661_v63  ;;  %v3181_v49 = vsel %vm1362_vm10, 1.0, %v3521_v51 }
  0x66   : > { %v729_v50 = vadd.s32 48, %v3576_v3  ;;  %v1300_v21 = vpack.c.bf16 %v3522_v13, %v3151_v14  ;;  %v917_v5 = vand.u32 15, %v745_v24  ;;  %v747_v14 = vadd.s32 192, %v3576_v3 }
  0x67   : > { %v1692_v15 = vsel %vm1552_vm2, %v1687_v31, %v1691_v10  ;;  %v1695_v29 = vor.u32 %v1693_v36, %v1691_v10  ;;  %v840_v31 = vand.u32 15, %v734_v54  ;;  %v1326_v10 = vmul.bf16 %v1308_v39, %v3632_v41  ;;  %v3472_v41 = vld [vmem:[%s4653_s3 + $0xf8] sm:$0xff]  }
  0x68   : > { %1733 = vrot.lane.b32.xlu0 %v1692_v15, %s3520_s12  ;;  %v3473_v15 = vld [vmem:[%s4653_s3 + $0x90] sm:$0xff]   ;;  %v966_v63 = vand.u32 15, %v752_v7  ;;  %v4015_v54 = vpack.c.bf16 %v3181_v49, %v3522_v13  ;;  %v754_v7 = vadd.s32 248, %v3576_v3  ;;  %v1318_v24 = vmul.bf16 %v1300_v21, %v3653_v58 }
  0x69   : > { %v1700_v55 = vsel %vm1552_vm2, %v1695_v29, %v1699_v52  ;;  %vm1211_vm2 = vcmp.ne.s32.totalorder %v903_v62, 0  ;;  %v791_v52 = vand.u32 15, %v727_v22  ;;  %vm1346_vm11 = vcmp.ne.s32.totalorder %v840_v31, 15  ;;  %v3475_v22 = vld [vmem:[%s4653_s3 + $0x88] sm:$0xff]  }
  0x6a   : > { %1735 = vrot.lane.b32.xlu1 %v1700_v55, %s3520_s12  ;;  %v3160_v29 = vsel %vm1211_vm2, 1.0, %v3521_v51  ;;  %v3173_v4 = vsel %vm1346_vm11, 1.0, %v3521_v51  ;;  %vm4030_vm13 = vcmp.ne.s32.totalorder %v966_v63, 15  ;;  %vm1213_vm14 = vcmp.ne.s32.totalorder %v917_v5, 0  ;;  %v3476_v5 = vld [vmem:[%s4653_s3 + $0xe8] sm:$0xff]  }
  0x6b   : > { %v1309_v62 = vpack.c.bf16 %v3522_v13, %v3160_v29  ;;  %vm4019_vm12 = vcmp.ne.s32.totalorder %v791_v52, 0  ;;  %v1504_v52 = vrot.slane %v4015_v54, 7  ;;  %v4049_v49 = vpack.c.bf16 %v3173_v4, %v3522_v13  ;;  %v3477_v29 = vld [vmem:[%s4653_s3 + $0x80] sm:$0xff]  }
  0x6c   : > { %v731_v58 = vadd.s32 64, %v3576_v3  ;;  %v980_v63 = vand.u32 15, %v754_v7 }
  0x6e   : > { %vm4091_vm0 = vcmp.ne.s32.totalorder %v980_v63, 15 }
  0x91   : > { %v1718_v36 = vpop.permute.xlu0 %1717 }
  0x92   : > { %v3995_v40 = vsel %vm1794_vm9, %v1325_v0, %v1718_v36  ;;  %v3474_v36 = vld [vmem:[%s4653_s3 + $0xf0] sm:$0xff]  }
  0x93   : > { %2109 = vmatmul.mubr.bf16.vlgmr.msra.gmra.mxu1 %v3995_v40  ;;  %v1720_v11 = vpop.permute.xlu1 %1719 }
  0x94   : > { %2312 = vmatpush1.bf16.msra.mxu1 %v3471_v23  ;;  %3207 = vmatprep.mubr.msk.bf16.mxu1 %vm1794_vm9, %v3881_v30  ;;  %v4025_v39 = vsel %vm1794_vm9, %v1326_v10, %v1720_v11  ;;  %v805_v23 = vand.u32 15, %v729_v50  ;;  %v3152_v10 = vsel %vm4019_vm12, 1.0, %v3521_v51  ;;  %v3182_v11 = vsel %vm4030_vm13, 1.0, %v3521_v51 }
  0x95   : > { %2313 = vmatprep.subr.bf16.mxu1 %v3519_v1  ;;  %v3161_v50 = vsel %vm1213_vm14, 1.0, %v3521_v51  ;;  %v4079_v0 = vpack.c.bf16 %v3182_v11, %v3522_v13 }
  0x96   : > { %v1702_v12 = vpop.permute.xlu0 %1701  ;;  %vm1197_vm15 = vcmp.ne.s32.totalorder %v805_v23, 0  ;;  %v1310_v4 = vpack.c.bf16 %v3522_v13, %v3161_v50  ;;  %v819_v23 = vand.u32 15, %v731_v58 }
  0x97   : > { %v1797_v55 = vsel %vm1794_vm9, %v1317_v45, %v1702_v12  ;;  %v1704_v45 = vpop.permute.xlu1 %1703  ;;  %v931_v12 = vand.u32 15, %v747_v14  ;;  %v3478_v14 = vld [vmem:[%s4653_s3 + $0xe0] sm:$0xff]  }
  0x98   : > { %2045 = vmatmul.mubr.bf16.vlgmr.msra.gmra.mxu0 %v1797_v55  ;;  %2314 = vmatpush1.bf16.msra.mxu1 %v3473_v15  ;;  %v1327_v15 = vmul.bf16 %v1309_v62, %v3656_v59  ;;  %v1301_v59 = vpack.c.bf16 %v3522_v13, %v3152_v10  ;;  %v1505_v55 = vsel %vm716_vm1, %v1502_v9, %v1504_v52  ;;  %v1488_v62 = vrot.slane %v4049_v49, 7 }
  0x99   : > { %2605 = vmatpush1.bf16.msra.mxu0 %v3472_v41  ;;  %3199 = vmatprep.mubr.msk.bf16.mxu0 %vm1794_vm9, %v3892_v47  ;;  %v4064_v41 = vsel %vm1794_vm9, %v1318_v24, %v1704_v45  ;;  %v749_v9 = vadd.s32 208, %v3576_v3  ;;  %v1546_v45 = vmul.bf16 %v1505_v55, %v3734_v33  ;;  %vm1215_vm4 = vcmp.ne.s32.totalorder %v931_v12, 0 }
  0x9a   : > { %2606 = vmatprep.subr.bf16.mxu0 %v3519_v1  ;;  %2315 = vmatprep.subr.bf16.mxu1 %v3519_v1  ;;  %v1722_v21 = vpop.permute.xlu0 %1721  ;;  %v1319_v24 = vmul.bf16 %v1301_v59, %v3673_v20  ;;  %v1489_v58 = vsel %vm716_vm1, %v1486_v18, %v1488_v62  ;;  %v1506_v20 = vrot.slane %v4079_v0, 7  ;;  %v1328_v11 = vmul.bf16 %v1310_v4, %v3682_v34  ;;  %v3480_v59 = vld [vmem:[%s4653_s3 + $0xd8] sm:$0xff]  }
  0x9b   : > { %2117 = vmatmul.mubr.bf16.gmra.mxu1 %v4025_v39  ;;  %v4085_v31 = vsel %vm1794_vm9, %v1327_v15, %v1722_v21  ;;  %v3162_v18 = vsel %vm1215_vm4, 1.0, %v3521_v51  ;;  %vm4123_vm5 = vcmp.ne.s32.totalorder %v819_v23, 0  ;;  %v945_v34 = vand.u32 15, %v749_v9  ;;  %v3487_v0 = vld [vmem:[%s4653_s3 + $0xb8] sm:$0xff]  }
  0x9c   : > { %2316 = vmatpush1.bf16.msra.mxu1 %v3475_v22  ;;  %3208 = vmatprep.mubr.msk.bf16.mxu1 %vm1794_vm9, %v3898_v61  ;;  %v3153_v22 = vsel %vm1197_vm15, 1.0, %v3521_v51  ;;  %v1782_v12 = vrot.slane %v1546_v45, 1  ;;  %v1538_v55 = vmul.bf16 %v1489_v58, %v3741_v43  ;;  %v733_v4 = vadd.s32 80, %v3576_v3 }
  0x9d   : > { %2607 = vmatpush1.bf16.msra.mxu0 %v3474_v36  ;;  %2317 = vmatprep.subr.bf16.mxu1 %v3519_v1  ;;  %v756_v36 = vadd.s32 264, %v3576_v3  ;;  %v1706_v10 = vpop.permute.xlu1 %1705  ;;  %v1302_v15 = vpack.c.bf16 %v3522_v13, %v3153_v22  ;;  %v1507_v22 = vsel %vm716_vm1, %v1504_v52, %v1506_v20  ;;  %v1311_v9 = vpack.c.bf16 %v3522_v13, %v3162_v18 }
  0x9e   : > { %2608 = vmatprep.subr.bf16.mxu0 %v3519_v1  ;;  %v4128_v21 = vsel %vm1794_vm9, %v1319_v24, %v1706_v10  ;;  %v3154_v54 = vsel %vm4123_vm5, 1.0, %v3521_v51  ;;  %vm4157_vm6 = vcmp.ne.s32.totalorder %v945_v34, 0  ;;  %v3482_v24 = vld [vmem:[%s4653_s3 + $0xd0] sm:$0xff]   ;;  %v1547_v45 = vmul.bf16 %v1507_v22, %v3756_v57 }
  0x9f   : > { %v994_v63 = vand.u32 15, %v756_v36  ;;  %v3483_v36 = vld [vmem:[%s4653_s3 + $0x68] sm:$0xff]   ;;  %v833_v10 = vand.u32 15, %v733_v4  ;;  %v1303_v18 = vpack.c.bf16 %v3522_v13, %v3154_v54  ;;  %v3163_v50 = vsel %vm4157_vm6, 1.0, %v3521_v51 }
  0xa0   : > { %2053 = vmatmul.mubr.bf16.gmra.mxu0 %v4064_v41  ;;  %2318 = vmatpush1.bf16.msra.mxu1 %v3477_v29  ;;  %v3183_v29 = vsel %vm4091_vm0, 1.0, %v3521_v51  ;;  %v1784_v34 = vrot.slane %v1547_v45, 1  ;;  %v735_v4 = vadd.s32 96, %v3576_v3 }
  0xa1   : > { %2609 = vmatpush1.bf16.msra.mxu0 %v3476_v5  ;;  %3200 = vmatprep.mubr.msk.bf16.mxu0 %vm1794_vm9, %v3909_v8  ;;  %v1724_v5 = vpop.permute.xlu0 %1723  ;;  %v4143_v23 = vpack.c.bf16 %v3183_v29, %v3522_v13  ;;  %vm1368_vm8 = vcmp.ne.s32.totalorder %v994_v63, 15  ;;  %vm4206_vm3 = vcmp.ne.s32.totalorder %v833_v10, 0 }
  0xa2   : > { %2610 = vmatprep.subr.bf16.mxu0 %v3519_v1  ;;  %2319 = vmatprep.subr.bf16.mxu1 %v3519_v1  ;;  %v4149_v7 = vsel %vm1794_vm9, %v1328_v11, %v1724_v5  ;;  %v3184_v29 = vsel %vm1368_vm8, 1.0, %v3521_v51  ;;  %v847_v45 = vand.u32 15, %v735_v4 }
  0xa3   : > { %2125 = vmatmul.mubr.bf16.gmra.mxu1 %v4085_v31  ;;  %v1708_v58 = vpop.permute.xlu1 %1707  ;;  %v1508_v11 = vrot.slane %v4143_v23, 7  ;;  %v1312_v23 = vpack.c.bf16 %v3522_v13, %v3163_v50 }
  0xa4   : > { %3209 = vmatprep.mubr.msk.bf16.mxu1 %vm1794_vm9, %v3927_v28  ;;  %2320 = vmatpush1.bf16.msra.mxu1 %v3479_v2  ;;  %v1320_v2 = vmul.bf16 %v1302_v15, %v3703_v60  ;;  %v4165_v60 = vsel %vm1756_vm7, %v3921_v16, %v1782_v12  ;;  %v751_v15 = vadd.s32 224, %v3576_v3  ;;  %v1491_v16 = vsel %vm716_vm1, %v1488_v62, %v1490_v38  ;;  %v3484_v62 = vld [vmem:[%s4653_s3 + $0xc8] sm:$0xff]  }
  0xa5   : > { %2611 = vmatpush1.bf16.msra.mxu0 %v3478_v14  ;;  %2321 = vmatprep.subr.bf16.mxu1 %v3519_v1  ;;  %v4170_v14 = vrot.slane %v1538_v55, 1  ;;  %v1726_v49 = vpop.permute.xlu0 %1725  ;;  %v1539_v5 = vmul.bf16 %v1491_v16, %v3782_v37  ;;  %v4216_v55 = vpack.c.bf16 %v3184_v29, %v3522_v13  ;;  %v1330_v10 = vmul.bf16 %v1312_v23, %v3734_v33 }
  0xa6   : > { %2612 = vmatprep.subr.bf16.mxu0 %v3519_v1  ;;  %v4195_v38 = vsel %vm1794_vm9, %v1320_v2, %v1708_v58  ;;  %v4231_v2 = vsel %vm1756_vm7, %v1782_v12, %v1784_v34  ;;  %v753_v12 = vadd.s32 240, %v3576_v3  ;;  %v3489_v58 = vld [vmem:[%s4653_s3 + $0xb0] sm:$0xff]   ;;  %vm1203_vm2 = vcmp.ne.s32.totalorder %v847_v45, 0  ;;  %v3492_v45 = vld [vmem:[%s4653_s3 + $0x108] sm:$0xff]  }
  0xa7   : > { %v1710_v52 = vpop.permute.xlu1 %1709 }
  0xa8   : > { %2061 = vmatmul.mubr.bf16.gmra.mxu0 %v4128_v21  ;;  %2322 = vmatpush1.bf16.msra.mxu1 %v3481_v6  ;;  %v1329_v6 = vmul.bf16 %v1311_v9, %v3714_v17  ;;  %v4200_v17 = vsel %vm1756_vm7, %v3923_v27, %v4170_v14  ;;  %v1509_v27 = vsel %vm716_vm1, %v1506_v20, %v1508_v11  ;;  %v3486_v9 = vld [vmem:[%s4653_s3 + $0xc0] sm:$0xff]  }
  0xa9   : > { %2613 = vmatpush1.bf16.msra.mxu0 %v3480_v59  ;;  %3201 = vmatprep.mubr.msk.bf16.mxu0 %vm1794_vm9, %v3931_v25  ;;  %v959_v59 = vand.u32 15, %v751_v15  ;;  %v1321_v20 = vmul.bf16 %v1303_v18, %v3731_v32  ;;  %v1548_v54 = vmul.bf16 %v1509_v27, %v3794_v35  ;;  %v1510_v32 = vrot.slane %v4216_v55, 7  ;;  %v1728_v16 = vpop.permute.xlu0 %1727  ;;  %v3488_v18 = vld [vmem:[%s4653_s3 + $0x118] sm:$0xff]  }
  0xaa   : > { %2614 = vmatprep.subr.bf16.mxu0 %v3519_v1  ;;  %2323 = vmatprep.subr.bf16.mxu1 %v3519_v1  ;;  %v4221_v22 = vsel %vm1794_vm9, %v1329_v6, %v1726_v49  ;;  %v973_v49 = vand.u32 15, %v753_v12  ;;  %v4271_v63 = vsel %vm1794_vm9, %v1330_v10, %v1728_v16 }
  0xab   : > { %2133 = vmatmul.mubr.bf16.gmra.mxu1 %v4149_v7  ;;  %vm1219_vm10 = vcmp.ne.s32.totalorder %v959_v59, 0  ;;  %v4252_v15 = vsel %vm1794_vm9, %v1321_v20, %v1710_v52  ;;  %v1786_v6 = vrot.slane %v1548_v54, 1  ;;  %v3490_v59 = vld [vmem:[%s4653_s3 + $0x110] sm:$0xff]   ;;  %v3493_v20 = vld [vmem:[%s4653_s3 + $0xa0] sm:$0xff]  }
  0xac   : > { %3210 = vmatprep.mubr.msk.bf16.mxu1 %vm1794_vm9, %v4165_v60  ;;  %2324 = vmatpush1.bf16.msra.mxu1 %v3483_v36  ;;  %v3155_v36 = vsel %vm4206_vm3, 1.0, %v3521_v51  ;;  %v3164_v50 = vsel %vm1219_vm10, 1.0, %v3521_v51  ;;  %vm1221_vm11 = vcmp.ne.s32.totalorder %v973_v49, 0 }
  0xad   : > { %2615 = vmatpush1.bf16.msra.mxu0 %v3482_v24  ;;  %2325 = vmatprep.subr.bf16.mxu1 %v3519_v1  ;;  %v1768_v24 = vrot.slane %v1539_v5, 1  ;;  %v1304_v29 = vpack.c.bf16 %v3522_v13, %v3155_v36  ;;  %v1313_v5 = vpack.c.bf16 %v3522_v13, %v3164_v50  ;;  %v4281_v27 = vsel %vm1756_vm7, %v1784_v34, %v1786_v6  ;;  %v1712_v23 = vpop.permute.xlu1 %1711 }
  0xae   : > { %2616 = vmatprep.subr.bf16.mxu0 %v3519_v1  ;;  %v3165_v12 = vsel %vm1221_vm11, 1.0, %v3521_v51 }
  0xaf   : > { %v4262_v33 = vsel %vm1756_vm7, %v4170_v14, %v1768_v24  ;;  %v3491_v14 = vld [vmem:[%s4653_s3 + $0xa8] sm:$0xff]   ;;  %v1331_v34 = vmul.bf16 %v1313_v5, %v3756_v57  ;;  %v1730_v36 = vpop.permute.xlu0 %1729  ;;  %v1771_v57 = vsel %vm1756_vm7, %v1768_v24, %v3949_v46  ;;  %v3494_v46 = vld [vmem:[%s4653_s3 + $0x100] sm:$0xff]  }
  0xb0   : > { %2069 = vmatmul.mubr.bf16.gmra.mxu0 %v4195_v38  ;;  %2326 = vmatpush1.bf16.msra.mxu1 %v3485_v53  ;;  %v1511_v53 = vsel %vm716_vm1, %v1508_v11, %v1510_v32  ;;  %v1322_v11 = vmul.bf16 %v1304_v29, %v3741_v43 }
  0xb1   : > { %3202 = vmatprep.mubr.msk.bf16.mxu0 %vm1794_vm9, %v4200_v17  ;;  %2617 = vmatpush1.bf16.msra.mxu0 %v3484_v62  ;;  %v737_v62 = vadd.s32 112, %v3576_v3  ;;  %v1549_v4 = vmul.bf16 %v1511_v53, %v3812_v56  ;;  %v4310_v10 = vsel %vm1794_vm9, %v1331_v34, %v1730_v36  ;;  %v1714_v24 = vpop.permute.xlu1 %1713 }
  0xb2   : > { %2618 = vmatprep.subr.bf16.mxu0 %v3519_v1  ;;  %2335 = vmatprep.subr.bf16.mxu1 %v3519_v1 }
  0xb3   : > { %2141 = vmatmul.mubr.bf16.gmra.mxu1 %v4221_v22  ;;  %v861_v43 = vand.u32 15, %v737_v62  ;;  %v4299_v52 = vrot.slane %v1549_v4, 1  ;;  %v1732_v50 = vpop.permute.xlu0 %1731 }
  0xb4   : > { %3211 = vmatprep.mubr.msk.bf16.mxu1 %vm1794_vm9, %v4231_v2  ;;  %2336 = vmatpush2.bf16.msra.mxu1 %v3487_v0  ;;  %v3156_v0 = vsel %vm1203_vm2, 1.0, %v3521_v51 }
  0xb5   : > { %2619 = vmatpush1.bf16.msra.mxu0 %v3486_v9  ;;  %2337 = vmatprep.subr.bf16.mxu1 %v3519_v1  ;;  %v1817_v9 = vsel %vm1794_vm9, %v1322_v11, %v1712_v23  ;;  %v1305_v54 = vpack.c.bf16 %v3522_v13, %v3156_v0  ;;  %vm1205_vm12 = vcmp.ne.s32.totalorder %v861_v43, 0  ;;  %v4317_v29 = vsel %vm1756_vm7, %v1786_v6, %v4299_v52  ;;  %v1716_v62 = vpop.permute.xlu1 %1715 }
  0xb6   : > { %2628 = vmatprep.subr.bf16.mxu0 %v3519_v1 }
  0xb7   : > { %v1323_v16 = vmul.bf16 %v1305_v54, %v3782_v37 }
  0xb8   : > { %2077 = vmatmul.mubr.bf16.gmra.mxu0 %v4252_v15  ;;  %2338 = vmatpush2.bf16.msra.mxu1 %v3489_v58  ;;  %v1314_v58 = vpack.c.bf16 %v3522_v13, %v3165_v12 }
  0xb9   : > { %3203 = vmatprep.mubr.msk.bf16.mxu0 %vm1794_vm9, %v4262_v33  ;;  %2629 = vmatpush2.bf16.msra.mxu0 %v3488_v18  ;;  %v3157_v18 = vsel %vm1205_vm12, 1.0, %v3521_v51  ;;  %v1821_v6 = vsel %vm1794_vm9, %v1323_v16, %v1714_v24 }
  0xba   : > { %2630 = vmatprep.subr.bf16.mxu0 %v3519_v1  ;;  %2339 = vmatprep.subr.bf16.mxu1 %v3519_v1  ;;  %v1332_v37 = vmul.bf16 %v1314_v58, %v3794_v35  ;;  %v1306_v53 = vpack.c.bf16 %v3522_v13, %v3157_v18 }
  0xbb   : > { %2149 = vmatmul.mubr.bf16.gmra.mxu1 %v4271_v63 }
  0xbc   : > { %3212 = vmatprep.mubr.msk.bf16.mxu1 %vm1794_vm9, %v4281_v27  ;;  %2340 = vmatpush2.bf16.msra.mxu1 %v3491_v14  ;;  %v4331_v49 = vsel %vm1794_vm9, %v1332_v37, %v1732_v50 }
  0xbd   : > { %2631 = vmatpush2.bf16.msra.mxu0 %v3490_v59  ;;  %2341 = vmatprep.subr.bf16.mxu1 %v3519_v1 }
  0xbe   : > { %2632 = vmatprep.subr.bf16.mxu0 %v3519_v1 }
  0xc0   : > { %2085 = vmatmul.mubr.bf16.gmra.mxu0 %v1817_v9  ;;  %2342 = vmatpush2.bf16.msra.mxu1 %v3493_v20 }
  0xc1   : > { %3204 = vmatprep.mubr.msk.bf16.mxu0 %vm1794_vm9, %v1771_v57  ;;  %2633 = vmatpush2.bf16.msra.mxu0 %v3492_v45 }
  0xc2   : > { %2634 = vmatprep.subr.bf16.mxu0 %v3519_v1  ;;  %v1324_v1 = vmul.bf16 %v1306_v53, %v3787_v44  ;;  %v758_v44 = vadd.s32 280, %v3576_v3 }
  0xc3   : > { %2157 = vmatmul.mubr.bf16.gmra.mxu1 %v4310_v10 }
  0xc4   : > { %3213 = vmatprep.mubr.msk.bf16.mxu1 %vm1794_vm9, %v4317_v29  ;;  %v1825_v35 = vsel %vm1794_vm9, %v1324_v1, %v1716_v62 }
  0xc5   : > { %2635 = vmatpush2.bf16.msra.mxu0 %v3494_v46 }
  0xc8   : > { %2093 = vmatmul.mubr.bf16.gmra.mxu0 %v1821_v6 }
  0xc9   : > { %3205 = vmatprep.mubr.msk.bf16.mxu0 %vm1794_vm9, %v3954_v48 }
  0xcb   : > { %2165 = vmatmul.mubr.bf16.gmra.mxu1 %v4331_v49 }
  0xcc   : > { %3251 = vmatprep.mubr.msk.bf16.mxu1 %vm1794_vm9, %v3892_v47 }
  0xd0   : > { %2101 = vmatmul.mubr.bf16.gmra.mxu0 %v1825_v35 }
  0xd1   : > { %3303 = vmatprep.mubr.msk.bf16.mxu0 %vm1794_vm9, %v3909_v8 }
  0xd3   : > { %2344 = vmatmul.mubr.bf16.vlgmr.msra.gmra.mxu1 %v4064_v41 }
  0xd4   : > { %3252 = vmatprep.mubr.msk.bf16.mxu1 %vm1794_vm9, %v3909_v8  ;;  %v755_v8 = vadd.s32 256, %v3576_v3 }
  0xd8   : > { %2637 = vmatmul.mubr.bf16.vlgmr.msra.gmra.mxu0 %v4128_v21 }
  0xd9   : > { %3304 = vmatprep.mubr.msk.bf16.mxu0 %vm1794_vm9, %v3931_v25 }
  0xdb   : > { %2352 = vmatmul.mubr.bf16.gmra.mxu1 %v4128_v21 }
  0xdc   : > { %3253 = vmatprep.mubr.msk.bf16.mxu1 %vm1794_vm9, %v3931_v25  ;;  %v987_v25 = vand.u32 15, %v755_v8 }
  0xde   : > { %vm1223_vm14 = vcmp.ne.s32.totalorder %v987_v25, 0 }
  0xdf   : > { %v3166_v41 = vsel %vm1223_vm14, 1.0, %v3521_v51 }
  0xe0   : > { %2645 = vmatmul.mubr.bf16.gmra.mxu0 %v4195_v38  ;;  %v1315_v21 = vpack.c.bf16 %v3522_v13, %v3166_v41 }
  0xe1   : > { %3305 = vmatprep.mubr.msk.bf16.mxu0 %vm1794_vm9, %v4200_v17 }
  0xe3   : > { %2360 = vmatmul.mubr.bf16.gmra.mxu1 %v4195_v38  ;;  %v1734_v38 = vpop.permute.xlu0 %1733 }
  0xe4   : > { %3254 = vmatprep.mubr.msk.bf16.mxu1 %vm1794_vm9, %v4200_v17 }
  0xe8   : > { %2653 = vmatmul.mubr.bf16.gmra.mxu0 %v4252_v15 }
  0xe9   : > { %3306 = vmatprep.mubr.msk.bf16.mxu0 %vm1794_vm9, %v4262_v33 }
  0xeb   : > { %2368 = vmatmul.mubr.bf16.gmra.mxu1 %v4252_v15 }
  0xec   : > { %3255 = vmatprep.mubr.msk.bf16.mxu1 %vm1794_vm9, %v4262_v33 }
  0xf0   : > { %2661 = vmatmul.mubr.bf16.gmra.mxu0 %v1817_v9 }
  0xf1   : > { %3307 = vmatprep.mubr.msk.bf16.mxu0 %vm1794_vm9, %v1771_v57 }
  0xf3   : > { %2376 = vmatmul.mubr.bf16.gmra.mxu1 %v1817_v9 }
  0xf4   : > { %3256 = vmatprep.mubr.msk.bf16.mxu1 %vm1794_vm9, %v1771_v57 }
  0xf8   : > { %2669 = vmatmul.mubr.bf16.gmra.mxu0 %v1821_v6 }
  0xf9   : > { %3308 = vmatprep.mubr.msk.bf16.mxu0 %vm1794_vm9, %v3954_v48 }
  0xfb   : > { %2384 = vmatmul.mubr.bf16.gmra.mxu1 %v1821_v6 }
  0xfc   : > { %3257 = vmatprep.mubr.msk.bf16.mxu1 %vm1794_vm9, %v3954_v48 }
 0x100   : > { %2677 = vmatmul.mubr.bf16.gmra.mxu0 %v1825_v35 }
 0x101   : > { %3309 = vmatprep.mubr.msk.bf16.mxu0 %vm1794_vm9, %v3859_v42 }
 0x103   : > { %2392 = vmatmul.mubr.bf16.gmra.mxu1 %v1825_v35 }
 0x104   : > { %3258 = vmatprep.mubr.msk.bf16.mxu1 %vm1794_vm9, %v3859_v42  ;;  %v1008_v42 = vand.u32 15, %v758_v44 }
 0x106   : > { %vm1370_vm13 = vcmp.ne.s32.totalorder %v1008_v42, 15 }
 0x108   : > { %2685 = vmatmul.mubr.bf16.gmra.mxu0 %v3995_v40 }
 0x109   : > { %3310 = vmatprep.mubr.msk.bf16.mxu0 %vm1794_vm9, %v3881_v30 }
 0x10b   : > { %2400 = vmatmul.mubr.bf16.gmra.mxu1 %v3995_v40  ;;  %v757_v40 = vadd.s32 272, %v3576_v3 }
 0x10c   : > { %3259 = vmatprep.mubr.msk.bf16.mxu1 %vm1794_vm9, %v3881_v30  ;;  %v3185_v30 = vsel %vm1370_vm13, 1.0, %v3521_v51 }
 0x10d   : > { %v1460_v47 = vpack.c.bf16 %v3185_v30, %v3522_v13 }
 0x110   : > { %2693 = vmatmul.mubr.bf16.gmra.mxu0 %v4025_v39 }
 0x111   : > { %3311 = vmatprep.mubr.msk.bf16.mxu0 %vm1794_vm9, %v3898_v61 }
 0x113   : > { %2408 = vmatmul.mubr.bf16.gmra.mxu1 %v4025_v39 }
 0x114   : > { %3260 = vmatprep.mubr.msk.bf16.mxu1 %vm1794_vm9, %v3898_v61  ;;  %v1512_v61 = vrot.slane %v1460_v47, 7 }
 0x116   : > { %v1551_v3 = vmul.bf16 %v1512_v61, %v3961_v19 }
 0x118   : > { %2701 = vmatmul.mubr.bf16.gmra.mxu0 %v4085_v31  ;;  %v1792_v17 = vrot.slane %v1551_v3, 1 }
 0x119   : > { %3312 = vmatprep.mubr.msk.bf16.mxu0 %vm1794_vm9, %v3927_v28 }
 0x11b   : > { %2416 = vmatmul.mubr.bf16.gmra.mxu1 %v4085_v31  ;;  %v1001_v31 = vand.u32 15, %v757_v40 }
 0x11c   : > { %3261 = vmatprep.mubr.msk.bf16.mxu1 %vm1794_vm9, %v3927_v28  ;;  %v1513_v28 = vsel %vm716_vm1, %v1510_v32, %v1512_v61 }
 0x11d   : > { %v1550_v48 = vmul.bf16 %v1513_v28, %v3968_v26  ;;  %vm1225_vm1 = vcmp.ne.s32.totalorder %v1001_v31, 0 }
 0x11e   : > { %v3167_v55 = vsel %vm1225_vm1, 1.0, %v3521_v51 }
 0x11f   : > { %v1790_v39 = vrot.slane %v1550_v48, 1 }
 0x120   : > { %2709 = vmatmul.mubr.bf16.gmra.mxu0 %v4149_v7 }
 0x121   : > { %3313 = vmatprep.mubr.msk.bf16.mxu0 %vm1794_vm9, %v4165_v60  ;;  %v1793_v19 = vsel %vm1756_vm7, %v1790_v39, %v1792_v17 }
 0x123   : > { %2424 = vmatmul.mubr.bf16.gmra.mxu1 %v4149_v7  ;;  %v1791_v7 = vsel %vm1756_vm7, %v4299_v52, %v1790_v39  ;;  %vm2957_vm7 = vcmask 519168  }
 0x124   : > { %3262 = vmatprep.mubr.msk.bf16.mxu1 %vm1794_vm9, %v4165_v60  ;;  %v1333_v60 = vmul.bf16 %v1315_v21, %v3812_v56  ;;  %v1736_v56 = vpop.permute.xlu1 %1735 }
 0x128   : > { %2717 = vmatmul.mubr.bf16.gmra.mxu0 %v4221_v22 }
 0x129   : > { %3314 = vmatprep.mubr.msk.bf16.mxu0 %vm1794_vm9, %v4231_v2 }
 0x12b   : > { %2432 = vmatmul.mubr.bf16.gmra.mxu1 %v4221_v22  ;;  %v1861_v22 = vsel %vm1794_vm9, %v1333_v60, %v1734_v38 }
 0x12c   : > { %3263 = vmatprep.mubr.msk.bf16.mxu1 %vm1794_vm9, %v4231_v2  ;;  %v1316_v2 = vpack.c.bf16 %v3522_v13, %v3167_v55 }
 0x12e   : > { %v1334_v32 = vmul.bf16 %v1316_v2, %v3968_v26 }
 0x130   : > { %2725 = vmatmul.mubr.bf16.gmra.mxu0 %v4271_v63  ;;  %v1865_v15 = vsel %vm1794_vm9, %v1334_v32, %v1736_v56 }
 0x131   : > { %3315 = vmatprep.mubr.msk.bf16.mxu0 %vm1794_vm9, %v4281_v27 }
 0x133   : > { %2440 = vmatmul.mubr.bf16.gmra.mxu1 %v4271_v63 }
 0x134   : > { %3264 = vmatprep.mubr.msk.bf16.mxu1 %vm1794_vm9, %v4281_v27 }
 0x138   : > { %2733 = vmatmul.mubr.bf16.gmra.mxu0 %v4310_v10 }
 0x139   : > { %3316 = vmatprep.mubr.msk.bf16.mxu0 %vm1794_vm9, %v4317_v29 }
 0x13b   : > { %2448 = vmatmul.mubr.bf16.gmra.mxu1 %v4310_v10 }
 0x13c   : > { %3265 = vmatprep.mubr.msk.bf16.mxu1 %vm1794_vm9, %v4317_v29 }
 0x140   : > { %2741 = vmatmul.mubr.bf16.gmra.mxu0 %v4331_v49 }
 0x141   : > { %3317 = vmatprep.mubr.msk.bf16.mxu0 %vm1794_vm9, %v1791_v7 }
 0x143   : > { %2456 = vmatmul.mubr.bf16.gmra.mxu1 %v4331_v49 }
 0x144   : > { %3266 = vmatprep.mubr.msk.bf16.mxu1 %vm1794_vm9, %v1791_v7 }
 0x148   : > { %2749 = vmatmul.mubr.bf16.gmra.mxu0 %v1861_v22 }
 0x149   : > { %3318 = vmatprep.mubr.msk.bf16.mxu0 %vm1794_vm9, %v1793_v19 }
 0x14b   : > { %2464 = vmatmul.mubr.bf16.gmra.mxu1 %v1861_v22 }
 0x150   : > { %2757 = vmatmul.mubr.bf16.gmra.mxu0 %v1865_v15  ;;  %v4504_v15 = vld [vmem:[%s4654_s4] ss:$0 sm:$0xff] }
 0x153   : > { %v4441_v51 = vpop.f32.mrf.mxu1 }
 0x155   : > { %v2112_v33 = vpop.f32.mrf.mxu1 }
 0x157   : > { %v4443_v63 = vpop.f32.mrf.mxu1 }
 0x158   : > { %v2046_v5 = vpop.f32.mrf.mxu0 }
 0x159   : > { %v2115_v14 = vpop.f32.mrf.mxu1 }
 0x15a   : > { %v2048_v13 = vpop.f32.mrf.mxu0  ;;  %v2179_v14 = vadd.f32 %v4504_v15, %v2046_v5 }
 0x15b   : > { %v4445_v11 = vpop.f32.mrf.mxu1 }
 0x15c   : > { %v4447_v27 = vpop.f32.mrf.mxu0 }
 0x15d   : > { %v2120_v59 = vpop.f32.mrf.mxu1 }
 0x15e   : > { %v2051_v4 = vpop.f32.mrf.mxu0 }
 0x15f   : > { %v4449_v26 = vpop.f32.mrf.mxu1 }
 0x160   : > { %v4451_v23 = vpop.f32.mrf.mxu0 }
 0x161   : > { %v2123_v0 = vpop.f32.mrf.mxu1 }
 0x162   : > { %v2056_v43 = vpop.f32.mrf.mxu0 }
 0x163   : > { %v4453_v34 = vpop.f32.mrf.mxu1 }
 0x164   : > { %v4455_v20 = vpop.f32.mrf.mxu0 }
 0x165   : > { %v2128_v9 = vpop.f32.mrf.mxu1 }
 0x166   : > { %v2059_v36 = vpop.f32.mrf.mxu0  ;;  %v2180_v9 = vadd.f32 %v4504_v15, %v4447_v27 }
 0x167   : > { %v4457_v54 = vpop.f32.mrf.mxu1 }
 0x168   : > { %v4459_v52 = vpop.f32.mrf.mxu0 }
 0x169   : > { %v2131_v12 = vpop.f32.mrf.mxu1 }
 0x16a   : > { %v2064_v45 = vpop.f32.mrf.mxu0 }
 0x16b   : > { %v4461_v57 = vpop.f32.mrf.mxu1 }
 0x16c   : > { %v4463_v10 = vpop.f32.mrf.mxu0 }
 0x16d   : > { %v2136_v58 = vpop.f32.mrf.mxu1 }
 0x16e   : > { %v2067_v16 = vpop.f32.mrf.mxu0 }
 0x16f   : > { %v4465_v29 = vpop.f32.mrf.mxu1 }
 0x170   : > { %v4467_v46 = vpop.f32.mrf.mxu0 }
 0x171   : > { %v2139_v24 = vpop.f32.mrf.mxu1 }
 0x172   : > { %v2072_v18 = vpop.f32.mrf.mxu0 }
 0x173   : > { %v4469_v37 = vpop.f32.mrf.mxu1  ;;  %v2181_v18 = vadd.f32 %v4504_v15, %v4451_v23 }
 0x174   : > { %v4471_v6 = vpop.f32.mrf.mxu0 }
 0x175   : > { %v2144_v50 = vpop.f32.mrf.mxu1 }
 0x176   : > { %v2075_v53 = vpop.f32.mrf.mxu0 }
 0x177   : > { %v4473_v49 = vpop.f32.mrf.mxu1 }
 0x178   : > { %v4475_v1 = vpop.f32.mrf.mxu0 }
 0x179   : > { %v2147_v62 = vpop.f32.mrf.mxu1 }
 0x17a   : > { %v2080_v35 = vpop.f32.mrf.mxu0 }
 0x17b   : > { %v4477_v44 = vpop.f32.mrf.mxu1 }
 0x17c   : > { %v4479_v42 = vpop.f32.mrf.mxu0 }
 0x17d   : > { %v2152_v30 = vpop.f32.mrf.mxu1 }
 0x17e   : > { %v2083_v47 = vpop.f32.mrf.mxu0 }
 0x17f   : > { %v4481_v61 = vpop.f32.mrf.mxu1 }
 0x180   : > { %v4483_v8 = vpop.f32.mrf.mxu0 }
 0x181   : > { %v2155_v28 = vpop.f32.mrf.mxu1 }
 0x182   : > { %v2088_v25 = vpop.f32.mrf.mxu0 }
 0x183   : > { %v4485_v48 = vpop.f32.mrf.mxu1  ;;  %v2182_v25 = vadd.f32 %v4504_v15, %v4455_v20 }
 0x184   : > { %v4487_v40 = vpop.f32.mrf.mxu0 }
 0x185   : > { %v2160_v39 = vpop.f32.mrf.mxu1 }
 0x186   : > { %v2091_v41 = vpop.f32.mrf.mxu0 }
 0x187   : > { %v4489_v31 = vpop.f32.mrf.mxu1 }
 0x188   : > { %v4491_v21 = vpop.f32.mrf.mxu0 }
 0x189   : > { %v2163_v7 = vpop.f32.mrf.mxu1 }
 0x18a   : > { %v2096_v3 = vpop.f32.mrf.mxu0 }
 0x18b   : > { %v4493_v60 = vpop.f32.mrf.mxu1 }
 0x18c   : > { %v4495_v38 = vpop.f32.mrf.mxu0 }
 0x18d   : > { %v2168_v17 = vpop.f32.mrf.mxu1 }
 0x18e   : > { %v2099_v55 = vpop.f32.mrf.mxu0 }
 0x18f   : > { %v4497_v22 = vpop.f32.mrf.mxu1 }
 0x190   : > { %v4499_v2 = vpop.f32.mrf.mxu0 }
 0x191   : > { %v2171_v19 = vpop.f32.mrf.mxu1 }
 0x192   : > { %v2104_v32 = vpop.f32.mrf.mxu0 }
 0x193   : > { %v2345_v56 = vpop.f32.mrf.mxu1  ;;  %v2183_v32 = vadd.f32 %v4504_v15, %v4459_v52 }
 0x194   : > { %v4506_v33 = vpop.f32.mrf.mxu0  ;;  %v2472_v4 = vadd.f32 %v2345_v56, %v2179_v14 }
 0x195   : > { %v2347_v13 = vpop.f32.mrf.mxu1 }
 0x196   : > { %v2107_v59 = vpop.f32.mrf.mxu0 }
 0x197   : > { %v2348_v0 = vpop.f32.mrf.mxu1 }
 0x198   : > { %v2638_v43 = vpop.f32.mrf.mxu0  ;;  %v2473_v58 = vadd.f32 %v2348_v0, %v2180_v9  ;;  %v2184_v9 = vadd.f32 %v4504_v15, %v4463_v10 }
 0x199   : > { %v2765_v36 = vadd.f32 %v2638_v43, %v2472_v4  ;;  %v2350_v12 = vpop.f32.mrf.mxu1 }
 0x19a   : > { %v2640_v45 = vpop.f32.mrf.mxu0 }
 0x19b   : > { %v2797_v16 = vmax.f32 %v2765_v36, 0.0  ;;  %v2353_v24 = vpop.f32.mrf.mxu1 }
 0x19c   : > { %v2641_v5 = vpop.f32.mrf.mxu0  ;;  %v2474_v35 = vadd.f32 %v2353_v24, %v2181_v18  ;;  %v2185_v18 = vadd.f32 %v4504_v15, %v4467_v46 }
 0x19d   : > { %v3358_v50 = vpack.c.bf16 %v2797_v16, %v2797_v16  ;;  %v2766_v27 = vadd.f32 %v2641_v5, %v2473_v58  ;;  %v2355_v53 = vpop.f32.mrf.mxu1 }
 0x19e   : > { %v2643_v62 = vpop.f32.mrf.mxu0 }
 0x19f   : > { %2958 = vst.msk [vmem:[%s4515_s26] sm:$0xf] %vm2957_vm7, %v3358_v50  ;;  %v2798_v30 = vmax.f32 %v2766_v27, 0.0  ;;  %v2356_v47 = vpop.f32.mrf.mxu1 }
 0x1a0   : > { %v2646_v28 = vpop.f32.mrf.mxu0  ;;  %v2475_v23 = vadd.f32 %v2356_v47, %v2182_v25 }
 0x1a1   : > { %v3359_v39 = vpack.c.bf16 %v2798_v30, %v2798_v30  ;;  %v2767_v41 = vadd.f32 %v2646_v28, %v2474_v35  ;;  %v2358_v7 = vpop.f32.mrf.mxu1  ;;  %v2186_v28 = vadd.f32 %v4504_v15, %v4471_v6 }
 0x1a2   : > { %v2648_v3 = vpop.f32.mrf.mxu0 }
 0x1a3   : > { %2959 = vst.msk [vmem:[%s4515_s26 + $0x4] sm:$0xf] %vm2957_vm7, %v3359_v39  ;;  %v2799_v17 = vmax.f32 %v2767_v41, 0.0  ;;  %v2361_v55 = vpop.f32.mrf.mxu1 }
 0x1a4   : > { %v2649_v19 = vpop.f32.mrf.mxu0  ;;  %v2476_v20 = vadd.f32 %v2361_v55, %v2183_v32  ;;  %v2187_v55 = vadd.f32 %v4504_v15, %v4475_v1 }
 0x1a5   : > { %v3360_v56 = vpack.c.bf16 %v2799_v17, %v2799_v17  ;;  %v2768_v14 = vadd.f32 %v2649_v19, %v2475_v23  ;;  %v2363_v13 = vpop.f32.mrf.mxu1 }
 0x1a6   : > { %v2651_v59 = vpop.f32.mrf.mxu0 }
 0x1a7   : > { %2960 = vst.msk [vmem:[%s4515_s26 + $0x8] sm:$0xf] %vm2957_vm7, %v3360_v56  ;;  %v2800_v4 = vmax.f32 %v2768_v14, 0.0  ;;  %v2364_v0 = vpop.f32.mrf.mxu1 }
 0x1a8   : > { %v2654_v43 = vpop.f32.mrf.mxu0  ;;  %v2477_v52 = vadd.f32 %v2364_v0, %v2184_v9 }
 0x1a9   : > { %v3361_v36 = vpack.c.bf16 %v2800_v4, %v2800_v4  ;;  %v2769_v12 = vadd.f32 %v2654_v43, %v2476_v20  ;;  %v2366_v45 = vpop.f32.mrf.mxu1  ;;  %v2188_v4 = vadd.f32 %v4504_v15, %v4479_v42 }
 0x1aa   : > { %v2656_v58 = vpop.f32.mrf.mxu0 }
 0x1ab   : > { %2961 = vst.msk [vmem:[%s4515_s26 + $0xc] sm:$0xf] %vm2957_vm7, %v3361_v36  ;;  %v2801_v16 = vmax.f32 %v2769_v12, 0.0  ;;  %v2369_v24 = vpop.f32.mrf.mxu1 }
 0x1ac   : > { %v2657_v5 = vpop.f32.mrf.mxu0  ;;  %v2478_v10 = vadd.f32 %v2369_v24, %v2185_v18 }
 0x1ad   : > { %v3362_v50 = vpack.c.bf16 %v2801_v16, %v2801_v16  ;;  %v2770_v27 = vadd.f32 %v2657_v5, %v2477_v52  ;;  %v2371_v53 = vpop.f32.mrf.mxu1  ;;  %v2189_v52 = vadd.f32 %v4504_v15, %v4483_v8 }
 0x1ae   : > { %v2659_v62 = vpop.f32.mrf.mxu0 }
 0x1af   : > { %2962 = vst.msk [vmem:[%s4515_s26 + $0x10] sm:$0xf] %vm2957_vm7, %v3362_v50  ;;  %v2802_v35 = vmax.f32 %v2770_v27, 0.0  ;;  %v2372_v30 = vpop.f32.mrf.mxu1  ;;  %v2190_v62 = vadd.f32 %v4504_v15, %v4487_v40 }
 0x1b0   : > { %v2662_v47 = vpop.f32.mrf.mxu0  ;;  %v2479_v46 = vadd.f32 %v2372_v30, %v2186_v28 }
 0x1b1   : > { %v3363_v25 = vpack.c.bf16 %v2802_v35, %v2802_v35  ;;  %v2771_v39 = vadd.f32 %v2662_v47, %v2478_v10  ;;  %v2374_v41 = vpop.f32.mrf.mxu1 }
 0x1b2   : > { %v2664_v7 = vpop.f32.mrf.mxu0  ;;  %v2191_v41 = vadd.f32 %v4504_v15, %v4491_v21 }
 0x1b3   : > { %2963 = vst.msk [vmem:[%s4515_s26 + $0x14] sm:$0xf] %vm2957_vm7, %v3363_v25  ;;  %v2803_v3 = vmax.f32 %v2771_v39, 0.0  ;;  %v2377_v23 = vpop.f32.mrf.mxu1 }
 0x1b4   : > { %v2665_v17 = vpop.f32.mrf.mxu0  ;;  %v2480_v6 = vadd.f32 %v2377_v23, %v2187_v55 }
 0x1b5   : > { %v3364_v19 = vpack.c.bf16 %v2803_v3, %v2803_v3  ;;  %v2772_v32 = vadd.f32 %v2665_v17, %v2479_v46  ;;  %v2379_v56 = vpop.f32.mrf.mxu1 }
 0x1b6   : > { %v2667_v14 = vpop.f32.mrf.mxu0 }
 0x1b7   : > { %2964 = vst.msk [vmem:[%s4515_s26 + $0x18] sm:$0xf] %vm2957_vm7, %v3364_v19  ;;  %v2804_v13 = vmax.f32 %v2772_v32, 0.0  ;;  %v2380_v59 = vpop.f32.mrf.mxu1  ;;  %v2192_v32 = vadd.f32 %v4504_v15, %v4495_v38 }
 0x1b8   : > { %v2670_v20 = vpop.f32.mrf.mxu0  ;;  %v2481_v1 = vadd.f32 %v2380_v59, %v2188_v4 }
 0x1b9   : > { %v3365_v0 = vpack.c.bf16 %v2804_v13, %v2804_v13  ;;  %v2773_v43 = vadd.f32 %v2670_v20, %v2480_v6  ;;  %v2382_v9 = vpop.f32.mrf.mxu1 }
 0x1ba   : > { %v2672_v36 = vpop.f32.mrf.mxu0 }
 0x1bb   : > { %2965 = vst.msk [vmem:[%s4515_s26 + $0x1c] sm:$0xf] %vm2957_vm7, %v3365_v0  ;;  %v2805_v12 = vmax.f32 %v2773_v43, 0.0  ;;  %v2385_v45 = vpop.f32.mrf.mxu1  ;;  %v2193_v0 = vadd.f32 %v4504_v15, %v4499_v2 }
 0x1bc   : > { %v2673_v58 = vpop.f32.mrf.mxu0  ;;  %v2482_v42 = vadd.f32 %v2385_v45, %v2189_v52  ;;  %v2194_v52 = vadd.f32 %v4504_v15, %v4506_v33 }
 0x1bd   : > { %v3366_v16 = vpack.c.bf16 %v2805_v12, %v2805_v12  ;;  %v2774_v24 = vadd.f32 %v2673_v58, %v2481_v1  ;;  %v2387_v5 = vpop.f32.mrf.mxu1 }
 0x1be   : > { %v2675_v18 = vpop.f32.mrf.mxu0 }
 0x1bf   : > { %2966 = vst.msk [vmem:[%s4515_s26 + $0x20] sm:$0xf] %vm2957_vm7, %v3366_v16  ;;  %v2806_v50 = vmax.f32 %v2774_v24, 0.0  ;;  %v2388_v27 = vpop.f32.mrf.mxu1 }
 0x1c0   : > { %v2678_v53 = vpop.f32.mrf.mxu0  ;;  %v2483_v8 = vadd.f32 %v2388_v27, %v2190_v62 }
 0x1c1   : > { %v3367_v10 = vpack.c.bf16 %v2806_v50, %v2806_v50  ;;  %v2775_v35 = vadd.f32 %v2678_v53, %v2482_v42  ;;  %v2390_v30 = vpop.f32.mrf.mxu1  ;;  %v2195_v53 = vadd.f32 %v4504_v15, %v4441_v51 }
 0x1c2   : > { %v2680_v47 = vpop.f32.mrf.mxu0 }
 0x1c3   : > { %2967 = vst.msk [vmem:[%s4515_s26 + $0x24] sm:$0xf] %vm2957_vm7, %v3367_v10  ;;  %v2807_v28 = vmax.f32 %v2775_v35, 0.0  ;;  %v2393_v25 = vpop.f32.mrf.mxu1 }
 0x1c4   : > { %v2681_v39 = vpop.f32.mrf.mxu0  ;;  %v2484_v40 = vadd.f32 %v2393_v25, %v2191_v41  ;;  %v2196_v25 = vadd.f32 %v4504_v15, %v4443_v63 }
 0x1c5   : > { %v3368_v7 = vpack.c.bf16 %v2807_v28, %v2807_v28  ;;  %v2776_v46 = vadd.f32 %v2681_v39, %v2483_v8  ;;  %v2395_v3 = vpop.f32.mrf.mxu1 }
 0x1c6   : > { %v2683_v23 = vpop.f32.mrf.mxu0 }
 0x1c7   : > { %2968 = vst.msk [vmem:[%s4515_s26 + $0x28] sm:$0xf] %vm2957_vm7, %v3368_v7  ;;  %v2808_v17 = vmax.f32 %v2776_v46, 0.0  ;;  %v2396_v55 = vpop.f32.mrf.mxu1 }
 0x1c8   : > { %v2686_v19 = vpop.f32.mrf.mxu0  ;;  %v2485_v21 = vadd.f32 %v2396_v55, %v2192_v32 }
 0x1c9   : > { %v3369_v56 = vpack.c.bf16 %v2808_v17, %v2808_v17  ;;  %v2777_v14 = vadd.f32 %v2686_v19, %v2484_v40  ;;  %v2398_v6 = vpop.f32.mrf.mxu1  ;;  %v2197_v17 = vadd.f32 %v4504_v15, %v4445_v11 }
 0x1ca   : > { %v2688_v13 = vpop.f32.mrf.mxu0 }
 0x1cb   : > { %2969 = vst.msk [vmem:[%s4515_s26 + $0x2c] sm:$0xf] %vm2957_vm7, %v3369_v56  ;;  %v2809_v59 = vmax.f32 %v2777_v14, 0.0  ;;  %v2401_v20 = vpop.f32.mrf.mxu1 }
 0x1cc   : > { %v2689_v4 = vpop.f32.mrf.mxu0  ;;  %v2486_v38 = vadd.f32 %v2401_v20, %v2193_v0 }
 0x1cd   : > { %v3370_v43 = vpack.c.bf16 %v2809_v59, %v2809_v59  ;;  %v2778_v9 = vadd.f32 %v2689_v4, %v2485_v21  ;;  %v2403_v36 = vpop.f32.mrf.mxu1  ;;  %v2198_v21 = vadd.f32 %v4504_v15, %v4449_v26 }
 0x1ce   : > { %v2691_v1 = vpop.f32.mrf.mxu0 }
 0x1cf   : > { %2970 = vst.msk [vmem:[%s4515_s26 + $0x30] sm:$0xf] %vm2957_vm7, %v3370_v43  ;;  %v2810_v12 = vmax.f32 %v2778_v9, 0.0  ;;  %v2404_v45 = vpop.f32.mrf.mxu1  ;;  %v2199_v1 = vadd.f32 %v4504_v15, %v4453_v34 }
 0x1d0   : > { %v2694_v58 = vpop.f32.mrf.mxu0  ;;  %v2487_v2 = vadd.f32 %v2404_v45, %v2194_v52 }
 0x1d1   : > { %v3371_v16 = vpack.c.bf16 %v2810_v12, %v2810_v12  ;;  %v2779_v24 = vadd.f32 %v2694_v58, %v2486_v38  ;;  %v2406_v5 = vpop.f32.mrf.mxu1 }
 0x1d2   : > { %v2696_v18 = vpop.f32.mrf.mxu0  ;;  %v2200_v5 = vadd.f32 %v4504_v15, %v4457_v54 }
 0x1d3   : > { %2971 = vst.msk [vmem:[%s4515_s26 + $0x34] sm:$0xf] %vm2957_vm7, %v3371_v16  ;;  %v2811_v42 = vmax.f32 %v2779_v24, 0.0  ;;  %v2409_v50 = vpop.f32.mrf.mxu1 }
 0x1d4   : > { %v2697_v27 = vpop.f32.mrf.mxu0  ;;  %v2488_v33 = vadd.f32 %v2409_v50, %v2195_v53 }
 0x1d5   : > { %v3372_v62 = vpack.c.bf16 %v2811_v42, %v2811_v42  ;;  %v2780_v10 = vadd.f32 %v2697_v27, %v2487_v2  ;;  %v2411_v35 = vpop.f32.mrf.mxu1 }
 0x1d6   : > { %v2699_v30 = vpop.f32.mrf.mxu0 }
 0x1d7   : > { %2972 = vst.msk [vmem:[%s4515_s26 + $0x38] sm:$0xf] %vm2957_vm7, %v3372_v62  ;;  %v2812_v47 = vmax.f32 %v2780_v10, 0.0  ;;  %v2412_v8 = vpop.f32.mrf.mxu1  ;;  %v2201_v10 = vadd.f32 %v4504_v15, %v4461_v57 }
 0x1d8   : > { %v2702_v28 = vpop.f32.mrf.mxu0  ;;  %v2489_v51 = vadd.f32 %v2412_v8, %v2196_v25 }
 0x1d9   : > { %v3373_v39 = vpack.c.bf16 %v2812_v47, %v2812_v47  ;;  %v2781_v41 = vadd.f32 %v2702_v28, %v2488_v33  ;;  %v2414_v7 = vpop.f32.mrf.mxu1 }
 0x1da   : > { %v2704_v46 = vpop.f32.mrf.mxu0 }
 0x1db   : > { %2973 = vst.msk [vmem:[%s4515_s26 + $0x3c] sm:$0xf] %vm2957_vm7, %v3373_v39  ;;  %v2813_v3 = vmax.f32 %v2781_v41, 0.0  ;;  %v2417_v23 = vpop.f32.mrf.mxu1  ;;  %v2202_v39 = vadd.f32 %v4504_v15, %v4465_v29 }
 0x1dc   : > { %v2705_v40 = vpop.f32.mrf.mxu0  ;;  %v2490_v63 = vadd.f32 %v2417_v23, %v2197_v17  ;;  %v2203_v17 = vadd.f32 %v4504_v15, %v4469_v37 }
 0x1dd   : > { %v3374_v55 = vpack.c.bf16 %v2813_v3, %v2813_v3  ;;  %v2782_v19 = vadd.f32 %v2705_v40, %v2489_v51  ;;  %v2419_v32 = vpop.f32.mrf.mxu1 }
 0x1de   : > { %v2707_v56 = vpop.f32.mrf.mxu0 }
 0x1df   : > { %2974 = vst.msk [vmem:[%s4515_s26 + $0x40] sm:$0xf] %vm2957_vm7, %v3374_v55  ;;  %v2814_v14 = vmax.f32 %v2782_v19, 0.0  ;;  %v2420_v6 = vpop.f32.mrf.mxu1 }
 0x1e0   : > { %v2710_v13 = vpop.f32.mrf.mxu0  ;;  %v2491_v11 = vadd.f32 %v2420_v6, %v2198_v21 }
 0x1e1   : > { %v3375_v59 = vpack.c.bf16 %v2814_v14, %v2814_v14  ;;  %v2783_v20 = vadd.f32 %v2710_v13, %v2490_v63  ;;  %v2422_v4 = vpop.f32.mrf.mxu1  ;;  %v2204_v13 = vadd.f32 %v4504_v15, %v4473_v49 }
 0x1e2   : > { %v2712_v0 = vpop.f32.mrf.mxu0 }
 0x1e3   : > { %2975 = vst.msk [vmem:[%s4515_s26 + $0x44] sm:$0xf] %vm2957_vm7, %v3375_v59  ;;  %v2815_v43 = vmax.f32 %v2783_v20, 0.0  ;;  %v2425_v9 = vpop.f32.mrf.mxu1 }
 0x1e4   : > { %v2713_v36 = vpop.f32.mrf.mxu0  ;;  %v2492_v26 = vadd.f32 %v2425_v9, %v2199_v1  ;;  %v2205_v9 = vadd.f32 %v4504_v15, %v4477_v44 }
 0x1e5   : > { %v3376_v38 = vpack.c.bf16 %v2815_v43, %v2815_v43  ;;  %v2784_v12 = vadd.f32 %v2713_v36, %v2491_v11  ;;  %v2427_v45 = vpop.f32.mrf.mxu1 }
 0x1e6   : > { %v2715_v58 = vpop.f32.mrf.mxu0 }
 0x1e7   : > { %2976 = vst.msk [vmem:[%s4515_s26 + $0x48] sm:$0xf] %vm2957_vm7, %v3376_v38  ;;  %v2816_v52 = vmax.f32 %v2784_v12, 0.0  ;;  %v2428_v16 = vpop.f32.mrf.mxu1 }
 0x1e8   : > { %v2718_v24 = vpop.f32.mrf.mxu0  ;;  %v2493_v34 = vadd.f32 %v2428_v16, %v2200_v5 }
 0x1e9   : > { %v3377_v18 = vpack.c.bf16 %v2816_v52, %v2816_v52  ;;  %v2785_v2 = vadd.f32 %v2718_v24, %v2492_v26  ;;  %v2430_v42 = vpop.f32.mrf.mxu1  ;;  %v2206_v52 = vadd.f32 %v4504_v15, %v4481_v61 }
 0x1ea   : > { %v2720_v50 = vpop.f32.mrf.mxu0 }
 0x1eb   : > { %2977 = vst.msk [vmem:[%s4515_s26 + $0x4c] sm:$0xf] %vm2957_vm7, %v3377_v18  ;;  %v2817_v27 = vmax.f32 %v2785_v2, 0.0  ;;  %v2433_v53 = vpop.f32.mrf.mxu1 }
 0x1ec   : > { %v2721_v62 = vpop.f32.mrf.mxu0  ;;  %v2494_v54 = vadd.f32 %v2433_v53, %v2201_v10 }
 0x1ed   : > { %v3378_v35 = vpack.c.bf16 %v2817_v27, %v2817_v27  ;;  %v2786_v30 = vadd.f32 %v2721_v62, %v2493_v34  ;;  %v2435_v33 = vpop.f32.mrf.mxu1  ;;  %v2207_v34 = vadd.f32 %v4504_v15, %v4485_v48 }
 0x1ee   : > { %v2723_v47 = vpop.f32.mrf.mxu0 }
 0x1ef   : > { %2978 = vst.msk [vmem:[%s4515_s26 + $0x50] sm:$0xf] %vm2957_vm7, %v3378_v35  ;;  %v2818_v8 = vmax.f32 %v2786_v30, 0.0  ;;  %v2436_v28 = vpop.f32.mrf.mxu1  ;;  %v2208_v47 = vadd.f32 %v4504_v15, %v4489_v31 }
 0x1f0   : > { %v2726_v25 = vpop.f32.mrf.mxu0  ;;  %v2495_v57 = vadd.f32 %v2436_v28, %v2202_v39 }
 0x1f1   : > { %v3379_v41 = vpack.c.bf16 %v2818_v8, %v2818_v8  ;;  %v2787_v7 = vadd.f32 %v2726_v25, %v2494_v54  ;;  %v2438_v46 = vpop.f32.mrf.mxu1 }
 0x1f2   : > { %v2728_v51 = vpop.f32.mrf.mxu0  ;;  %v2209_v46 = vadd.f32 %v4504_v15, %v4493_v60 }
 0x1f3   : > { %2979 = vst.msk [vmem:[%s4515_s26 + $0x54] sm:$0xf] %vm2957_vm7, %v3379_v41  ;;  %v2819_v3 = vmax.f32 %v2787_v7, 0.0  ;;  %v2441_v23 = vpop.f32.mrf.mxu1 }
 0x1f4   : > { %v2729_v40 = vpop.f32.mrf.mxu0  ;;  %v2496_v29 = vadd.f32 %v2441_v23, %v2203_v17 }
 0x1f5   : > { %v3380_v55 = vpack.c.bf16 %v2819_v3, %v2819_v3  ;;  %v2788_v19 = vadd.f32 %v2729_v40, %v2495_v57  ;;  %v2443_v32 = vpop.f32.mrf.mxu1 }
 0x1f6   : > { %v2731_v56 = vpop.f32.mrf.mxu0 }
 0x1f7   : > { %2980 = vst.msk [vmem:[%s4515_s26 + $0x58] sm:$0xf] %vm2957_vm7, %v3380_v55  ;;  %v2820_v63 = vmax.f32 %v2788_v19, 0.0  ;;  %v2444_v14 = vpop.f32.mrf.mxu1  ;;  %v2210_v19 = vadd.f32 %v4504_v15, %v4497_v22 }
 0x1f8   : > { %v2734_v6 = vpop.f32.mrf.mxu0  ;;  %v2497_v37 = vadd.f32 %v2444_v14, %v2204_v13 }
 0x1f9   : > { %v3381_v21 = vpack.c.bf16 %v2820_v63, %v2820_v63  ;;  %v2789_v59 = vadd.f32 %v2734_v6, %v2496_v29  ;;  %v2446_v20 = vpop.f32.mrf.mxu1 }
 0x1fa   : > { %v2736_v4 = vpop.f32.mrf.mxu0 }
 0x1fb   : > { %2981 = vst.msk [vmem:[%s4515_s26 + $0x5c] sm:$0xf] %vm2957_vm7, %v3381_v21  ;;  %v2821_v0 = vmax.f32 %v2789_v59, 0.0  ;;  %v2449_v11 = vpop.f32.mrf.mxu1 }
 0x1fc   : > { %v2737_v43 = vpop.f32.mrf.mxu0  ;;  %v2498_v49 = vadd.f32 %v2449_v11, %v2205_v9 }
 0x1fd   : > { %v3382_v36 = vpack.c.bf16 %v2821_v0, %v2821_v0  ;;  %v2790_v1 = vadd.f32 %v2737_v43, %v2497_v37  ;;  %v2451_v38 = vpop.f32.mrf.mxu1 }
 0x1fe   : > { %v2739_v12 = vpop.f32.mrf.mxu0 }
 0x1ff   : > { %2982 = vst.msk [vmem:[%s4515_s26 + $0x60] sm:$0xf] %vm2957_vm7, %v3382_v36  ;;  %v2822_v45 = vmax.f32 %v2790_v1, 0.0  ;;  %v2452_v58 = vpop.f32.mrf.mxu1 }
 0x200   : > { %v2742_v26 = vpop.f32.mrf.mxu0  ;;  %v2499_v44 = vadd.f32 %v2452_v58, %v2206_v52 }
 0x201   : > { %v3383_v16 = vpack.c.bf16 %v2822_v45, %v2822_v45  ;;  %v2791_v24 = vadd.f32 %v2742_v26, %v2498_v49  ;;  %v2454_v5 = vpop.f32.mrf.mxu1 }
 0x202   : > { %v2744_v18 = vpop.f32.mrf.mxu0 }
 0x203   : > { %2983 = vst.msk [vmem:[%s4515_s26 + $0x64] sm:$0xf] %vm2957_vm7, %v3383_v16  ;;  %v2823_v2 = vmax.f32 %v2791_v24, 0.0  ;;  %v2457_v42 = vpop.f32.mrf.mxu1 }
 0x204   : > { %v2745_v50 = vpop.f32.mrf.mxu0  ;;  %v2500_v61 = vadd.f32 %v2457_v42, %v2207_v34 }
 0x205   : > { %v3384_v27 = vpack.c.bf16 %v2823_v2, %v2823_v2  ;;  %v2792_v53 = vadd.f32 %v2745_v50, %v2499_v44  ;;  %v2459_v62 = vpop.f32.mrf.mxu1 }
 0x206   : > { %v2747_v10 = vpop.f32.mrf.mxu0 }
 0x207   : > { %2984 = vst.msk [vmem:[%s4515_s26 + $0x68] sm:$0xf] %vm2957_vm7, %v3384_v27  ;;  %v2824_v35 = vmax.f32 %v2792_v53, 0.0  ;;  %v2460_v30 = vpop.f32.mrf.mxu1 }
 0x208   : > { %v2750_v33 = vpop.f32.mrf.mxu0  ;;  %v2501_v48 = vadd.f32 %v2460_v30, %v2208_v47 }
 0x209   : > { %v3385_v54 = vpack.c.bf16 %v2824_v35, %v2824_v35  ;;  %v2793_v8 = vadd.f32 %v2750_v33, %v2500_v61  ;;  %v2462_v28 = vpop.f32.mrf.mxu1 }
 0x20a   : > { %v2752_v25 = vpop.f32.mrf.mxu0 }
 0x20b   : > { %2985 = vst.msk [vmem:[%s4515_s26 + $0x6c] sm:$0xf] %vm2957_vm7, %v3385_v54  ;;  %v2825_v39 = vmax.f32 %v2793_v8, 0.0  ;;  %v2465_v41 = vpop.f32.mrf.mxu1 }
 0x20c   : > { %v2753_v7 = vpop.f32.mrf.mxu0  ;;  %v2502_v31 = vadd.f32 %v2465_v41, %v2209_v46 }
 0x20d   : > { %v3386_v51 = vpack.c.bf16 %v2825_v39, %v2825_v39  ;;  %v2794_v57 = vadd.f32 %v2753_v7, %v2501_v48  ;;  %v2467_v3 = vpop.f32.mrf.mxu1 }
 0x20e   : > { %v2755_v23 = vpop.f32.mrf.mxu0 }
 0x20f   : > { %2986 = vst.msk [vmem:[%s4515_s26 + $0x70] sm:$0xf] %vm2957_vm7, %v3386_v51  ;;  %v2826_v40 = vmax.f32 %v2794_v57, 0.0  ;;  %v2468_v17 = vpop.f32.mrf.mxu1 }
 0x210   : > { %v2758_v55 = vpop.f32.mrf.mxu0  ;;  %v2503_v60 = vadd.f32 %v2468_v17, %v2210_v19 }
 0x211   : > { %v3387_v32 = vpack.c.bf16 %v2826_v40, %v2826_v40  ;;  %v2795_v56 = vadd.f32 %v2758_v55, %v2502_v31  ;;  %v2470_v29 = vpop.f32.mrf.mxu1 }
 0x212   : > { %v2760_v63 = vpop.f32.mrf.mxu0 }
 0x213   : > { %2987 = vst.msk [vmem:[%s4515_s26 + $0x74] sm:$0xf] %vm2957_vm7, %v3387_v32  ;;  %v2827_v14 = vmax.f32 %v2795_v56, 0.0 }
 0x214   : > { %v2761_v6 = vpop.f32.mrf.mxu0 }
 0x215   : > { %v3388_v13 = vpack.c.bf16 %v2827_v14, %v2827_v14  ;;  %v2796_v21 = vadd.f32 %v2761_v6, %v2503_v60 }
 0x216   : > { %v2763_v59 = vpop.f32.mrf.mxu0 }
 0x217   : > { %2988 = vst.msk [vmem:[%s4515_s26 + $0x78] sm:$0xf] %vm2957_vm7, %v3388_v13  ;;  %v2828_v20 = vmax.f32 %v2796_v21, 0.0 }
 0x219   : > { %v3389_v4 = vpack.c.bf16 %v2828_v20, %v2828_v20 }
 0x21b   : > { %2989 = vst.msk [vmem:[%s4515_s26 + $0x7c] sm:$0xf] %vm2957_vm7, %v3389_v4 }
 0x21c PF: > { %s15_s20 = sadd.s32 1, %s3517_s20   ;;  %s4670_s18 = smov %s3513_s19 }
 0x21d   : > { %p12_p5 = scmp.ge.s32.totalorder %s15_s20, 4   ;;  %s4671_s19 = smov %s4673_s21 }
 0x21f   :  { %14 = sbr.rel (!%p12_p5) target bundleno = 2 (0x2), region = 78 }

// kernel: pup_head_forward.7
= control target key start
LH: loop header
LB: loop body
LE: loop exit
PB: predicated region body
PF: predicated region fallthrough
CT: control target
= control target key end

     0   :  { %s9911_s26 = smov 0   ;;  %s9913_s27 = smov 0   ;;  %s13804_s0 = inlined_call_operand.vmem [shape: bf16[2,32,32,64], index: 0, kind: input, shape index: {}, may-alias: {0,1,2}]   ;;  %s13805_s1 = inlined_call_operand.vmem [shape: bf16[2,1024,64], index: 1, kind: input, shape index: {}, may-alias: {0,1,2}]   ;;  %s13806_s2 = inlined_call_operand.vmem [shape: bf16[2,32,32,64], index: 2, kind: input, shape index: {}, may-alias: {0,1,2}]   ;;  %s13807_s3 = inlined_call_operand.vmem [shape: bf16[3,192,64], index: 3, kind: input, shape index: {}]   ;;  %s13808_s4 = inlined_call_operand.vmem [shape: f32[1,64], index: 4, kind: input, shape index: {}]   ;;  %s13809_s5 = inlined_call_operand.vmem [shape: bf16[1,64], index: 5, kind: input, shape index: {}]   ;;  %s13810_s6 = inlined_call_operand.<no memory space> [shape: f32[1,1], index: 6, kind: input, shape index: {}]   ;;  %s13811_s7 = inlined_call_operand.vmem [shape: f32[2,1,1024], index: 7, kind: output, shape index: {}]  }
   0x1   :  { %v12_v0 = vstv %s13810_s6  ;;  %s9915_s28 = smov 0  }
   0x2   :  { %13 = vst [vmem:[#allocation2] sm:$0x1] %v12_v0 }
   0x3 LB: > { %s31_s6 = sadd.s32 1, %s9856_s27  ;;  %p9143_p0 = scmp.ge.s32.totalorder %s9860_s28, 1  ;;  %s9860_s28 = sphi %s9915_s28, %s19_s28   ;;  %s9856_s27 = sphi %s9913_s27, %s14815_s27   ;;  %s9852_s26 = sphi %s9911_s26, %s14814_s26  }
   0x4   : > { %p33_p1 = scmp.ge.s32.totalorder %s31_s6, 2  ;;  %p324_p2 = scmp.lt.s32.totalorder %s9860_s28, 3 }
   0x6   : > { %s14817_s6 = smov (%p33_p1, %s31_s6), 0  ;;  %p325_p3 = pnand %p9143_p0, %p324_p2 }
   0x8   : > { %328 = sbr.rel (%p325_p3) target bundleno = 1492 (0x5d4), region = 48 }
   0xd   : > { %p393_p4 = scmp.lt.s32.totalorder %s9852_s26, 1  ;;  %v1580_v1 = vlaneseq  ;;  %v13812_v2 = vmov 0   ;;  %v9763_v3 = vld [vmem:[%s13807_s3 + $0x38] sm:$0xff]   ;;  %vm631_vm0 = vsmask.f32 256  ;;  %v9764_v4 = vld [vmem:[%s13807_s3 + $0x30] sm:$0xff]  }
   0xe   : > { %6164 = vmatprep.subr.bf16.mxu0 %v13812_v2  ;;  %9647 = vmatprep.subr.bf16.mxu1 %v13812_v2  ;;  %vm1574_vm1 = vcmask 1040384   ;;  %v9766_v9 = vld [vmem:[%s13807_s3 + $0x28] sm:$0xff]   ;;  %v9767_v21 = vld [vmem:[%s13807_s3 + $0x20] sm:$0xff]   ;;  %vm4710_vm2 = vsmask.f32 7424  ;;  %v14073_v36 = vmov 0 }
   0xf   : > { %s14819_s26 = smov (!%p393_p4, %s9852_s26), 1  ;;  %9733 = vset.pattern.permute.xlu0 %v13812_v2  ;;  %6165 = vmatpush1.bf16.msra.mxu0 %v9763_v3  ;;  %v9954_v5 = vshrl.u32 %v1580_v1, 7  ;;  %vm9980_vm3 = vmand %vm1574_vm1, %vm631_vm0  ;;  %s9863_s21 = smov 64   ;;  %vm5464_vm5 = vcmask 1046528   ;;  %vm5602_vm6 = vcmask 523264  }
  0x10   : > { %s9938_s8 = sshll.u32 %s14819_s26, 9  ;;  %9659 = vmatpush1.bf16.msra.mxu1 %v9763_v3  ;;  %6166 = vmatprep.subr.bf16.mxu0 %v13812_v2  ;;  %v14074_v36 = vsel %vm9980_vm3, 4294967295, %v14073_v36  ;;  %s9150_s10 = sshll.u32 %s14819_s26, 3 }
  0x11   : > { %s401_s13 = scalar_lea.vmem %s13804_s0, %s9938_s8  ;;  %s9951_s16 = scalar_lea.vmem %s13805_s1, %s9938_s8  ;;  %14072 = vst [vmem:[#allocation3_spill] sm:$0xff] %v9954_v5  ;;  %9648 = vmatprep.subr.bf16.mxu1 %v13812_v2  ;;  %14075 = vst [vmem:[#allocation4_spill] sm:$0xff] %v14074_v36  ;;  %v14089_v36 = vmov 0  }
  0x12   : > { %v443_v6 = vld [vmem:[%s401_s13] sm:$0xf]  ;;  %v444_v7 = vld [vmem:[%s401_s13 + $0x4] sm:$0xf]  ;;  %v445_v8 = vld [vmem:[%s401_s13 + $0x8] sm:$0xf] }
  0x13   : > { %v446_v10 = vld [vmem:[%s401_s13 + $0xc] sm:$0xf]  ;;  %v464_v11 = vmul.bf16 0.0, %v443_v6  ;;  %v465_v12 = vmul.bf16 0.0, %v444_v7  ;;  %v466_v13 = vmul.bf16 0.0, %v445_v8  ;;  %v9734_v14 = vld [vmem:[%s9951_s16] sm:$0xff]   ;;  %6167 = vmatpush1.bf16.msra.mxu0 %v9764_v4  ;;  %s440_s13 = scalar_lea.vmem %s13811_s7, %s9150_s10 }
  0x14   : > { %v467_v15 = vmul.bf16 0.0, %v446_v10  ;;  %v9962_v16 = vld [vmem:[%s9951_s16 + $0x8] sm:$0xff]   ;;  %9660 = vmatpush1.bf16.msra.mxu1 %v9764_v4  ;;  %v971_v18 = vshrl.u32 %v9734_v14, 16  ;;  %v974_v19 = vshll.u32 %v9734_v14, 16  ;;  %6168 = vmatprep.subr.bf16.mxu0 %v13812_v2  ;;  %v9736_v25 = vld [vmem:[%s9951_s16 + $0x10] sm:$0xff]   ;;  %v9737_v28 = vld [vmem:[%s9951_s16 + $0x18] sm:$0xff]  }
  0x15   : > { %v9151_v17 = vcombine.low %v464_v11, %v465_v12  ;;  %9649 = vmatprep.subr.bf16.mxu1 %v13812_v2  ;;  %v978_v29 = vshrl.u32 %v9962_v16, 16  ;;  %v986_v32 = vshrl.u32 %v9736_v25, 16  ;;  %v989_v33 = vshll.u32 %v9736_v25, 16  ;;  %v9738_v34 = vld [vmem:[%s9951_s16 + $0x20] sm:$0xff]   ;;  %v9739_v51 = vld [vmem:[%s9951_s16 + $0x28] sm:$0xff]   ;;  %v9740_v1 = vld [vmem:[%s9951_s16 + $0x30] sm:$0xff]  }
  0x16   : > { %v9152_v20 = vcombine.low %v466_v13, %v467_v15  ;;  %v9969_v24 = vrot.slane %v971_v18, 7  ;;  %v994_v38 = vshrl.u32 %v9737_v28, 16  ;;  %v997_v39 = vshll.u32 %v9737_v28, 16  ;;  %v9741_v8 = vld [vmem:[%s9951_s16 + $0x38] sm:$0xff]   ;;  %s9573_s19 = sadd.s32 496, %s9938_s8 }
  0x17   : > { %v633_v22 = vshrl.u32 %v9151_v17, 16  ;;  %v636_v23 = vshll.u32 %v9151_v17, 16  ;;  %6169 = vmatpush1.bf16.msra.mxu0 %v9766_v9  ;;  %v980_v37 = vrot.slane %v978_v29, 7  ;;  %v988_v41 = vrot.slane %v986_v32, 7  ;;  %s12536_s22 = scalar_lea.vmem %s13806_s2, %s9573_s19 }
  0x18   : > { %v640_v26 = vshrl.u32 %v9152_v20, 16  ;;  %v643_v27 = vshll.u32 %v9152_v20, 16  ;;  %9661 = vmatpush1.bf16.msra.mxu1 %v9766_v9  ;;  %v976_v31 = vor.u32 %v974_v19, %v9969_v24  ;;  %6170 = vmatprep.subr.bf16.mxu0 %v13812_v2  ;;  %v1002_v42 = vshrl.u32 %v9738_v34, 16 }
  0x19   : > { %v635_v30 = vrot.slane %v633_v22, 7  ;;  %9650 = vmatprep.subr.bf16.mxu1 %v13812_v2  ;;  %v1005_v43 = vshll.u32 %v9738_v34, 16  ;;  %v996_v46 = vrot.slane %v994_v38, 7  ;;  %v981_v47 = vshll.u32 %v9962_v16, 16 }
  0x1a   : > { %v642_v35 = vrot.slane %v640_v26, 7  ;;  %v991_v50 = vor.u32 %v989_v33, %v988_v41  ;;  %v1004_v52 = vrot.slane %v1002_v42, 7  ;;  %v1010_v7 = vshrl.u32 %v9739_v51, 16  ;;  %v9742_v26 = vld [vmem:[%s9951_s16 + $0x40] sm:$0xff]  }
  0x1b   : > { %v638_v40 = vor.u32 %v636_v23, %v635_v30  ;;  %6171 = vmatpush1.bf16.msra.mxu0 %v9767_v21  ;;  %v999_v56 = vor.u32 %v997_v39, %v996_v46  ;;  %v1013_v11 = vshll.u32 %v9739_v51, 16  ;;  %v983_v12 = vor.u32 %v981_v47, %v980_v37 }
  0x1c   : > { %v645_v44 = vor.u32 %v643_v27, %v642_v35  ;;  %v9986_v45 = vsel %vm9980_vm3, %v642_v35, %v976_v31  ;;  %9662 = vmatpush1.bf16.msra.mxu1 %v9767_v21  ;;  %6172 = vmatprep.subr.bf16.mxu0 %v13812_v2  ;;  %v10005_v60 = vsel %vm631_vm0, %v980_v37, %v991_v50  ;;  %v1012_v16 = vrot.slane %v1010_v7, 7  ;;  %v9743_v31 = vld [vmem:[%s9951_s16 + $0x48] sm:$0xff]  }
  0x1d   : > { %v9991_v48 = vsel %vm9980_vm3, 0, %v638_v40  ;;  %v4727_v49 = vshll.u32 %v9986_v45, 16  ;;  %9651 = vmatprep.subr.bf16.mxu1 %v13812_v2  ;;  %v10008_v62 = vsel %vm631_vm0, %v988_v41, %v999_v56  ;;  %v4743_v63 = vshll.u32 %v10005_v60, 16  ;;  %v9744_v40 = vld [vmem:[%s9951_s16 + $0x50] sm:$0xff]   ;;  %v9745_v56 = vld [vmem:[%s9951_s16 + $0x58] sm:$0xff]  }
  0x1e   : > { %v9998_v53 = vsel %vm631_vm0, %v635_v30, %v645_v44  ;;  %v4712_v54 = vshrl.u32 %v9991_v48, 16  ;;  %v4714_v55 = vshll.u32 %v9991_v48, 16  ;;  %v4747_v0 = vshrl.u32 %v10005_v60, 16 }
  0x1f   : > { %v4719_v57 = vshll.u32 %v9998_v53, 16  ;;  %v4723_v58 = vshrl.u32 %v9998_v53, 16  ;;  %v4729_v59 = vrot.slane %v4727_v49, 1  ;;  %v4751_v4 = vshll.u32 %v10008_v62, 16 }
  0x20   : > { %v4716_v61 = vrot.slane %v4714_v55, 1  ;;  %v1007_v6 = vor.u32 %v1005_v43, %v1004_v52  ;;  %v10015_v10 = vrot.slane %v4743_v63, 1  ;;  %v1015_v22 = vor.u32 %v1013_v11, %v1012_v16  ;;  %v9746_v63 = vld [vmem:[%s9951_s16 + $0x60] sm:$0xff]  }
  0x21   : > { %v4721_v3 = vrot.slane %v4719_v57, 1  ;;  %v10017_v14 = vrot.slane %v4751_v4, 1  ;;  %v10030_v23 = vsel %vm631_vm0, %v9969_v24, %v983_v12  ;;  %v4731_v25 = vshrl.u32 %v9986_v45, 16 }
  0x22   : > { %v4717_v9 = vor.u32 %v4716_v61, %v4712_v54  ;;  %v10020_v15 = vsel %vm631_vm0, %v996_v46, %v1007_v6  ;;  %v4749_v18 = vor.u32 %v4747_v0, %v10015_v10  ;;  %v4735_v29 = vshll.u32 %v10030_v23, 16 }
  0x23   : > { %v4725_v13 = vor.u32 %v4723_v58, %v4721_v3  ;;  %v4759_v19 = vshll.u32 %v10020_v15, 16  ;;  %v4763_v20 = vshrl.u32 %v10020_v15, 16  ;;  %v1018_v30 = vshrl.u32 %v9740_v1, 16 }
  0x24   : > { %v4722_v17 = vsel %vm4710_vm2, %v4717_v9, %v4721_v3  ;;  %v4754_v27 = vsel %vm4710_vm2, %v4749_v18, %v10017_v14  ;;  %v10041_v32 = vsel %vm631_vm0, %v1004_v52, %v1015_v22  ;;  %v4733_v33 = vor.u32 %v4731_v25, %v4729_v59 }
  0x25   : > { %5259 = vrot.lane.b32.xlu0 %v4722_v17, %s9863_s21  ;;  %v4730_v21 = vsel %vm4710_vm2, %v4725_v13, %v4729_v59  ;;  %v10036_v28 = vrot.slane %v4759_v19, 1  ;;  %v1021_v34 = vshll.u32 %v9740_v1, 16  ;;  %v1026_v24 = vshrl.u32 %v9741_v8, 16 }
  0x26   : > { %v4767_v37 = vshll.u32 %v10041_v32, 16  ;;  %v4737_v38 = vrot.slane %v4735_v29, 1  ;;  %v1020_v39 = vrot.slane %v1018_v30, 7  ;;  %v1029_v42 = vshll.u32 %v9741_v8, 16  ;;  %v9748_v29 = vld [vmem:[%s9951_s16 + $0x70] sm:$0xff]  }
  0x27   : > { %v4765_v35 = vor.u32 %v4763_v20, %v10036_v28  ;;  %v1028_v41 = vrot.slane %v1026_v24, 7  ;;  %v1034_v43 = vshrl.u32 %v9742_v26, 16  ;;  %v1037_v44 = vshll.u32 %v9742_v26, 16  ;;  %v9749_v24 = vld [vmem:[%s9951_s16 + $0x78] sm:$0xff]  }
  0x28   : > { %v10047_v46 = vrot.slane %v4767_v37, 1  ;;  %v4738_v47 = vsel %vm4710_vm2, %v4733_v33, %v4737_v38  ;;  %v1023_v49 = vor.u32 %v1021_v34, %v1020_v39  ;;  %v1042_v50 = vshrl.u32 %v9743_v31, 16 }
  0x29   : > { %5261 = vrot.lane.b32.xlu0 %v4730_v21, %s9863_s21  ;;  %5263 = vrot.lane.b32.xlu1 %v4738_v47, %s9863_s21  ;;  %v1031_v51 = vor.u32 %v1029_v42, %v1028_v41  ;;  %v1036_v52 = vrot.slane %v1034_v43, 7  ;;  %v1045_v54 = vshll.u32 %v9743_v31, 16  ;;  %v4739_v55 = vshrl.u32 %v10030_v23, 16  ;;  %v9747_v21 = vld [vmem:[%s9951_s16 + $0x68] sm:$0xff]  }
  0x2a   : > { %v4770_v57 = vsel %vm4710_vm2, %v4765_v35, %v10047_v46  ;;  %v10056_v58 = vsel %vm631_vm0, %v1012_v16, %v1023_v49  ;;  %v1044_v59 = vrot.slane %v1042_v50, 7  ;;  %v1050_v61 = vshrl.u32 %v9744_v40, 16  ;;  %v9750_v35 = vld [vmem:[%s9951_s16 + $0x80] sm:$0xff]  }
  0x2b   : > { %v10061_v0 = vsel %vm631_vm0, %v1020_v39, %v1031_v51  ;;  %v4775_v1 = vshll.u32 %v10056_v58, 16  ;;  %v4779_v3 = vshrl.u32 %v10056_v58, 16  ;;  %v1039_v4 = vor.u32 %v1037_v44, %v1036_v52 }
  0x2c   : > { %14076 = vst [vmem:[#allocation5_spill] sm:$0xff] %v10061_v0  ;;  %v4783_v6 = vshll.u32 %v10061_v0, 16  ;;  %v1047_v7 = vor.u32 %v1045_v54, %v1044_v59  ;;  %v4741_v8 = vor.u32 %v4739_v55, %v4737_v38  ;;  %v1052_v9 = vrot.slane %v1050_v61, 7 }
  0x2d   : > { %5267 = vrot.lane.b32.xlu0 %v4754_v27, %s9863_s21  ;;  %v10066_v11 = vrot.slane %v4775_v1, 1  ;;  %v10069_v12 = vsel %vm631_vm0, %v1028_v41, %v1039_v4  ;;  %v1053_v13 = vshll.u32 %v9744_v40, 16  ;;  %v1058_v16 = vshrl.u32 %v9745_v56, 16 }
  0x2e   : > { %14077 = vst [vmem:[#allocation6_spill] sm:$0xff] %v10069_v12  ;;  %v10071_v17 = vrot.slane %v4783_v6, 1  ;;  %v10074_v18 = vsel %vm631_vm0, %v1036_v52, %v1047_v7  ;;  %v4791_v19 = vshll.u32 %v10069_v12, 16  ;;  %v4795_v20 = vshrl.u32 %v10069_v12, 16 }
  0x2f   : > { %v4781_v22 = vor.u32 %v4779_v3, %v10066_v11  ;;  %v4799_v25 = vshll.u32 %v10074_v18, 16  ;;  %v4746_v26 = vsel %vm4710_vm2, %v4741_v8, %v10015_v10  ;;  %v1055_v27 = vor.u32 %v1053_v13, %v1052_v9  ;;  %v9751_v13 = vld [vmem:[%s9951_s16 + $0x88] sm:$0xff]  }
  0x30   : > { %v10085_v30 = vrot.slane %v4791_v19, 1  ;;  %5265 = vrot.lane.b32.xlu1 %v4746_v26, %s9863_s21  ;;  %v1060_v31 = vrot.slane %v1058_v16, 7  ;;  %v1061_v33 = vshll.u32 %v9745_v56, 16  ;;  %v1066_v34 = vshrl.u32 %v9746_v63, 16 }
  0x31   : > { %5271 = vrot.lane.b32.xlu0 %v4770_v57, %s9863_s21  ;;  %v4786_v37 = vsel %vm4710_vm2, %v4781_v22, %v10071_v17  ;;  %v10092_v38 = vrot.slane %v4799_v25, 1  ;;  %v10095_v39 = vsel %vm631_vm0, %v1044_v59, %v1055_v27  ;;  %v1069_v10 = vshll.u32 %v9746_v63, 16 }
  0x32   : > { %14078 = vst [vmem:[#allocation7_spill] sm:$0xff] %v10095_v39  ;;  %v4797_v40 = vor.u32 %v4795_v20, %v10085_v30  ;;  %v1063_v41 = vor.u32 %v1061_v33, %v1060_v31  ;;  %v4807_v42 = vshll.u32 %v10095_v39, 16  ;;  %v4811_v43 = vshrl.u32 %v10095_v39, 16 }
  0x33   : > { %v1068_v44 = vrot.slane %v1066_v34, 7  ;;  %v1074_v47 = vshrl.u32 %v9747_v21, 16  ;;  %v1077_v49 = vshll.u32 %v9747_v21, 16  ;;  %v1082_v50 = vshrl.u32 %v9748_v29, 16 }
  0x34   : > { %v4802_v51 = vsel %vm4710_vm2, %v4797_v40, %v10092_v38  ;;  %v10104_v52 = vsel %vm631_vm0, %v1052_v9, %v1063_v41  ;;  %v10106_v54 = vrot.slane %v4807_v42, 1  ;;  %v1085_v55 = vshll.u32 %v9748_v29, 16  ;;  %v9753_v42 = vld [vmem:[%s9951_s16 + $0x98] sm:$0xff]  }
  0x35   : > { %5275 = vrot.lane.b32.xlu0 %v4786_v37, %s9863_s21  ;;  %v4815_v56 = vshll.u32 %v10104_v52, 16  ;;  %v1071_v57 = vor.u32 %v1069_v10, %v1068_v44  ;;  %v1076_v59 = vrot.slane %v1074_v47, 7  ;;  %v1084_v61 = vrot.slane %v1082_v50, 7 }
  0x36   : > { %v4813_v63 = vor.u32 %v4811_v43, %v10106_v54  ;;  %v1090_v1 = vshrl.u32 %v9749_v24, 16  ;;  %v1093_v3 = vshll.u32 %v9749_v24, 16  ;;  %v1098_v4 = vshrl.u32 %v9750_v35, 16  ;;  %v9752_v24 = vld [vmem:[%s9951_s16 + $0x90] sm:$0xff]  }
  0x37   : > { %v10111_v6 = vrot.slane %v4815_v56, 1  ;;  %v10114_v7 = vsel %vm631_vm0, %v1060_v31, %v1071_v57  ;;  %v1079_v8 = vor.u32 %v1077_v49, %v1076_v59  ;;  %v1087_v9 = vor.u32 %v1085_v55, %v1084_v61  ;;  %v10144_v49 = vld [vmem:[%s9951_s16 + $0xa0] sm:$0xff]   ;;  %v9755_v57 = vld [vmem:[%s9951_s16 + $0xa8] sm:$0xff]  }
  0x38   : > { %14079 = vst [vmem:[#allocation8_spill] sm:$0xff] %v10114_v7  ;;  %v4823_v16 = vshll.u32 %v10114_v7, 16  ;;  %v4827_v19 = vshrl.u32 %v10114_v7, 16  ;;  %v1092_v20 = vrot.slane %v1090_v1, 7  ;;  %v1100_v21 = vrot.slane %v1098_v4, 7 }
  0x39   : > { %5279 = vrot.lane.b32.xlu0 %v4802_v51, %s9863_s21  ;;  %v4818_v22 = vsel %vm4710_vm2, %v4813_v63, %v10111_v6  ;;  %v10122_v25 = vsel %vm631_vm0, %v1068_v44, %v1079_v8  ;;  %v10125_v26 = vsel %vm631_vm0, %v1076_v59, %v1087_v9  ;;  %v1101_v27 = vshll.u32 %v9750_v35, 16  ;;  %v9769_v59 = vld [vmem:[%s13807_s3 + $0x18] sm:$0xff]  }
  0x3a   : > { %14080 = vst [vmem:[#allocation9_spill] sm:$0xff] %v10125_v26  ;;  %v10127_v29 = vrot.slane %v4823_v16, 1  ;;  %v4831_v31 = vshll.u32 %v10122_v25, 16  ;;  %v1095_v33 = vor.u32 %v1093_v3, %v1092_v20  ;;  %v4839_v34 = vshll.u32 %v10125_v26, 16  ;;  %v9756_v16 = vld [vmem:[%s9951_s16 + $0xb0] sm:$0xff]   ;;  %6173 = vmatpush1.bf16.msra.mxu0 %v9769_v59  ;;  %9663 = vmatpush1.bf16.msra.mxu1 %v9769_v59 }
  0x3b   : > { %v4843_v37 = vshrl.u32 %v10125_v26, 16  ;;  %v1103_v10 = vor.u32 %v1101_v27, %v1100_v21  ;;  %v1106_v40 = vshrl.u32 %v9751_v13, 16  ;;  %v1109_v41 = vshll.u32 %v9751_v13, 16  ;;  %6174 = vmatprep.subr.bf16.mxu0 %v13812_v2  ;;  %9652 = vmatprep.subr.bf16.mxu1 %v13812_v2 }
  0x3c   : > { %v4829_v35 = vor.u32 %v4827_v19, %v10127_v29  ;;  %v10136_v43 = vrot.slane %v4831_v31, 1  ;;  %v10139_v44 = vsel %vm631_vm0, %v1084_v61, %v1095_v33  ;;  %v10141_v47 = vrot.slane %v4839_v34, 1  ;;  %v9770_v19 = vld [vmem:[%s13807_s3 + $0x10] sm:$0xff]  }
  0x3d   : > { %5283 = vrot.lane.b32.xlu0 %v4818_v22, %s9863_s21  ;;  %v4847_v50 = vshll.u32 %v10139_v44, 16  ;;  %v10148_v51 = vsel %vm631_vm0, %v1092_v20, %v1103_v10  ;;  %v1108_v55 = vrot.slane %v1106_v40, 7  ;;  %v4755_v56 = vshrl.u32 %v10008_v62, 16  ;;  %v9757_v10 = vld [vmem:[%s9951_s16 + $0xb8] sm:$0xff]  }
  0x3e   : > { %14081 = vst [vmem:[#allocation10_spill] sm:$0xff] %v10148_v51  ;;  %v4834_v61 = vsel %vm4710_vm2, %v4829_v35, %v10136_v43  ;;  %v4845_v63 = vor.u32 %v4843_v37, %v10141_v47  ;;  %v4855_v1 = vshll.u32 %v10148_v51, 16  ;;  %v4859_v3 = vshrl.u32 %v10148_v51, 16  ;;  %6175 = vmatpush1.bf16.msra.mxu0 %v9770_v19  ;;  %9664 = vmatpush1.bf16.msra.mxu1 %v9770_v19 }
  0x3f   : > { %v10161_v4 = vrot.slane %v4847_v50, 1  ;;  %v1111_v8 = vor.u32 %v1109_v41, %v1108_v55  ;;  %v4757_v9 = vor.u32 %v4755_v56, %v10017_v14  ;;  %v1114_v13 = vshrl.u32 %v9752_v24, 16  ;;  %v9772_v56 = vld [vmem:[%s13807_s3 + $0x8] sm:$0xff]   ;;  %6176 = vmatprep.subr.bf16.mxu0 %v13812_v2  ;;  %9653 = vmatprep.subr.bf16.mxu1 %v13812_v2 }
  0x40   : > { %v10168_v20 = vrot.slane %v4855_v1, 1  ;;  %v1117_v22 = vshll.u32 %v9752_v24, 16  ;;  %v1122_v27 = vshrl.u32 %v9753_v42, 16  ;;  %v1125_v31 = vshll.u32 %v9753_v42, 16 }
  0x41   : > { %5287 = vrot.lane.b32.xlu0 %v4834_v61, %s9863_s21  ;;  %v4850_v33 = vsel %vm4710_vm2, %v4845_v63, %v10161_v4  ;;  %v10174_v14 = vsel %vm631_vm0, %v1100_v21, %v1111_v8  ;;  %v4762_v34 = vsel %vm4710_vm2, %v4757_v9, %v10036_v28  ;;  %v1116_v37 = vrot.slane %v1114_v13, 7  ;;  %v9759_v13 = vld [vmem:[%s9951_s16 + $0x158] sm:$0xff]  }
  0x42   : > { %14082 = vst [vmem:[#allocation11_spill] sm:$0xff] %v10174_v14  ;;  %v4861_v24 = vor.u32 %v4859_v3, %v10168_v20  ;;  %v4863_v40 = vshll.u32 %v10174_v14, 16  ;;  %5269 = vrot.lane.b32.xlu1 %v4762_v34, %s9863_s21  ;;  %v1124_v41 = vrot.slane %v1122_v27, 7  ;;  %v1130_v42 = vshrl.u32 %v10144_v49, 16  ;;  %v9758_v3 = vld [vmem:[%s9951_s16 + $0x150] sm:$0xff]   ;;  %6177 = vmatpush1.bf16.msra.mxu0 %v9772_v56 }
  0x43   : > { %v1119_v21 = vor.u32 %v1117_v22, %v1116_v37  ;;  %v1133_v35 = vshll.u32 %v10144_v49, 16  ;;  %v1138_v28 = vshrl.u32 %v9755_v57, 16  ;;  %v1141_v50 = vshll.u32 %v9755_v57, 16  ;;  %v9773_v22 = vld [vmem:[%s13807_s3] sm:$0xff]   ;;  %6178 = vmatprep.subr.bf16.mxu0 %v13812_v2  ;;  %9665 = vmatpush1.bf16.msra.mxu1 %v9772_v56 }
  0x44   : > { %v10189_v59 = vrot.slane %v4863_v40, 1  ;;  %v1127_v61 = vor.u32 %v1125_v31, %v1124_v41  ;;  %v1132_v63 = vrot.slane %v1130_v42, 7  ;;  %v1146_v1 = vshrl.u32 %v9756_v16, 16  ;;  %9654 = vmatprep.subr.bf16.mxu1 %v13812_v2 }
  0x45   : > { %5291 = vrot.lane.b32.xlu0 %v4850_v33, %s9863_s21  ;;  %v10194_v8 = vsel %vm631_vm0, %v1108_v55, %v1119_v21  ;;  %v1140_v49 = vrot.slane %v1138_v28, 7  ;;  %v1149_v9 = vshll.u32 %v9756_v16, 16  ;;  %v1154_v57 = vshrl.u32 %v9757_v10, 16 }
  0x46   : > { %14083 = vst [vmem:[#allocation12_spill] sm:$0xff] %v10194_v8  ;;  %v4866_v27 = vsel %vm4710_vm2, %v4861_v24, %v10189_v59  ;;  %v10204_v31 = vsel %vm631_vm0, %v1116_v37, %v1127_v61  ;;  %v4871_v55 = vshll.u32 %v10194_v8, 16  ;;  %v4875_v19 = vshrl.u32 %v10194_v8, 16  ;;  %v9760_v37 = vld [vmem:[%s9951_s16 + $0x160] sm:$0xff]   ;;  %6179 = vmatpush1.bf16.msra.mxu0 %v9773_v22 }
  0x47   : > { %14084 = vst [vmem:[#allocation13_spill] sm:$0xff] %v10204_v31  ;;  %v4879_v16 = vshll.u32 %v10204_v31, 16  ;;  %v1135_v33 = vor.u32 %v1133_v35, %v1132_v63  ;;  %v1143_v34 = vor.u32 %v1141_v50, %v1140_v49  ;;  %v1148_v40 = vrot.slane %v1146_v1, 7  ;;  %v9761_v1 = vld [vmem:[%s9951_s16 + $0x168] sm:$0xff]   ;;  %6188 = vmatprep.subr.bf16.mxu0 %v14089_v36  ;;  %9666 = vmatpush1.bf16.msra.mxu1 %v9773_v22  ;;  %v10259_v22 = vld [vmem:[%s9951_s16 + $0x178] sm:$0xff]  }
  0x48   : > { %v10210_v42 = vrot.slane %v4871_v55, 1  ;;  %v10212_v21 = vrot.slane %v1154_v57, 7  ;;  %v1157_v24 = vshll.u32 %v9757_v10, 16  ;;  %v1306_v28 = vshrl.u32 %v9758_v3, 16  ;;  %9655 = vmatprep.subr.bf16.mxu1 %v14089_v36 }
  0x49   : > { %5295 = vrot.lane.b32.xlu0 %v4866_v27, %s9863_s21  ;;  %v10216_v61 = vrot.slane %v4879_v16, 1  ;;  %v10219_v27 = vsel %vm631_vm0, %v1124_v41, %v1135_v33  ;;  %v10222_v35 = vsel %vm631_vm0, %v1132_v63, %v1143_v34  ;;  %v1151_v50 = vor.u32 %v1149_v9, %v1148_v40  ;;  %v9775_v41 = vld [vmem:[%s13807_s3 + $0x58] sm:$0xff]  }
  0x4a   : > { %14085 = vst [vmem:[#allocation14_spill] sm:$0xff] %v10219_v27  ;;  %14086 = vst [vmem:[#allocation15_spill] sm:$0xff] %v10222_v35  ;;  %v4877_v57 = vor.u32 %v4875_v19, %v10210_v42  ;;  %v4887_v10 = vshll.u32 %v10219_v27, 16  ;;  %v4891_v3 = vshrl.u32 %v10219_v27, 16  ;;  %v4895_v56 = vshll.u32 %v10222_v35, 16  ;;  %6189 = vmatpush2.bf16.msra.mxu0 %v9775_v41 }
  0x4b   : > { %v10234_v55 = vsel %vm631_vm0, %v1140_v49, %v1151_v50  ;;  %v1159_v63 = vor.u32 %v1157_v24, %v10212_v21  ;;  %v10237_v9 = vrot.slane %v1306_v28, 7  ;;  %v1314_v16 = vshrl.u32 %v9759_v13, 16  ;;  %6190 = vmatprep.subr.bf16.mxu0 %v14089_v36  ;;  %9667 = vmatpush2.bf16.msra.mxu1 %v9775_v41 }
  0x4c   : > { %14087 = vst [vmem:[#allocation16_spill] sm:$0xff] %v10234_v55  ;;  %v4882_v19 = vsel %vm4710_vm2, %v4877_v57, %v10216_v61  ;;  %v10241_v33 = vrot.slane %v4887_v10, 1  ;;  %v10243_v34 = vrot.slane %v4895_v56, 1  ;;  %v4903_v2 = vshll.u32 %v10234_v55, 16  ;;  %v9762_v57 = vld [vmem:[%s9951_s16 + $0x170] sm:$0xff]   ;;  %9656 = vmatprep.subr.bf16.mxu1 %v14089_v36 }
  0x4d   : > { %14088 = vst [vmem:[#allocation17_spill] sm:$0xff] %v10237_v9  ;;  %5299 = vrot.lane.b32.xlu0 %v4882_v19, %s9863_s21  ;;  %v10249_v49 = vsel %vm631_vm0, %v1148_v40, %v1159_v63  ;;  %v4907_v24 = vshrl.u32 %v10234_v55, 16  ;;  %v1316_v28 = vrot.slane %v1314_v16, 7  ;;  %v1317_v50 = vshll.u32 %v9759_v13, 16  ;;  %v9776_v13 = vld [vmem:[%s13807_s3 + $0x50] sm:$0xff]  }
  0x4e   : > { %14090 = vst [vmem:[#allocation18_spill] sm:$0xff] %v10249_v49  ;;  %v4893_v10 = vor.u32 %v4891_v3, %v10241_v33  ;;  %v10255_v56 = vrot.slane %v4903_v2, 1  ;;  %v4911_v27 = vshll.u32 %v10249_v49, 16  ;;  %v1322_v8 = vshrl.u32 %v9760_v37, 16  ;;  %6191 = vmatpush2.bf16.msra.mxu0 %v9776_v13 }
  0x4f   : > { %v1319_v19 = vor.u32 %v1317_v50, %v1316_v28  ;;  %v1325_v51 = vshll.u32 %v9760_v37, 16  ;;  %v4771_v40 = vshrl.u32 %v10041_v32, 16  ;;  %v1330_v63 = vshrl.u32 %v9761_v1, 16  ;;  %6192 = vmatprep.subr.bf16.mxu0 %v14089_v36  ;;  %9668 = vmatpush2.bf16.msra.mxu1 %v9776_v13  ;;  %v9779_v13 = vld [vmem:[%s13807_s3 + $0x40] sm:$0xff]  }
  0x50   : > { %v4898_v3 = vsel %vm4710_vm2, %v4893_v10, %v10243_v34  ;;  %v4909_v2 = vor.u32 %v4907_v24, %v10255_v56  ;;  %v10268_v16 = vrot.slane %v4911_v27, 1  ;;  %v1324_v55 = vrot.slane %v1322_v8, 7  ;;  %v9778_v10 = vld [vmem:[%s13807_s3 + $0x48] sm:$0xff]   ;;  %9657 = vmatprep.subr.bf16.mxu1 %v14089_v36 }
  0x51   : > { %5303 = vrot.lane.b32.xlu0 %v4898_v3, %s9863_s21  ;;  %v10274_v37 = vsel %vm631_vm0, %v10237_v9, %v1319_v19  ;;  %v4773_v50 = vor.u32 %v4771_v40, %v10047_v46  ;;  %v1332_v26 = vrot.slane %v1330_v63, 7  ;;  %v1333_v7 = vshll.u32 %v9761_v1, 16  ;;  %v9768_v9 = vld [vmem:[%s9951_s16 + $0x180] sm:$0xff]  }
  0x52   : > { %v4914_v27 = vsel %vm4710_vm2, %v4909_v2, %v10268_v16  ;;  %v1327_v8 = vor.u32 %v1325_v51, %v1324_v55  ;;  %v5071_v24 = vshll.u32 %v10274_v37, 16  ;;  %v5075_v41 = vshrl.u32 %v10274_v37, 16  ;;  %6193 = vmatpush2.bf16.msra.mxu0 %v9778_v10 }
  0x53   : > { %v4778_v46 = vsel %vm4710_vm2, %v4773_v50, %v10066_v11  ;;  %v1335_v19 = vor.u32 %v1333_v7, %v1332_v26  ;;  %v1338_v1 = vshrl.u32 %v9762_v57, 16  ;;  %v1341_v40 = vshll.u32 %v9762_v57, 16  ;;  %v9771_v50 = vld [vmem:[%s9951_s16 + $0x188] sm:$0xff]   ;;  %6194 = vmatprep.subr.bf16.mxu0 %v14089_v36  ;;  %9669 = vmatpush2.bf16.msra.mxu1 %v9778_v10 }
  0x54   : > { %v10288_v63 = vsel %vm631_vm0, %v1316_v28, %v1327_v8  ;;  %v10290_v51 = vrot.slane %v5071_v24, 1  ;;  %5273 = vrot.lane.b32.xlu1 %v4778_v46, %s9863_s21  ;;  %v4787_v3 = vshrl.u32 %v10061_v0, 16  ;;  %v1346_v2 = vshrl.u32 %v10259_v22, 16  ;;  %9658 = vmatprep.subr.bf16.mxu1 %v14089_v36 }
  0x55   : > { %5307 = vrot.lane.b32.xlu0 %v4914_v27, %s9863_s21  ;;  %v5079_v11 = vshll.u32 %v10288_v63, 16  ;;  %v10300_v7 = vsel %vm631_vm0, %v1324_v55, %v1335_v19  ;;  %v5083_v28 = vshrl.u32 %v10288_v63, 16  ;;  %v1340_v57 = vrot.slane %v1338_v1, 7 }
  0x56   : > { %14091 = vst [vmem:[#allocation19_spill] sm:$0xff] %v10290_v51  ;;  %14092 = vst [vmem:[#allocation20_spill] sm:$0xff] %v10300_v7  ;;  %v5077_v8 = vor.u32 %v5075_v41, %v10290_v51  ;;  %v5087_v24 = vshll.u32 %v10300_v7, 16  ;;  %v5091_v46 = vshrl.u32 %v10300_v7, 16  ;;  %v4789_v39 = vor.u32 %v4787_v3, %v10071_v17  ;;  %v9774_v7 = vld [vmem:[%s9951_s16 + $0x190] sm:$0xff]   ;;  %6195 = vmatpush2.bf16.msra.mxu0 %v9779_v13 }
  0x57   : > { %v5081_v27 = vrot.slane %v5079_v11, 1  ;;  %v1343_v12 = vor.u32 %v1341_v40, %v1340_v57  ;;  %v1348_v55 = vrot.slane %v1346_v2, 7  ;;  %v1349_v19 = vshll.u32 %v10259_v22, 16  ;;  %7722 = vmatprep.subr.bf16.mxu0 %v14089_v36  ;;  %9670 = vmatpush2.bf16.msra.mxu1 %v9779_v13 }
  0x58   : > { %v5089_v1 = vrot.slane %v5087_v24, 1  ;;  %v4794_v41 = vsel %vm4710_vm2, %v4789_v39, %v10085_v30  ;;  %v1354_v51 = vshrl.u32 %v9768_v9, 16  ;;  %v1357_v0 = vshll.u32 %v9768_v9, 16  ;;  %6946 = vmatprep.subr.bf16.mxu1 %v14089_v36 }
  0x59   : > { %v5082_v17 = vsel %vm4710_vm2, %v5077_v8, %v5081_v27  ;;  %v5085_v40 = vor.u32 %v5083_v28, %v5081_v27  ;;  %v10319_v3 = vsel %vm631_vm0, %v1332_v26, %v1343_v12  ;;  %5277 = vrot.lane.b32.xlu1 %v4794_v41, %s9863_s21  ;;  %v1351_v22 = vor.u32 %v1349_v19, %v1348_v55 }
  0x5a   : > { %5349 = vrot.lane.b32.xlu0 %v5082_v17, %s9863_s21  ;;  %v5093_v2 = vor.u32 %v5091_v46, %v5089_v1  ;;  %v5095_v11 = vshll.u32 %v10319_v3, 16  ;;  %v5099_v30 = vshrl.u32 %v10319_v3, 16  ;;  %v1356_v39 = vrot.slane %v1354_v51, 7 }
  0x5b   : > { %v5090_v9 = vsel %vm4710_vm2, %v5085_v40, %v5089_v1  ;;  %v10327_v28 = vsel %vm631_vm0, %v1340_v57, %v1351_v22  ;;  %v4803_v12 = vshrl.u32 %v10074_v18, 16  ;;  %v1362_v26 = vshrl.u32 %v9771_v50, 16  ;;  %v9777_v1 = vld [vmem:[%s9951_s16 + $0x198] sm:$0xff]  }
  0x5c   : > { %v5097_v8 = vrot.slane %v5095_v11, 1  ;;  %v5103_v24 = vshll.u32 %v10327_v28, 16  ;;  %v1359_v46 = vor.u32 %v1357_v0, %v1356_v39  ;;  %v5107_v27 = vshrl.u32 %v10327_v28, 16 }
  0x5d   : > { %v4805_v10 = vor.u32 %v4803_v12, %v10092_v38  ;;  %v1364_v51 = vrot.slane %v1362_v26, 7  ;;  %v1365_v19 = vshll.u32 %v9771_v50, 16  ;;  %v1370_v57 = vshrl.u32 %v9774_v7, 16 }
  0x5e   : > { %5351 = vrot.lane.b32.xlu0 %v5090_v9, %s9863_s21  ;;  %v5098_v41 = vsel %vm4710_vm2, %v5093_v2, %v5097_v8  ;;  %v5101_v17 = vor.u32 %v5099_v30, %v5097_v8  ;;  %v10339_v40 = vsel %vm631_vm0, %v1348_v55, %v1359_v46  ;;  %v5105_v0 = vrot.slane %v5103_v24, 1 }
  0x5f   : > { %v5111_v22 = vshll.u32 %v10339_v40, 16  ;;  %v4810_v11 = vsel %vm4710_vm2, %v4805_v10, %v10106_v54  ;;  %v1367_v38 = vor.u32 %v1365_v19, %v1364_v51  ;;  %v5115_v50 = vshrl.u32 %v10339_v40, 16 }
  0x60   : > { %5281 = vrot.lane.b32.xlu1 %v4810_v11, %s9863_s21  ;;  %v1372_v9 = vrot.slane %v1370_v57, 7  ;;  %v1373_v2 = vshll.u32 %v9774_v7, 16  ;;  %v1584_v55 = vadd.s32 24, %v9954_v5  ;;  %v5109_v30 = vor.u32 %v5107_v27, %v5105_v0  ;;  %v9780_v57 = vld [vmem:[%s9951_s16 + $0x1a0] sm:$0xff]  }
  0x61   : > { %v10349_v13 = vsel %vm631_vm0, %v1356_v39, %v1367_v38  ;;  %v4819_v12 = vshrl.u32 %v10104_v52, 16  ;;  %v1378_v26 = vshrl.u32 %v9777_v1, 16  ;;  %v5113_v54 = vrot.slane %v5111_v22, 1 }
  0x62   : > { %5353 = vrot.lane.b32.xlu0 %v5098_v41, %s9863_s21  ;;  %v5119_v8 = vshll.u32 %v10349_v13, 16  ;;  %v1375_v24 = vor.u32 %v1373_v2, %v1372_v9  ;;  %v1381_v46 = vshll.u32 %v9777_v1, 16  ;;  %v5106_v10 = vsel %vm4710_vm2, %v5101_v17, %v5105_v0 }
  0x63   : > { %v4821_v7 = vor.u32 %v4819_v12, %v10111_v6  ;;  %v1380_v19 = vrot.slane %v1378_v26, 7  ;;  %v1742_v39 = vand.u32 31, %v1584_v55  ;;  %v5123_v38 = vshrl.u32 %v10349_v13, 16 }
  0x64   : > { %v10357_v27 = vsel %vm631_vm0, %v1364_v51, %v1375_v24  ;;  %v5121_v11 = vrot.slane %v5119_v8, 1  ;;  %v5114_v1 = vsel %vm4710_vm2, %v5109_v30, %v5113_v54  ;;  %v5117_v17 = vor.u32 %v5115_v50, %v5113_v54 }
  0x65   : > { %v4826_v41 = vsel %vm4710_vm2, %v4821_v7, %v10127_v29  ;;  %v1383_v22 = vor.u32 %v1381_v46, %v1380_v19  ;;  %vm3896_vm4 = vcmp.ne.s32.totalorder %v1742_v39, 31  ;;  %v5127_v6 = vshll.u32 %v10357_v27, 16 }
  0x66   : > { %5355 = vrot.lane.b32.xlu0 %v5106_v10, %s9863_s21  ;;  %5285 = vrot.lane.b32.xlu1 %v4826_v41, %s9863_s21  ;;  %v13840_v0 = vmov 0.0   ;;  %v5131_v29 = vshrl.u32 %v10357_v27, 16  ;;  %v13838_v55 = vmov 1.0   ;;  %v9866_v30 = vmov 1.0|1.0   ;;  %v9781_v10 = vld [vmem:[%s9951_s16 + $0x1a8] sm:$0xff]  }
  0x67   : > { %v10368_v51 = vsel %vm631_vm0, %v1372_v9, %v1383_v22  ;;  %v9253_v2 = vsel %vm3896_vm4, 1.0, %v13840_v0  ;;  %v10375_v50 = vrot.slane %v9866_v30, 7  ;;  %v1386_v54 = vshrl.u32 %v9780_v57, 16  ;;  %v9782_v0 = vld [vmem:[%s9951_s16 + $0x1b0] sm:$0xff]  }
  0x68   : > { %v10373_v12 = vpack.c.bf16 %v9253_v2, %v13838_v55  ;;  %v5135_v26 = vshll.u32 %v10368_v51, 16  ;;  %v5122_v9 = vsel %vm4710_vm2, %v5117_v17, %v5121_v11  ;;  %v1389_v46 = vshll.u32 %v9780_v57, 16 }
  0x69   : > { %14093 = vst [vmem:[#allocation21_spill] sm:$0xff] %v10375_v50  ;;  %v4641_v24 = vmul.bf16 %v10375_v50, %v9991_v48  ;;  %v5125_v7 = vor.u32 %v5123_v38, %v5121_v11  ;;  %v5129_v39 = vrot.slane %v5127_v6, 1  ;;  %v1388_v41 = vrot.slane %v1386_v54, 7 }
  0x6a   : > { %5357 = vrot.lane.b32.xlu0 %v5114_v1, %s9863_s21  ;;  %v13842_v8 = vrot.slane %v10373_v12, 7  ;;  %v4835_v22 = vshrl.u32 %v10122_v25, 16  ;;  %v5137_v17 = vrot.slane %v5135_v26, 1  ;;  %v5139_v11 = vshrl.u32 %v10368_v51, 16 }
  0x6b   : > { %v5465_v30 = vrot.slane %v4641_v24, 1  ;;  %v1391_v55 = vor.u32 %v1389_v46, %v1388_v41  ;;  %v5133_v57 = vor.u32 %v5131_v29, %v5129_v39  ;;  %v1394_v6 = vshrl.u32 %v9781_v10, 16 }
  0x6c   : > { %v4439_v1 = vsel %vm1574_vm1, %v10375_v50, %v13842_v8  ;;  %v4837_v38 = vor.u32 %v4835_v22, %v10136_v43  ;;  %v5130_v54 = vsel %vm4710_vm2, %v5125_v7, %v5129_v39  ;;  %v9783_v7 = vld [vmem:[%s9951_s16 + $0x1b8] sm:$0xff]   ;;  %v1405_v22 = vshll.u32 %v9782_v0, 16 }
  0x6d   : > { %v4642_v2 = vmul.bf16 %v4439_v1, %v9998_v53  ;;  %v10398_v26 = vsel %vm631_vm0, %v1380_v19, %v1391_v55  ;;  %v1397_v1 = vshll.u32 %v9781_v10, 16  ;;  %v1396_v29 = vrot.slane %v1394_v6, 7 }
  0x6e   : > { %5359 = vrot.lane.b32.xlu0 %v5122_v9, %s9863_s21  ;;  %v5143_v24 = vshll.u32 %v10398_v26, 16  ;;  %v4842_v9 = vsel %vm4710_vm2, %v4837_v38, %v10141_v47  ;;  %v5138_v43 = vsel %vm4710_vm2, %v5133_v57, %v5137_v17  ;;  %v5141_v19 = vor.u32 %v5139_v11, %v5137_v17 }
  0x6f   : > { %v10395_v8 = vrot.slane %v4642_v2, 1  ;;  %5289 = vrot.lane.b32.xlu1 %v4842_v9, %s9863_s21  ;;  %v1399_v10 = vor.u32 %v1397_v1, %v1396_v29  ;;  %v5147_v39 = vshrl.u32 %v10398_v26, 16  ;;  %v1402_v47 = vshrl.u32 %v9782_v0, 16 }
  0x70   : > { %v5145_v55 = vrot.slane %v5143_v24, 1  ;;  %v4851_v2 = vshrl.u32 %v10139_v44, 16  ;;  %v1410_v11 = vshrl.u32 %v9783_v7, 16 }
  0x71   : > { %v5467_v46 = vsel %vm5464_vm5, %v5465_v30, %v10395_v8  ;;  %v10413_v30 = vsel %vm631_vm0, %v1388_v41, %v1399_v10  ;;  %v1404_v6 = vrot.slane %v1402_v47, 7 }
  0x72   : > { %5361 = vrot.lane.b32.xlu0 %v5130_v54, %s9863_s21  ;;  %9299 = vmatprep.mubr.msk.bf16.mxu0 %vm5602_vm6, %v5467_v46  ;;  %v5151_v38 = vshll.u32 %v10413_v30, 16  ;;  %v5146_v17 = vsel %vm4710_vm2, %v5141_v19, %v5145_v55  ;;  %v4853_v57 = vor.u32 %v4851_v2, %v10161_v4  ;;  %v1413_v54 = vshll.u32 %v9783_v7, 16  ;;  %v9784_v46 = vld [vmem:[%s9951_s16 + $0x1c0] sm:$0xff]  }
  0x73   : > { %v5149_v1 = vor.u32 %v5147_v39, %v5145_v55  ;;  %v1407_v9 = vor.u32 %v1405_v22, %v1404_v6  ;;  %v5155_v0 = vshrl.u32 %v10413_v30, 16  ;;  %v1412_v10 = vrot.slane %v1410_v11, 7 }
  0x74   : > { %v5153_v24 = vrot.slane %v5151_v38, 1  ;;  %v4858_v41 = vsel %vm4710_vm2, %v4853_v57, %v10168_v20  ;;  %v1418_v39 = vshrl.u32 %v9784_v46, 16  ;;  %v1588_v20 = vadd.s32 56, %v9954_v5 }
  0x75   : > { %v10424_v47 = vsel %vm631_vm0, %v1396_v29, %v1407_v9  ;;  %5293 = vrot.lane.b32.xlu1 %v4858_v41, %s9863_s21 }
  0x76   : > { %5363 = vrot.lane.b32.xlu0 %v5138_v43, %s9863_s21  ;;  %v5159_v4 = vshll.u32 %v10424_v47, 16  ;;  %v1415_v43 = vor.u32 %v1413_v54, %v1412_v10  ;;  %v5154_v19 = vsel %vm4710_vm2, %v5149_v1, %v5153_v24  ;;  %v5157_v55 = vor.u32 %v5155_v0, %v5153_v24  ;;  %v9785_v1 = vld [vmem:[%s9951_s16 + $0x1c8] sm:$0xff]  }
  0x77   : > { %v5163_v7 = vshrl.u32 %v10424_v47, 16  ;;  %v1420_v38 = vrot.slane %v1418_v39, 7  ;;  %v1721_v24 = vand.u32 31, %v9954_v5  ;;  %v1770_v9 = vand.u32 31, %v1588_v20  ;;  %v9786_v39 = vld [vmem:[%s9951_s16 + $0x1d0] sm:$0xff]  }
  0x78   : > { %v5161_v22 = vrot.slane %v5159_v4, 1  ;;  %v10433_v29 = vsel %vm631_vm0, %v1404_v6, %v1415_v43  ;;  %v4867_v4 = vshrl.u32 %v10174_v14, 16 }
  0x79   : > { %14094 = vst [vmem:[#allocation22_spill] sm:$0xff] %v10433_v29  ;;  %v5167_v2 = vshll.u32 %v10433_v29, 16  ;;  %v5171_v41 = vshrl.u32 %v10433_v29, 16  ;;  %vm3349_vm7 = vcmp.ne.s32.totalorder %v1721_v24, 0  ;;  %vm3900_vm8 = vcmp.ne.s32.totalorder %v1770_v9, 31 }
  0x7a   : > { %5365 = vrot.lane.b32.xlu0 %v5146_v17, %s9863_s21  ;;  %v1421_v17 = vshll.u32 %v9784_v46, 16  ;;  %v5162_v57 = vsel %vm4710_vm2, %v5157_v55, %v5161_v22  ;;  %v5165_v11 = vor.u32 %v5163_v7, %v5161_v22  ;;  %v1426_v55 = vshrl.u32 %v9785_v1, 16 }
  0x7b   : > { %v5169_v54 = vrot.slane %v5167_v2, 1  ;;  %v4869_v7 = vor.u32 %v4867_v4, %v10189_v59  ;;  %v1429_v22 = vshll.u32 %v9785_v1, 16  ;;  %v14096_v2 = vmov 0.0  }
  0x7c   : > { %v1423_v0 = vor.u32 %v1421_v17, %v1420_v38  ;;  %v9254_v17 = vsel %vm3900_vm8, 1.0, %v14096_v2  ;;  %v1434_v1 = vshrl.u32 %v9786_v39, 16  ;;  %v9219_v9 = vsel %vm3349_vm7, 1.0, %v14096_v2 }
  0x7d   : > { %v5170_v46 = vsel %vm4710_vm2, %v5165_v11, %v5169_v54  ;;  %v5173_v43 = vor.u32 %v5171_v41, %v5169_v54  ;;  %v1428_v11 = vrot.slane %v1426_v55, 7  ;;  %v14097_v54 = vrot.slane %v10373_v12, 7 }
  0x7e   : > { %5367 = vrot.lane.b32.xlu0 %v5154_v19, %s9863_s21  ;;  %v10443_v6 = vsel %vm631_vm0, %v1412_v10, %v1423_v0  ;;  %v4874_v10 = vsel %vm4710_vm2, %v4869_v7, %v10210_v42  ;;  %v1592_v0 = vadd.s32 88, %v9954_v5  ;;  %v1437_v41 = vshll.u32 %v9786_v39, 16 }
  0x7f   : > { %14095 = vst [vmem:[#allocation23_spill] sm:$0xff] %v10443_v6  ;;  %v5175_v19 = vshll.u32 %v10443_v6, 16  ;;  %5297 = vrot.lane.b32.xlu1 %v4874_v10, %s9863_s21  ;;  %v4441_v59 = vsel %vm1574_vm1, %v14097_v54, %v10375_v50  ;;  %v5179_v24 = vshrl.u32 %v10443_v6, 16  ;;  %v1431_v42 = vor.u32 %v1429_v22, %v1428_v11 }
  0x80   : > { %v14098_v4 = vmov 1.0   ;;  %v4643_v12 = vmul.bf16 %v4441_v59, %v9986_v45  ;;  %v1585_v55 = vadd.s32 32, %v9954_v5  ;;  %v4883_v10 = vshrl.u32 %v10204_v31, 16 }
  0x81   : > { %v5177_v20 = vrot.slane %v5175_v19, 1  ;;  %v1672_v19 = vadd.s32 728, %v9954_v5  ;;  %v10471_v7 = vsel %vm631_vm0, %v1420_v38, %v1431_v42  ;;  %v3757_v54 = vpack.c.bf16 %v14098_v4, %v9219_v9  ;;  %v9787_v42 = vld [vmem:[%s9951_s16 + $0x1d8] sm:$0xff]  }
  0x82   : > { %5369 = vrot.lane.b32.xlu0 %v5162_v57, %s9863_s21  ;;  %14099 = vst [vmem:[#allocation24_spill] sm:$0xff] %v10471_v7  ;;  %v5183_v39 = vshll.u32 %v10471_v7, 16  ;;  %v4885_v6 = vor.u32 %v4883_v10, %v10216_v61  ;;  %v1798_v14 = vand.u32 31, %v1592_v0  ;;  %v5468_v31 = vrot.slane %v4643_v12, 1 }
  0x83   : > { %v5178_v57 = vsel %vm4710_vm2, %v5173_v43, %v5177_v20  ;;  %v10465_v43 = vrot.slane %v1434_v1, 7  ;;  %v5181_v22 = vor.u32 %v5179_v24, %v5177_v20  ;;  %v2358_v1 = vand.u32 31, %v1672_v19 }
  0x84   : > { %v5185_v29 = vrot.slane %v5183_v39, 1  ;;  %v1749_v20 = vand.u32 31, %v1585_v55  ;;  %v4890_v61 = vsel %vm4710_vm2, %v4885_v6, %v10241_v33  ;;  %vm3904_vm10 = vcmp.ne.s32.totalorder %v1798_v14, 31 }
  0x85   : > { %vm3984_vm9 = vcmp.ne.s32.totalorder %v2358_v1, 31  ;;  %5301 = vrot.lane.b32.xlu1 %v4890_v61, %s9863_s21  ;;  %v1445_v10 = vshll.u32 %v9787_v42, 16  ;;  %v5469_v33 = vsel %vm5464_vm5, %v10395_v8, %v5468_v31 }
  0x86   : > { %5371 = vrot.lane.b32.xlu0 %v5170_v46, %s9863_s21  ;;  %v4304_v46 = vpack.c.bf16 %v9254_v17, %v14098_v4  ;;  %v1439_v17 = vor.u32 %v1437_v41, %v10465_v43  ;;  %v5186_v41 = vsel %vm4710_vm2, %v5181_v22, %v5185_v29  ;;  %v9275_v9 = vsel %vm3984_vm9, 1.0, %v14096_v2  ;;  %v9788_v22 = vld [vmem:[%s9951_s16 + $0x1e0] sm:$0xff]  }
  0x87   : > { %vm3353_vm11 = vcmp.ne.s32.totalorder %v1749_v20, 0 }
  0x88   : > { %v4442_v59 = vrot.slane %v4304_v46, 7  ;;  %v10480_v38 = vsel %vm631_vm0, %v1428_v11, %v1439_v17  ;;  %v4346_v11 = vpack.c.bf16 %v9275_v9, %v14098_v4  ;;  %v3825_v46 = vmul.bf16 %v3757_v54, %v9991_v48 }
  0x89   : > { %v5191_v24 = vshll.u32 %v10480_v38, 16  ;;  %v9255_v48 = vsel %vm3904_vm10, 1.0, %v14096_v2  ;;  %v5195_v1 = vshrl.u32 %v10480_v38, 16  ;;  %v9220_v20 = vsel %vm3353_vm11, 1.0, %v14096_v2 }
  0x8a   : > { %5373 = vrot.lane.b32.xlu0 %v5178_v57, %s9863_s21  ;;  %v5187_v57 = vshrl.u32 %v10471_v7, 16  ;;  %v4443_v19 = vsel %vm1574_vm1, %v10375_v50, %v4442_v59  ;;  %v4526_v55 = vrot.slane %v4346_v11, 7  ;;  %v10515_v9 = vpack.c.bf16 %v9255_v48, %v14098_v4 }
  0x8b   : > { %v5193_v0 = vrot.slane %v5191_v24, 1  ;;  %v4644_v17 = vmul.bf16 %v4443_v19, %v10030_v23  ;;  %v4445_v24 = vsel %vm1574_vm1, %v4442_v59, %v10375_v50  ;;  %v1453_v59 = vshll.u32 %v9788_v22, 16 }
  0x8c   : > { %v5189_v7 = vor.u32 %v5187_v57, %v5185_v29  ;;  %v1442_v29 = vshrl.u32 %v9787_v42, 16  ;;  %v4527_v14 = vsel %vm1574_vm1, %v10375_v50, %v4526_v55  ;;  %v3826_v42 = vmul.bf16 1.0|1.0, %v9998_v53 }
  0x8d   : > { %v4686_v8 = vmul.bf16 %v4527_v14, %v10274_v37  ;;  %v1596_v53 = vadd.s32 120, %v9954_v5  ;;  %v4645_v48 = vmul.bf16 %v4445_v24, %v10005_v60  ;;  %v1589_v14 = vadd.s32 64, %v9954_v5 }
  0x8e   : > { %5375 = vrot.lane.b32.xlu0 %v5186_v41, %s9863_s21  ;;  %v5194_v12 = vsel %vm4710_vm2, %v5189_v7, %v5193_v0  ;;  %v1444_v6 = vrot.slane %v1442_v29, 7  ;;  %v4529_v7 = vsel %vm1574_vm1, %v4526_v55, %v10375_v50  ;;  %v5470_v29 = vrot.slane %v4644_v17, 1 }
  0x8f   : > { %v4687_v54 = vmul.bf16 %v4529_v7, %v10288_v63  ;;  %v10517_v61 = vrot.slane %v4686_v8, 1  ;;  %v1826_v8 = vand.u32 31, %v1596_v53  ;;  %v1777_v24 = vand.u32 31, %v1589_v14 }
  0x90   : > { %v1447_v41 = vor.u32 %v1445_v10, %v1444_v6  ;;  %v5197_v10 = vor.u32 %v5195_v1, %v5193_v0  ;;  %v10544_v0 = vsel %vm5464_vm5, %v5468_v31, %v5470_v29  ;;  %v5472_v53 = vrot.slane %v4645_v48, 1 }
  0x91   : > { %14100 = vst [vmem:[#allocation25_spill] sm:$0xff] %v10517_v61  ;;  %v10519_v11 = vrot.slane %v4687_v54, 1  ;;  %14102 = vst [vmem:[#allocation27_spill] sm:$0xff] %v10544_v0  ;;  %vm3908_vm12 = vcmp.ne.s32.totalorder %v1826_v8, 31  ;;  %vm3357_vm13 = vcmp.ne.s32.totalorder %v1777_v24, 0 }
  0x92   : > { %5377 = vrot.lane.b32.xlu0 %v5194_v12, %s9863_s21  ;;  %v10524_v12 = vsel %vm631_vm0, %v10465_v43, %v1447_v41  ;;  %v9256_v14 = vsel %vm3908_vm12, 1.0, %v14096_v2  ;;  %v9221_v24 = vsel %vm3357_vm13, 1.0, %v14096_v2 }
  0x93   : > { %v10529_v55 = vsel %vm5464_vm5, %v10517_v61, %v10519_v11  ;;  %v5203_v1 = vshrl.u32 %v10524_v12, 16 }
  0x94   : > { %14101 = vst [vmem:[#allocation26_spill] sm:$0xff] %v10529_v55  ;;  %9344 = vmatprep.mubr.msk.bf16.mxu1 %vm5602_vm6, %v10529_v55 }
  0x97   : > { %v5260_v39 = vpop.permute.xlu0 %5259 }
  0x98   : > { %v5605_v57 = vsel %vm5602_vm6, %v3825_v46, %v5260_v39  ;;  %v1450_v46 = vshrl.u32 %v9788_v22, 16  ;;  %v3759_v39 = vpack.c.bf16 %v14098_v4, %v9220_v20  ;;  %v4446_v22 = vrot.slane %v10515_v9, 7 }
  0x99   : > { %6197 = vmatmul.mubr.bf16.vlgmr.msra.gmra.mxu0 %v5605_v57  ;;  %v4899_v9 = vshrl.u32 %v10222_v35, 16 }
  0x9a   : > { %9300 = vmatprep.mubr.msk.bf16.mxu0 %vm5602_vm6, %v5469_v33  ;;  %v5199_v33 = vshll.u32 %v10524_v12, 16  ;;  %v10536_v17 = vrot.slane %v1450_v46, 7  ;;  %v4447_v31 = vsel %vm1574_vm1, %v10375_v50, %v4446_v22 }
  0x9b   : > { %v5262_v19 = vpop.permute.xlu0 %5261 }
  0x9c   : > { %v5609_v43 = vsel %vm5602_vm6, %v3826_v42, %v5262_v19  ;;  %v5201_v7 = vrot.slane %v5199_v33, 1  ;;  %v1455_v54 = vor.u32 %v1453_v59, %v10536_v17  ;;  %v3827_v42 = vmul.bf16 %v3759_v39, %v9986_v45  ;;  %v5264_v19 = vpop.permute.xlu1 %5263  ;;  %v9789_v33 = vld [vmem:[%s9951_s16 + $0x1e8] sm:$0xff]  }
  0x9d   : > { %v4646_v39 = vmul.bf16 %v4447_v31, %v10008_v62 }
  0x9e   : > { %v5202_v20 = vsel %vm4710_vm2, %v5197_v10, %v5201_v7  ;;  %v10556_v41 = vsel %vm631_vm0, %v1444_v6, %v1455_v54  ;;  %v5205_v45 = vor.u32 %v5203_v1, %v5201_v7  ;;  %v4901_v10 = vor.u32 %v4899_v9, %v10243_v34 }
  0x9f   : > { %v10541_v57 = vpop.permute.xlu0 %5267  ;;  %5379 = vrot.lane.b32.xlu0 %v5202_v20, %s9863_s21  ;;  %14103 = vst [vmem:[#allocation28_spill] sm:$0xff] %v10556_v41  ;;  %v5207_v59 = vshll.u32 %v10556_v41, 16  ;;  %v10566_v6 = vsel %vm5602_vm6, %v3827_v42, %v5264_v19  ;;  %v1676_v54 = vadd.s32 760, %v9954_v5  ;;  %v10573_v7 = vsel %vm5464_vm5, %v5470_v29, %v5472_v53  ;;  %v9790_v42 = vld [vmem:[%s9951_s16 + $0x1f0] sm:$0xff]  }
  0xa0   : > { %14104 = vst [vmem:[#allocation29_spill] sm:$0xff] %v10566_v6  ;;  %14105 = vst [vmem:[#allocation30_spill] sm:$0xff] %v10573_v7  ;;  %v1593_v34 = vadd.s32 96, %v9954_v5  ;;  %v4906_v1 = vsel %vm4710_vm2, %v4901_v10, %v10255_v56  ;;  %v1458_v20 = vshrl.u32 %v9789_v33, 16  ;;  %v5474_v31 = vrot.slane %v4646_v39, 1 }
  0xa1   : > { %6205 = vmatmul.mubr.bf16.gmra.mxu0 %v5609_v43  ;;  %v5209_v43 = vrot.slane %v5207_v59, 1  ;;  %5305 = vrot.lane.b32.xlu1 %v4906_v1, %s9863_s21  ;;  %v4308_v29 = vpack.c.bf16 %v9256_v14, %v14098_v4  ;;  %v1461_v9 = vshll.u32 %v9789_v33, 16  ;;  %v3828_v56 = vmul.bf16 1.0|1.0, %v10030_v23 }
  0xa2   : > { %9301 = vmatprep.mubr.msk.bf16.mxu0 %vm5602_vm6, %v10544_v0  ;;  %v4449_v19 = vsel %vm1574_vm1, %v4446_v22, %v10375_v50  ;;  %v1460_v59 = vrot.slane %v1458_v20, 7  ;;  %v1805_v39 = vand.u32 31, %v1593_v34  ;;  %v1600_v1 = vadd.s32 152, %v9954_v5 }
  0xa3   : > { %v10559_v46 = vpop.permute.xlu0 %5271  ;;  %v5210_v8 = vsel %vm4710_vm2, %v5205_v45, %v5209_v43  ;;  %v2386_v45 = vand.u32 31, %v1676_v54  ;;  %v5211_v55 = vshrl.u32 %v10556_v41, 16  ;;  %v3761_v33 = vpack.c.bf16 %v14098_v4, %v9221_v24 }
  0xa4   : > { %5381 = vrot.lane.b32.xlu0 %v5210_v8, %s9863_s21  ;;  %v5266_v8 = vpop.permute.xlu1 %5265  ;;  %v1463_v14 = vor.u32 %v1461_v9, %v1460_v59  ;;  %v1466_v61 = vshrl.u32 %v9790_v42, 16  ;;  %v10597_v23 = vsel %vm5464_vm5, %v5472_v53, %v5474_v31  ;;  %v4647_v22 = vmul.bf16 %v4449_v19, %v10020_v15 }
  0xa5   : > { %14106 = vst [vmem:[#allocation31_spill] sm:$0xff] %v10597_v23  ;;  %v4450_v54 = vrot.slane %v4308_v29, 7  ;;  %v1469_v20 = vshll.u32 %v9790_v42, 16  ;;  %vm3988_vm14 = vcmp.ne.s32.totalorder %v2386_v45, 31  ;;  %vm3361_vm15 = vcmp.ne.s32.totalorder %v1805_v39, 0 }
  0xa6   : > { %v10605_v34 = vsel %vm631_vm0, %v10536_v17, %v1463_v14  ;;  %v10607_v0 = vrot.slane %v1466_v61, 7  ;;  %v1854_v9 = vand.u32 31, %v1600_v1  ;;  %v5213_v53 = vor.u32 %v5211_v55, %v5209_v43 }
  0xa7   : > { %v10570_v48 = vpop.permute.xlu0 %5275  ;;  %14108 = vst [vmem:[#allocation33_spill] sm:$0xff] %v10605_v34  ;;  %v5215_v41 = vshll.u32 %v10605_v34, 16  ;;  %v9276_v19 = vsel %vm3988_vm14, 1.0, %v14096_v2  ;;  %v5219_v61 = vshrl.u32 %v10605_v34, 16  ;;  %v3829_v45 = vmul.bf16 %v3761_v33, %v10005_v60 }
  0xa8   : > { %14109 = vst [vmem:[#allocation34_spill] sm:$0xff] %v10607_v0  ;;  %v1471_v29 = vor.u32 %v1469_v20, %v10607_v0  ;;  %v4451_v55 = vsel %vm1574_vm1, %v10375_v50, %v4450_v54  ;;  %v9222_v43 = vsel %vm3361_vm15, 1.0, %v14096_v2  ;;  %v1673_v1 = vadd.s32 736, %v9954_v5 }
  0xa9   : > { %6213 = vmatmul.mubr.bf16.gmra.mxu0 %v10566_v6  ;;  %v10601_v6 = vsel %vm5602_vm6, %v3828_v56, %v5266_v8  ;;  %v10614_v56 = vrot.slane %v4647_v22, 1  ;;  %v5217_v17 = vrot.slane %v5215_v41, 1  ;;  %vm3912_vm4 = vcmp.ne.s32.totalorder %v1854_v9, 31 }
  0xaa   : > { %9302 = vmatprep.mubr.msk.bf16.mxu0 %vm5602_vm6, %v10573_v7  ;;  %v9791_v7 = vld [vmem:[%s9951_s16 + $0xc0] sm:$0xff]   ;;  %14107 = vst [vmem:[#allocation32_spill] sm:$0xff] %v10601_v6  ;;  %v10625_v8 = vsel %vm631_vm0, %v1460_v59, %v1471_v29  ;;  %v4348_v14 = vpack.c.bf16 %v9276_v19, %v14098_v4  ;;  %v3830_v20 = vmul.bf16 1.0|1.0, %v10008_v62  ;;  %v4648_v9 = vmul.bf16 %v4451_v55, %v10041_v32 }
  0xab   : > { %v10590_v10 = vpop.permute.xlu0 %5279  ;;  %v1162_v42 = vshrl.u32 %v9791_v7, 16  ;;  %14110 = vst [vmem:[#allocation35_spill] sm:$0xff] %v10625_v8  ;;  %v5218_v41 = vsel %vm4710_vm2, %v5213_v53, %v5217_v17  ;;  %v5221_v60 = vor.u32 %v5219_v61, %v5217_v17  ;;  %v5223_v33 = vshll.u32 %v10625_v8, 16 }
  0xac   : > { %5383 = vrot.lane.b32.xlu0 %v5218_v41, %s9863_s21  ;;  %v10638_v59 = vsel %vm5464_vm5, %v5474_v31, %v10614_v56  ;;  %v10643_v53 = vpack.c.bf16 %v14098_v4, %v9222_v43  ;;  %v10647_v29 = vsel %vm5602_vm6, %v3829_v45, %v10541_v57  ;;  %v9257_v19 = vsel %vm3912_vm4, 1.0, %v14096_v2 }
  0xad   : > { %v10634_v22 = vrot.slane %v1162_v42, 7  ;;  %14111 = vst [vmem:[#allocation36_spill] sm:$0xff] %v10638_v59  ;;  %14112 = vst [vmem:[#allocation37_spill] sm:$0xff] %v10647_v29  ;;  %v10650_v42 = vrot.slane %v5223_v33, 1  ;;  %v1165_v17 = vshll.u32 %v9791_v7, 16  ;;  %v4453_v62 = vsel %vm1574_vm1, %v4450_v54, %v10375_v50  ;;  %v9792_v7 = vld [vmem:[%s9951_s16 + $0xc8] sm:$0xff]  }
  0xae   : > { %v2365_v31 = vand.u32 31, %v1673_v1  ;;  %v1680_v55 = vadd.s32 792, %v9954_v5  ;;  %v4915_v43 = vshrl.u32 %v10249_v49, 16  ;;  %v4530_v57 = vrot.slane %v4348_v14, 7 }
  0xaf   : > { %v10609_v24 = vpop.permute.xlu0 %5283  ;;  %14113 = vst [vmem:[#allocation38_spill] sm:$0xff] %v10650_v42  ;;  %v5226_v45 = vsel %vm4710_vm2, %v5221_v60, %v10650_v42  ;;  %v1167_v33 = vor.u32 %v1165_v17, %v10634_v22  ;;  %v3831_v54 = vmul.bf16 %v10643_v53, %v10020_v15  ;;  %v10667_v1 = vpack.c.bf16 %v9257_v19, %v14098_v4  ;;  %v9793_v53 = vld [vmem:[%s9951_s16 + $0xd0] sm:$0xff]  }
  0xb0   : > { %v1597_v0 = vadd.s32 128, %v9954_v5  ;;  %v1604_v41 = vadd.s32 184, %v9954_v5  ;;  %5385 = vrot.lane.b32.xlu0 %v5226_v45, %s9863_s21  ;;  %v5478_v14 = vrot.slane %v4648_v9, 1  ;;  %v4649_v60 = vmul.bf16 %v4453_v62, %v10056_v58 }
  0xb1   : > { %6221 = vmatmul.mubr.bf16.gmra.mxu0 %v10601_v6  ;;  %v10678_v15 = vsel %vm631_vm0, %v10212_v21, %v1167_v33  ;;  %vm10683_vm7 = vcmp.ne.s32.totalorder %v2365_v31, 0  ;;  %v2414_v45 = vand.u32 31, %v1680_v55  ;;  %v4531_v62 = vsel %vm1574_vm1, %v10375_v50, %v4530_v57 }
  0xb2   : > { %9303 = vmatprep.mubr.msk.bf16.mxu0 %vm5602_vm6, %v10597_v23  ;;  %14114 = vst [vmem:[#allocation39_spill] sm:$0xff] %v10678_v15  ;;  %v4919_v9 = vshll.u32 %v10678_v15, 16  ;;  %v4533_v21 = vsel %vm1574_vm1, %v4530_v57, %v10375_v50  ;;  %v1170_v33 = vshrl.u32 %v9792_v7, 16  ;;  %v1173_v17 = vshll.u32 %v9792_v7, 16 }
  0xb3   : > { %v10627_v39 = vpop.permute.xlu0 %5287  ;;  %v4454_v23 = vrot.slane %v10667_v1, 7  ;;  %v1833_v6 = vand.u32 31, %v1597_v0  ;;  %v1882_v31 = vand.u32 31, %v1604_v41  ;;  %v10697_v55 = vrot.slane %v4649_v60, 1  ;;  %v14119_v1 = vld [vmem:[#allocation20_spill] sm:$0xff] }
  0xb4   : > { %v5270_v42 = vpop.permute.xlu1 %5269  ;;  %v4921_v8 = vrot.slane %v4919_v9, 1  ;;  %v10701_v34 = vsel %vm5464_vm5, %v10614_v56, %v5478_v14  ;;  %vm3992_vm8 = vcmp.ne.s32.totalorder %v2414_v45, 31  ;;  %v4923_v7 = vshrl.u32 %v10678_v15, 16 }
  0xb5   : > { %v10695_v49 = vsel %vm5602_vm6, %v3830_v20, %v5270_v42  ;;  %14118 = vst [vmem:[#allocation41_spill] sm:$0xff] %v10701_v34  ;;  %v4688_v0 = vmul.bf16 %v4531_v62, %v14119_v1  ;;  %v9242_v20 = vsel %vm10683_vm7, 1.0, %v14096_v2  ;;  %v4689_v42 = vmul.bf16 %v4533_v21, %v10319_v3 }
  0xb6   : > { %14117 = vst [vmem:[#allocation40_spill] sm:$0xff] %v10695_v49  ;;  %v4455_v56 = vsel %vm1574_vm1, %v10375_v50, %v4454_v23  ;;  %vm10716_vm9 = vcmp.ne.s32.totalorder %v1833_v6, 0  ;;  %vm3916_vm10 = vcmp.ne.s32.totalorder %v1882_v31, 31  ;;  %v1181_v62 = vshll.u32 %v9793_v53, 16 }
  0xb7   : > { %v10652_v61 = vpop.permute.xlu0 %5291  ;;  %v10732_v6 = vsel %vm5464_vm5, %v5478_v14, %v10697_v55  ;;  %v10735_v21 = vpack.c.bf16 %v14098_v4, %v9242_v20  ;;  %v9223_v20 = vsel %vm10716_vm9, 1.0, %v14096_v2 }
  0xb8   : > { %14123 = vst [vmem:[#allocation42_spill] sm:$0xff] %v10732_v6 }
  0xb9   : > { %6229 = vmatmul.mubr.bf16.gmra.mxu0 %v10647_v29  ;;  %v9277_v29 = vsel %vm3992_vm8, 1.0, %v14096_v2 }
  0xba   : > { %9304 = vmatprep.mubr.msk.bf16.mxu0 %vm5602_vm6, %v10638_v59  ;;  %v4917_v59 = vor.u32 %v4915_v43, %v10268_v16  ;;  %v1172_v16 = vrot.slane %v1170_v33, 7  ;;  %v1178_v43 = vshrl.u32 %v9793_v53, 16  ;;  %v4925_v33 = vor.u32 %v4923_v7, %v4921_v8 }
  0xbb   : > { %v10681_v19 = vpop.permute.xlu0 %5295 }
  0xbc   : > { %v4922_v57 = vsel %vm4710_vm2, %v4917_v59, %v4921_v8  ;;  %v1175_v41 = vor.u32 %v1173_v17, %v1172_v16  ;;  %v10720_v45 = vrot.slane %v1178_v43, 7  ;;  %v1677_v17 = vadd.s32 768, %v9954_v5 }
  0xbd   : > { %5309 = vrot.lane.b32.xlu1 %v4922_v57, %s9863_s21  ;;  %v10740_v43 = vsel %vm5602_vm6, %v3831_v54, %v10559_v46  ;;  %v5558_v57 = vrot.slane %v4688_v0, 1  ;;  %v4350_v8 = vpack.c.bf16 %v9277_v29, %v14098_v4  ;;  %v1601_v54 = vadd.s32 160, %v9954_v5 }
  0xbe   : > { %v10728_v9 = vsel %vm631_vm0, %v10634_v22, %v1175_v41  ;;  %14124 = vst [vmem:[#allocation43_spill] sm:$0xff] %v10740_v43  ;;  %v1183_v22 = vor.u32 %v1181_v62, %v10720_v45  ;;  %v14126_v41 = vld [vmem:[#allocation5_spill] sm:$0xff]  ;;  %v2393_v46 = vand.u32 31, %v1677_v17 }
  0xbf   : > { %v10711_v60 = vpop.permute.xlu0 %5299  ;;  %14122 = vst [vmem:[#allocation20_spill] sm:$0xff] %v10728_v9  ;;  %v4927_v31 = vshll.u32 %v10728_v9, 16  ;;  %v4650_v14 = vmul.bf16 %v4455_v56, %v14126_v41  ;;  %v4931_v59 = vshrl.u32 %v10728_v9, 16  ;;  %v1684_v9 = vadd.s32 824, %v9954_v5 }
  0xc0   : > { %v10755_v0 = vsel %vm631_vm0, %v1172_v16, %v1183_v22  ;;  %v4457_v16 = vsel %vm1574_vm1, %v4454_v23, %v10375_v50  ;;  %v4534_v22 = vrot.slane %v4350_v8, 7  ;;  %vm3445_vm11 = vcmp.ne.s32.totalorder %v2393_v46, 0  ;;  %v14130_v8 = vld [vmem:[#allocation6_spill] sm:$0xff] }
  0xc1   : > { %6237 = vmatmul.mubr.bf16.gmra.mxu0 %v10695_v49  ;;  %v4929_v7 = vrot.slane %v4927_v31, 1  ;;  %v10751_v49 = vrot.slane %v4689_v42, 1  ;;  %v4935_v15 = vshll.u32 %v10755_v0, 16  ;;  %v3765_v42 = vpack.c.bf16 %v14098_v4, %v9223_v20 }
  0xc2   : > { %9305 = vmatprep.mubr.msk.bf16.mxu0 %vm5602_vm6, %v10701_v34  ;;  %v9258_v34 = vsel %vm3916_vm10, 1.0, %v14096_v2  ;;  %v1861_v20 = vand.u32 31, %v1601_v54  ;;  %v1608_v23 = vadd.s32 216, %v9954_v5 }
  0xc3   : > { %v10744_v53 = vpop.permute.xlu0 %5303  ;;  %v10758_v62 = vpack.c.bf16 %v9258_v34, %v14098_v4  ;;  %v4930_v56 = vsel %vm4710_vm2, %v4925_v33, %v4929_v7  ;;  %v9794_v34 = vld [vmem:[%s9951_s16 + $0xd8] sm:$0xff]   ;;  %v10774_v33 = vrot.slane %v4650_v14, 1  ;;  %v4933_v29 = vor.u32 %v4931_v59, %v4929_v7 }
  0xc4   : > { %14125 = vst [vmem:[#allocation44_spill] sm:$0xff] %v10744_v53  ;;  %5311 = vrot.lane.b32.xlu1 %v4930_v56, %s9863_s21  ;;  %v4937_v56 = vrot.slane %v4935_v15, 1  ;;  %v10786_v14 = vsel %vm5464_vm5, %v5558_v57, %v10751_v49  ;;  %v4651_v7 = vmul.bf16 %v4457_v16, %v14130_v8  ;;  %v3833_v46 = vmul.bf16 %v3765_v42, %v10056_v58 }
  0xc5   : > { %14129 = vst [vmem:[#allocation46_spill] sm:$0xff] %v10786_v14  ;;  %v4458_v59 = vrot.slane %v10758_v62, 7  ;;  %v10795_v15 = vsel %vm5464_vm5, %v10697_v55, %v10774_v33  ;;  %v2442_v53 = vand.u32 31, %v1684_v9  ;;  %v9795_v62 = vld [vmem:[%s9951_s16 + $0xe0] sm:$0xff]   ;;  %v14132_v58 = vmul.bf16 1.0|1.0, %v10041_v32 }
  0xc6   : > { %v5274_v17 = vpop.permute.xlu1 %5273  ;;  %v4938_v54 = vsel %vm4710_vm2, %v4933_v29, %v4937_v56  ;;  %14131 = vst [vmem:[#allocation6_spill] sm:$0xff] %v10795_v15  ;;  %vm10807_vm12 = vcmp.ne.s32.totalorder %v1861_v20, 0  ;;  %v1910_v55 = vand.u32 31, %v1608_v23  ;;  %v9801_v9 = vld [vmem:[%s13807_s3 + $0x98] sm:$0xff]   ;;  %v4939_v20 = vshrl.u32 %v10755_v0, 16 }
  0xc7   : > { %v10771_v31 = vpop.permute.xlu0 %5307  ;;  %v10805_v29 = vsel %vm5602_vm6, %v14132_v58, %v5274_v17  ;;  %v4459_v32 = vsel %vm1574_vm1, %v10375_v50, %v4458_v59  ;;  %v4537_v17 = vsel %vm1574_vm1, %v4534_v22, %v10375_v50  ;;  %v5484_v23 = vrot.slane %v4651_v7, 1 }
  0xc8   : > { %14127 = vst [vmem:[#allocation5_spill] sm:$0xff] %v10771_v31  ;;  %v10782_v31 = vsel %vm5464_vm5, %v10519_v11, %v5558_v57  ;;  %v4535_v11 = vsel %vm1574_vm1, %v10375_v50, %v4534_v22  ;;  %v9243_v57 = vsel %vm3445_vm11, 1.0, %v14096_v2  ;;  %5313 = vrot.lane.b32.xlu1 %v4938_v54, %s9863_s21  ;;  %14133 = vst [vmem:[#allocation47_spill] sm:$0xff] %v10805_v29  ;;  %v14136_v54 = vmul.bf16 1.0|1.0, %v10274_v37 }
  0xc9   : > { %6245 = vmatmul.mubr.bf16.gmra.mxu0 %v10740_v43  ;;  %14128 = vst [vmem:[#allocation45_spill] sm:$0xff] %v10782_v31  ;;  %v1189_v43 = vshll.u32 %v9794_v34, 16  ;;  %v10832_v37 = vpack.c.bf16 %v14098_v4, %v9243_v57  ;;  %v4690_v22 = vmul.bf16 %v4535_v11, %v10327_v28  ;;  %v9224_v58 = vsel %vm10807_vm12, 1.0, %v14096_v2 }
  0xca   : > { %9306 = vmatprep.mubr.msk.bf16.mxu0 %vm5602_vm6, %v10732_v6  ;;  %v1186_v6 = vshrl.u32 %v9794_v34, 16  ;;  %vm10842_vm13 = vcmp.ne.s32.totalorder %v2442_v53, 31  ;;  %v1194_v7 = vshrl.u32 %v9795_v62, 16  ;;  %v4691_v57 = vmul.bf16 %v4537_v17, %v10339_v40  ;;  %v9802_v53 = vld [vmem:[%s13807_s3 + $0x90] sm:$0xff]  }
  0xcb   : > { %vm3920_vm14 = vcmp.ne.s32.totalorder %v1910_v55, 31  ;;  %v1681_v42 = vadd.s32 800, %v9954_v5  ;;  %v3767_v55 = vpack.c.bf16 %v14098_v4, %v9224_v58  ;;  %v14140_v17 = vmul.bf16 %v10735_v21, %v10288_v63 }
  0xcc   : > { %v5350_v16 = vpop.permute.xlu0 %5349  ;;  %v10811_v34 = vrot.slane %v1186_v6, 7  ;;  %v10829_v6 = vsel %vm5602_vm6, %v3833_v46, %v10570_v48  ;;  %v10876_v58 = vsel %vm5464_vm5, %v10774_v33, %v5484_v23  ;;  %v10880_v48 = vrot.slane %v4691_v57, 1 }
  0xcd   : > { %v10819_v35 = vsel %vm5602_vm6, %v14136_v54, %v5350_v16  ;;  %v1605_v54 = vadd.s32 192, %v9954_v5  ;;  %v2421_v21 = vand.u32 31, %v1681_v42  ;;  %v3835_v42 = vmul.bf16 %v3767_v55, %v14130_v8  ;;  %v5278_v8 = vpop.permute.xlu1 %5277  ;;  %v14144_v55 = vld [vmem:[#allocation7_spill] sm:$0xff] }
  0xce   : > { %14137 = vst [vmem:[#allocation48_spill] sm:$0xff] %v10819_v35  ;;  %6557 = vmatmul.mubr.bf16.vlgmr.msra.gmra.mxu1 %v10819_v35  ;;  %v1191_v16 = vor.u32 %v1189_v43, %v10811_v34  ;;  %v4652_v43 = vmul.bf16 %v4459_v32, %v10074_v18  ;;  %v1197_v32 = vshll.u32 %v9795_v62, 16  ;;  %v4461_v62 = vsel %vm1574_vm1, %v4458_v59, %v10375_v50 }
  0xcf   : > { %9345 = vmatprep.mubr.msk.bf16.mxu1 %vm5602_vm6, %v10782_v31  ;;  %6947 = vmatpush1.bf16.msra.mxu1 %v9801_v9  ;;  %v4941_v31 = vor.u32 %v4939_v20, %v4937_v56  ;;  %v10865_v9 = vrot.slane %v1194_v7, 7  ;;  %v5562_v56 = vrot.slane %v4690_v22, 1  ;;  %v9259_v20 = vsel %vm3920_vm14, 1.0, %v14096_v2 }
  0xd0   : > { %v5352_v46 = vpop.permute.xlu0 %5351  ;;  %v10852_v11 = vsel %vm631_vm0, %v10720_v45, %v1191_v16  ;;  %6948 = vmatprep.subr.bf16.mxu1 %v14089_v36  ;;  %v9278_v45 = vsel %vm10842_vm13, 1.0, %v14096_v2  ;;  %v1889_v7 = vand.u32 31, %v1605_v54  ;;  %v10892_v33 = vpack.c.bf16 %v9259_v20, %v14098_v4  ;;  %v9796_v54 = vld [vmem:[%s9951_s16 + $0xe8] sm:$0xff]  }
  0xd1   : > { %6253 = vmatmul.mubr.bf16.gmra.mxu0 %v10805_v29  ;;  %v4943_v35 = vshll.u32 %v10852_v11, 16  ;;  %v10871_v16 = vsel %vm5602_vm6, %v14140_v17, %v5352_v46  ;;  %v10878_v29 = vrot.slane %v4652_v43, 1  ;;  %v4352_v63 = vpack.c.bf16 %v9278_v45, %v14098_v4 }
  0xd2   : > { %9307 = vmatprep.mubr.msk.bf16.mxu0 %vm5602_vm6, %v10795_v15  ;;  %14141 = vst [vmem:[#allocation49_spill] sm:$0xff] %v10871_v16  ;;  %v1688_v59 = vadd.s32 856, %v9954_v5  ;;  %v1199_v46 = vor.u32 %v1197_v32, %v10865_v9  ;;  %v4947_v43 = vshrl.u32 %v10852_v11, 16  ;;  %v10904_v57 = vsel %vm5464_vm5, %v10751_v49, %v5562_v56 }
  0xd3   : > { %v4945_v15 = vrot.slane %v4943_v35, 1  ;;  %6949 = vmatpush1.bf16.msra.mxu1 %v9802_v53  ;;  %v9804_v35 = vld [vmem:[%s13807_s3 + $0x88] sm:$0xff]   ;;  %14142 = vst [vmem:[#allocation50_spill] sm:$0xff] %v10904_v57  ;;  %v10914_v32 = vsel %vm5464_vm5, %v5484_v23, %v10878_v29  ;;  %v4653_v20 = vmul.bf16 %v4461_v62, %v14144_v55  ;;  %vm10926_vm15 = vcmp.ne.s32.totalorder %v2421_v21, 0 }
  0xd4   : > { %6950 = vmatprep.subr.bf16.mxu1 %v14089_v36  ;;  %v5354_v45 = vpop.permute.xlu0 %5353  ;;  %v10923_v17 = vsel %vm631_vm0, %v10811_v34, %v1199_v46  ;;  %vm10930_vm4 = vcmp.ne.s32.totalorder %v1889_v7, 0  ;;  %v4462_v34 = vrot.slane %v10892_v33, 7  ;;  %v2470_v46 = vand.u32 31, %v1688_v59 }
  0xd5   : > { %v4946_v22 = vsel %vm4710_vm2, %v4941_v31, %v4945_v15  ;;  %v3834_v31 = vmul.bf16 1.0|1.0, %v14126_v41  ;;  %v10918_v41 = vsel %vm5464_vm5, %v5562_v56, %v10880_v48  ;;  %v9805_v56 = vld [vmem:[%s13807_s3 + $0x80] sm:$0xff]   ;;  %v4949_v49 = vor.u32 %v4947_v43, %v4945_v15  ;;  %v9797_v43 = vld [vmem:[%s9951_s16 + $0xf0] sm:$0xff]  }
  0xd6   : > { %6565 = vmatmul.mubr.bf16.gmra.mxu1 %v10871_v16  ;;  %5315 = vrot.lane.b32.xlu1 %v4946_v22, %s9863_s21  ;;  %14143 = vst [vmem:[#allocation51_spill] sm:$0xff] %v10918_v41  ;;  %v4538_v22 = vrot.slane %v4352_v63, 7  ;;  %v4951_v62 = vshll.u32 %v10923_v17, 16  ;;  %v14149_v63 = vmul.bf16 1.0|1.0, %v14119_v1  ;;  %v1612_v7 = vadd.s32 248, %v9954_v5 }
  0xd7   : > { %9346 = vmatprep.mubr.msk.bf16.mxu1 %vm5602_vm6, %v10786_v14  ;;  %6951 = vmatpush1.bf16.msra.mxu1 %v9804_v35  ;;  %v1202_v35 = vshrl.u32 %v9796_v54, 16  ;;  %v1205_v14 = vshll.u32 %v9796_v54, 16  ;;  %v10947_v16 = vsel %vm5602_vm6, %v3834_v31, %v5278_v8  ;;  %v10951_v33 = vsel %vm5602_vm6, %v3835_v42, %v10590_v10  ;;  %v9807_v10 = vld [vmem:[%s13807_s3 + $0x78] sm:$0xff]  }
  0xd8   : > { %6952 = vmatprep.subr.bf16.mxu1 %v14089_v36  ;;  %v10943_v21 = vsel %vm5602_vm6, %v14149_v63, %v5354_v45  ;;  %14151 = vst [vmem:[#allocation52_spill] sm:$0xff] %v10951_v33  ;;  %v4953_v59 = vrot.slane %v4951_v62, 1  ;;  %v4539_v1 = vsel %vm1574_vm1, %v10375_v50, %v4538_v22  ;;  %v9244_v45 = vsel %vm10926_vm15, 1.0, %v14096_v2 }
  0xd9   : > { %6261 = vmatmul.mubr.bf16.gmra.mxu0 %v10829_v6  ;;  %14150 = vst [vmem:[#allocation7_spill] sm:$0xff] %v10943_v21  ;;  %v9225_v31 = vsel %vm10930_vm4, 1.0, %v14096_v2  ;;  %v10963_v54 = vrot.slane %v1202_v35, 7  ;;  %v4463_v42 = vsel %vm1574_vm1, %v10375_v50, %v4462_v34  ;;  %v4541_v53 = vsel %vm1574_vm1, %v4538_v22, %v10375_v50  ;;  %v5356_v35 = vpop.permute.xlu0 %5355 }
  0xda   : > { %9308 = vmatprep.mubr.msk.bf16.mxu0 %vm5602_vm6, %v10876_v58  ;;  %v4954_v8 = vsel %vm4710_vm2, %v4949_v49, %v4953_v59  ;;  %v4955_v23 = vshrl.u32 %v10923_v17, 16  ;;  %vm10981_vm7 = vcmp.ne.s32.totalorder %v2470_v46, 31  ;;  %v1938_v63 = vand.u32 31, %v1612_v7 }
  0xdb   : > { %6953 = vmatpush1.bf16.msra.mxu1 %v9805_v56  ;;  %v10979_v56 = vrot.slane %v4653_v20, 1  ;;  %v1207_v22 = vor.u32 %v1205_v14, %v10963_v54  ;;  %v4692_v49 = vmul.bf16 %v4539_v1, %v10349_v13  ;;  %v10990_v15 = vpack.c.bf16 %v14098_v4, %v9244_v45  ;;  %5317 = vrot.lane.b32.xlu1 %v4954_v8, %s9863_s21  ;;  %v9808_v1 = vld [vmem:[%s13807_s3 + $0x70] sm:$0xff]  }
  0xdc   : > { %6954 = vmatprep.subr.bf16.mxu1 %v14089_v36  ;;  %v1210_v20 = vshrl.u32 %v9797_v43, 16  ;;  %v4654_v46 = vmul.bf16 %v4463_v42, %v10104_v52  ;;  %v4693_v7 = vmul.bf16 %v4541_v53, %v10357_v27  ;;  %v1685_v14 = vadd.s32 832, %v9954_v5 }
  0xdd   : > { %v9279_v45 = vsel %vm10981_vm7, 1.0, %v14096_v2  ;;  %v1213_v8 = vshll.u32 %v9797_v43, 16  ;;  %v14154_v53 = vmul.bf16 %v10832_v37, %v10319_v3  ;;  %vm3924_vm8 = vcmp.ne.s32.totalorder %v1938_v63, 31  ;;  %v5282_v43 = vpop.permute.xlu1 %5281 }
  0xde   : > { %6573 = vmatmul.mubr.bf16.gmra.mxu1 %v10943_v21  ;;  %v10999_v21 = vsel %vm631_vm0, %v10865_v9, %v1207_v22  ;;  %v11016_v22 = vrot.slane %v1210_v20, 7  ;;  %v5566_v3 = vrot.slane %v4692_v49, 1  ;;  %v11026_v37 = vrot.slane %v4654_v46, 1 }
  0xdf   : > { %9347 = vmatprep.mubr.msk.bf16.mxu1 %vm5602_vm6, %v10904_v57  ;;  %v3769_v57 = vpack.c.bf16 %v14098_v4, %v9225_v31  ;;  %6955 = vmatpush1.bf16.msra.mxu1 %v9807_v10  ;;  %v4957_v31 = vor.u32 %v4955_v23, %v4953_v59  ;;  %v4959_v42 = vshll.u32 %v10999_v21, 16  ;;  %v11013_v9 = vsel %vm5602_vm6, %v14154_v53, %v5356_v35 }
  0xe0   : > { %6956 = vmatprep.subr.bf16.mxu1 %v14089_v36  ;;  %14155 = vst [vmem:[#allocation53_spill] sm:$0xff] %v11013_v9  ;;  %v1609_v10 = vadd.s32 224, %v9954_v5  ;;  %v11021_v59 = vsel %vm5464_vm5, %v10878_v29, %v10979_v56  ;;  %v4465_v63 = vsel %vm1574_vm1, %v4462_v34, %v10375_v50  ;;  %v4354_v35 = vpack.c.bf16 %v9279_v45, %v14098_v4  ;;  %v9810_v29 = vld [vmem:[%s13807_s3 + $0x68] sm:$0xff]  }
  0xe1   : > { %6269 = vmatmul.mubr.bf16.gmra.mxu0 %v10947_v16  ;;  %14156 = vst [vmem:[#allocation54_spill] sm:$0xff] %v11021_v59  ;;  %v3837_v23 = vmul.bf16 %v3769_v57, %v14144_v55  ;;  %v4961_v62 = vrot.slane %v4959_v42, 1  ;;  %v2449_v20 = vand.u32 31, %v1685_v14  ;;  %v9260_v53 = vsel %vm3924_vm8, 1.0, %v14096_v2 }
  0xe2   : > { %9309 = vmatprep.mubr.msk.bf16.mxu0 %vm5602_vm6, %v10914_v32  ;;  %v1215_v55 = vor.u32 %v1213_v8, %v11016_v22  ;;  %v11042_v34 = vrot.slane %v4693_v7, 1  ;;  %v1917_v49 = vand.u32 31, %v1609_v10  ;;  %v1692_v46 = vadd.s32 888, %v9954_v5  ;;  %v9798_v10 = vld [vmem:[%s9951_s16 + $0xf8] sm:$0xff]  }
  0xe3   : > { %6957 = vmatpush1.bf16.msra.mxu1 %v9808_v1  ;;  %v4962_v57 = vsel %vm4710_vm2, %v4957_v31, %v4961_v62  ;;  %v4963_v14 = vshrl.u32 %v10999_v21, 16  ;;  %v5358_v1 = vpop.permute.xlu0 %5357  ;;  %v14157_v31 = vld [vmem:[#allocation8_spill] sm:$0xff]  ;;  %v1616_v8 = vadd.s32 280, %v9954_v5  ;;  %vm3453_vm9 = vcmp.ne.s32.totalorder %v2449_v20, 0 }
  0xe4   : > { %6958 = vmatprep.subr.bf16.mxu1 %v14089_v36  ;;  %v4655_v42 = vmul.bf16 %v4465_v63, %v14157_v31  ;;  %5319 = vrot.lane.b32.xlu1 %v4962_v57, %s9863_s21  ;;  %v11054_v7 = vsel %vm631_vm0, %v10963_v54, %v1215_v55  ;;  %v9811_v63 = vld [vmem:[%s13807_s3 + $0x60] sm:$0xff]   ;;  %v11066_v57 = vsel %vm5464_vm5, %v10880_v48, %v5566_v3  ;;  %vm3377_vm10 = vcmp.ne.s32.totalorder %v1917_v49, 0 }
  0xe5   : > { %14158 = vst [vmem:[#allocation8_spill] sm:$0xff] %v11066_v57  ;;  %v11071_v54 = vsel %vm5464_vm5, %v10979_v56, %v11026_v37  ;;  %v2498_v48 = vand.u32 31, %v1692_v46  ;;  %v14162_v55 = vmul.bf16 1.0|1.0, %v10074_v18  ;;  %v9813_v18 = vld [vmem:[%s13807_s3 + $0xb8] sm:$0xff]  }
  0xe6   : > { %6581 = vmatmul.mubr.bf16.gmra.mxu1 %v11013_v9  ;;  %v11058_v9 = vpack.c.bf16 %v9260_v53, %v14098_v4  ;;  %14159 = vst [vmem:[#allocation55_spill] sm:$0xff] %v11071_v54 }
  0xe7   : > { %9348 = vmatprep.mubr.msk.bf16.mxu1 %vm5602_vm6, %v10918_v41  ;;  %v4542_v41 = vrot.slane %v4354_v35, 7  ;;  %6959 = vmatpush1.bf16.msra.mxu1 %v9810_v29  ;;  %v11075_v35 = vsel %vm5602_vm6, %v3837_v23, %v10609_v24  ;;  %v11086_v56 = vsel %vm5602_vm6, %v14162_v55, %v5282_v43  ;;  %v1966_v24 = vand.u32 31, %v1616_v8 }
  0xe8   : > { %6960 = vmatprep.subr.bf16.mxu1 %v14089_v36  ;;  %v1218_v23 = vshrl.u32 %v9798_v10, 16  ;;  %v3838_v8 = vmul.bf16 1.0|1.0, %v10104_v52  ;;  %vm4004_vm11 = vcmp.ne.s32.totalorder %v2498_v48, 31 }
  0xe9   : > { %6277 = vmatmul.mubr.bf16.gmra.mxu0 %v10951_v33  ;;  %v4965_v33 = vor.u32 %v4963_v14, %v4961_v62  ;;  %v14160_v62 = vmul.bf16 1.0|1.0, %v10327_v28  ;;  %v11088_v14 = vrot.slane %v4655_v42, 1  ;;  %v4543_v20 = vsel %vm1574_vm1, %v10375_v50, %v4542_v41 }
  0xea   : > { %9310 = vmatprep.mubr.msk.bf16.mxu0 %vm5602_vm6, %v11021_v59  ;;  %v4967_v59 = vshll.u32 %v11054_v7, 16  ;;  %v9245_v28 = vsel %vm3453_vm9, 1.0, %v14096_v2  ;;  %v4545_v43 = vsel %vm1574_vm1, %v4542_v41, %v10375_v50  ;;  %v11103_v46 = vrot.slane %v1218_v23, 7 }
  0xeb   : > { %v11081_v29 = vsel %vm5602_vm6, %v14160_v62, %v5358_v1  ;;  %v4466_v1 = vrot.slane %v11058_v9, 7  ;;  %6961 = vmatpush1.bf16.msra.mxu1 %v9811_v63  ;;  %v1221_v42 = vshll.u32 %v9798_v10, 16  ;;  %v9799_v9 = vld [vmem:[%s9951_s16 + $0x100] sm:$0xff]   ;;  %v4971_v41 = vshrl.u32 %v11054_v7, 16  ;;  %v5360_v63 = vpop.permute.xlu0 %5359 }
  0xec   : > { %14161 = vst [vmem:[#allocation56_spill] sm:$0xff] %v11081_v29  ;;  %v4969_v53 = vrot.slane %v4967_v59, 1  ;;  %v9226_v59 = vsel %vm3377_vm10, 1.0, %v14096_v2  ;;  %v11120_v10 = vsel %vm5464_vm5, %v11026_v37, %v11088_v14  ;;  %v11123_v62 = vpack.c.bf16 %v14098_v4, %v9245_v28  ;;  %6970 = vmatprep.subr.bf16.mxu1 %v14089_v36  ;;  %v9814_v37 = vld [vmem:[%s13807_s3 + $0xb0] sm:$0xff]  }
  0xed   : > { %vm3928_vm12 = vcmp.ne.s32.totalorder %v1966_v24, 31  ;;  %v4694_v52 = vmul.bf16 %v4543_v20, %v10368_v51  ;;  %v4467_v48 = vsel %vm1574_vm1, %v10375_v50, %v4466_v1  ;;  %v3771_v55 = vpack.c.bf16 %v14098_v4, %v9226_v59 }
  0xee   : > { %v4970_v49 = vsel %vm4710_vm2, %v4965_v33, %v4969_v53  ;;  %6589 = vmatmul.mubr.bf16.gmra.mxu1 %v11081_v29  ;;  %v11111_v33 = vsel %vm5464_vm5, %v5566_v3, %v11042_v34  ;;  %v1223_v3 = vor.u32 %v1221_v42, %v11103_v46  ;;  %v4695_v23 = vmul.bf16 %v4545_v43, %v10398_v26 }
  0xef   : > { %5321 = vrot.lane.b32.xlu1 %v4970_v49, %s9863_s21  ;;  %9349 = vmatprep.mubr.msk.bf16.mxu1 %vm5602_vm6, %v11066_v57  ;;  %14163 = vst [vmem:[#allocation57_spill] sm:$0xff] %v11111_v33  ;;  %v9280_v24 = vsel %vm4004_vm11, 1.0, %v14096_v2  ;;  %v1689_v28 = vadd.s32 864, %v9954_v5  ;;  %v1226_v20 = vshrl.u32 %v9799_v9, 16  ;;  %v14164_v59 = vmul.bf16 %v10990_v15, %v10339_v40 }
  0xf0   : > { %6971 = vmatpush2.bf16.msra.mxu1 %v9813_v18  ;;  %v11139_v49 = vsel %vm631_vm0, %v11016_v22, %v1223_v3  ;;  %v9261_v43 = vsel %vm3928_vm12, 1.0, %v14096_v2  ;;  %v4973_v42 = vor.u32 %v4971_v41, %v4969_v53  ;;  %v4656_v57 = vmul.bf16 %v4467_v48, %v10122_v25  ;;  %v9816_v53 = vld [vmem:[%s13807_s3 + $0xa8] sm:$0xff]   ;;  %v5286_v41 = vpop.permute.xlu1 %5285 }
  0xf1   : > { %6285 = vmatmul.mubr.bf16.gmra.mxu0 %v11086_v56  ;;  %6972 = vmatprep.subr.bf16.mxu1 %v14089_v36  ;;  %v11146_v18 = vsel %vm5602_vm6, %v14164_v59, %v5360_v63  ;;  %v4975_v45 = vshll.u32 %v11139_v49, 16  ;;  %v1613_v29 = vadd.s32 256, %v9954_v5  ;;  %v11152_v22 = vrot.slane %v1226_v20, 7 }
  0xf2   : > { %9311 = vmatprep.mubr.msk.bf16.mxu0 %vm5602_vm6, %v11071_v54  ;;  %14165 = vst [vmem:[#allocation58_spill] sm:$0xff] %v11146_v18  ;;  %v1229_v3 = vshll.u32 %v9799_v9, 16  ;;  %v11154_v54 = vrot.slane %v4694_v52, 1  ;;  %v4469_v15 = vsel %vm1574_vm1, %v4466_v1, %v10375_v50  ;;  %v3839_v48 = vmul.bf16 %v3771_v55, %v14157_v31 }
  0xf3   : > { %v4977_v63 = vrot.slane %v4975_v45, 1  ;;  %v4356_v9 = vpack.c.bf16 %v9280_v24, %v14098_v4  ;;  %v2477_v52 = vand.u32 31, %v1689_v28  ;;  %v11167_v20 = vpack.c.bf16 %v9261_v43, %v14098_v4  ;;  %v14166_v28 = vld [vmem:[#allocation9_spill] sm:$0xff] }
  0xf4   : > { %6973 = vmatpush2.bf16.msra.mxu1 %v9814_v37  ;;  %v11173_v45 = vrot.slane %v4695_v23, 1  ;;  %v4979_v55 = vshrl.u32 %v11139_v49, 16  ;;  %v5362_v37 = vpop.permute.xlu0 %5361  ;;  %v5494_v24 = vrot.slane %v4656_v57, 1  ;;  %v4657_v59 = vmul.bf16 %v4469_v15, %v14166_v28  ;;  %v9800_v57 = vld [vmem:[%s9951_s16 + $0x108] sm:$0xff]  }
  0xf5   : > { %6974 = vmatprep.subr.bf16.mxu1 %v14089_v36  ;;  %v4978_v31 = vsel %vm4710_vm2, %v4973_v42, %v4977_v63  ;;  %v1945_v43 = vand.u32 31, %v1613_v29  ;;  %v1231_v40 = vor.u32 %v1229_v3, %v11152_v22  ;;  %v11184_v23 = vsel %vm5602_vm6, %v3838_v8, %v5286_v41  ;;  %v9817_v29 = vld [vmem:[%s13807_s3 + $0xa0] sm:$0xff]  }
  0xf6   : > { %6597 = vmatmul.mubr.bf16.gmra.mxu1 %v11146_v18  ;;  %5323 = vrot.lane.b32.xlu1 %v4978_v31, %s9863_s21  ;;  %14167 = vst [vmem:[#allocation9_spill] sm:$0xff] %v11184_v23  ;;  %v11189_v42 = vsel %vm5464_vm5, %v11042_v34, %v11154_v54  ;;  %v3840_v1 = vmul.bf16 1.0|1.0, %v10122_v25  ;;  %v4546_v15 = vrot.slane %v4356_v9, 7  ;;  %vm3457_vm13 = vcmp.ne.s32.totalorder %v2477_v52, 0 }
  0xf7   : > { %9350 = vmatprep.mubr.msk.bf16.mxu1 %vm5602_vm6, %v11111_v33  ;;  %14168 = vst [vmem:[#allocation59_spill] sm:$0xff] %v11189_v42  ;;  %v1696_v33 = vadd.s32 920, %v9954_v5  ;;  %v4470_v8 = vrot.slane %v11167_v20, 7  ;;  %v11200_v3 = vsel %vm631_vm0, %v11103_v46, %v1231_v40  ;;  %v14169_v25 = vmul.bf16 1.0|1.0, %v10349_v13 }
  0xf8   : > { %6975 = vmatpush2.bf16.msra.mxu1 %v9816_v53  ;;  %v1620_v53 = vadd.s32 312, %v9954_v5  ;;  %v4981_v41 = vor.u32 %v4979_v55, %v4977_v63  ;;  %v4983_v9 = vshll.u32 %v11200_v3, 16  ;;  %v11212_v52 = vsel %vm5464_vm5, %v11088_v14, %v5494_v24  ;;  %v9803_v55 = vld [vmem:[%s9951_s16 + $0x110] sm:$0xff]  }
  0xf9   : > { %6293 = vmatmul.mubr.bf16.gmra.mxu0 %v11075_v35  ;;  %6976 = vmatprep.subr.bf16.mxu1 %v14089_v36  ;;  %v11206_v34 = vsel %vm5602_vm6, %v14169_v25, %v5362_v37  ;;  %14171 = vst [vmem:[#allocation61_spill] sm:$0xff] %v11212_v52  ;;  %v11216_v46 = vsel %vm5602_vm6, %v3839_v48, %v10627_v39  ;;  %v11218_v40 = vrot.slane %v4657_v59, 1  ;;  %vm3381_vm14 = vcmp.ne.s32.totalorder %v1945_v43, 0  ;;  %v5364_v25 = vpop.permute.xlu0 %5363 }
  0xfa   : > { %9312 = vmatprep.mubr.msk.bf16.mxu0 %vm5602_vm6, %v11120_v10  ;;  %14170 = vst [vmem:[#allocation60_spill] sm:$0xff] %v11206_v34  ;;  %v9246_v13 = vsel %vm3457_vm13, 1.0, %v14096_v2  ;;  %v2526_v20 = vand.u32 31, %v1696_v33  ;;  %v4985_v31 = vrot.slane %v4983_v9, 1  ;;  %v1234_v37 = vshrl.u32 %v9800_v57, 16 }
  0xfb   : > { %v4547_v63 = vsel %vm1574_vm1, %v10375_v50, %v4546_v15  ;;  %v4471_v14 = vsel %vm1574_vm1, %v10375_v50, %v4470_v8  ;;  %v4549_v39 = vsel %vm1574_vm1, %v4546_v15, %v10375_v50  ;;  %v1237_v48 = vshll.u32 %v9800_v57, 16 }
  0xfc   : > { %6977 = vmatpush2.bf16.msra.mxu1 %v9817_v29  ;;  %v9227_v33 = vsel %vm3381_vm14, 1.0, %v14096_v2  ;;  %v1994_v59 = vand.u32 31, %v1620_v53  ;;  %v4986_v43 = vsel %vm4710_vm2, %v4981_v41, %v4985_v31  ;;  %v1236_v29 = vrot.slane %v1234_v37, 7 }
  0xfd   : > { %v11239_v57 = vsel %vm5464_vm5, %v11154_v54, %v11173_v45  ;;  %v11243_v15 = vsel %vm5464_vm5, %v5494_v24, %v11218_v40  ;;  %v11246_v9 = vpack.c.bf16 %v14098_v4, %v9246_v13  ;;  %5325 = vrot.lane.b32.xlu1 %v4986_v43, %s9863_s21  ;;  %v4987_v53 = vshrl.u32 %v11200_v3, 16 }
  0xfe   : > { %6605 = vmatmul.mubr.bf16.gmra.mxu1 %v11206_v34  ;;  %14172 = vst [vmem:[#allocation62_spill] sm:$0xff] %v11239_v57  ;;  %14173 = vst [vmem:[#allocation63_spill] sm:$0xff] %v11243_v15  ;;  %v4696_v41 = vmul.bf16 %v4547_v63, %v10413_v30  ;;  %vm4008_vm15 = vcmp.ne.s32.totalorder %v2526_v20, 31  ;;  %v1693_v37 = vadd.s32 896, %v9954_v5  ;;  %v5290_v34 = vpop.permute.xlu1 %5289  ;;  %v4658_v54 = vmul.bf16 %v4471_v14, %v10139_v44 }
  0xff   : > { %9351 = vmatprep.mubr.msk.bf16.mxu1 %vm5602_vm6, %v11189_v42  ;;  %v1239_v42 = vor.u32 %v1237_v48, %v1236_v29  ;;  %v3773_v18 = vpack.c.bf16 %v14098_v4, %v9227_v33  ;;  %v4697_v24 = vmul.bf16 %v4549_v39, %v10424_v47  ;;  %v14174_v13 = vmul.bf16 %v11123_v62, %v10357_v27 }
 0x100   : > { %vm3932_vm4 = vcmp.ne.s32.totalorder %v1994_v59, 31  ;;  %v1245_v63 = vshll.u32 %v9803_v55, 16  ;;  %v9281_v48 = vsel %vm4008_vm15, 1.0, %v14096_v2  ;;  %v1617_v14 = vadd.s32 288, %v9954_v5 }
 0x101   : > { %6301 = vmatmul.mubr.bf16.gmra.mxu0 %v11184_v23  ;;  %v11259_v43 = vsel %vm5602_vm6, %v14174_v13, %v5364_v25  ;;  %v11263_v20 = vsel %vm631_vm0, %v11152_v22, %v1239_v42  ;;  %v4989_v33 = vor.u32 %v4987_v53, %v4985_v31  ;;  %v11269_v23 = vsel %vm5602_vm6, %v3840_v1, %v5290_v34  ;;  %v5366_v31 = vpop.permute.xlu0 %5365 }
 0x102   : > { %9313 = vmatprep.mubr.msk.bf16.mxu0 %vm5602_vm6, %v11212_v52  ;;  %v1242_v52 = vshrl.u32 %v9803_v55, 16  ;;  %14175 = vst [vmem:[#allocation64_spill] sm:$0xff] %v11259_v43  ;;  %v4991_v39 = vshll.u32 %v11263_v20, 16  ;;  %14176 = vst [vmem:[#allocation65_spill] sm:$0xff] %v11269_v23  ;;  %v4473_v27 = vsel %vm1574_vm1, %v4470_v8, %v10375_v50  ;;  %v2505_v62 = vand.u32 31, %v1693_v37 }
 0x103   : > { %v5574_v22 = vrot.slane %v4696_v41, 1  ;;  %v11276_v42 = vrot.slane %v4697_v24, 1  ;;  %v9262_v55 = vsel %vm3932_vm4, 1.0, %v14096_v2  ;;  %v3879_v1 = vmul.bf16 %v11246_v9, %v10398_v26  ;;  %v14177_v41 = vld [vmem:[#allocation10_spill] sm:$0xff] }
 0x104   : > { %v11273_v59 = vrot.slane %v1242_v52, 7  ;;  %v4993_v25 = vrot.slane %v4991_v39, 1  ;;  %v5498_v8 = vrot.slane %v4658_v54, 1  ;;  %v4358_v34 = vpack.c.bf16 %v9281_v48, %v14098_v4 }
 0x105   : > { %v3841_v53 = vmul.bf16 %v3773_v18, %v14166_v28  ;;  %v4659_v37 = vmul.bf16 %v4473_v27, %v14177_v41  ;;  %v1973_v24 = vand.u32 31, %v1617_v14  ;;  %vm11291_vm7 = vcmp.ne.s32.totalorder %v2505_v62, 0  ;;  %v9806_v14 = vld [vmem:[%s9951_s16 + $0x118] sm:$0xff]  }
 0x106   : > { %6613 = vmatmul.mubr.bf16.gmra.mxu1 %v11259_v43  ;;  %v1247_v52 = vor.u32 %v1245_v63, %v11273_v59  ;;  %v4994_v13 = vsel %vm4710_vm2, %v4989_v33, %v4993_v25  ;;  %v11296_v26 = vpack.c.bf16 %v9262_v55, %v14098_v4  ;;  %v4995_v54 = vshrl.u32 %v11263_v20, 16  ;;  %v5294_v55 = vpop.permute.xlu1 %5293  ;;  %v5368_v43 = vpop.permute.xlu0 %5367 }
 0x107   : > { %9352 = vmatprep.mubr.msk.bf16.mxu1 %vm5602_vm6, %v11239_v57  ;;  %5327 = vrot.lane.b32.xlu1 %v4994_v13, %s9863_s21  ;;  %v11305_v18 = vsel %vm5464_vm5, %v11173_v45, %v5574_v22  ;;  %v11309_v28 = vsel %vm5464_vm5, %v5574_v22, %v11276_v42  ;;  %v1700_v63 = vadd.s32 952, %v9954_v5  ;;  %v14182_v33 = vmul.bf16 1.0|1.0, %v10368_v51 }
 0x108   : > { %v11300_v9 = vsel %vm631_vm0, %v1236_v29, %v1247_v52  ;;  %14180 = vst [vmem:[#allocation10_spill] sm:$0xff] %v11305_v18  ;;  %14181 = vst [vmem:[#allocation66_spill] sm:$0xff] %v11309_v28  ;;  %v3842_v27 = vmul.bf16 1.0|1.0, %v10139_v44  ;;  %v4550_v62 = vrot.slane %v4358_v34, 7  ;;  %v4997_v45 = vor.u32 %v4995_v54, %v4993_v25 }
 0x109   : > { %6309 = vmatmul.mubr.bf16.gmra.mxu0 %v11216_v46  ;;  %v4999_v48 = vshll.u32 %v11300_v9, 16  ;;  %v11317_v29 = vsel %vm5602_vm6, %v14182_v33, %v5366_v31  ;;  %v11320_v52 = vrot.slane %v4659_v37, 1  ;;  %v9247_v22 = vsel %vm11291_vm7, 1.0, %v14096_v2  ;;  %v9809_v31 = vld [vmem:[%s9951_s16 + $0x120] sm:$0xff]  }
 0x10a   : > { %9314 = vmatprep.mubr.msk.bf16.mxu0 %vm5602_vm6, %v11243_v15  ;;  %14183 = vst [vmem:[#allocation67_spill] sm:$0xff] %v11317_v29  ;;  %v1624_v13 = vadd.s32 344, %v9954_v5  ;;  %v11328_v51 = vsel %vm5464_vm5, %v11218_v40, %v5498_v8  ;;  %v11332_v44 = vsel %vm5602_vm6, %v3841_v53, %v10652_v61  ;;  %v4474_v25 = vrot.slane %v11296_v26, 7  ;;  %v5370_v33 = vpop.permute.xlu0 %5369 }
 0x10b   : > { %v5001_v57 = vrot.slane %v4999_v48, 1  ;;  %14184 = vst [vmem:[#allocation68_spill] sm:$0xff] %v11328_v51  ;;  %14185 = vst [vmem:[#allocation69_spill] sm:$0xff] %v11332_v44  ;;  %vm11335_vm8 = vcmp.ne.s32.totalorder %v1973_v24, 0  ;;  %v2554_v37 = vand.u32 31, %v1700_v63  ;;  %v1250_v54 = vshrl.u32 %v9806_v14, 16 }
 0x10c   : > { %v1253_v48 = vshll.u32 %v9806_v14, 16  ;;  %v3880_v61 = vmul.bf16 1.0|1.0, %v10413_v30  ;;  %v11347_v40 = vsel %vm5602_vm6, %v3842_v27, %v5294_v55  ;;  %v4551_v53 = vsel %vm1574_vm1, %v10375_v50, %v4550_v62  ;;  %v14191_v55 = vld [vmem:[#allocation22_spill] sm:$0xff] }
 0x10d   : > { %v5002_v39 = vsel %vm4710_vm2, %v4997_v45, %v5001_v57  ;;  %14188 = vst [vmem:[#allocation70_spill] sm:$0xff] %v11347_v40  ;;  %v3813_v24 = vpack.c.bf16 %v14098_v4, %v9247_v22  ;;  %v11353_v26 = vsel %vm5602_vm6, %v3879_v1, %v5368_v43  ;;  %v11359_v63 = vsel %vm5464_vm5, %v5498_v8, %v11320_v52 }
 0x10e   : > { %6621 = vmatmul.mubr.bf16.gmra.mxu1 %v11317_v29  ;;  %14189 = vst [vmem:[#allocation71_spill] sm:$0xff] %v11353_v26  ;;  %14190 = vst [vmem:[#allocation72_spill] sm:$0xff] %v11359_v63  ;;  %v2022_v14 = vand.u32 31, %v1624_v13  ;;  %5329 = vrot.lane.b32.xlu1 %v5002_v39, %s9863_s21  ;;  %v1252_v30 = vrot.slane %v1250_v54, 7  ;;  %v4475_v27 = vsel %vm1574_vm1, %v10375_v50, %v4474_v25  ;;  %v9228_v43 = vsel %vm11335_vm8, 1.0, %v14096_v2 }
 0x10f   : > { %9353 = vmatprep.mubr.msk.bf16.mxu1 %vm5602_vm6, %v11305_v18  ;;  %v5003_v1 = vshrl.u32 %v11300_v9, 16  ;;  %v1258_v45 = vshrl.u32 %v9809_v31, 16  ;;  %v4698_v22 = vmul.bf16 %v4551_v53, %v14191_v55  ;;  %vm4012_vm9 = vcmp.ne.s32.totalorder %v2554_v37, 31  ;;  %v5372_v37 = vpop.permute.xlu0 %5371 }
 0x110   : > { %v1697_v8 = vadd.s32 928, %v9954_v5  ;;  %v1255_v13 = vor.u32 %v1253_v48, %v1252_v30  ;;  %v3881_v39 = vmul.bf16 %v3813_v24, %v10424_v47  ;;  %v4553_v54 = vsel %vm1574_vm1, %v4550_v62, %v10375_v50 }
 0x111   : > { %6317 = vmatmul.mubr.bf16.gmra.mxu0 %v11269_v23  ;;  %v11373_v18 = vrot.slane %v1258_v45, 7  ;;  %v1261_v29 = vshll.u32 %v9809_v31, 16  ;;  %v3775_v23 = vpack.c.bf16 %v14098_v4, %v9228_v43  ;;  %vm3936_vm10 = vcmp.ne.s32.totalorder %v2022_v14, 31 }
 0x112   : > { %9315 = vmatprep.mubr.msk.bf16.mxu0 %vm5602_vm6, %v11328_v51  ;;  %v14192_v51 = vld [vmem:[#allocation11_spill] sm:$0xff]  ;;  %v11379_v53 = vsel %vm631_vm0, %v11273_v59, %v1255_v13  ;;  %v9282_v48 = vsel %vm4012_vm9, 1.0, %v14096_v2  ;;  %v1621_v47 = vadd.s32 320, %v9954_v5  ;;  %v5005_v24 = vor.u32 %v5003_v1, %v5001_v57 }
 0x113   : > { %v4660_v34 = vmul.bf16 %v4475_v27, %v14192_v51  ;;  %v5007_v62 = vshll.u32 %v11379_v53, 16  ;;  %v11386_v31 = vsel %vm5602_vm6, %v3880_v61, %v5370_v33  ;;  %v5578_v27 = vrot.slane %v4698_v22, 1  ;;  %v14194_v59 = vld [vmem:[#allocation23_spill] sm:$0xff] }
 0x114   : > { %14193 = vst [vmem:[#allocation22_spill] sm:$0xff] %v11386_v31  ;;  %v4477_v14 = vsel %vm1574_vm1, %v4474_v25, %v10375_v50  ;;  %v2533_v43 = vand.u32 31, %v1697_v8  ;;  %v4699_v45 = vmul.bf16 %v4553_v54, %v14194_v59  ;;  %v9263_v57 = vsel %vm3936_vm10, 1.0, %v14096_v2  ;;  %v14196_v54 = vld [vmem:[#allocation12_spill] sm:$0xff] }
 0x115   : > { %v5009_v1 = vrot.slane %v5007_v62, 1  ;;  %v1263_v13 = vor.u32 %v1261_v29, %v11373_v18  ;;  %v11399_v61 = vsel %vm5602_vm6, %v3881_v39, %v5372_v37  ;;  %v3843_v25 = vmul.bf16 %v3775_v23, %v14177_v41 }
 0x116   : > { %6629 = vmatmul.mubr.bf16.gmra.mxu1 %v11353_v26  ;;  %14195 = vst [vmem:[#allocation11_spill] sm:$0xff] %v11399_v61  ;;  %v4360_v33 = vpack.c.bf16 %v9282_v48, %v14098_v4  ;;  %v5011_v22 = vshrl.u32 %v11379_v53, 16  ;;  %v5502_v8 = vrot.slane %v4660_v34, 1  ;;  %v2001_v26 = vand.u32 31, %v1621_v47 }
 0x117   : > { %9354 = vmatprep.mubr.msk.bf16.mxu1 %vm5602_vm6, %v11309_v28  ;;  %v4661_v28 = vmul.bf16 %v4477_v14, %v14196_v54  ;;  %v5010_v62 = vsel %vm4710_vm2, %v5005_v24, %v5009_v1  ;;  %vm11406_vm11 = vcmp.ne.s32.totalorder %v2533_v43, 0  ;;  %v11411_v39 = vpack.c.bf16 %v9263_v57, %v14098_v4  ;;  %v9812_v24 = vld [vmem:[%s9951_s16 + $0x128] sm:$0xff]   ;;  %v9821_v14 = vld [vmem:[%s13807_s3 + $0xf8] sm:$0xff]  }
 0x118   : > { %v1704_v23 = vadd.s32 984, %v9954_v5  ;;  %5331 = vrot.lane.b32.xlu1 %v5010_v62, %s9863_s21  ;;  %v11416_v41 = vsel %vm631_vm0, %v1252_v30, %v1263_v13  ;;  %v11420_v34 = vsel %vm5464_vm5, %v11276_v42, %v5578_v27  ;;  %v11422_v37 = vrot.slane %v4699_v45, 1  ;;  %7723 = vmatpush1.bf16.msra.mxu0 %v9821_v14 }
 0x119   : > { %6325 = vmatmul.mubr.bf16.gmra.mxu0 %v11332_v44  ;;  %14199 = vst [vmem:[#allocation23_spill] sm:$0xff] %v11420_v34  ;;  %v3882_v48 = vmul.bf16 1.0|1.0, %v14191_v55  ;;  %v1628_v47 = vadd.s32 376, %v9954_v5  ;;  %v11432_v43 = vsel %vm5602_vm6, %v3843_v25, %v10681_v19  ;;  %v4554_v30 = vrot.slane %v4360_v33, 7  ;;  %v5374_v55 = vpop.permute.xlu0 %5373  ;;  %v5298_v19 = vpop.permute.xlu1 %5297  ;;  %7724 = vmatprep.subr.bf16.mxu0 %v14089_v36 }
 0x11a   : > { %9316 = vmatprep.mubr.msk.bf16.mxu0 %vm5602_vm6, %v11359_v63  ;;  %v5013_v57 = vor.u32 %v5011_v22, %v5009_v1  ;;  %v5015_v42 = vshll.u32 %v11416_v41, 16  ;;  %v11437_v45 = vsel %vm5464_vm5, %v11320_v52, %v5502_v8  ;;  %v11439_v13 = vrot.slane %v4661_v28, 1  ;;  %v9815_v28 = vld [vmem:[%s9951_s16 + $0x130] sm:$0xff]  }
 0x11b   : > { %14200 = vst [vmem:[#allocation12_spill] sm:$0xff] %v11437_v45  ;;  %v3844_v62 = vmul.bf16 1.0|1.0, %v14192_v51  ;;  %v9248_v63 = vsel %vm11406_vm11, 1.0, %v14096_v2  ;;  %v4478_v1 = vrot.slane %v11411_v39, 7  ;;  %vm11447_vm12 = vcmp.ne.s32.totalorder %v2001_v26, 0 }
 0x11c   : > { %v2582_v52 = vand.u32 31, %v1704_v23  ;;  %v5017_v33 = vrot.slane %v5015_v42, 1  ;;  %v11458_v51 = vsel %vm5464_vm5, %v5578_v27, %v11422_v37  ;;  %v2050_v22 = vand.u32 31, %v1628_v47 }
 0x11d   : > { %14203 = vst [vmem:[#allocation73_spill] sm:$0xff] %v11458_v51  ;;  %v1266_v29 = vshrl.u32 %v9812_v24, 16  ;;  %v1269_v26 = vshll.u32 %v9812_v24, 16  ;;  %v11463_v39 = vsel %vm5602_vm6, %v3882_v48, %v5374_v55  ;;  %v4555_v23 = vsel %vm1574_vm1, %v10375_v50, %v4554_v30 }
 0x11e   : > { %6637 = vmatmul.mubr.bf16.gmra.mxu1 %v11386_v31  ;;  %14204 = vst [vmem:[#allocation74_spill] sm:$0xff] %v11463_v39  ;;  %v3815_v14 = vpack.c.bf16 %v14098_v4, %v9248_v63  ;;  %v5018_v42 = vsel %vm4710_vm2, %v5013_v57, %v5017_v33  ;;  %v11471_v27 = vsel %vm5464_vm5, %v5502_v8, %v11439_v13  ;;  %v9229_v24 = vsel %vm11447_vm12, 1.0, %v14096_v2 }
 0x11f   : > { %9355 = vmatprep.mubr.msk.bf16.mxu1 %vm5602_vm6, %v11420_v34  ;;  %14205 = vst [vmem:[#allocation75_spill] sm:$0xff] %v11471_v27  ;;  %v11474_v47 = vsel %vm5602_vm6, %v3844_v62, %v5298_v19  ;;  %5333 = vrot.lane.b32.xlu1 %v5018_v42, %s9863_s21  ;;  %v1268_v48 = vrot.slane %v1266_v29, 7  ;;  %v4479_v55 = vsel %vm1574_vm1, %v10375_v50, %v4478_v1  ;;  %vm4016_vm13 = vcmp.ne.s32.totalorder %v2582_v52, 31  ;;  %v14207_v34 = vld [vmem:[#allocation24_spill] sm:$0xff] }
 0x120   : > { %14206 = vst [vmem:[#allocation76_spill] sm:$0xff] %v11474_v47  ;;  %v5019_v63 = vshrl.u32 %v11416_v41, 16  ;;  %v1274_v57 = vshrl.u32 %v9815_v28, 16  ;;  %v4700_v8 = vmul.bf16 %v4555_v23, %v14207_v34  ;;  %v4557_v62 = vsel %vm1574_vm1, %v4554_v30, %v10375_v50 }
 0x121   : > { %6333 = vmatmul.mubr.bf16.gmra.mxu0 %v11347_v40  ;;  %vm3940_vm14 = vcmp.ne.s32.totalorder %v2050_v22, 31  ;;  %v1271_v19 = vor.u32 %v1269_v26, %v1268_v48  ;;  %v3883_v25 = vmul.bf16 %v3815_v14, %v14194_v59  ;;  %v3777_v31 = vpack.c.bf16 %v14098_v4, %v9229_v24  ;;  %v14208_v40 = vld [vmem:[#allocation13_spill] sm:$0xff] }
 0x122   : > { %9317 = vmatprep.mubr.msk.bf16.mxu0 %vm5602_vm6, %v11437_v45  ;;  %v11488_v42 = vrot.slane %v1274_v57, 7  ;;  %v1277_v29 = vshll.u32 %v9815_v28, 16  ;;  %v5376_v45 = vpop.permute.xlu0 %5375  ;;  %v4662_v52 = vmul.bf16 %v4479_v55, %v14208_v40  ;;  %v3884_v44 = vmul.bf16 1.0|1.0, %v14207_v34 }
 0x123   : > { %v9283_v15 = vsel %vm4016_vm13, 1.0, %v14096_v2  ;;  %v11495_v23 = vsel %vm631_vm0, %v11373_v18, %v1271_v19  ;;  %v1701_v59 = vadd.s32 960, %v9954_v5  ;;  %v9264_v30 = vsel %vm3940_vm14, 1.0, %v14096_v2 }
 0x124   : > { %v5021_v22 = vor.u32 %v5019_v63, %v5017_v33  ;;  %v5023_v28 = vshll.u32 %v11495_v23, 16  ;;  %v5582_v34 = vrot.slane %v4700_v8, 1  ;;  %v4701_v26 = vmul.bf16 %v4557_v62, %v10480_v38 }
 0x125   : > { %v1279_v18 = vor.u32 %v1277_v29, %v11488_v42  ;;  %v5027_v14 = vshrl.u32 %v11495_v23, 16  ;;  %v11510_v24 = vsel %vm5602_vm6, %v3883_v25, %v5376_v45  ;;  %v3845_v33 = vmul.bf16 %v3777_v31, %v14196_v54 }
 0x126   : > { %6645 = vmatmul.mubr.bf16.gmra.mxu1 %v11399_v61  ;;  %14209 = vst [vmem:[#allocation24_spill] sm:$0xff] %v11510_v24  ;;  %v11514_v55 = vpack.c.bf16 %v9283_v15, %v14098_v4  ;;  %v5025_v63 = vrot.slane %v5023_v28, 1  ;;  %v5506_v57 = vrot.slane %v4662_v52, 1  ;;  %v4481_v8 = vsel %vm1574_vm1, %v4478_v1, %v10375_v50  ;;  %v5378_v25 = vpop.permute.xlu0 %5377 }
 0x127   : > { %9356 = vmatprep.mubr.msk.bf16.mxu1 %vm5602_vm6, %v11458_v51  ;;  %v11519_v62 = vpack.c.bf16 %v9264_v30, %v14098_v4  ;;  %v11522_v19 = vsel %vm631_vm0, %v1268_v48, %v1279_v18  ;;  %v2561_v29 = vand.u32 31, %v1701_v59  ;;  %v1625_v45 = vadd.s32 352, %v9954_v5  ;;  %v9818_v59 = vld [vmem:[%s9951_s16 + $0x138] sm:$0xff]  }
 0x128   : > { %v1708_v31 = vadd.s32 1016, %v9954_v5  ;;  %v5026_v15 = vsel %vm4710_vm2, %v5021_v22, %v5025_v63  ;;  %v11529_v54 = vsel %vm5464_vm5, %v11422_v37, %v5582_v34  ;;  %v11531_v1 = vrot.slane %v4701_v26, 1  ;;  %v14211_v30 = vld [vmem:[#allocation14_spill] sm:$0xff] }
 0x129   : > { %6341 = vmatmul.mubr.bf16.gmra.mxu0 %v11432_v43  ;;  %14210 = vst [vmem:[#allocation13_spill] sm:$0xff] %v11529_v54  ;;  %5335 = vrot.lane.b32.xlu1 %v5026_v15, %s9863_s21  ;;  %v5029_v52 = vor.u32 %v5027_v14, %v5025_v63  ;;  %v5031_v48 = vshll.u32 %v11522_v19, 16  ;;  %v4663_v28 = vmul.bf16 %v4481_v8, %v14211_v30  ;;  %v3846_v18 = vmul.bf16 1.0|1.0, %v14208_v40  ;;  %v5302_v14 = vpop.permute.xlu1 %5301  ;;  %v9819_v8 = vld [vmem:[%s9951_s16 + $0x140] sm:$0xff]  }
 0x12a   : > { %9318 = vmatprep.mubr.msk.bf16.mxu0 %vm5602_vm6, %v11471_v27  ;;  %v4558_v22 = vrot.slane %v11514_v55, 7  ;;  %v1632_v51 = vadd.s32 408, %v9954_v5  ;;  %v11542_v37 = vsel %vm5464_vm5, %v11439_v13, %v5506_v57  ;;  %v11546_v26 = vsel %vm5602_vm6, %v3845_v33, %v10711_v60 }
 0x12b   : > { %14212 = vst [vmem:[#allocation14_spill] sm:$0xff] %v11542_v37  ;;  %v4482_v63 = vrot.slane %v11519_v62, 7  ;;  %v5033_v15 = vrot.slane %v5031_v48, 1  ;;  %v11552_v40 = vsel %vm5602_vm6, %v3884_v44, %v5378_v25  ;;  %vm11554_vm15 = vcmp.ne.s32.totalorder %v2561_v29, 0  ;;  %v9820_v25 = vld [vmem:[%s9951_s16 + $0x148] sm:$0xff]  }
 0x12c   : > { %14213 = vst [vmem:[#allocation77_spill] sm:$0xff] %v11552_v40  ;;  %v2029_v13 = vand.u32 31, %v1625_v45  ;;  %v2610_v61 = vand.u32 31, %v1708_v31  ;;  %v11563_v60 = vsel %vm5464_vm5, %v5582_v34, %v11531_v1  ;;  %v1282_v62 = vshrl.u32 %v9818_v59, 16 }
 0x12d   : > { %14216 = vst [vmem:[#allocation78_spill] sm:$0xff] %v11563_v60  ;;  %v5034_v33 = vsel %vm4710_vm2, %v5029_v52, %v5033_v15  ;;  %v1285_v44 = vshll.u32 %v9818_v59, 16  ;;  %v5508_v29 = vrot.slane %v4663_v28, 1  ;;  %v11570_v45 = vsel %vm5602_vm6, %v3846_v18, %v5302_v14 }
 0x12e   : > { %6653 = vmatmul.mubr.bf16.gmra.mxu1 %v11463_v39  ;;  %14217 = vst [vmem:[#allocation79_spill] sm:$0xff] %v11570_v45  ;;  %v4559_v31 = vsel %vm1574_vm1, %v10375_v50, %v4558_v22  ;;  %v2078_v48 = vand.u32 31, %v1632_v51  ;;  %5337 = vrot.lane.b32.xlu1 %v5034_v33, %s9863_s21  ;;  %v9249_v34 = vsel %vm11554_vm15, 1.0, %v14096_v2  ;;  %v4483_v52 = vsel %vm1574_vm1, %v10375_v50, %v4482_v63 }
 0x12f   : > { %9357 = vmatprep.mubr.msk.bf16.mxu1 %vm5602_vm6, %v11529_v54  ;;  %v1284_v59 = vrot.slane %v1282_v62, 7  ;;  %v1290_v54 = vshrl.u32 %v9819_v8, 16  ;;  %vm11580_vm4 = vcmp.ne.s32.totalorder %v2029_v13, 0  ;;  %vm4020_vm7 = vcmp.ne.s32.totalorder %v2610_v61, 31  ;;  %v14221_v62 = vld [vmem:[#allocation15_spill] sm:$0xff] }
 0x130   : > { %v5035_v18 = vshrl.u32 %v11522_v19, 16  ;;  %v1293_v14 = vshll.u32 %v9819_v8, 16  ;;  %v4702_v51 = vmul.bf16 %v4559_v31, %v10524_v12  ;;  %v11587_v55 = vsel %vm5464_vm5, %v5506_v57, %v5508_v29 }
 0x131   : > { %6349 = vmatmul.mubr.bf16.gmra.mxu0 %v11474_v47  ;;  %v1287_v33 = vor.u32 %v1285_v44, %v1284_v59  ;;  %v1292_v39 = vrot.slane %v1290_v54, 7  ;;  %14220 = vst [vmem:[#allocation80_spill] sm:$0xff] %v11587_v55  ;;  %v11590_v47 = vpack.c.bf16 %v14098_v4, %v9249_v34  ;;  %v4664_v13 = vmul.bf16 %v4483_v52, %v14221_v62 }
 0x132   : > { %9319 = vmatprep.mubr.msk.bf16.mxu0 %vm5602_vm6, %v11542_v37  ;;  %v1298_v37 = vshrl.u32 %v9820_v25, 16  ;;  %vm3944_vm8 = vcmp.ne.s32.totalorder %v2078_v48, 31  ;;  %v9284_v27 = vsel %vm4020_vm7, 1.0, %v14096_v2  ;;  %v1301_v31 = vshll.u32 %v9820_v25, 16 }
 0x133   : > { %v11596_v61 = vsel %vm631_vm0, %v11488_v42, %v1287_v33  ;;  %v1295_v8 = vor.u32 %v1293_v14, %v1292_v39  ;;  %v9230_v57 = vsel %vm11580_vm4, 1.0, %v14096_v2  ;;  %v5037_v54 = vor.u32 %v5035_v18, %v5033_v15 }
 0x134   : > { %v5039_v44 = vshll.u32 %v11596_v61, 16  ;;  %v5043_v34 = vshrl.u32 %v11596_v61, 16  ;;  %v5586_v42 = vrot.slane %v4702_v51, 1  ;;  %v9265_v48 = vsel %vm3944_vm8, 1.0, %v14096_v2  ;;  %v9822_v51 = vld [vmem:[%s13807_s3 + $0xf0] sm:$0xff]  }
 0x135   : > { %v11609_v25 = vsel %vm631_vm0, %v1284_v59, %v1295_v8  ;;  %v1300_v52 = vrot.slane %v1298_v37, 7  ;;  %v4561_v15 = vsel %vm1574_vm1, %v4558_v22, %v10375_v50  ;;  %v11616_v28 = vpack.c.bf16 %v9284_v27, %v14098_v4  ;;  %7725 = vmatpush1.bf16.msra.mxu0 %v9822_v51 }
 0x136   : > { %6661 = vmatmul.mubr.bf16.gmra.mxu1 %v11510_v24  ;;  %v5041_v18 = vrot.slane %v5039_v44, 1  ;;  %v5047_v14 = vshll.u32 %v11609_v25, 16  ;;  %v5510_v33 = vrot.slane %v4664_v13, 1  ;;  %v4485_v37 = vsel %vm1574_vm1, %v4482_v63, %v10375_v50  ;;  %v14223_v13 = vld [vmem:[#allocation28_spill] sm:$0xff]  ;;  %7726 = vmatprep.subr.bf16.mxu0 %v14089_v36 }
 0x137   : > { %9358 = vmatprep.mubr.msk.bf16.mxu1 %vm5602_vm6, %v11563_v60  ;;  %v1303_v59 = vor.u32 %v1301_v31, %v1300_v52  ;;  %v5051_v8 = vshrl.u32 %v11609_v25, 16  ;;  %v3779_v60 = vpack.c.bf16 %v14098_v4, %v9230_v57  ;;  %v11627_v22 = vpack.c.bf16 %v9265_v48, %v14098_v4  ;;  %v14224_v57 = vld [vmem:[#allocation16_spill] sm:$0xff] }
 0x138   : > { %v5042_v27 = vsel %vm4710_vm2, %v5037_v54, %v5041_v18  ;;  %v5045_v44 = vor.u32 %v5043_v34, %v5041_v18  ;;  %v11632_v24 = vsel %vm5464_vm5, %v11531_v1, %v5586_v42  ;;  %v5049_v63 = vrot.slane %v5047_v14, 1 }
 0x139   : > { %6357 = vmatmul.mubr.bf16.gmra.mxu0 %v11546_v26  ;;  %14222 = vst [vmem:[#allocation15_spill] sm:$0xff] %v11632_v24  ;;  %5339 = vrot.lane.b32.xlu1 %v5042_v27, %s9863_s21  ;;  %v11637_v31 = vsel %vm631_vm0, %v1292_v39, %v1303_v59  ;;  %v4665_v48 = vmul.bf16 %v4485_v37, %v14224_v57  ;;  %v4562_v54 = vrot.slane %v11616_v28, 7  ;;  %v1636_v34 = vadd.s32 440, %v9954_v5  ;;  %v5380_v27 = vpop.permute.xlu0 %5379 }
 0x13a   : > { %9320 = vmatprep.mubr.msk.bf16.mxu0 %vm5602_vm6, %v11587_v55  ;;  %v4703_v55 = vmul.bf16 %v4561_v15, %v14223_v13  ;;  %v5055_v1 = vshll.u32 %v11637_v31, 16  ;;  %v11645_v18 = vsel %vm5464_vm5, %v5508_v29, %v5510_v33  ;;  %v1705_v15 = vadd.s32 992, %v9954_v5 }
 0x13b   : > { %14225 = vst [vmem:[#allocation28_spill] sm:$0xff] %v11645_v18  ;;  %v5050_v14 = vsel %vm4710_vm2, %v5045_v44, %v5049_v63  ;;  %v5053_v39 = vor.u32 %v5051_v8, %v5049_v63  ;;  %v3885_v51 = vmul.bf16 %v11590_v47, %v10480_v38  ;;  %v4486_v28 = vrot.slane %v11627_v22, 7  ;;  %v9834_v8 = vld [vmem:[%s9951_s16 + $0x150] sm:$0xff]  }
 0x13c   : > { %v1629_v37 = vadd.s32 384, %v9954_v5  ;;  %v5057_v59 = vrot.slane %v5055_v1, 1  ;;  %v3847_v29 = vmul.bf16 %v3779_v60, %v14211_v30  ;;  %v5588_v44 = vrot.slane %v4703_v55, 1 }
 0x13d   : > { %v1309_v63 = vshll.u32 %v9834_v8, 16  ;;  %v4563_v38 = vsel %vm1574_vm1, %v10375_v50, %v4562_v54  ;;  %v2106_v47 = vand.u32 31, %v1636_v34  ;;  %5341 = vrot.lane.b32.xlu1 %v5050_v14, %s9863_s21  ;;  %v5059_v22 = vshrl.u32 %v11637_v31, 16 }
 0x13e   : > { %6669 = vmatmul.mubr.bf16.gmra.mxu1 %v11552_v40  ;;  %v5512_v1 = vrot.slane %v4665_v48, 1  ;;  %v2589_v40 = vand.u32 31, %v1705_v15  ;;  %v11668_v60 = vsel %vm5602_vm6, %v3885_v51, %v5380_v27  ;;  %v4487_v55 = vsel %vm1574_vm1, %v10375_v50, %v4486_v28  ;;  %v14230_v48 = vld [vmem:[#allocation33_spill] sm:$0xff] }
 0x13f   : > { %9359 = vmatprep.mubr.msk.bf16.mxu1 %vm5602_vm6, %v11632_v24  ;;  %v5058_v24 = vsel %vm4710_vm2, %v5053_v39, %v5057_v59  ;;  %14227 = vst [vmem:[#allocation16_spill] sm:$0xff] %v11668_v60  ;;  %v2057_v8 = vand.u32 31, %v1629_v37  ;;  %v11677_v14 = vsel %vm5464_vm5, %v5586_v42, %v5588_v44  ;;  %v4704_v15 = vmul.bf16 %v4563_v38, %v14230_v48 }
 0x140   : > { %vm3948_vm9 = vcmp.ne.s32.totalorder %v2106_v47, 31  ;;  %v11687_v27 = vsel %vm5464_vm5, %v5510_v33, %v5512_v1  ;;  %vm3473_vm10 = vcmp.ne.s32.totalorder %v2589_v40, 0  ;;  %v5382_v33 = vpop.permute.xlu0 %5381 }
 0x141   : > { %6365 = vmatmul.mubr.bf16.gmra.mxu0 %v11570_v45  ;;  %v14226_v45 = vld [vmem:[#allocation17_spill] sm:$0xff]  ;;  %5343 = vrot.lane.b32.xlu1 %v5058_v24, %s9863_s21  ;;  %vm3397_vm11 = vcmp.ne.s32.totalorder %v2057_v8, 0  ;;  %v3886_v24 = vmul.bf16 1.0|1.0, %v10524_v12  ;;  %v5590_v40 = vrot.slane %v4704_v15, 1  ;;  %v9250_v38 = vsel %vm3473_vm10, 1.0, %v14096_v2 }
 0x142   : > { %9321 = vmatprep.mubr.msk.bf16.mxu0 %vm5602_vm6, %v11645_v18  ;;  %v1311_v30 = vor.u32 %v1309_v63, %v14226_v45  ;;  %v14228_v18 = vld [vmem:[#allocation44_spill] sm:$0xff]  ;;  %14229 = vst [vmem:[#allocation17_spill] sm:$0xff] %v11677_v14  ;;  %v5061_v45 = vor.u32 %v5059_v22, %v5057_v59  ;;  %v9266_v59 = vsel %vm3948_vm9, 1.0, %v14096_v2  ;;  %v5306_v63 = vpop.permute.xlu1 %5305  ;;  %v4565_v12 = vsel %vm1574_vm1, %v4562_v54, %v10375_v50 }
 0x143   : > { %v11674_v34 = vsel %vm5602_vm6, %v3847_v29, %v14228_v18  ;;  %v14231_v18 = vld [vmem:[#allocation18_spill] sm:$0xff]  ;;  %v4328_v8 = vpack.c.bf16 %v9266_v59, %v14098_v4  ;;  %v11718_v54 = vsel %vm5464_vm5, %v5588_v44, %v5590_v40  ;;  %v1640_v59 = vadd.s32 472, %v9954_v5 }
 0x144   : > { %v11681_v39 = vsel %vm631_vm0, %v1300_v52, %v1311_v30  ;;  %v4666_v42 = vmul.bf16 %v4487_v55, %v14231_v18  ;;  %v3848_v52 = vmul.bf16 1.0|1.0, %v14221_v62  ;;  %v9231_v55 = vsel %vm3397_vm11, 1.0, %v14096_v2  ;;  %14234 = vst [vmem:[#allocation33_spill] sm:$0xff] %v11718_v54 }
 0x145   : > { %v5063_v51 = vshll.u32 %v11681_v39, 16  ;;  %v5067_v37 = vshrl.u32 %v11681_v39, 16  ;;  %v4489_v62 = vsel %vm1574_vm1, %v4486_v28, %v10375_v50 }
 0x146   : > { %6677 = vmatmul.mubr.bf16.gmra.mxu1 %v11668_v60  ;;  %v5514_v30 = vrot.slane %v4666_v42, 1  ;;  %v3781_v42 = vpack.c.bf16 %v14098_v4, %v9231_v55  ;;  %v2134_v55 = vand.u32 31, %v1640_v59  ;;  %v1660_v59 = vadd.s32 632, %v9954_v5 }
 0x147   : > { %v5065_v29 = vrot.slane %v5063_v51, 1  ;;  %9360 = vmatprep.mubr.msk.bf16.mxu1 %vm5602_vm6, %v11677_v14  ;;  %v14232_v51 = vld [vmem:[#allocation19_spill] sm:$0xff]  ;;  %v11711_v14 = vsel %vm5602_vm6, %v3886_v24, %v5382_v33  ;;  %v1633_v33 = vadd.s32 416, %v9954_v5 }
 0x148   : > { %14233 = vst [vmem:[#allocation44_spill] sm:$0xff] %v11711_v14  ;;  %vm3952_vm12 = vcmp.ne.s32.totalorder %v2134_v55, 31 }
 0x149   : > { %6373 = vmatmul.mubr.bf16.gmra.mxu0 %v11674_v34  ;;  %v5066_v47 = vsel %vm4710_vm2, %v5061_v45, %v5065_v29  ;;  %v5069_v22 = vor.u32 %v5067_v37, %v5065_v29  ;;  %v11714_v45 = vsel %vm5602_vm6, %v3848_v52, %v5306_v63  ;;  %v3819_v37 = vpack.c.bf16 %v14098_v4, %v9250_v38  ;;  %v14235_v29 = vld [vmem:[#allocation35_spill] sm:$0xff]  ;;  %v5384_v63 = vpop.permute.xlu0 %5383 }
 0x14a   : > { %9322 = vmatprep.mubr.msk.bf16.mxu0 %vm5602_vm6, %v11687_v27  ;;  %5345 = vrot.lane.b32.xlu1 %v5066_v47, %s9863_s21  ;;  %v4705_v28 = vmul.bf16 %v4565_v12, %v14235_v29  ;;  %v11724_v47 = vsel %vm5464_vm5, %v5512_v1, %v5514_v30  ;;  %v4490_v52 = vrot.slane %v4328_v8, 7  ;;  %v3849_v1 = vmul.bf16 %v3781_v42, %v14224_v57  ;;  %v14243_v42 = vld [vmem:[#allocation20_spill] sm:$0xff] }
 0x14b   : > { %v5074_v15 = vsel %vm4710_vm2, %v5069_v22, %v14232_v51  ;;  %v14236_v22 = vld [vmem:[#allocation39_spill] sm:$0xff]  ;;  %v3887_v44 = vmul.bf16 %v3819_v37, %v14223_v13  ;;  %v2085_v8 = vand.u32 31, %v1633_v33  ;;  %v9267_v33 = vsel %vm3952_vm12, 1.0, %v14096_v2 }
 0x14c   : > { %v4667_v24 = vmul.bf16 %v4489_v62, %v14236_v22  ;;  %v11737_v38 = vrot.slane %v4705_v28, 1  ;;  %v4491_v62 = vsel %vm1574_vm1, %v10375_v50, %v4490_v52 }
 0x14d   : > { %v11742_v51 = vsel %vm5602_vm6, %v3887_v44, %v5384_v63  ;;  %v4668_v28 = vmul.bf16 %v4491_v62, %v14243_v42  ;;  %vm3401_vm13 = vcmp.ne.s32.totalorder %v2085_v8, 0  ;;  %v5386_v44 = vpop.permute.xlu0 %5385  ;;  %v3850_v63 = vmul.bf16 1.0|1.0, %v14231_v18  ;;  %v5310_v62 = vpop.permute.xlu1 %5309 }
 0x14e   : > { %5347 = vrot.lane.b32.xlu1 %v5074_v15, %s9863_s21  ;;  %6685 = vmatmul.mubr.bf16.gmra.mxu1 %v11711_v14  ;;  %14237 = vst [vmem:[#allocation18_spill] sm:$0xff] %v11737_v38  ;;  %v5516_v12 = vrot.slane %v4667_v24, 1  ;;  %14238 = vst [vmem:[#allocation19_spill] sm:$0xff] %v11742_v51  ;;  %v14239_v15 = vld [vmem:[#allocation5_spill] sm:$0xff]  ;;  %v11750_v37 = vsel %vm5464_vm5, %v5590_v40, %v11737_v38  ;;  %v3888_v40 = vmul.bf16 1.0|1.0, %v14230_v48 }
 0x14f   : > { %9361 = vmatprep.mubr.msk.bf16.mxu1 %vm5602_vm6, %v11718_v54  ;;  %v11746_v13 = vsel %vm5602_vm6, %v3849_v1, %v14239_v15  ;;  %14241 = vst [vmem:[#allocation5_spill] sm:$0xff] %v11750_v37  ;;  %v2274_v1 = vand.u32 31, %v1660_v59  ;;  %v5518_v8 = vrot.slane %v4668_v28, 1  ;;  %v9232_v15 = vsel %vm3401_vm13, 1.0, %v14096_v2 }
 0x150   : > { %14240 = vst [vmem:[#allocation39_spill] sm:$0xff] %v11746_v13  ;;  %v11753_v57 = vsel %vm5464_vm5, %v5514_v30, %v5516_v12  ;;  %v9823_v30 = vld [vmem:[%s13807_s3 + $0xe8] sm:$0xff]   ;;  %v4493_v48 = vsel %vm1574_vm1, %v4490_v52, %v10375_v50  ;;  %v11775_v38 = vpack.c.bf16 %v9267_v33, %v14098_v4  ;;  %v11781_v18 = vsel %vm5602_vm6, %v3888_v40, %v5386_v44  ;;  %v9824_v44 = vld [vmem:[%s13807_s3 + $0xe0] sm:$0xff]  }
 0x151   : > { %6381 = vmatmul.mubr.bf16.gmra.mxu0 %v11714_v45  ;;  %14242 = vst [vmem:[#allocation81_spill] sm:$0xff] %v11753_v57  ;;  %vm3972_vm14 = vcmp.ne.s32.totalorder %v2274_v1, 31  ;;  %14246 = vst [vmem:[#allocation83_spill] sm:$0xff] %v11781_v18  ;;  %v1637_v59 = vadd.s32 448, %v9954_v5  ;;  %v1664_v28 = vadd.s32 664, %v9954_v5  ;;  %v3783_v52 = vpack.c.bf16 %v14098_v4, %v9232_v15  ;;  %v5312_v60 = vpop.permute.xlu1 %5311 }
 0x152   : > { %9323 = vmatprep.mubr.msk.bf16.mxu0 %vm5602_vm6, %v11724_v47  ;;  %7727 = vmatpush1.bf16.msra.mxu0 %v9823_v30  ;;  %v4669_v33 = vmul.bf16 %v4493_v48, %v10755_v0  ;;  %v1644_v30 = vadd.s32 504, %v9954_v5  ;;  %v9272_v40 = vsel %vm3972_vm14, 1.0, %v14096_v2  ;;  %v14250_v48 = vld [vmem:[#allocation27_spill] sm:$0xff] }
 0x153   : > { %7728 = vmatprep.subr.bf16.mxu0 %v14089_v36  ;;  %v3851_v54 = vmul.bf16 %v3783_v52, %v14236_v22 }
 0x154   : > { %v11809_v14 = vrot.slane %v4669_v33, 1 }
 0x156   : > { %6693 = vmatmul.mubr.bf16.gmra.mxu1 %v11742_v51  ;;  %v11792_v51 = vsel %vm5464_vm5, %v5516_v12, %v5518_v8  ;;  %v2113_v12 = vand.u32 31, %v1637_v59  ;;  %7729 = vmatpush1.bf16.msra.mxu0 %v9824_v44  ;;  %v9825_v59 = vld [vmem:[%s13807_s3 + $0xd8] sm:$0xff]   ;;  %v9827_v44 = vld [vmem:[%s13807_s3 + $0xc8] sm:$0xff]  }
 0x157   : > { %9362 = vmatprep.mubr.msk.bf16.mxu1 %vm5602_vm6, %v11750_v37  ;;  %14248 = vst [vmem:[#allocation85_spill] sm:$0xff] %v11792_v51  ;;  %7730 = vmatprep.subr.bf16.mxu0 %v14089_v36 }
 0x158   : > { %vm11824_vm4 = vcmp.ne.s32.totalorder %v2113_v12, 0  ;;  %v1668_v12 = vadd.s32 696, %v9954_v5 }
 0x159   : > { %v11758_v24 = vpop.f32.mrf.mxu0  ;;  %6389 = vmatmul.mubr.bf16.gmra.mxu0 %v11746_v13 }
 0x15a   : > { %14244 = vst [vmem:[#allocation20_spill] sm:$0xff] %v11758_v24  ;;  %9324 = vmatprep.mubr.msk.bf16.mxu0 %vm5602_vm6, %v11753_v57  ;;  %7731 = vmatpush1.bf16.msra.mxu0 %v9825_v59  ;;  %v14260_v59 = vld [vmem:[#allocation30_spill] sm:$0xff] }
 0x15b   : > { %v6200_v55 = vpop.f32.mrf.mxu0  ;;  %7732 = vmatprep.subr.bf16.mxu0 %v14089_v36 }
 0x15c   : > { %v11786_v55 = vsel %vm5602_vm6, %v3850_v63, %v5310_v62  ;;  %v4494_v63 = vrot.slane %v11775_v38, 7  ;;  %v4340_v62 = vpack.c.bf16 %v9272_v40, %v14098_v4 }
 0x15d   : > { %v11778_v37 = vpop.f32.mrf.mxu0  ;;  %14247 = vst [vmem:[#allocation84_spill] sm:$0xff] %v11786_v55 }
 0x15e   : > { %14245 = vst [vmem:[#allocation82_spill] sm:$0xff] %v11778_v37  ;;  %6701 = vmatmul.mubr.bf16.gmra.mxu1 %v11781_v18  ;;  %v2162_v18 = vand.u32 31, %v1644_v30  ;;  %v4514_v38 = vrot.slane %v4340_v62, 7 }
 0x15f   : > { %v6203_v1 = vpop.f32.mrf.mxu0  ;;  %9400 = vmatprep.mubr.msk.bf16.mxu1 %vm5602_vm6, %v14250_v48 }
 0x160   : > { %v2302_v1 = vand.u32 31, %v1664_v28  ;;  %v4495_v28 = vsel %vm1574_vm1, %v10375_v50, %v4494_v63  ;;  %v4515_v22 = vsel %vm1574_vm1, %v10375_v50, %v4514_v38  ;;  %v4517_v52 = vsel %vm1574_vm1, %v4514_v38, %v10375_v50 }
 0x161   : > { %v11801_v15 = vpop.f32.mrf.mxu0  ;;  %6397 = vmatmul.mubr.bf16.gmra.mxu0 %v11786_v55  ;;  %v4680_v62 = vmul.bf16 %v4515_v22, %v11495_v23  ;;  %v4681_v48 = vmul.bf16 %v4517_v52, %v11522_v19  ;;  %v11836_v38 = vsel %vm5464_vm5, %v5518_v8, %v11809_v14  ;;  %vm11838_vm7 = vcmp.ne.s32.totalorder %v2162_v18, 31 }
 0x162   : > { %14249 = vst [vmem:[#allocation86_spill] sm:$0xff] %v11801_v15  ;;  %9325 = vmatprep.mubr.msk.bf16.mxu0 %vm5602_vm6, %v11792_v51  ;;  %vm3976_vm15 = vcmp.ne.s32.totalorder %v2302_v1, 31  ;;  %14255 = vst [vmem:[#allocation88_spill] sm:$0xff] %v11836_v38  ;;  %v4670_v22 = vmul.bf16 %v4495_v28, %v10852_v11  ;;  %v2330_v8 = vand.u32 31, %v1668_v12  ;;  %v3852_v28 = vmul.bf16 1.0|1.0, %v14243_v42 }
 0x163   : > { %v6208_v40 = vpop.f32.mrf.mxu0  ;;  %v9273_v33 = vsel %vm3976_vm15, 1.0, %v14096_v2  ;;  %v11844_v52 = vrot.slane %v4680_v62, 1 }
 0x164   : > { %v4342_v1 = vpack.c.bf16 %v9273_v33, %v14098_v4  ;;  %v11832_v40 = vsel %vm5602_vm6, %v3851_v54, %v5312_v60  ;;  %v5544_v33 = vrot.slane %v4681_v48, 1  ;;  %v9826_v60 = vld [vmem:[%s13807_s3 + $0xd0] sm:$0xff]   ;;  %vm3980_vm8 = vcmp.ne.s32.totalorder %v2330_v8, 31 }
 0x165   : > { %v11822_v30 = vpop.f32.mrf.mxu0  ;;  %14254 = vst [vmem:[#allocation87_spill] sm:$0xff] %v11832_v40  ;;  %v14258_v54 = vld [vmem:[#allocation29_spill] sm:$0xff]  ;;  %7733 = vmatpush1.bf16.msra.mxu0 %v9826_v60  ;;  %v9274_v37 = vsel %vm3980_vm8, 1.0, %v14096_v2 }
 0x166   : > { %14251 = vst [vmem:[#allocation27_spill] sm:$0xff] %v11822_v30  ;;  %v4518_v15 = vrot.slane %v4342_v1, 7  ;;  %6979 = vmatmul.mubr.bf16.vlgmr.msra.gmra.mxu1 %v14258_v54  ;;  %v11862_v62 = vsel %vm5464_vm5, %v11844_v52, %v5544_v33  ;;  %v9233_v1 = vsel %vm11824_vm4, 1.0, %v14096_v2  ;;  %v5314_v54 = vpop.permute.xlu1 %5313  ;;  %7734 = vmatprep.subr.bf16.mxu0 %v14089_v36  ;;  %v4344_v8 = vpack.c.bf16 %v9274_v37, %v14098_v4 }
 0x167   : > { %v6211_v30 = vpop.f32.mrf.mxu0  ;;  %9401 = vmatprep.mubr.msk.bf16.mxu1 %vm5602_vm6, %v14260_v59  ;;  %14261 = vst [vmem:[#allocation30_spill] sm:$0xff] %v11862_v62  ;;  %v5522_v59 = vrot.slane %v4670_v22, 1 }
 0x168   : > { %v9268_v30 = vsel %vm11838_vm7, 1.0, %v14096_v2  ;;  %v4519_v48 = vsel %vm1574_vm1, %v10375_v50, %v4518_v15  ;;  %v4521_v29 = vsel %vm1574_vm1, %v4518_v15, %v10375_v50 }
 0x169   : > { %v11851_v18 = vpop.f32.mrf.mxu0  ;;  %6405 = vmatmul.mubr.bf16.gmra.mxu0 %v11832_v40  ;;  %v4682_v42 = vmul.bf16 %v4519_v48, %v11596_v61  ;;  %v4497_v48 = vsel %vm1574_vm1, %v4494_v63, %v10375_v50  ;;  %v11883_v15 = vpack.c.bf16 %v9268_v30, %v14098_v4  ;;  %v1648_v40 = vadd.s32 536, %v9954_v5 }
 0x16a   : > { %14259 = vst [vmem:[#allocation29_spill] sm:$0xff] %v11851_v18  ;;  %9326 = vmatprep.mubr.msk.bf16.mxu0 %vm5602_vm6, %v11836_v38  ;;  %v4683_v18 = vmul.bf16 %v4521_v29, %v11609_v25  ;;  %v3785_v29 = vpack.c.bf16 %v14098_v4, %v9233_v1  ;;  %v11890_v38 = vsel %vm5602_vm6, %v3852_v28, %v5314_v54  ;;  %v4522_v63 = vrot.slane %v4344_v8, 7 }
 0x16b   : > { %v6216_v12 = vpop.f32.mrf.mxu0  ;;  %v5546_v60 = vrot.slane %v4682_v42, 1  ;;  %14263 = vst [vmem:[#allocation90_spill] sm:$0xff] %v11890_v38  ;;  %7735 = vmatpush1.bf16.msra.mxu0 %v9827_v44  ;;  %v11898_v42 = vsel %vm5464_vm5, %v11809_v14, %v5522_v59  ;;  %v4671_v37 = vmul.bf16 %v4497_v48, %v10923_v17  ;;  %v1641_v28 = vadd.s32 480, %v9954_v5 }
 0x16c   : > { %v5548_v12 = vrot.slane %v4683_v18, 1  ;;  %14264 = vst [vmem:[#allocation91_spill] sm:$0xff] %v11898_v42  ;;  %7736 = vmatprep.subr.bf16.mxu0 %v14089_v36  ;;  %v9828_v18 = vld [vmem:[%s13807_s3 + $0xc0] sm:$0xff]   ;;  %v4498_v54 = vrot.slane %v11883_v15, 7  ;;  %v4523_v14 = vsel %vm1574_vm1, %v10375_v50, %v4522_v63  ;;  %v4525_v44 = vsel %vm1574_vm1, %v4522_v63, %v10375_v50  ;;  %v5316_v63 = vpop.permute.xlu1 %5315 }
 0x16d   : > { %v11886_v22 = vpop.f32.mrf.mxu0  ;;  %v11894_v24 = vsel %vm5464_vm5, %v5544_v33, %v5546_v60  ;;  %v14266_v33 = vld [vmem:[#allocation32_spill] sm:$0xff]  ;;  %v4684_v8 = vmul.bf16 %v4523_v14, %v11637_v31  ;;  %v2190_v15 = vand.u32 31, %v1648_v40  ;;  %v5524_v51 = vrot.slane %v4671_v37, 1  ;;  %v9829_v14 = vld [vmem:[%s13807_s3 + $0x118] sm:$0xff]  }
 0x16e   : > { %14262 = vst [vmem:[#allocation89_spill] sm:$0xff] %v11886_v22  ;;  %v11902_v1 = vsel %vm5464_vm5, %v5546_v60, %v5548_v12  ;;  %6987 = vmatmul.mubr.bf16.gmra.mxu1 %v14266_v33  ;;  %v14268_v60 = vld [vmem:[#allocation31_spill] sm:$0xff]  ;;  %v3853_v33 = vmul.bf16 %v3785_v29, %v10755_v0  ;;  %v4499_v0 = vsel %vm1574_vm1, %v10375_v50, %v4498_v54 }
 0x16f   : > { %v6219_v30 = vpop.f32.mrf.mxu0  ;;  %14265 = vst [vmem:[#allocation92_spill] sm:$0xff] %v11902_v1  ;;  %9402 = vmatprep.mubr.msk.bf16.mxu1 %vm5602_vm6, %v14268_v60  ;;  %7737 = vmatpush1.bf16.msra.mxu0 %v9828_v18  ;;  %vm3960_vm9 = vcmp.ne.s32.totalorder %v2190_v15, 31  ;;  %v3854_v15 = vmul.bf16 1.0|1.0, %v10852_v11 }
 0x170   : > { %v4685_v30 = vmul.bf16 %v4525_v44, %v11681_v39  ;;  %7746 = vmatprep.subr.bf16.mxu0 %v14089_v36  ;;  %v2141_v44 = vand.u32 31, %v1641_v28  ;;  %v11943_v37 = vsel %vm5602_vm6, %v3853_v33, %v5316_v63  ;;  %v11946_v28 = vsel %vm5464_vm5, %v5522_v59, %v5524_v51  ;;  %v14274_v33 = vld [vmem:[#allocation36_spill] sm:$0xff] }
 0x171   : > { %v11915_v48 = vpop.f32.mrf.mxu0  ;;  %6413 = vmatmul.mubr.bf16.gmra.mxu0 %v11890_v38  ;;  %14270 = vst [vmem:[#allocation93_spill] sm:$0xff] %v11943_v37  ;;  %14271 = vst [vmem:[#allocation94_spill] sm:$0xff] %v11946_v28  ;;  %v9269_v59 = vsel %vm3960_vm9, 1.0, %v14096_v2 }
 0x172   : > { %14267 = vst [vmem:[#allocation32_spill] sm:$0xff] %v11915_v48  ;;  %9327 = vmatprep.mubr.msk.bf16.mxu0 %vm5602_vm6, %v11898_v42  ;;  %v5550_v48 = vrot.slane %v4684_v8, 1  ;;  %v11925_v55 = vrot.slane %v4685_v30, 1  ;;  %v4672_v8 = vmul.bf16 %v4499_v0, %v10999_v21  ;;  %v14272_v30 = vld [vmem:[#allocation37_spill] sm:$0xff]  ;;  %vm3409_vm10 = vcmp.ne.s32.totalorder %v2141_v44, 0 }
 0x173   : > { %v6224_v22 = vpop.f32.mrf.mxu0  ;;  %7747 = vmatpush2.bf16.msra.mxu0 %v9829_v14  ;;  %v5318_v14 = vpop.permute.xlu1 %5317  ;;  %v9234_v0 = vsel %vm3409_vm10, 1.0, %v14096_v2  ;;  %v4334_v11 = vpack.c.bf16 %v9269_v59, %v14098_v4  ;;  %v14278_v59 = vld [vmem:[#allocation40_spill] sm:$0xff] }
 0x174   : > { %v11936_v40 = vsel %vm5464_vm5, %v5548_v12, %v5550_v48  ;;  %v11940_v22 = vsel %vm5464_vm5, %v5550_v48, %v11925_v55  ;;  %7748 = vmatprep.subr.bf16.mxu0 %v14089_v36  ;;  %v9830_v12 = vld [vmem:[%s13807_s3 + $0x110] sm:$0xff]   ;;  %v5526_v44 = vrot.slane %v4672_v8, 1  ;;  %v1652_v8 = vadd.s32 568, %v9954_v5 }
 0x175   : > { %v11933_v29 = vpop.f32.mrf.mxu0 }
 0x176   : > { %14269 = vst [vmem:[#allocation31_spill] sm:$0xff] %v11933_v29  ;;  %6995 = vmatmul.mubr.bf16.gmra.mxu1 %v14272_v30 }
 0x177   : > { %v6227_v18 = vpop.f32.mrf.mxu0  ;;  %9403 = vmatprep.mubr.msk.bf16.mxu1 %vm5602_vm6, %v14274_v33  ;;  %7749 = vmatpush2.bf16.msra.mxu0 %v9830_v12  ;;  %v11974_v12 = vsel %vm5602_vm6, %v3854_v15, %v5318_v14  ;;  %v1645_v15 = vadd.s32 512, %v9954_v5  ;;  %v4502_v14 = vrot.slane %v4334_v11, 7 }
 0x178   : > { %7750 = vmatprep.subr.bf16.mxu0 %v14089_v36  ;;  %v9831_v18 = vld [vmem:[%s13807_s3 + $0x108] sm:$0xff]   ;;  %14276 = vst [vmem:[#allocation95_spill] sm:$0xff] %v11974_v12 }
 0x179   : > { %v11954_v48 = vpop.f32.mrf.mxu0  ;;  %6421 = vmatmul.mubr.bf16.gmra.mxu0 %v11943_v37  ;;  %v11979_v37 = vsel %vm5464_vm5, %v5524_v51, %v5526_v44  ;;  %v2169_v38 = vand.u32 31, %v1645_v15  ;;  %v4503_v11 = vsel %vm1574_vm1, %v10375_v50, %v4502_v14 }
 0x17a   : > { %14273 = vst [vmem:[#allocation37_spill] sm:$0xff] %v11954_v48  ;;  %9328 = vmatprep.mubr.msk.bf16.mxu0 %vm5602_vm6, %v11946_v28  ;;  %v4501_v48 = vsel %vm1574_vm1, %v4498_v54, %v10375_v50  ;;  %14277 = vst [vmem:[#allocation96_spill] sm:$0xff] %v11979_v37  ;;  %v9832_v54 = vld [vmem:[%s13807_s3 + $0x100] sm:$0xff]  }
 0x17b   : > { %v6232_v63 = vpop.f32.mrf.mxu0  ;;  %7751 = vmatpush2.bf16.msra.mxu0 %v9831_v18  ;;  %v4673_v42 = vmul.bf16 %v4501_v48, %v11054_v7  ;;  %v5320_v18 = vpop.permute.xlu1 %5319  ;;  %vm3413_vm12 = vcmp.ne.s32.totalorder %v2169_v38, 0  ;;  %v4505_v38 = vsel %vm1574_vm1, %v4502_v14, %v10375_v50  ;;  %v14291_v14 = vld [vmem:[#allocation47_spill] sm:$0xff] }
 0x17c   : > { %v3787_v63 = vpack.c.bf16 %v14098_v4, %v9234_v0  ;;  %7752 = vmatprep.subr.bf16.mxu0 %v14089_v36  ;;  %v2218_v36 = vand.u32 31, %v1652_v8  ;;  %v14284_v8 = vld [vmem:[#allocation43_spill] sm:$0xff] }
 0x17d   : > { %v11971_v29 = vpop.f32.mrf.mxu0 }
 0x17e   : > { %14275 = vst [vmem:[#allocation36_spill] sm:$0xff] %v11971_v29  ;;  %7003 = vmatmul.mubr.bf16.gmra.mxu1 %v14278_v59  ;;  %v3855_v51 = vmul.bf16 %v3787_v63, %v10923_v17  ;;  %v5528_v29 = vrot.slane %v4673_v42, 1  ;;  %vm3964_vm11 = vcmp.ne.s32.totalorder %v2218_v36, 31  ;;  %v4674_v63 = vmul.bf16 %v4503_v11, %v11139_v49 }
 0x17f   : > { %v6235_v28 = vpop.f32.mrf.mxu0  ;;  %7753 = vmatpush2.bf16.msra.mxu0 %v9832_v54  ;;  %v14286_v54 = vld [vmem:[#allocation42_spill] sm:$0xff]  ;;  %v9270_v15 = vsel %vm3964_vm11, 1.0, %v14096_v2  ;;  %v9235_v36 = vsel %vm3413_vm12, 1.0, %v14096_v2 }
 0x180   : > { %v14280_v28 = vld [vmem:[#allocation41_spill] sm:$0xff]  ;;  %v12004_v17 = vsel %vm5464_vm5, %v5526_v44, %v5528_v29  ;;  %v5322_v44 = vpop.permute.xlu1 %5321 }
 0x181   : > { %v11988_v0 = vpop.f32.mrf.mxu0  ;;  %6429 = vmatmul.mubr.bf16.gmra.mxu0 %v11974_v12  ;;  %9404 = vmatprep.mubr.msk.bf16.mxu1 %vm5602_vm6, %v14280_v28  ;;  %v12001_v12 = vsel %vm5602_vm6, %v3855_v51, %v5320_v18  ;;  %14283 = vst [vmem:[#allocation98_spill] sm:$0xff] %v12004_v17  ;;  %v3856_v51 = vmul.bf16 1.0|1.0, %v10999_v21  ;;  %v4336_v18 = vpack.c.bf16 %v9270_v15, %v14098_v4  ;;  %v1649_v15 = vadd.s32 544, %v9954_v5 }
 0x182   : > { %14279 = vst [vmem:[#allocation40_spill] sm:$0xff] %v11988_v0  ;;  %9329 = vmatprep.mubr.msk.bf16.mxu0 %vm5602_vm6, %v11979_v37  ;;  %14282 = vst [vmem:[#allocation97_spill] sm:$0xff] %v12001_v12  ;;  %v3789_v21 = vpack.c.bf16 %v14098_v4, %v9235_v36 }
 0x183   : > { %v6240_v48 = vpop.f32.mrf.mxu0 }
 0x184   : > { %v5530_v48 = vrot.slane %v4674_v63, 1  ;;  %v4675_v63 = vmul.bf16 %v4505_v38, %v11200_v3  ;;  %v5324_v38 = vpop.permute.xlu1 %5323 }
 0x185   : > { %v11998_v0 = vpop.f32.mrf.mxu0 }
 0x186   : > { %14281 = vst [vmem:[#allocation41_spill] sm:$0xff] %v11998_v0  ;;  %7011 = vmatmul.mubr.bf16.gmra.mxu1 %v14284_v8  ;;  %v1656_v0 = vadd.s32 600, %v9954_v5 }
 0x187   : > { %v6243_v57 = vpop.f32.mrf.mxu0  ;;  %9405 = vmatprep.mubr.msk.bf16.mxu1 %vm5602_vm6, %v14286_v54 }
 0x189   : > { %v12008_v42 = vpop.f32.mrf.mxu0  ;;  %6437 = vmatmul.mubr.bf16.gmra.mxu0 %v12001_v12 }
 0x18a   : > { %14285 = vst [vmem:[#allocation43_spill] sm:$0xff] %v12008_v42  ;;  %9330 = vmatprep.mubr.msk.bf16.mxu0 %vm5602_vm6, %v12004_v17  ;;  %v12024_v42 = vsel %vm5602_vm6, %v3856_v51, %v5322_v44  ;;  %v14293_v51 = vld [vmem:[#allocation6_spill] sm:$0xff]  ;;  %v2246_v44 = vand.u32 31, %v1656_v0 }
 0x18b   : > { %v6248_v57 = vpop.f32.mrf.mxu0  ;;  %14288 = vst [vmem:[#allocation99_spill] sm:$0xff] %v12024_v42 }
 0x18c   : > { %v12029_v57 = vsel %vm5464_vm5, %v5528_v29, %v5530_v48  ;;  %v3857_v29 = vmul.bf16 %v3789_v21, %v11054_v7  ;;  %vm3968_vm13 = vcmp.ne.s32.totalorder %v2246_v44, 31  ;;  %v5326_v44 = vpop.permute.xlu1 %5325 }
 0x18d   : > { %v12021_v11 = vpop.f32.mrf.mxu0  ;;  %14289 = vst [vmem:[#allocation100_spill] sm:$0xff] %v12029_v57 }
 0x18e   : > { %14287 = vst [vmem:[#allocation42_spill] sm:$0xff] %v12021_v11  ;;  %v12032_v12 = vpop.f32.mrf.mxu1  ;;  %7019 = vmatmul.mubr.bf16.gmra.mxu1 %v14291_v14  ;;  %v4506_v11 = vrot.slane %v4336_v18, 7  ;;  %v2197_v18 = vand.u32 31, %v1649_v15 }
 0x18f   : > { %v6251_v17 = vpop.f32.mrf.mxu0  ;;  %14290 = vst [vmem:[#allocation101_spill] sm:$0xff] %v12032_v12  ;;  %9406 = vmatprep.mubr.msk.bf16.mxu1 %vm5602_vm6, %v14293_v51  ;;  %v5532_v12 = vrot.slane %v4675_v63, 1 }
 0x190   : > { %v6560_v17 = vpop.f32.mrf.mxu1  ;;  %vm3417_vm14 = vcmp.ne.s32.totalorder %v2197_v18, 0 }
 0x191   : > { %v12036_v37 = vpop.f32.mrf.mxu0  ;;  %6445 = vmatmul.mubr.bf16.gmra.mxu0 %v12024_v42  ;;  %v12051_v17 = vsel %vm5602_vm6, %v3857_v29, %v5324_v38  ;;  %v12054_v21 = vsel %vm5464_vm5, %v5530_v48, %v5532_v12  ;;  %v3858_v48 = vmul.bf16 1.0|1.0, %v11139_v49 }
 0x192   : > { %14292 = vst [vmem:[#allocation102_spill] sm:$0xff] %v12036_v37  ;;  %9331 = vmatprep.mubr.msk.bf16.mxu0 %vm5602_vm6, %v12029_v57  ;;  %v12044_v14 = vpop.f32.mrf.mxu1  ;;  %v4507_v37 = vsel %vm1574_vm1, %v10375_v50, %v4506_v11  ;;  %14296 = vst [vmem:[#allocation104_spill] sm:$0xff] %v12051_v17 }
 0x193   : > { %v6256_v36 = vpop.f32.mrf.mxu0  ;;  %14294 = vst [vmem:[#allocation6_spill] sm:$0xff] %v12044_v14  ;;  %14297 = vst [vmem:[#allocation105_spill] sm:$0xff] %v12054_v21  ;;  %v4676_v0 = vmul.bf16 %v4507_v37, %v11263_v20  ;;  %v12078_v49 = vsel %vm5602_vm6, %v3858_v48, %v5326_v44 }
 0x194   : > { %v6563_v13 = vpop.f32.mrf.mxu1  ;;  %v9236_v36 = vsel %vm3417_vm14, 1.0, %v14096_v2  ;;  %14302 = vst [vmem:[#allocation110_spill] sm:$0xff] %v12078_v49 }
 0x195   : > { %v12048_v42 = vpop.f32.mrf.mxu0  ;;  %v9271_v13 = vsel %vm3968_vm13, 1.0, %v14096_v2  ;;  %v5534_v38 = vrot.slane %v4676_v0, 1 }
 0x196   : > { %14295 = vst [vmem:[#allocation103_spill] sm:$0xff] %v12048_v42  ;;  %v12057_v63 = vpop.f32.mrf.mxu1  ;;  %7027 = vmatmul.mubr.bf16.gmra.mxu1 %v10829_v6 }
 0x197   : > { %v6259_v7 = vpop.f32.mrf.mxu0  ;;  %14298 = vst [vmem:[#allocation106_spill] sm:$0xff] %v12057_v63  ;;  %9407 = vmatprep.mubr.msk.bf16.mxu1 %vm5602_vm6, %v10876_v58  ;;  %v4338_v63 = vpack.c.bf16 %v9271_v13, %v14098_v4  ;;  %v12082_v42 = vsel %vm5464_vm5, %v5532_v12, %v5534_v38 }
 0x198   : > { %v6568_v29 = vpop.f32.mrf.mxu1  ;;  %v4509_v7 = vsel %vm1574_vm1, %v4506_v11, %v10375_v50  ;;  %v1653_v11 = vadd.s32 576, %v9954_v5 }
 0x199   : > { %v12060_v15 = vpop.f32.mrf.mxu0  ;;  %6453 = vmatmul.mubr.bf16.gmra.mxu0 %v12051_v17  ;;  %v4677_v0 = vmul.bf16 %v4509_v7, %v11300_v9  ;;  %v4510_v13 = vrot.slane %v4338_v63, 7 }
 0x19a   : > { %14299 = vst [vmem:[#allocation107_spill] sm:$0xff] %v12060_v15  ;;  %9332 = vmatprep.mubr.msk.bf16.mxu0 %vm5602_vm6, %v12054_v21  ;;  %v12070_v18 = vpop.f32.mrf.mxu1  ;;  %v3791_v15 = vpack.c.bf16 %v14098_v4, %v9236_v36  ;;  %v5328_v36 = vpop.permute.xlu1 %5327 }
 0x19b   : > { %v6264_v37 = vpop.f32.mrf.mxu0  ;;  %14300 = vst [vmem:[#allocation108_spill] sm:$0xff] %v12070_v18  ;;  %v5536_v7 = vrot.slane %v4677_v0, 1  ;;  %v4511_v63 = vsel %vm1574_vm1, %v10375_v50, %v4510_v13  ;;  %v14310_v0 = vld [vmem:[#allocation52_spill] sm:$0xff] }
 0x19c   : > { %v6571_v29 = vpop.f32.mrf.mxu1  ;;  %v3859_v12 = vmul.bf16 %v3791_v15, %v11200_v3  ;;  %v4678_v15 = vmul.bf16 %v4511_v63, %v11379_v53 }
 0x19d   : > { %v12075_v14 = vpop.f32.mrf.mxu0  ;;  %v12107_v3 = vsel %vm5464_vm5, %v5534_v38, %v5536_v7 }
 0x19e   : > { %14301 = vst [vmem:[#allocation109_spill] sm:$0xff] %v12075_v14  ;;  %v12085_v18 = vpop.f32.mrf.mxu1  ;;  %7035 = vmatmul.mubr.bf16.gmra.mxu1 %v10947_v16  ;;  %14308 = vst [vmem:[#allocation116_spill] sm:$0xff] %v12107_v3 }
 0x19f   : > { %v6267_v37 = vpop.f32.mrf.mxu0  ;;  %14303 = vst [vmem:[#allocation111_spill] sm:$0xff] %v12085_v18  ;;  %9408 = vmatprep.mubr.msk.bf16.mxu1 %vm5602_vm6, %v10914_v32 }
 0x1a0   : > { %v6576_v48 = vpop.f32.mrf.mxu1  ;;  %v2225_v37 = vand.u32 31, %v1653_v11 }
 0x1a1   : > { %v12089_v14 = vpop.f32.mrf.mxu0  ;;  %6461 = vmatmul.mubr.bf16.gmra.mxu0 %v12078_v49  ;;  %v12104_v49 = vsel %vm5602_vm6, %v3859_v12, %v5328_v36  ;;  %v3860_v12 = vmul.bf16 1.0|1.0, %v11263_v20  ;;  %v5330_v36 = vpop.permute.xlu1 %5329 }
 0x1a2   : > { %14304 = vst [vmem:[#allocation112_spill] sm:$0xff] %v12089_v14  ;;  %9333 = vmatprep.mubr.msk.bf16.mxu0 %vm5602_vm6, %v12082_v42  ;;  %v12097_v29 = vpop.f32.mrf.mxu1  ;;  %14307 = vst [vmem:[#allocation115_spill] sm:$0xff] %v12104_v49  ;;  %vm3421_vm15 = vcmp.ne.s32.totalorder %v2225_v37, 0  ;;  %v4513_v37 = vsel %vm1574_vm1, %v4510_v13, %v10375_v50  ;;  %v1657_v13 = vadd.s32 608, %v9954_v5 }
 0x1a3   : > { %v6272_v44 = vpop.f32.mrf.mxu0  ;;  %14305 = vst [vmem:[#allocation113_spill] sm:$0xff] %v12097_v29  ;;  %v14312_v29 = vld [vmem:[#allocation54_spill] sm:$0xff]  ;;  %v9237_v63 = vsel %vm3421_vm15, 1.0, %v14096_v2 }
 0x1a4   : > { %v6579_v14 = vpop.f32.mrf.mxu1  ;;  %v3793_v20 = vpack.c.bf16 %v14098_v4, %v9237_v63 }
 0x1a5   : > { %v12101_v18 = vpop.f32.mrf.mxu0 }
 0x1a6   : > { %14306 = vst [vmem:[#allocation114_spill] sm:$0xff] %v12101_v18  ;;  %v12110_v44 = vpop.f32.mrf.mxu1  ;;  %7043 = vmatmul.mubr.bf16.gmra.mxu1 %v14310_v0 }
 0x1a7   : > { %v6275_v48 = vpop.f32.mrf.mxu0  ;;  %14309 = vst [vmem:[#allocation117_spill] sm:$0xff] %v12110_v44  ;;  %9409 = vmatprep.mubr.msk.bf16.mxu1 %vm5602_vm6, %v14312_v29 }
 0x1a8   : > { %v6584_v14 = vpop.f32.mrf.mxu1  ;;  %v5538_v48 = vrot.slane %v4678_v15, 1 }
 0x1a9   : > { %v12113_v11 = vpop.f32.mrf.mxu0  ;;  %6469 = vmatmul.mubr.bf16.gmra.mxu0 %v12104_v49  ;;  %v12129_v14 = vsel %vm5602_vm6, %v3860_v12, %v5330_v36  ;;  %v5332_v36 = vpop.permute.xlu1 %5331 }
 0x1aa   : > { %14311 = vst [vmem:[#allocation52_spill] sm:$0xff] %v12113_v11  ;;  %9334 = vmatprep.mubr.msk.bf16.mxu0 %vm5602_vm6, %v12107_v3  ;;  %v12122_v44 = vpop.f32.mrf.mxu1  ;;  %14315 = vst [vmem:[#allocation119_spill] sm:$0xff] %v12129_v14  ;;  %v4679_v3 = vmul.bf16 %v4513_v37, %v11416_v41 }
 0x1ab   : > { %v6280_v38 = vpop.f32.mrf.mxu0  ;;  %14313 = vst [vmem:[#allocation54_spill] sm:$0xff] %v12122_v44 }
 0x1ac   : > { %v6587_v18 = vpop.f32.mrf.mxu1  ;;  %v12133_v38 = vsel %vm5464_vm5, %v5536_v7, %v5538_v48  ;;  %v5540_v63 = vrot.slane %v4679_v3, 1 }
 0x1ad   : > { %v12126_v11 = vpop.f32.mrf.mxu0  ;;  %v14318_v18 = vld [vmem:[#allocation55_spill] sm:$0xff] }
 0x1ae   : > { %14314 = vst [vmem:[#allocation118_spill] sm:$0xff] %v12126_v11  ;;  %v12136_v15 = vpop.f32.mrf.mxu1  ;;  %7051 = vmatmul.mubr.bf16.gmra.mxu1 %v11086_v56 }
 0x1af   : > { %v6283_v49 = vpop.f32.mrf.mxu0  ;;  %14316 = vst [vmem:[#allocation120_spill] sm:$0xff] %v12136_v15  ;;  %9410 = vmatprep.mubr.msk.bf16.mxu1 %vm5602_vm6, %v14318_v18  ;;  %v2253_v15 = vand.u32 31, %v1657_v13 }
 0x1b0   : > { %v6592_v12 = vpop.f32.mrf.mxu1  ;;  %v3861_v49 = vmul.bf16 %v3793_v20, %v11300_v9 }
 0x1b1   : > { %v12140_v44 = vpop.f32.mrf.mxu0  ;;  %6477 = vmatmul.mubr.bf16.gmra.mxu0 %v12129_v14  ;;  %v12156_v12 = vsel %vm5464_vm5, %v5538_v48, %v5540_v63  ;;  %vm3425_vm4 = vcmp.ne.s32.totalorder %v2253_v15, 0 }
 0x1b2   : > { %14317 = vst [vmem:[#allocation121_spill] sm:$0xff] %v12140_v44  ;;  %9335 = vmatprep.mubr.msk.bf16.mxu0 %vm5602_vm6, %v12133_v38  ;;  %v12148_v37 = vpop.f32.mrf.mxu1  ;;  %v12153_v11 = vsel %vm5602_vm6, %v3861_v49, %v5332_v36  ;;  %v9238_v13 = vsel %vm3425_vm4, 1.0, %v14096_v2 }
 0x1b3   : > { %v6288_v7 = vpop.f32.mrf.mxu0  ;;  %14319 = vst [vmem:[#allocation55_spill] sm:$0xff] %v12148_v37 }
 0x1b4   : > { %v6595_v44 = vpop.f32.mrf.mxu1 }
 0x1b5   : > { %v12150_v50 = vpop.f32.mrf.mxu0  ;;  %v3862_v44 = vmul.bf16 1.0|1.0, %v11379_v53  ;;  %v12180_v53 = vsel %vm5464_vm5, %v5540_v63, %v11844_v52 }
 0x1b6   : > { %14320 = vst [vmem:[#allocation122_spill] sm:$0xff] %v12150_v50  ;;  %v12158_v9 = vpop.f32.mrf.mxu1  ;;  %7059 = vmatmul.mubr.bf16.gmra.mxu1 %v11075_v35 }
 0x1b7   : > { %v6291_v14 = vpop.f32.mrf.mxu0  ;;  %14321 = vst [vmem:[#allocation123_spill] sm:$0xff] %v12158_v9  ;;  %9411 = vmatprep.mubr.msk.bf16.mxu1 %vm5602_vm6, %v11120_v10  ;;  %v3795_v9 = vpack.c.bf16 %v14098_v4, %v9238_v13 }
 0x1b8   : > { %v6600_v3 = vpop.f32.mrf.mxu1  ;;  %v5334_v14 = vpop.permute.xlu1 %5333 }
 0x1b9   : > { %v12161_v20 = vpop.f32.mrf.mxu0  ;;  %6485 = vmatmul.mubr.bf16.gmra.mxu0 %v12153_v11  ;;  %v12175_v36 = vsel %vm5602_vm6, %v3862_v44, %v5334_v14  ;;  %v3863_v14 = vmul.bf16 %v3795_v9, %v11416_v41  ;;  %v14335_v9 = vld [vmem:[#allocation63_spill] sm:$0xff] }
 0x1ba   : > { %14322 = vst [vmem:[#allocation124_spill] sm:$0xff] %v12161_v20  ;;  %9336 = vmatprep.mubr.msk.bf16.mxu0 %vm5602_vm6, %v12156_v12  ;;  %v12170_v49 = vpop.f32.mrf.mxu1  ;;  %14325 = vst [vmem:[#allocation127_spill] sm:$0xff] %v12175_v36  ;;  %v1661_v20 = vadd.s32 640, %v9954_v5 }
 0x1bb   : > { %v6296_v48 = vpop.f32.mrf.mxu0  ;;  %14323 = vst [vmem:[#allocation125_spill] sm:$0xff] %v12170_v49 }
 0x1bc   : > { %v6603_v7 = vpop.f32.mrf.mxu1  ;;  %v14327_v48 = vld [vmem:[#allocation9_spill] sm:$0xff]  ;;  %v5336_v63 = vpop.permute.xlu1 %5335 }
 0x1bd   : > { %v12172_v15 = vpop.f32.mrf.mxu0  ;;  %v14329_v7 = vld [vmem:[#allocation61_spill] sm:$0xff] }
 0x1be   : > { %14324 = vst [vmem:[#allocation126_spill] sm:$0xff] %v12172_v15  ;;  %v12182_v37 = vpop.f32.mrf.mxu1  ;;  %7067 = vmatmul.mubr.bf16.gmra.mxu1 %v14327_v48 }
 0x1bf   : > { %v6299_v3 = vpop.f32.mrf.mxu0  ;;  %14326 = vst [vmem:[#allocation128_spill] sm:$0xff] %v12182_v37  ;;  %9412 = vmatprep.mubr.msk.bf16.mxu1 %vm5602_vm6, %v14329_v7 }
 0x1c0   : > { %v6608_v44 = vpop.f32.mrf.mxu1  ;;  %v2281_v3 = vand.u32 31, %v1661_v20 }
 0x1c1   : > { %v12186_v49 = vpop.f32.mrf.mxu0  ;;  %6493 = vmatmul.mubr.bf16.gmra.mxu0 %v12175_v36  ;;  %v3864_v44 = vmul.bf16 1.0|1.0, %v11495_v23  ;;  %v14340_v23 = vld [vmem:[#allocation65_spill] sm:$0xff] }
 0x1c2   : > { %14328 = vst [vmem:[#allocation9_spill] sm:$0xff] %v12186_v49  ;;  %9337 = vmatprep.mubr.msk.bf16.mxu0 %vm5602_vm6, %v12180_v53  ;;  %v12194_v13 = vpop.f32.mrf.mxu1  ;;  %v12199_v49 = vsel %vm5602_vm6, %v3863_v14, %v5336_v63  ;;  %vm3429_vm7 = vcmp.ne.s32.totalorder %v2281_v3, 0 }
 0x1c3   : > { %v6304_v52 = vpop.f32.mrf.mxu0  ;;  %14330 = vst [vmem:[#allocation61_spill] sm:$0xff] %v12194_v13  ;;  %14332 = vst [vmem:[#allocation130_spill] sm:$0xff] %v12199_v49  ;;  %v9239_v14 = vsel %vm3429_vm7, 1.0, %v14096_v2 }
 0x1c4   : > { %v6611_v15 = vpop.f32.mrf.mxu1  ;;  %v3797_v13 = vpack.c.bf16 %v14098_v4, %v9239_v14 }
 0x1c5   : > { %v12196_v37 = vpop.f32.mrf.mxu0 }
 0x1c6   : > { %14331 = vst [vmem:[#allocation129_spill] sm:$0xff] %v12196_v37  ;;  %v12201_v36 = vpop.f32.mrf.mxu1  ;;  %7075 = vmatmul.mubr.bf16.gmra.mxu1 %v11216_v46 }
 0x1c7   : > { %v6307_v50 = vpop.f32.mrf.mxu0  ;;  %14333 = vst [vmem:[#allocation131_spill] sm:$0xff] %v12201_v36  ;;  %9413 = vmatprep.mubr.msk.bf16.mxu1 %vm5602_vm6, %v14335_v9 }
 0x1c8   : > { %v6616_v20 = vpop.f32.mrf.mxu1  ;;  %v5338_v50 = vpop.permute.xlu1 %5337 }
 0x1c9   : > { %v12204_v41 = vpop.f32.mrf.mxu0  ;;  %6501 = vmatmul.mubr.bf16.gmra.mxu0 %v12199_v49  ;;  %v12218_v36 = vsel %vm5602_vm6, %v3864_v44, %v5338_v50  ;;  %v3865_v44 = vmul.bf16 %v3797_v13, %v11522_v19  ;;  %v14349_v13 = vld [vmem:[#allocation72_spill] sm:$0xff] }
 0x1ca   : > { %14334 = vst [vmem:[#allocation132_spill] sm:$0xff] %v12204_v41  ;;  %9338 = vmatprep.mubr.msk.bf16.mxu0 %vm5602_vm6, %v11862_v62  ;;  %v12213_v52 = vpop.f32.mrf.mxu1  ;;  %14338 = vst [vmem:[#allocation134_spill] sm:$0xff] %v12218_v36 }
 0x1cb   : > { %v6312_v15 = vpop.f32.mrf.mxu0  ;;  %14336 = vst [vmem:[#allocation63_spill] sm:$0xff] %v12213_v52  ;;  %v14342_v52 = vld [vmem:[#allocation68_spill] sm:$0xff] }
 0x1cc   : > { %v6619_v3 = vpop.f32.mrf.mxu1  ;;  %v1665_v15 = vadd.s32 672, %v9954_v5  ;;  %v5340_v14 = vpop.permute.xlu1 %5339 }
 0x1cd   : > { %v12215_v63 = vpop.f32.mrf.mxu0 }
 0x1ce   : > { %14337 = vst [vmem:[#allocation133_spill] sm:$0xff] %v12215_v63  ;;  %v12221_v41 = vpop.f32.mrf.mxu1  ;;  %7083 = vmatmul.mubr.bf16.gmra.mxu1 %v14340_v23 }
 0x1cf   : > { %v6315_v20 = vpop.f32.mrf.mxu0  ;;  %14339 = vst [vmem:[#allocation135_spill] sm:$0xff] %v12221_v41  ;;  %9414 = vmatprep.mubr.msk.bf16.mxu1 %vm5602_vm6, %v14342_v52  ;;  %v2309_v41 = vand.u32 31, %v1665_v15 }
 0x1d0   : > { %v6624_v3 = vpop.f32.mrf.mxu1 }
 0x1d1   : > { %v12225_v37 = vpop.f32.mrf.mxu0  ;;  %6509 = vmatmul.mubr.bf16.gmra.mxu0 %v12218_v36  ;;  %v14347_v3 = vld [vmem:[#allocation69_spill] sm:$0xff]  ;;  %vm3433_vm8 = vcmp.ne.s32.totalorder %v2309_v41, 0 }
 0x1d2   : > { %14341 = vst [vmem:[#allocation65_spill] sm:$0xff] %v12225_v37  ;;  %9339 = vmatprep.mubr.msk.bf16.mxu0 %vm5602_vm6, %v11894_v24  ;;  %v12233_v20 = vpop.f32.mrf.mxu1  ;;  %v12238_v37 = vsel %vm5602_vm6, %v3865_v44, %v5340_v14  ;;  %v9240_v44 = vsel %vm3433_vm8, 1.0, %v14096_v2 }
 0x1d3   : > { %v6320_v50 = vpop.f32.mrf.mxu0  ;;  %14343 = vst [vmem:[#allocation68_spill] sm:$0xff] %v12233_v20  ;;  %14345 = vst [vmem:[#allocation137_spill] sm:$0xff] %v12238_v37 }
 0x1d4   : > { %v6627_v62 = vpop.f32.mrf.mxu1  ;;  %v3866_v50 = vmul.bf16 1.0|1.0, %v11596_v61  ;;  %v14354_v61 = vld [vmem:[#allocation70_spill] sm:$0xff] }
 0x1d5   : > { %v12235_v63 = vpop.f32.mrf.mxu0 }
 0x1d6   : > { %14344 = vst [vmem:[#allocation136_spill] sm:$0xff] %v12235_v63  ;;  %v12240_v49 = vpop.f32.mrf.mxu1  ;;  %7091 = vmatmul.mubr.bf16.gmra.mxu1 %v14347_v3 }
 0x1d7   : > { %v6323_v36 = vpop.f32.mrf.mxu0  ;;  %14346 = vst [vmem:[#allocation138_spill] sm:$0xff] %v12240_v49  ;;  %9415 = vmatprep.mubr.msk.bf16.mxu1 %vm5602_vm6, %v14349_v13 }
 0x1d8   : > { %v6632_v15 = vpop.f32.mrf.mxu1  ;;  %v5342_v36 = vpop.permute.xlu1 %5341 }
 0x1d9   : > { %v12243_v19 = vpop.f32.mrf.mxu0  ;;  %6517 = vmatmul.mubr.bf16.gmra.mxu0 %v12238_v37  ;;  %v12257_v20 = vsel %vm5602_vm6, %v3866_v50, %v5342_v36 }
 0x1da   : > { %14348 = vst [vmem:[#allocation69_spill] sm:$0xff] %v12243_v19  ;;  %9340 = vmatprep.mubr.msk.bf16.mxu0 %vm5602_vm6, %v11902_v1  ;;  %v12252_v14 = vpop.f32.mrf.mxu1  ;;  %14352 = vst [vmem:[#allocation140_spill] sm:$0xff] %v12257_v20  ;;  %v3799_v19 = vpack.c.bf16 %v14098_v4, %v9240_v44 }
 0x1db   : > { %v6328_v62 = vpop.f32.mrf.mxu0  ;;  %14350 = vst [vmem:[#allocation72_spill] sm:$0xff] %v12252_v14  ;;  %v14356_v14 = vld [vmem:[#allocation12_spill] sm:$0xff] }
 0x1dc   : > { %v6635_v49 = vpop.f32.mrf.mxu1  ;;  %v1669_v62 = vadd.s32 704, %v9954_v5  ;;  %v3867_v50 = vmul.bf16 %v3799_v19, %v11609_v25  ;;  %v5344_v44 = vpop.permute.xlu1 %5343  ;;  %v14361_v19 = vld [vmem:[#allocation75_spill] sm:$0xff] }
 0x1dd   : > { %v12254_v41 = vpop.f32.mrf.mxu0 }
 0x1de   : > { %14351 = vst [vmem:[#allocation139_spill] sm:$0xff] %v12254_v41  ;;  %v12260_v63 = vpop.f32.mrf.mxu1  ;;  %7099 = vmatmul.mubr.bf16.gmra.mxu1 %v14354_v61 }
 0x1df   : > { %v6331_v15 = vpop.f32.mrf.mxu0  ;;  %14353 = vst [vmem:[#allocation141_spill] sm:$0xff] %v12260_v63  ;;  %9416 = vmatprep.mubr.msk.bf16.mxu1 %vm5602_vm6, %v14356_v14  ;;  %v2337_v63 = vand.u32 31, %v1669_v62 }
 0x1e0   : > { %v6640_v49 = vpop.f32.mrf.mxu1 }
 0x1e1   : > { %v12264_v1 = vpop.f32.mrf.mxu0  ;;  %6525 = vmatmul.mubr.bf16.gmra.mxu0 %v12257_v20  ;;  %vm3437_vm9 = vcmp.ne.s32.totalorder %v2337_v63, 0  ;;  %v3868_v49 = vmul.bf16 1.0|1.0, %v11637_v31 }
 0x1e2   : > { %14355 = vst [vmem:[#allocation70_spill] sm:$0xff] %v12264_v1  ;;  %9341 = vmatprep.mubr.msk.bf16.mxu0 %vm5602_vm6, %v11936_v40  ;;  %v12272_v15 = vpop.f32.mrf.mxu1  ;;  %v12277_v1 = vsel %vm5602_vm6, %v3867_v50, %v5344_v44  ;;  %v9241_v50 = vsel %vm3437_vm9, 1.0, %v14096_v2 }
 0x1e3   : > { %v6336_v36 = vpop.f32.mrf.mxu0  ;;  %14357 = vst [vmem:[#allocation12_spill] sm:$0xff] %v12272_v15  ;;  %v3801_v15 = vpack.c.bf16 %v14098_v4, %v9241_v50 }
 0x1e4   : > { %v6643_v5 = vpop.f32.mrf.mxu1 }
 0x1e5   : > { %v12274_v41 = vpop.f32.mrf.mxu0 }
 0x1e6   : > { %14358 = vst [vmem:[#allocation142_spill] sm:$0xff] %v12274_v41  ;;  %v12279_v37 = vpop.f32.mrf.mxu1  ;;  %7107 = vmatmul.mubr.bf16.gmra.mxu1 %v11432_v43  ;;  %v14366_v41 = vld [vmem:[#allocation76_spill] sm:$0xff] }
 0x1e7   : > { %v6339_v20 = vpop.f32.mrf.mxu0  ;;  %14359 = vst [vmem:[#allocation143_spill] sm:$0xff] %v12279_v37  ;;  %9417 = vmatprep.mubr.msk.bf16.mxu1 %vm5602_vm6, %v14361_v19 }
 0x1e8   : > { %v6648_v62 = vpop.f32.mrf.mxu1  ;;  %v5346_v20 = vpop.permute.xlu1 %5345 }
 0x1e9   : > { %v12282_v25 = vpop.f32.mrf.mxu0  ;;  %6533 = vmatmul.mubr.bf16.gmra.mxu0 %v12277_v1  ;;  %v12296_v37 = vsel %vm5602_vm6, %v3868_v49, %v5346_v20  ;;  %v3869_v20 = vmul.bf16 %v3801_v15, %v11681_v39  ;;  %v14373_v39 = vld [vmem:[#allocation80_spill] sm:$0xff] }
 0x1ea   : > { %14360 = vst [vmem:[#allocation144_spill] sm:$0xff] %v12282_v25  ;;  %9342 = vmatprep.mubr.msk.bf16.mxu0 %vm5602_vm6, %v11940_v22  ;;  %v12291_v36 = vpop.f32.mrf.mxu1  ;;  %v14364_v25 = vld [vmem:[#allocation25_spill] sm:$0xff] }
 0x1eb   : > { %v6344_v5 = vpop.f32.mrf.mxu0  ;;  %14362 = vst [vmem:[#allocation75_spill] sm:$0xff] %v12291_v36  ;;  %v12302_v31 = vsel %vm5464_vm5, %v11925_v55, %v14364_v25 }
 0x1ec   : > { %v6651_v44 = vpop.f32.mrf.mxu1  ;;  %v5348_v55 = vpop.permute.xlu1 %5347 }
 0x1ed   : > { %v12293_v63 = vpop.f32.mrf.mxu0  ;;  %v14368_v44 = vld [vmem:[#allocation14_spill] sm:$0xff]  ;;  %v12320_v36 = vsel %vm5602_vm6, %v3869_v20, %v5348_v55 }
 0x1ee   : > { %14363 = vst [vmem:[#allocation145_spill] sm:$0xff] %v12293_v63  ;;  %v12304_v5 = vpop.f32.mrf.mxu1  ;;  %7115 = vmatmul.mubr.bf16.gmra.mxu1 %v14366_v41  ;;  %v14412_v63 = vld [vmem:[#allocation90_spill] sm:$0xff] }
 0x1ef   : > { %v6347_v62 = vpop.f32.mrf.mxu0  ;;  %14365 = vst [vmem:[#allocation25_spill] sm:$0xff] %v12304_v5  ;;  %9418 = vmatprep.mubr.msk.bf16.mxu1 %vm5602_vm6, %v14368_v44 }
 0x1f0   : > { %v6656_v49 = vpop.f32.mrf.mxu1 }
 0x1f1   : > { %v12307_v2 = vpop.f32.mrf.mxu0  ;;  %6541 = vmatmul.mubr.bf16.gmra.mxu0 %v12296_v37 }
 0x1f2   : > { %14367 = vst [vmem:[#allocation76_spill] sm:$0xff] %v12307_v2  ;;  %9343 = vmatprep.mubr.msk.bf16.mxu0 %vm5602_vm6, %v12302_v31  ;;  %v12315_v25 = vpop.f32.mrf.mxu1 }
 0x1f3   : > { %v6352_v50 = vpop.f32.mrf.mxu0  ;;  %14369 = vst [vmem:[#allocation14_spill] sm:$0xff] %v12315_v25  ;;  %v14377_v25 = vld [vmem:[#allocation79_spill] sm:$0xff] }
 0x1f4   : > { %v6659_v5 = vpop.f32.mrf.mxu1 }
 0x1f5   : > { %v12317_v62 = vpop.f32.mrf.mxu0 }
 0x1f6   : > { %14370 = vst [vmem:[#allocation146_spill] sm:$0xff] %v12317_v62  ;;  %v12322_v2 = vpop.f32.mrf.mxu1  ;;  %7123 = vmatmul.mubr.bf16.gmra.mxu1 %v11546_v26  ;;  %v14379_v62 = vld [vmem:[#allocation28_spill] sm:$0xff] }
 0x1f7   : > { %v6355_v4 = vpop.f32.mrf.mxu0  ;;  %14371 = vst [vmem:[#allocation147_spill] sm:$0xff] %v12322_v2  ;;  %9419 = vmatprep.mubr.msk.bf16.mxu1 %vm5602_vm6, %v14373_v39 }
 0x1f8   : > { %v6664_v15 = vpop.f32.mrf.mxu1 }
 0x1f9   : > { %v12325_v49 = vpop.f32.mrf.mxu0  ;;  %6549 = vmatmul.mubr.bf16.gmra.mxu0 %v12320_v36 }
 0x1fa   : > { %14372 = vst [vmem:[#allocation148_spill] sm:$0xff] %v12325_v49  ;;  %9500 = vmatprep.mubr.msk.bf16.mxu0 %vm5602_vm6, %v14268_v60  ;;  %v12332_v50 = vpop.f32.mrf.mxu1 }
 0x1fb   : > { %v6360_v5 = vpop.f32.mrf.mxu0  ;;  %14374 = vst [vmem:[#allocation80_spill] sm:$0xff] %v12332_v50 }
 0x1fc   : > { %v6667_v4 = vpop.f32.mrf.mxu1 }
 0x1fd   : > { %v12334_v20 = vpop.f32.mrf.mxu0 }
 0x1fe   : > { %14375 = vst [vmem:[#allocation149_spill] sm:$0xff] %v12334_v20  ;;  %v12336_v2 = vpop.f32.mrf.mxu1  ;;  %7131 = vmatmul.mubr.bf16.gmra.mxu1 %v14377_v25 }
 0x1ff   : > { %v6363_v55 = vpop.f32.mrf.mxu0  ;;  %14376 = vst [vmem:[#allocation150_spill] sm:$0xff] %v12336_v2  ;;  %9420 = vmatprep.mubr.msk.bf16.mxu1 %vm5602_vm6, %v14379_v62 }
 0x200   : > { %v6672_v15 = vpop.f32.mrf.mxu1 }
 0x201   : > { %v12339_v49 = vpop.f32.mrf.mxu0  ;;  %7755 = vmatmul.mubr.bf16.vlgmr.msra.gmra.mxu0 %v14272_v30 }
 0x202   : > { %14378 = vst [vmem:[#allocation79_spill] sm:$0xff] %v12339_v49  ;;  %9501 = vmatprep.mubr.msk.bf16.mxu0 %vm5602_vm6, %v14274_v33  ;;  %v12346_v5 = vpop.f32.mrf.mxu1 }
 0x203   : > { %v6368_v60 = vpop.f32.mrf.mxu0  ;;  %14380 = vst [vmem:[#allocation28_spill] sm:$0xff] %v12346_v5 }
 0x204   : > { %v6675_v55 = vpop.f32.mrf.mxu1 }
 0x205   : > { %v12348_v4 = vpop.f32.mrf.mxu0 }
 0x206   : > { %14381 = vst [vmem:[#allocation151_spill] sm:$0xff] %v12348_v4  ;;  %v12350_v50 = vpop.f32.mrf.mxu1  ;;  %7139 = vmatmul.mubr.bf16.gmra.mxu1 %v11674_v34 }
 0x207   : > { %v6371_v2 = vpop.f32.mrf.mxu0  ;;  %14382 = vst [vmem:[#allocation152_spill] sm:$0xff] %v12350_v50  ;;  %9421 = vmatprep.mubr.msk.bf16.mxu1 %vm5602_vm6, %v11687_v27 }
 0x208   : > { %v6680_v30 = vpop.f32.mrf.mxu1 }
 0x209   : > { %v12353_v49 = vpop.f32.mrf.mxu0  ;;  %7763 = vmatmul.mubr.bf16.gmra.mxu0 %v14278_v59 }
 0x20a   : > { %14383 = vst [vmem:[#allocation153_spill] sm:$0xff] %v12353_v49  ;;  %9502 = vmatprep.mubr.msk.bf16.mxu0 %vm5602_vm6, %v14280_v28  ;;  %v12360_v15 = vpop.f32.mrf.mxu1 }
 0x20b   : > { %v6376_v33 = vpop.f32.mrf.mxu0  ;;  %14384 = vst [vmem:[#allocation154_spill] sm:$0xff] %v12360_v15  ;;  %v14391_v15 = vld [vmem:[#allocation39_spill] sm:$0xff] }
 0x20c   : > { %v6683_v2 = vpop.f32.mrf.mxu1 }
 0x20d   : > { %v12362_v60 = vpop.f32.mrf.mxu0 }
 0x20e   : > { %14385 = vst [vmem:[#allocation155_spill] sm:$0xff] %v12362_v60  ;;  %v12364_v50 = vpop.f32.mrf.mxu1  ;;  %7147 = vmatmul.mubr.bf16.gmra.mxu1 %v11714_v45  ;;  %v14394_v60 = vld [vmem:[#allocation81_spill] sm:$0xff] }
 0x20f   : > { %v6379_v55 = vpop.f32.mrf.mxu0  ;;  %14386 = vst [vmem:[#allocation156_spill] sm:$0xff] %v12364_v50  ;;  %9422 = vmatprep.mubr.msk.bf16.mxu1 %vm5602_vm6, %v11724_v47 }
 0x210   : > { %v6688_v59 = vpop.f32.mrf.mxu1 }
 0x211   : > { %v12367_v5 = vpop.f32.mrf.mxu0  ;;  %7771 = vmatmul.mubr.bf16.gmra.mxu0 %v14284_v8  ;;  %v14393_v8 = vld [vmem:[#allocation47_spill] sm:$0xff] }
 0x212   : > { %14387 = vst [vmem:[#allocation157_spill] sm:$0xff] %v12367_v5  ;;  %9503 = vmatprep.mubr.msk.bf16.mxu0 %vm5602_vm6, %v14286_v54  ;;  %v12374_v30 = vpop.f32.mrf.mxu1 }
 0x213   : > { %v6384_v28 = vpop.f32.mrf.mxu0  ;;  %14388 = vst [vmem:[#allocation158_spill] sm:$0xff] %v12374_v30 }
 0x214   : > { %v6691_v2 = vpop.f32.mrf.mxu1 }
 0x215   : > { %v12376_v33 = vpop.f32.mrf.mxu0 }
 0x216   : > { %14389 = vst [vmem:[#allocation159_spill] sm:$0xff] %v12376_v33  ;;  %v12378_v50 = vpop.f32.mrf.mxu1  ;;  %7155 = vmatmul.mubr.bf16.gmra.mxu1 %v14391_v15  ;;  %v14398_v33 = vld [vmem:[#allocation84_spill] sm:$0xff] }
 0x217   : > { %v6387_v55 = vpop.f32.mrf.mxu0  ;;  %14390 = vst [vmem:[#allocation160_spill] sm:$0xff] %v12378_v50  ;;  %9423 = vmatprep.mubr.msk.bf16.mxu1 %vm5602_vm6, %v14394_v60 }
 0x218   : > { %v6696_v59 = vpop.f32.mrf.mxu1 }
 0x219   : > { %v12381_v5 = vpop.f32.mrf.mxu0  ;;  %7779 = vmatmul.mubr.bf16.gmra.mxu0 %v14393_v8  ;;  %v14400_v8 = vld [vmem:[#allocation85_spill] sm:$0xff] }
 0x21a   : > { %14392 = vst [vmem:[#allocation39_spill] sm:$0xff] %v12381_v5  ;;  %9504 = vmatprep.mubr.msk.bf16.mxu0 %vm5602_vm6, %v14293_v51  ;;  %v12388_v28 = vpop.f32.mrf.mxu1 }
 0x21b   : > { %v6392_v54 = vpop.f32.mrf.mxu0  ;;  %14395 = vst [vmem:[#allocation47_spill] sm:$0xff] %v12388_v28  ;;  %v14403_v28 = vld [vmem:[#allocation20_spill] sm:$0xff] }
 0x21c   : > { %v6699_v55 = vpop.f32.mrf.mxu1 }
 0x21d   : > { %v12390_v2 = vpop.f32.mrf.mxu0 }
 0x21e   : > { %14396 = vst [vmem:[#allocation81_spill] sm:$0xff] %v12390_v2  ;;  %v12392_v30 = vpop.f32.mrf.mxu1  ;;  %7163 = vmatmul.mubr.bf16.gmra.mxu1 %v14398_v33 }
 0x21f   : > { %v6395_v50 = vpop.f32.mrf.mxu0  ;;  %14397 = vst [vmem:[#allocation161_spill] sm:$0xff] %v12392_v30  ;;  %9424 = vmatprep.mubr.msk.bf16.mxu1 %vm5602_vm6, %v14400_v8 }
 0x220   : > { %v6704_v59 = vpop.f32.mrf.mxu1  ;;  %v12405_v50 = vld [vmem:[%s13808_s4] ss:$0 sm:$0xff] }
 0x221   : > { %v12395_v5 = vpop.f32.mrf.mxu0  ;;  %7787 = vmatmul.mubr.bf16.gmra.mxu0 %v10829_v6  ;;  %v6715_v6 = vadd.f32 %v12405_v50, %v14403_v28  ;;  %v14404_v59 = vld [vmem:[#allocation87_spill] sm:$0xff] }
 0x222   : > { %14399 = vst [vmem:[#allocation84_spill] sm:$0xff] %v12395_v5  ;;  %9505 = vmatprep.mubr.msk.bf16.mxu0 %vm5602_vm6, %v10876_v58  ;;  %v12407_v54 = vpop.f32.mrf.mxu1 }
 0x223   : > { %v6400_v51 = vpop.f32.mrf.mxu0  ;;  %14401 = vst [vmem:[#allocation85_spill] sm:$0xff] %v12407_v54 }
 0x224   : > { %v6707_v30 = vpop.f32.mrf.mxu1  ;;  %v14407_v51 = vld [vmem:[#allocation88_spill] sm:$0xff] }
 0x225   : > { %v12409_v55 = vpop.f32.mrf.mxu0  ;;  %v14408_v30 = vld [vmem:[#allocation82_spill] sm:$0xff] }
 0x226   : > { %14402 = vst [vmem:[#allocation162_spill] sm:$0xff] %v12409_v55  ;;  %v6980_v2 = vpop.f32.mrf.mxu1  ;;  %7171 = vmatmul.mubr.bf16.gmra.mxu1 %v14404_v59  ;;  %v6716_v28 = vadd.f32 %v12405_v50, %v14408_v30  ;;  %v14415_v30 = vld [vmem:[#allocation91_spill] sm:$0xff] }
 0x227   : > { %v6403_v5 = vpop.f32.mrf.mxu0  ;;  %v12414_v49 = vadd.f32 %v6980_v2, %v6715_v6  ;;  %9425 = vmatprep.mubr.msk.bf16.mxu1 %vm5602_vm6, %v14407_v51 }
 0x228   : > { %v6982_v54 = vpop.f32.mrf.mxu1 }
 0x229   : > { %14405 = vst [vmem:[#allocation20_spill] sm:$0xff] %v12414_v49  ;;  %v12416_v58 = vpop.f32.mrf.mxu0  ;;  %7795 = vmatmul.mubr.bf16.gmra.mxu0 %v10947_v16 }
 0x22a   : > { %14406 = vst [vmem:[#allocation87_spill] sm:$0xff] %v12416_v58  ;;  %9506 = vmatprep.mubr.msk.bf16.mxu0 %vm5602_vm6, %v10914_v32  ;;  %v6983_v55 = vpop.f32.mrf.mxu1  ;;  %v14411_v58 = vld [vmem:[#allocation86_spill] sm:$0xff] }
 0x22b   : > { %v6408_v5 = vpop.f32.mrf.mxu0  ;;  %v12425_v4 = vadd.f32 %v6983_v55, %v6716_v28  ;;  %v6717_v16 = vadd.f32 %v12405_v50, %v14411_v58  ;;  %v14416_v28 = vld [vmem:[#allocation27_spill] sm:$0xff] }
 0x22c   : > { %v6985_v6 = vpop.f32.mrf.mxu1  ;;  %v6718_v58 = vadd.f32 %v12405_v50, %v14416_v28  ;;  %v14423_v28 = vld [vmem:[#allocation94_spill] sm:$0xff] }
 0x22d   : > { %14409 = vst [vmem:[#allocation88_spill] sm:$0xff] %v12425_v4  ;;  %v12427_v2 = vpop.f32.mrf.mxu0  ;;  %v14420_v4 = vld [vmem:[#allocation93_spill] sm:$0xff] }
 0x22e   : > { %14410 = vst [vmem:[#allocation82_spill] sm:$0xff] %v12427_v2  ;;  %v6988_v49 = vpop.f32.mrf.mxu1  ;;  %7179 = vmatmul.mubr.bf16.gmra.mxu1 %v14412_v63 }
 0x22f   : > { %v6411_v20 = vpop.f32.mrf.mxu0  ;;  %v12432_v54 = vadd.f32 %v6988_v49, %v6717_v16  ;;  %9426 = vmatprep.mubr.msk.bf16.mxu1 %vm5602_vm6, %v14415_v30 }
 0x230   : > { %v6990_v55 = vpop.f32.mrf.mxu1 }
 0x231   : > { %14413 = vst [vmem:[#allocation86_spill] sm:$0xff] %v12432_v54  ;;  %v12434_v32 = vpop.f32.mrf.mxu0  ;;  %7803 = vmatmul.mubr.bf16.gmra.mxu0 %v14310_v0 }
 0x232   : > { %14414 = vst [vmem:[#allocation90_spill] sm:$0xff] %v12434_v32  ;;  %9507 = vmatprep.mubr.msk.bf16.mxu0 %vm5602_vm6, %v14312_v29  ;;  %v6991_v5 = vpop.f32.mrf.mxu1  ;;  %v14419_v32 = vld [vmem:[#allocation29_spill] sm:$0xff] }
 0x233   : > { %v6416_v20 = vpop.f32.mrf.mxu0  ;;  %v12443_v6 = vadd.f32 %v6991_v5, %v6718_v58  ;;  %v6719_v0 = vadd.f32 %v12405_v50, %v14419_v32 }
 0x234   : > { %v6993_v16 = vpop.f32.mrf.mxu1  ;;  %v14424_v20 = vld [vmem:[#allocation89_spill] sm:$0xff] }
 0x235   : > { %14417 = vst [vmem:[#allocation91_spill] sm:$0xff] %v12443_v6  ;;  %v12445_v49 = vpop.f32.mrf.mxu0  ;;  %v6720_v32 = vadd.f32 %v12405_v50, %v14424_v20  ;;  %v14428_v6 = vld [vmem:[#allocation95_spill] sm:$0xff]  ;;  %v14431_v20 = vld [vmem:[#allocation96_spill] sm:$0xff] }
 0x236   : > { %14418 = vst [vmem:[#allocation27_spill] sm:$0xff] %v12445_v49  ;;  %v6996_v54 = vpop.f32.mrf.mxu1  ;;  %7187 = vmatmul.mubr.bf16.gmra.mxu1 %v14420_v4 }
 0x237   : > { %v6419_v2 = vpop.f32.mrf.mxu0  ;;  %v12450_v55 = vadd.f32 %v6996_v54, %v6719_v0  ;;  %9427 = vmatprep.mubr.msk.bf16.mxu1 %vm5602_vm6, %v14423_v28 }
 0x238   : > { %v6998_v58 = vpop.f32.mrf.mxu1 }
 0x239   : > { %14421 = vst [vmem:[#allocation29_spill] sm:$0xff] %v12450_v55  ;;  %v12452_v29 = vpop.f32.mrf.mxu0  ;;  %7811 = vmatmul.mubr.bf16.gmra.mxu0 %v11086_v56 }
 0x23a   : > { %14422 = vst [vmem:[#allocation93_spill] sm:$0xff] %v12452_v29  ;;  %9508 = vmatprep.mubr.msk.bf16.mxu0 %vm5602_vm6, %v14318_v18  ;;  %v6999_v5 = vpop.f32.mrf.mxu1  ;;  %v14427_v29 = vld [vmem:[#allocation32_spill] sm:$0xff] }
 0x23b   : > { %v6424_v2 = vpop.f32.mrf.mxu0  ;;  %v12461_v16 = vadd.f32 %v6999_v5, %v6720_v32  ;;  %v6721_v56 = vadd.f32 %v12405_v50, %v14427_v29 }
 0x23c   : > { %v7001_v0 = vpop.f32.mrf.mxu1  ;;  %v14432_v2 = vld [vmem:[#allocation31_spill] sm:$0xff] }
 0x23d   : > { %14425 = vst [vmem:[#allocation94_spill] sm:$0xff] %v12461_v16  ;;  %v12463_v54 = vpop.f32.mrf.mxu0  ;;  %v6722_v29 = vadd.f32 %v12405_v50, %v14432_v2  ;;  %v14436_v16 = vld [vmem:[#allocation97_spill] sm:$0xff]  ;;  %v14439_v2 = vld [vmem:[#allocation98_spill] sm:$0xff] }
 0x23e   : > { %14426 = vst [vmem:[#allocation89_spill] sm:$0xff] %v12463_v54  ;;  %v7004_v55 = vpop.f32.mrf.mxu1  ;;  %7195 = vmatmul.mubr.bf16.gmra.mxu1 %v14428_v6 }
 0x23f   : > { %v6427_v49 = vpop.f32.mrf.mxu0  ;;  %v12468_v58 = vadd.f32 %v7004_v55, %v6721_v56  ;;  %9428 = vmatprep.mubr.msk.bf16.mxu1 %vm5602_vm6, %v14431_v20 }
 0x240   : > { %v7006_v32 = vpop.f32.mrf.mxu1 }
 0x241   : > { %14429 = vst [vmem:[#allocation32_spill] sm:$0xff] %v12468_v58  ;;  %v12470_v18 = vpop.f32.mrf.mxu0  ;;  %7819 = vmatmul.mubr.bf16.gmra.mxu0 %v11075_v35 }
 0x242   : > { %14430 = vst [vmem:[#allocation95_spill] sm:$0xff] %v12470_v18  ;;  %9509 = vmatprep.mubr.msk.bf16.mxu0 %vm5602_vm6, %v11120_v10  ;;  %v7007_v5 = vpop.f32.mrf.mxu1  ;;  %v14435_v18 = vld [vmem:[#allocation37_spill] sm:$0xff] }
 0x243   : > { %v6432_v49 = vpop.f32.mrf.mxu0  ;;  %v12479_v0 = vadd.f32 %v7007_v5, %v6722_v29  ;;  %v6723_v35 = vadd.f32 %v12405_v50, %v14435_v18 }
 0x244   : > { %v7009_v56 = vpop.f32.mrf.mxu1  ;;  %v14440_v49 = vld [vmem:[#allocation36_spill] sm:$0xff] }
 0x245   : > { %14433 = vst [vmem:[#allocation96_spill] sm:$0xff] %v12479_v0  ;;  %v12481_v55 = vpop.f32.mrf.mxu0  ;;  %v6724_v18 = vadd.f32 %v12405_v50, %v14440_v49 }
 0x246   : > { %14434 = vst [vmem:[#allocation31_spill] sm:$0xff] %v12481_v55  ;;  %v7012_v58 = vpop.f32.mrf.mxu1  ;;  %7203 = vmatmul.mubr.bf16.gmra.mxu1 %v14436_v16 }
 0x247   : > { %v6435_v54 = vpop.f32.mrf.mxu0  ;;  %v12486_v32 = vadd.f32 %v7012_v58, %v6723_v35  ;;  %9429 = vmatprep.mubr.msk.bf16.mxu1 %vm5602_vm6, %v14439_v2 }
 0x248   : > { %v7014_v29 = vpop.f32.mrf.mxu1 }
 0x249   : > { %14437 = vst [vmem:[#allocation37_spill] sm:$0xff] %v12486_v32  ;;  %v12488_v10 = vpop.f32.mrf.mxu0  ;;  %7827 = vmatmul.mubr.bf16.gmra.mxu0 %v14327_v48  ;;  %v14444_v29 = vld [vmem:[#allocation99_spill] sm:$0xff] }
 0x24a   : > { %14438 = vst [vmem:[#allocation97_spill] sm:$0xff] %v12488_v10  ;;  %9510 = vmatprep.mubr.msk.bf16.mxu0 %vm5602_vm6, %v14329_v7  ;;  %v7015_v5 = vpop.f32.mrf.mxu1  ;;  %v14443_v10 = vld [vmem:[#allocation40_spill] sm:$0xff] }
 0x24b   : > { %v6440_v54 = vpop.f32.mrf.mxu0  ;;  %v12497_v56 = vadd.f32 %v7015_v5, %v6724_v18  ;;  %v6725_v48 = vadd.f32 %v12405_v50, %v14443_v10  ;;  %v14447_v18 = vld [vmem:[#allocation41_spill] sm:$0xff] }
 0x24c   : > { %v7017_v35 = vpop.f32.mrf.mxu1  ;;  %v6726_v10 = vadd.f32 %v12405_v50, %v14447_v18 }
 0x24d   : > { %14441 = vst [vmem:[#allocation98_spill] sm:$0xff] %v12497_v56  ;;  %v12499_v58 = vpop.f32.mrf.mxu0 }
 0x24e   : > { %14442 = vst [vmem:[#allocation36_spill] sm:$0xff] %v12499_v58  ;;  %v7020_v32 = vpop.f32.mrf.mxu1  ;;  %7211 = vmatmul.mubr.bf16.gmra.mxu1 %v14444_v29 }
 0x24f   : > { %v6443_v55 = vpop.f32.mrf.mxu0  ;;  %v12504_v0 = vadd.f32 %v7020_v32, %v6725_v48  ;;  %9430 = vmatprep.mubr.msk.bf16.mxu1 %vm5602_vm6, %v12029_v57  ;;  %v9833_v48 = vld [vmem:[%s9951_s16 + $0x1f8] sm:$0xff]  }
 0x250   : > { %v7022_v49 = vpop.f32.mrf.mxu1 }
 0x251   : > { %14445 = vst [vmem:[#allocation40_spill] sm:$0xff] %v12504_v0  ;;  %v12506_v7 = vpop.f32.mrf.mxu0  ;;  %7835 = vmatmul.mubr.bf16.gmra.mxu0 %v11216_v46  ;;  %v14450_v46 = vld [vmem:[#allocation43_spill] sm:$0xff] }
 0x252   : > { %14446 = vst [vmem:[#allocation99_spill] sm:$0xff] %v12506_v7  ;;  %9511 = vmatprep.mubr.msk.bf16.mxu0 %vm5602_vm6, %v14335_v9  ;;  %v7023_v54 = vpop.f32.mrf.mxu1  ;;  %v6727_v7 = vadd.f32 %v12405_v50, %v14450_v46  ;;  %v1474_v9 = vshrl.u32 %v9833_v48, 16  ;;  %v469_v46 = vld [vmem:[%s12536_s22 + $0x4] sm:$0xf] }
 0x253   : > { %v6448_v55 = vpop.f32.mrf.mxu0  ;;  %v12515_v5 = vadd.f32 %v7023_v54, %v6726_v10 }
 0x254   : > { %v7025_v35 = vpop.f32.mrf.mxu1  ;;  %v1476_v55 = vrot.slane %v1474_v9, 7 }
 0x255   : > { %14448 = vst [vmem:[#allocation41_spill] sm:$0xff] %v12515_v5  ;;  %v12517_v32 = vpop.f32.mrf.mxu0  ;;  %v468_v35 = vld [vmem:[%s12536_s22] sm:$0xf] }
 0x256   : > { %14449 = vst [vmem:[#allocation163_spill] sm:$0xff] %v12517_v32  ;;  %v7028_v49 = vpop.f32.mrf.mxu1  ;;  %7219 = vmatmul.mubr.bf16.gmra.mxu1 %v12051_v17  ;;  %v490_v32 = vmul.bf16 0.0, %v469_v46  ;;  %v14458_v17 = vld [vmem:[#allocation35_spill] sm:$0xff]  ;;  %v14459_v46 = vld [vmem:[#allocation110_spill] sm:$0xff] }
 0x257   : > { %v6451_v58 = vpop.f32.mrf.mxu0  ;;  %v12523_v0 = vadd.f32 %v7028_v49, %v6727_v7  ;;  %9431 = vmatprep.mubr.msk.bf16.mxu1 %vm5602_vm6, %v12054_v21  ;;  %v14453_v7 = vld [vmem:[#allocation42_spill] sm:$0xff]  ;;  %v5227_v57 = vshrl.u32 %v14458_v17, 16  ;;  %v14463_v17 = vld [vmem:[#allocation103_spill] sm:$0xff] }
 0x258   : > { %v7030_v10 = vpop.f32.mrf.mxu1  ;;  %v1477_v58 = vshll.u32 %v9833_v48, 16  ;;  %v14457_v21 = vld [vmem:[#allocation102_spill] sm:$0xff] }
 0x259   : > { %14451 = vst [vmem:[#allocation43_spill] sm:$0xff] %v12523_v0  ;;  %v12525_v18 = vpop.f32.mrf.mxu0  ;;  %7843 = vmatmul.mubr.bf16.gmra.mxu0 %v14340_v23  ;;  %v6728_v23 = vadd.f32 %v12405_v50, %v14453_v7  ;;  %v14455_v0 = vld [vmem:[#allocation34_spill] sm:$0xff]  ;;  %v6729_v7 = vadd.f32 %v12405_v50, %v14457_v21 }
 0x25a   : > { %14452 = vst [vmem:[#allocation164_spill] sm:$0xff] %v12525_v18  ;;  %9512 = vmatprep.mubr.msk.bf16.mxu0 %vm5602_vm6, %v14342_v52  ;;  %v7031_v49 = vpop.f32.mrf.mxu1  ;;  %v1479_v10 = vor.u32 %v1477_v58, %v1476_v55  ;;  %v489_v18 = vmul.bf16 0.0, %v468_v35 }
 0x25b   : > { %v6456_v54 = vpop.f32.mrf.mxu0  ;;  %v12542_v52 = vadd.f32 %v7031_v49, %v6728_v23 }
 0x25c   : > { %v7033_v9 = vpop.f32.mrf.mxu1  ;;  %v12548_v5 = vsel %vm631_vm0, %v14455_v0, %v1479_v10  ;;  %v9217_v56 = vcombine.low %v489_v18, %v490_v32  ;;  %v14462_v0 = vld [vmem:[#allocation38_spill] sm:$0xff] }
 0x25d   : > { %v12544_v48 = vpop.f32.mrf.mxu0  ;;  %14456 = vst [vmem:[#allocation34_spill] sm:$0xff] %v12548_v5  ;;  %v5231_v58 = vshll.u32 %v12548_v5, 16  ;;  %v5229_v21 = vor.u32 %v5227_v57, %v14462_v0 }
 0x25e   : > { %14454 = vst [vmem:[#allocation42_spill] sm:$0xff] %v12544_v48  ;;  %v7036_v35 = vpop.f32.mrf.mxu1  ;;  %7227 = vmatmul.mubr.bf16.gmra.mxu1 %v14459_v46  ;;  %v1557_v23 = vshrl.u32 %v9217_v56, 16 }
 0x25f   : > { %v6459_v54 = vpop.f32.mrf.mxu0  ;;  %v12555_v49 = vadd.f32 %v7036_v35, %v6729_v7  ;;  %9432 = vmatprep.mubr.msk.bf16.mxu1 %vm5602_vm6, %v12082_v42  ;;  %v5233_v32 = vrot.slane %v5231_v58, 1  ;;  %v6730_v7 = vadd.f32 %v12405_v50, %v14463_v17 }
 0x260   : > { %v7038_v18 = vpop.f32.mrf.mxu1  ;;  %v12565_v10 = vrot.slane %v1557_v23, 7  ;;  %v1560_v54 = vshll.u32 %v9217_v56, 16  ;;  %v14467_v56 = vld [vmem:[#allocation107_spill] sm:$0xff] }
 0x261   : > { %14460 = vst [vmem:[#allocation102_spill] sm:$0xff] %v12555_v49  ;;  %v12557_v9 = vpop.f32.mrf.mxu0  ;;  %7851 = vmatmul.mubr.bf16.gmra.mxu0 %v14347_v3  ;;  %v6731_v17 = vadd.f32 %v12405_v50, %v14467_v56  ;;  %v14468_v49 = vld [vmem:[#allocation115_spill] sm:$0xff]  ;;  %v14471_v56 = vld [vmem:[#allocation109_spill] sm:$0xff] }
 0x262   : > { %14461 = vst [vmem:[#allocation110_spill] sm:$0xff] %v12557_v9  ;;  %9513 = vmatprep.mubr.msk.bf16.mxu0 %vm5602_vm6, %v14349_v13  ;;  %v5234_v9 = vsel %vm4710_vm2, %v5229_v21, %v5233_v32  ;;  %v7039_v3 = vpop.f32.mrf.mxu1  ;;  %v1562_v48 = vor.u32 %v1560_v54, %v12565_v10  ;;  %v5235_v21 = vshrl.u32 %v12548_v5, 16  ;;  %v14606_v13 = vld [vmem:[#allocation93_spill] sm:$0xff] }
 0x263   : > { %v6464_v35 = vpop.f32.mrf.mxu0  ;;  %5387 = vrot.lane.b32.xlu0 %v5234_v9, %s9863_s21  ;;  %v12572_v57 = vadd.f32 %v7039_v3, %v6730_v7  ;;  %v14470_v3 = vld [vmem:[#allocation116_spill] sm:$0xff] }
 0x264   : > { %v7041_v0 = vpop.f32.mrf.mxu1  ;;  %v12578_v23 = vsel %vm9980_vm3, %v1476_v55, %v1562_v48  ;;  %v5237_v55 = vor.u32 %v5235_v21, %v5233_v32  ;;  %v14473_v21 = vld [vmem:[#allocation112_spill] sm:$0xff] }
 0x265   : > { %v12574_v58 = vpop.f32.mrf.mxu0  ;;  %14466 = vst [vmem:[#allocation103_spill] sm:$0xff] %v12578_v23  ;;  %v5239_v35 = vshll.u32 %v12578_v23, 16 }
 0x266   : > { %14464 = vst [vmem:[#allocation38_spill] sm:$0xff] %v12574_v58  ;;  %v7044_v9 = vpop.f32.mrf.mxu1  ;;  %7235 = vmatmul.mubr.bf16.gmra.mxu1 %v14468_v49  ;;  %v14474_v58 = vld [vmem:[#allocation119_spill] sm:$0xff] }
 0x267   : > { %v6467_v18 = vpop.f32.mrf.mxu0  ;;  %v12585_v54 = vadd.f32 %v7044_v9, %v6731_v17  ;;  %9433 = vmatprep.mubr.msk.bf16.mxu1 %vm5602_vm6, %v14470_v3  ;;  %v12592_v48 = vrot.slane %v5239_v35, 1  ;;  %v6733_v35 = vadd.f32 %v12405_v50, %v14473_v21 }
 0x268   : > { %v7046_v0 = vpop.f32.mrf.mxu1  ;;  %v6732_v18 = vadd.f32 %v12405_v50, %v14471_v56 }
 0x269   : > { %v12587_v7 = vpop.f32.mrf.mxu0  ;;  %7859 = vmatmul.mubr.bf16.gmra.mxu0 %v14354_v61  ;;  %v5242_v17 = vsel %vm4710_vm2, %v5237_v55, %v12592_v48 }
 0x26a   : > { %14469 = vst [vmem:[#allocation4_spill] sm:$0xff] %v12587_v7  ;;  %9514 = vmatprep.mubr.msk.bf16.mxu0 %vm5602_vm6, %v14356_v14  ;;  %v7047_v9 = vpop.f32.mrf.mxu1  ;;  %5389 = vrot.lane.b32.xlu1 %v5242_v17, %s9863_s21 }
 0x26b   : > { %v6472_v5 = vpop.f32.mrf.mxu0  ;;  %v12601_v61 = vadd.f32 %v7047_v9, %v6732_v18  ;;  %v14476_v18 = vld [vmem:[#allocation114_spill] sm:$0xff] }
 0x26c   : > { %v7049_v32 = vpop.f32.mrf.mxu1  ;;  %v6734_v17 = vadd.f32 %v12405_v50, %v14476_v18 }
 0x26d   : > { %v12603_v7 = vpop.f32.mrf.mxu0 }
 0x26e   : > { %14472 = vst [vmem:[#allocation107_spill] sm:$0xff] %v12603_v7  ;;  %v7052_v14 = vpop.f32.mrf.mxu1  ;;  %7243 = vmatmul.mubr.bf16.gmra.mxu1 %v14474_v58 }
 0x26f   : > { %v6475_v0 = vpop.f32.mrf.mxu0  ;;  %v12608_v56 = vadd.f32 %v7052_v14, %v6733_v35  ;;  %9434 = vmatprep.mubr.msk.bf16.mxu1 %vm5602_vm6, %v12133_v38  ;;  %v14478_v14 = vld [vmem:[#allocation52_spill] sm:$0xff] }
 0x270   : > { %v7054_v55 = vpop.f32.mrf.mxu1 }
 0x271   : > { %v12610_v5 = vpop.f32.mrf.mxu0  ;;  %7867 = vmatmul.mubr.bf16.gmra.mxu0 %v11432_v43  ;;  %v6735_v43 = vadd.f32 %v12405_v50, %v14478_v14 }
 0x272   : > { %14475 = vst [vmem:[#allocation115_spill] sm:$0xff] %v12610_v5  ;;  %9515 = vmatprep.mubr.msk.bf16.mxu0 %vm5602_vm6, %v14361_v19  ;;  %v7055_v32 = vpop.f32.mrf.mxu1 }
 0x273   : > { %v6480_v9 = vpop.f32.mrf.mxu0  ;;  %v12619_v21 = vadd.f32 %v7055_v32, %v6734_v17  ;;  %v14481_v17 = vld [vmem:[#allocation118_spill] sm:$0xff] }
 0x274   : > { %v7057_v0 = vpop.f32.mrf.mxu1  ;;  %v6736_v9 = vadd.f32 %v12405_v50, %v14481_v17 }
 0x275   : > { %v12621_v35 = vpop.f32.mrf.mxu0 }
 0x276   : > { %14477 = vst [vmem:[#allocation116_spill] sm:$0xff] %v12621_v35  ;;  %v7060_v7 = vpop.f32.mrf.mxu1  ;;  %7251 = vmatmul.mubr.bf16.gmra.mxu1 %v12153_v11 }
 0x277   : > { %v6483_v5 = vpop.f32.mrf.mxu0  ;;  %v12626_v55 = vadd.f32 %v7060_v7, %v6735_v43  ;;  %9435 = vmatprep.mubr.msk.bf16.mxu1 %vm5602_vm6, %v12156_v12  ;;  %v14483_v43 = vld [vmem:[#allocation121_spill] sm:$0xff] }
 0x278   : > { %v7062_v18 = vpop.f32.mrf.mxu1 }
 0x279   : > { %14479 = vst [vmem:[#allocation109_spill] sm:$0xff] %v12626_v55  ;;  %v12628_v19 = vpop.f32.mrf.mxu0  ;;  %7875 = vmatmul.mubr.bf16.gmra.mxu0 %v14366_v41  ;;  %v6737_v41 = vadd.f32 %v12405_v50, %v14483_v43  ;;  %v14484_v55 = vld [vmem:[#allocation127_spill] sm:$0xff] }
 0x27a   : > { %14480 = vst [vmem:[#allocation112_spill] sm:$0xff] %v12628_v19  ;;  %9516 = vmatprep.mubr.msk.bf16.mxu0 %vm5602_vm6, %v14368_v44  ;;  %v7063_v32 = vpop.f32.mrf.mxu1 }
 0x27b   : > { %v6488_v5 = vpop.f32.mrf.mxu0  ;;  %v12637_v0 = vadd.f32 %v7063_v32, %v6736_v9  ;;  %v14487_v9 = vld [vmem:[#allocation122_spill] sm:$0xff] }
 0x27c   : > { %v7065_v14 = vpop.f32.mrf.mxu1  ;;  %v6738_v5 = vadd.f32 %v12405_v50, %v14487_v9  ;;  %v14494_v9 = vld [vmem:[#allocation30_spill] sm:$0xff] }
 0x27d   : > { %v12639_v7 = vpop.f32.mrf.mxu0 }
 0x27e   : > { %14482 = vst [vmem:[#allocation119_spill] sm:$0xff] %v12639_v7  ;;  %v7068_v35 = vpop.f32.mrf.mxu1  ;;  %7259 = vmatmul.mubr.bf16.gmra.mxu1 %v14484_v55 }
 0x27f   : > { %v6491_v19 = vpop.f32.mrf.mxu0  ;;  %v12644_v18 = vadd.f32 %v7068_v35, %v6737_v41  ;;  %9436 = vmatprep.mubr.msk.bf16.mxu1 %vm5602_vm6, %v12180_v53  ;;  %v14490_v41 = vld [vmem:[#allocation124_spill] sm:$0xff] }
 0x280   : > { %v7070_v17 = vpop.f32.mrf.mxu1 }
 0x281   : > { %14485 = vst [vmem:[#allocation114_spill] sm:$0xff] %v12644_v18  ;;  %v12646_v44 = vpop.f32.mrf.mxu0  ;;  %7883 = vmatmul.mubr.bf16.gmra.mxu0 %v11546_v26  ;;  %v6739_v26 = vadd.f32 %v12405_v50, %v14490_v41  ;;  %v14491_v18 = vld [vmem:[#allocation130_spill] sm:$0xff] }
 0x282   : > { %14486 = vst [vmem:[#allocation52_spill] sm:$0xff] %v12646_v44  ;;  %9517 = vmatprep.mubr.msk.bf16.mxu0 %vm5602_vm6, %v14373_v39  ;;  %v7071_v32 = vpop.f32.mrf.mxu1 }
 0x283   : > { %v6496_v19 = vpop.f32.mrf.mxu0  ;;  %v12655_v14 = vadd.f32 %v7071_v32, %v6738_v5 }
 0x284   : > { %v7073_v43 = vpop.f32.mrf.mxu1  ;;  %v14495_v19 = vld [vmem:[#allocation126_spill] sm:$0xff] }
 0x285   : > { %14488 = vst [vmem:[#allocation118_spill] sm:$0xff] %v12655_v14  ;;  %v12657_v35 = vpop.f32.mrf.mxu0  ;;  %v6740_v32 = vadd.f32 %v12405_v50, %v14495_v19  ;;  %v14498_v14 = vld [vmem:[#allocation134_spill] sm:$0xff] }
 0x286   : > { %14489 = vst [vmem:[#allocation121_spill] sm:$0xff] %v12657_v35  ;;  %v7076_v7 = vpop.f32.mrf.mxu1  ;;  %7267 = vmatmul.mubr.bf16.gmra.mxu1 %v14491_v18 }
 0x287   : > { %v6499_v44 = vpop.f32.mrf.mxu0  ;;  %v12662_v17 = vadd.f32 %v7076_v7, %v6739_v26  ;;  %9437 = vmatprep.mubr.msk.bf16.mxu1 %vm5602_vm6, %v14494_v9 }
 0x288   : > { %v7078_v5 = vpop.f32.mrf.mxu1 }
 0x289   : > { %14492 = vst [vmem:[#allocation127_spill] sm:$0xff] %v12662_v17  ;;  %v12664_v39 = vpop.f32.mrf.mxu0  ;;  %7891 = vmatmul.mubr.bf16.gmra.mxu0 %v14377_v25 }
 0x28a   : > { %14493 = vst [vmem:[#allocation122_spill] sm:$0xff] %v12664_v39  ;;  %9518 = vmatprep.mubr.msk.bf16.mxu0 %vm5602_vm6, %v14379_v62  ;;  %v7079_v43 = vpop.f32.mrf.mxu1  ;;  %v14497_v39 = vld [vmem:[#allocation9_spill] sm:$0xff] }
 0x28b   : > { %v6504_v44 = vpop.f32.mrf.mxu0  ;;  %v12673_v41 = vadd.f32 %v7079_v43, %v6740_v32  ;;  %v6741_v25 = vadd.f32 %v12405_v50, %v14497_v39  ;;  %v14501_v32 = vld [vmem:[#allocation129_spill] sm:$0xff] }
 0x28c   : > { %v7081_v26 = vpop.f32.mrf.mxu1  ;;  %v6742_v39 = vadd.f32 %v12405_v50, %v14501_v32  ;;  %v14508_v32 = vld [vmem:[#allocation92_spill] sm:$0xff] }
 0x28d   : > { %v12675_v7 = vpop.f32.mrf.mxu0 }
 0x28e   : > { %14496 = vst [vmem:[#allocation124_spill] sm:$0xff] %v12675_v7  ;;  %v7084_v17 = vpop.f32.mrf.mxu1  ;;  %7275 = vmatmul.mubr.bf16.gmra.mxu1 %v14498_v14 }
 0x28f   : > { %v6507_v35 = vpop.f32.mrf.mxu0  ;;  %v12680_v5 = vadd.f32 %v7084_v17, %v6741_v25  ;;  %9438 = vmatprep.mubr.msk.bf16.mxu1 %vm5602_vm6, %v11894_v24  ;;  %v14504_v25 = vld [vmem:[#allocation132_spill] sm:$0xff] }
 0x290   : > { %v7086_v19 = vpop.f32.mrf.mxu1 }
 0x291   : > { %14499 = vst [vmem:[#allocation130_spill] sm:$0xff] %v12680_v5  ;;  %v12682_v62 = vpop.f32.mrf.mxu0  ;;  %7899 = vmatmul.mubr.bf16.gmra.mxu0 %v11674_v34  ;;  %v6743_v34 = vadd.f32 %v12405_v50, %v14504_v25  ;;  %v14505_v5 = vld [vmem:[#allocation137_spill] sm:$0xff] }
 0x292   : > { %14500 = vst [vmem:[#allocation30_spill] sm:$0xff] %v12682_v62  ;;  %9519 = vmatprep.mubr.msk.bf16.mxu0 %vm5602_vm6, %v11687_v27  ;;  %v7087_v44 = vpop.f32.mrf.mxu1 }
 0x293   : > { %v6512_v35 = vpop.f32.mrf.mxu0  ;;  %v12691_v43 = vadd.f32 %v7087_v44, %v6742_v39 }
 0x294   : > { %v7089_v26 = vpop.f32.mrf.mxu1  ;;  %v14509_v35 = vld [vmem:[#allocation133_spill] sm:$0xff] }
 0x295   : > { %14502 = vst [vmem:[#allocation126_spill] sm:$0xff] %v12691_v43  ;;  %v12693_v17 = vpop.f32.mrf.mxu0  ;;  %v6744_v44 = vadd.f32 %v12405_v50, %v14509_v35  ;;  %v14512_v43 = vld [vmem:[#allocation140_spill] sm:$0xff] }
 0x296   : > { %14503 = vst [vmem:[#allocation9_spill] sm:$0xff] %v12693_v17  ;;  %v7092_v7 = vpop.f32.mrf.mxu1  ;;  %7283 = vmatmul.mubr.bf16.gmra.mxu1 %v14505_v5 }
 0x297   : > { %v6515_v62 = vpop.f32.mrf.mxu0  ;;  %v12698_v19 = vadd.f32 %v7092_v7, %v6743_v34  ;;  %9439 = vmatprep.mubr.msk.bf16.mxu1 %vm5602_vm6, %v14508_v32 }
 0x298   : > { %v7094_v39 = vpop.f32.mrf.mxu1 }
 0x299   : > { %14506 = vst [vmem:[#allocation134_spill] sm:$0xff] %v12698_v19  ;;  %v12700_v27 = vpop.f32.mrf.mxu0  ;;  %7907 = vmatmul.mubr.bf16.gmra.mxu0 %v11714_v45 }
 0x29a   : > { %14507 = vst [vmem:[#allocation129_spill] sm:$0xff] %v12700_v27  ;;  %9520 = vmatprep.mubr.msk.bf16.mxu0 %vm5602_vm6, %v11724_v47  ;;  %v7095_v26 = vpop.f32.mrf.mxu1  ;;  %v14511_v27 = vld [vmem:[#allocation65_spill] sm:$0xff] }
 0x29b   : > { %v6520_v62 = vpop.f32.mrf.mxu0  ;;  %v12709_v25 = vadd.f32 %v7095_v26, %v6744_v44  ;;  %v6745_v45 = vadd.f32 %v12405_v50, %v14511_v27  ;;  %v14514_v44 = vld [vmem:[#allocation136_spill] sm:$0xff] }
 0x29c   : > { %v7097_v34 = vpop.f32.mrf.mxu1  ;;  %v6746_v27 = vadd.f32 %v12405_v50, %v14514_v44 }
 0x29d   : > { %v12711_v7 = vpop.f32.mrf.mxu0 }
 0x29e   : > { %14510 = vst [vmem:[#allocation132_spill] sm:$0xff] %v12711_v7  ;;  %v7100_v19 = vpop.f32.mrf.mxu1  ;;  %7291 = vmatmul.mubr.bf16.gmra.mxu1 %v14512_v43 }
 0x29f   : > { %v6523_v17 = vpop.f32.mrf.mxu0  ;;  %v12716_v39 = vadd.f32 %v7100_v19, %v6745_v45  ;;  %9440 = vmatprep.mubr.msk.bf16.mxu1 %vm5602_vm6, %v11936_v40  ;;  %v14516_v45 = vld [vmem:[#allocation69_spill] sm:$0xff] }
 0x2a0   : > { %v7102_v35 = vpop.f32.mrf.mxu1 }
 0x2a1   : > { %v12718_v47 = vpop.f32.mrf.mxu0  ;;  %7915 = vmatmul.mubr.bf16.gmra.mxu0 %v14391_v15  ;;  %v6747_v15 = vadd.f32 %v12405_v50, %v14516_v45 }
 0x2a2   : > { %14513 = vst [vmem:[#allocation137_spill] sm:$0xff] %v12718_v47  ;;  %9521 = vmatprep.mubr.msk.bf16.mxu0 %vm5602_vm6, %v14394_v60  ;;  %v7103_v62 = vpop.f32.mrf.mxu1 }
 0x2a3   : > { %v6528_v17 = vpop.f32.mrf.mxu0  ;;  %v12727_v26 = vadd.f32 %v7103_v62, %v6746_v27  ;;  %v14518_v27 = vld [vmem:[#allocation139_spill] sm:$0xff] }
 0x2a4   : > { %v7105_v34 = vpop.f32.mrf.mxu1  ;;  %v6748_v17 = vadd.f32 %v12405_v50, %v14518_v27 }
 0x2a5   : > { %v12729_v19 = vpop.f32.mrf.mxu0 }
 0x2a6   : > { %14515 = vst [vmem:[#allocation92_spill] sm:$0xff] %v12729_v19  ;;  %v7108_v7 = vpop.f32.mrf.mxu1  ;;  %7299 = vmatmul.mubr.bf16.gmra.mxu1 %v12277_v1 }
 0x2a7   : > { %v6531_v47 = vpop.f32.mrf.mxu0  ;;  %v12734_v35 = vadd.f32 %v7108_v7, %v6747_v15  ;;  %9441 = vmatprep.mubr.msk.bf16.mxu1 %vm5602_vm6, %v11940_v22  ;;  %v14521_v15 = vld [vmem:[#allocation70_spill] sm:$0xff] }
 0x2a8   : > { %v7110_v44 = vpop.f32.mrf.mxu1 }
 0x2a9   : > { %v12736_v60 = vpop.f32.mrf.mxu0  ;;  %7923 = vmatmul.mubr.bf16.gmra.mxu0 %v14398_v33  ;;  %v6749_v33 = vadd.f32 %v12405_v50, %v14521_v15 }
 0x2aa   : > { %14517 = vst [vmem:[#allocation133_spill] sm:$0xff] %v12736_v60  ;;  %9522 = vmatprep.mubr.msk.bf16.mxu0 %vm5602_vm6, %v14400_v8  ;;  %v7111_v62 = vpop.f32.mrf.mxu1 }
 0x2ab   : > { %v6536_v47 = vpop.f32.mrf.mxu0  ;;  %v12745_v34 = vadd.f32 %v7111_v62, %v6748_v17  ;;  %v14524_v17 = vld [vmem:[#allocation142_spill] sm:$0xff] }
 0x2ac   : > { %v7113_v45 = vpop.f32.mrf.mxu1  ;;  %v6750_v47 = vadd.f32 %v12405_v50, %v14524_v17  ;;  %v14530_v17 = vld [vmem:[#allocation26_spill] sm:$0xff] }
 0x2ad   : > { %14519 = vst [vmem:[#allocation65_spill] sm:$0xff] %v12745_v34  ;;  %v12747_v7 = vpop.f32.mrf.mxu0 }
 0x2ae   : > { %14520 = vst [vmem:[#allocation140_spill] sm:$0xff] %v12747_v7  ;;  %v7116_v19 = vpop.f32.mrf.mxu1  ;;  %7307 = vmatmul.mubr.bf16.gmra.mxu1 %v12296_v37 }
 0x2af   : > { %v6539_v60 = vpop.f32.mrf.mxu0  ;;  %v12752_v44 = vadd.f32 %v7116_v19, %v6749_v33  ;;  %9442 = vmatprep.mubr.msk.bf16.mxu1 %vm5602_vm6, %v12302_v31  ;;  %v14527_v33 = vld [vmem:[#allocation144_spill] sm:$0xff] }
 0x2b0   : > { %v7118_v27 = vpop.f32.mrf.mxu1 }
 0x2b1   : > { %14522 = vst [vmem:[#allocation136_spill] sm:$0xff] %v12752_v44  ;;  %v12754_v8 = vpop.f32.mrf.mxu0  ;;  %7931 = vmatmul.mubr.bf16.gmra.mxu0 %v14404_v59  ;;  %v6751_v59 = vadd.f32 %v12405_v50, %v14527_v33  ;;  %v14542_v44 = vld [vmem:[#allocation148_spill] sm:$0xff] }
 0x2b2   : > { %14523 = vst [vmem:[#allocation69_spill] sm:$0xff] %v12754_v8  ;;  %9523 = vmatprep.mubr.msk.bf16.mxu0 %vm5602_vm6, %v14407_v51  ;;  %v7119_v62 = vpop.f32.mrf.mxu1 }
 0x2b3   : > { %v6544_v60 = vpop.f32.mrf.mxu0  ;;  %v12763_v45 = vadd.f32 %v7119_v62, %v6750_v47 }
 0x2b4   : > { %v7121_v15 = vpop.f32.mrf.mxu1  ;;  %v14531_v60 = vld [vmem:[#allocation145_spill] sm:$0xff] }
 0x2b5   : > { %14525 = vst [vmem:[#allocation139_spill] sm:$0xff] %v12763_v45  ;;  %v12765_v19 = vpop.f32.mrf.mxu0  ;;  %v6752_v62 = vadd.f32 %v12405_v50, %v14531_v60  ;;  %v14535_v45 = vld [vmem:[#allocation48_spill] sm:$0xff]  ;;  %v14537_v60 = vld [vmem:[#allocation45_spill] sm:$0xff] }
 0x2b6   : > { %14526 = vst [vmem:[#allocation70_spill] sm:$0xff] %v12765_v19  ;;  %v7124_v7 = vpop.f32.mrf.mxu1  ;;  %7315 = vmatmul.mubr.bf16.gmra.mxu1 %v12320_v36 }
 0x2b7   : > { %v6547_v8 = vpop.f32.mrf.mxu0  ;;  %v12770_v27 = vadd.f32 %v7124_v7, %v6751_v59  ;;  %9443 = vmatprep.mubr.msk.bf16.mxu1 %vm5602_vm6, %v14530_v17 }
 0x2b8   : > { %v7126_v47 = vpop.f32.mrf.mxu1 }
 0x2b9   : > { %14528 = vst [vmem:[#allocation142_spill] sm:$0xff] %v12770_v27  ;;  %v12772_v51 = vpop.f32.mrf.mxu0  ;;  %7939 = vmatmul.mubr.bf16.gmra.mxu0 %v14412_v63 }
 0x2ba   : > { %14529 = vst [vmem:[#allocation144_spill] sm:$0xff] %v12772_v51  ;;  %9524 = vmatprep.mubr.msk.bf16.mxu0 %vm5602_vm6, %v14415_v30  ;;  %v7127_v15 = vpop.f32.mrf.mxu1  ;;  %v14534_v51 = vld [vmem:[#allocation76_spill] sm:$0xff] }
 0x2bb   : > { %v6552_v8 = vpop.f32.mrf.mxu0  ;;  %v12781_v33 = vadd.f32 %v7127_v15, %v6752_v62  ;;  %v6753_v63 = vadd.f32 %v12405_v50, %v14534_v51 }
 0x2bc   : > { %v7129_v59 = vpop.f32.mrf.mxu1  ;;  %v14538_v8 = vld [vmem:[#allocation20_spill] sm:$0xff] }
 0x2bd   : > { %14532 = vst [vmem:[#allocation26_spill] sm:$0xff] %v12781_v33  ;;  %v12783_v7 = vpop.f32.mrf.mxu0  ;;  %v14539_v59 = vld [vmem:[#allocation146_spill] sm:$0xff] }
 0x2be   : > { %14533 = vst [vmem:[#allocation145_spill] sm:$0xff] %v12783_v7  ;;  %v7132_v27 = vpop.f32.mrf.mxu1  ;;  %7323 = vmatmul.mubr.bf16.gmra.mxu1 %v14535_v45 }
 0x2bf   : > { %v6555_v19 = vpop.f32.mrf.mxu0  ;;  %v12788_v47 = vadd.f32 %v7132_v27, %v6753_v63  ;;  %9444 = vmatprep.mubr.msk.bf16.mxu1 %vm5602_vm6, %v14537_v60  ;;  %v6755_v60 = vadd.f32 %v12405_v50, %v14542_v44  ;;  %v14548_v44 = vld [vmem:[#allocation149_spill] sm:$0xff] }
 0x2c0   : > { %v7134_v62 = vpop.f32.mrf.mxu1  ;;  %v6754_v19 = vadd.f32 %v12405_v50, %v14539_v59 }
 0x2c1   : > { %14536 = vst [vmem:[#allocation76_spill] sm:$0xff] %v12788_v47  ;;  %v7756_v30 = vpop.f32.mrf.mxu0  ;;  %7947 = vmatmul.mubr.bf16.gmra.mxu0 %v14420_v4  ;;  %v14541_v47 = vld [vmem:[#allocation88_spill] sm:$0xff] }
 0x2c2   : > { %v8267_v15 = vadd.f32 %v7756_v30, %v14538_v8  ;;  %9525 = vmatprep.mubr.msk.bf16.mxu0 %vm5602_vm6, %v14423_v28  ;;  %v7135_v7 = vpop.f32.mrf.mxu1  ;;  %v14543_v8 = vld [vmem:[#allocation49_spill] sm:$0xff] }
 0x2c3   : > { %v7758_v51 = vpop.f32.mrf.mxu0  ;;  %v12798_v33 = vadd.f32 %v7135_v7, %v6754_v19  ;;  %v14545_v7 = vld [vmem:[#allocation46_spill] sm:$0xff] }
 0x2c4   : > { %v7137_v63 = vpop.f32.mrf.mxu1  ;;  %v8395_v45 = vmax.f32 %v8267_v15, 0.0  ;;  %v14547_v51 = vld [vmem:[#allocation86_spill] sm:$0xff]  ;;  %v6756_v15 = vadd.f32 %v12405_v50, %v14548_v44 }
 0x2c5   : > { %14540 = vst [vmem:[#allocation20_spill] sm:$0xff] %v12798_v33  ;;  %v7759_v27 = vpop.f32.mrf.mxu0  ;;  %v14551_v33 = vld [vmem:[#allocation79_spill] sm:$0xff] }
 0x2c6   : > { %v8268_v4 = vadd.f32 %v7759_v27, %v14541_v47  ;;  %v7140_v30 = vpop.f32.mrf.mxu1  ;;  %7331 = vmatmul.mubr.bf16.gmra.mxu1 %v14543_v8 }
 0x2c7   : > { %v7761_v62 = vpop.f32.mrf.mxu0  ;;  %v12804_v34 = vadd.f32 %v7140_v30, %v6755_v60  ;;  %9445 = vmatprep.mubr.msk.bf16.mxu1 %vm5602_vm6, %v14545_v7  ;;  %v14550_v30 = vld [vmem:[#allocation91_spill] sm:$0xff] }
 0x2c8   : > { %v8396_v28 = vmax.f32 %v8268_v4, 0.0  ;;  %v7142_v47 = vpop.f32.mrf.mxu1 }
 0x2c9   : > { %14544 = vst [vmem:[#allocation146_spill] sm:$0xff] %v12804_v34  ;;  %v7764_v59 = vpop.f32.mrf.mxu0  ;;  %7955 = vmatmul.mubr.bf16.gmra.mxu0 %v14428_v6 }
 0x2ca   : > { %v12809_v19 = vpack.c.bf16 %v8396_v28, %v8395_v45  ;;  %v8269_v27 = vadd.f32 %v7764_v59, %v14547_v51  ;;  %9526 = vmatprep.mubr.msk.bf16.mxu0 %vm5602_vm6, %v14431_v20  ;;  %v7143_v60 = vpop.f32.mrf.mxu1  ;;  %v6757_v45 = vadd.f32 %v12405_v50, %v14551_v33  ;;  %v14552_v51 = vld [vmem:[#allocation7_spill] sm:$0xff] }
 0x2cb   : > { %v7766_v63 = vpop.f32.mrf.mxu0  ;;  %v12816_v4 = vadd.f32 %v7143_v60, %v6756_v15  ;;  %v14554_v15 = vld [vmem:[#allocation50_spill] sm:$0xff]  ;;  %v14557_v33 = vld [vmem:[#allocation151_spill] sm:$0xff] }
 0x2cc   : > { %14546 = vst [vmem:[#allocation88_spill] sm:$0xff] %v12809_v19  ;;  %v7145_v6 = vpop.f32.mrf.mxu1  ;;  %v8397_v47 = vmax.f32 %v8269_v27, 0.0  ;;  %v6758_v27 = vadd.f32 %v12405_v50, %v14557_v33 }
 0x2cd   : > { %14549 = vst [vmem:[#allocation148_spill] sm:$0xff] %v12816_v4  ;;  %v7767_v62 = vpop.f32.mrf.mxu0  ;;  %v14560_v4 = vld [vmem:[#allocation153_spill] sm:$0xff] }
 0x2ce   : > { %v8270_v34 = vadd.f32 %v7767_v62, %v14550_v30  ;;  %v7148_v59 = vpop.f32.mrf.mxu1  ;;  %7339 = vmatmul.mubr.bf16.gmra.mxu1 %v14552_v51  ;;  %v14556_v62 = vld [vmem:[#allocation29_spill] sm:$0xff] }
 0x2cf   : > { %v7769_v28 = vpop.f32.mrf.mxu0  ;;  %v12822_v19 = vadd.f32 %v7148_v59, %v6757_v45  ;;  %9446 = vmatprep.mubr.msk.bf16.mxu1 %vm5602_vm6, %v14554_v15  ;;  %v14559_v59 = vld [vmem:[#allocation94_spill] sm:$0xff] }
 0x2d0   : > { %v8398_v20 = vmax.f32 %v8270_v34, 0.0  ;;  %v7150_v60 = vpop.f32.mrf.mxu1 }
 0x2d1   : > { %14553 = vst [vmem:[#allocation49_spill] sm:$0xff] %v12822_v19  ;;  %v7772_v44 = vpop.f32.mrf.mxu0  ;;  %7963 = vmatmul.mubr.bf16.gmra.mxu0 %v14436_v16 }
 0x2d2   : > { %v12827_v63 = vpack.c.bf16 %v8398_v20, %v8397_v47  ;;  %v8271_v6 = vadd.f32 %v7772_v44, %v14556_v62  ;;  %9527 = vmatprep.mubr.msk.bf16.mxu0 %vm5602_vm6, %v14439_v2  ;;  %v7151_v30 = vpop.f32.mrf.mxu1  ;;  %v6759_v47 = vadd.f32 %v12405_v50, %v14560_v4  ;;  %v14561_v62 = vld [vmem:[#allocation53_spill] sm:$0xff]  ;;  %v14566_v4 = vld [vmem:[#allocation100_spill] sm:$0xff] }
 0x2d3   : > { %v7774_v34 = vpop.f32.mrf.mxu0  ;;  %v12834_v45 = vadd.f32 %v7151_v30, %v6758_v27  ;;  %v14563_v27 = vld [vmem:[#allocation51_spill] sm:$0xff] }
 0x2d4   : > { %14555 = vst [vmem:[#allocation46_spill] sm:$0xff] %v12827_v63  ;;  %v7153_v16 = vpop.f32.mrf.mxu1  ;;  %v8399_v60 = vmax.f32 %v8271_v6, 0.0  ;;  %v14567_v6 = vld [vmem:[#allocation155_spill] sm:$0xff] }
 0x2d5   : > { %14558 = vst [vmem:[#allocation86_spill] sm:$0xff] %v12834_v45  ;;  %v7775_v28 = vpop.f32.mrf.mxu0 }
 0x2d6   : > { %v8272_v19 = vadd.f32 %v7775_v28, %v14559_v59  ;;  %v7156_v44 = vpop.f32.mrf.mxu1  ;;  %7347 = vmatmul.mubr.bf16.gmra.mxu1 %v14561_v62  ;;  %v14565_v28 = vld [vmem:[#allocation32_spill] sm:$0xff]  ;;  %v6760_v59 = vadd.f32 %v12405_v50, %v14567_v6 }
 0x2d7   : > { %v7777_v20 = vpop.f32.mrf.mxu0  ;;  %v12840_v63 = vadd.f32 %v7156_v44, %v6759_v47  ;;  %9447 = vmatprep.mubr.msk.bf16.mxu1 %vm5602_vm6, %v14563_v27  ;;  %v14570_v27 = vld [vmem:[#allocation157_spill] sm:$0xff] }
 0x2d8   : > { %v8400_v2 = vmax.f32 %v8272_v19, 0.0  ;;  %v7158_v30 = vpop.f32.mrf.mxu1 }
 0x2d9   : > { %14562 = vst [vmem:[#allocation149_spill] sm:$0xff] %v12840_v63  ;;  %v7780_v33 = vpop.f32.mrf.mxu0  ;;  %7971 = vmatmul.mubr.bf16.gmra.mxu0 %v14444_v29  ;;  %v14569_v63 = vld [vmem:[#allocation96_spill] sm:$0xff] }
 0x2da   : > { %v12845_v34 = vpack.c.bf16 %v8400_v2, %v8399_v60  ;;  %v8273_v16 = vadd.f32 %v7780_v33, %v14565_v28  ;;  %9528 = vmatprep.mubr.msk.bf16.mxu0 %vm5602_vm6, %v14566_v4  ;;  %v7159_v47 = vpop.f32.mrf.mxu1  ;;  %v6761_v60 = vadd.f32 %v12405_v50, %v14570_v27  ;;  %v14571_v28 = vld [vmem:[#allocation56_spill] sm:$0xff]  ;;  %v14577_v27 = vld [vmem:[#allocation105_spill] sm:$0xff] }
 0x2db   : > { %v7782_v19 = vpop.f32.mrf.mxu0  ;;  %v12852_v20 = vadd.f32 %v7159_v47, %v6760_v59  ;;  %v14574_v59 = vld [vmem:[#allocation8_spill] sm:$0xff] }
 0x2dc   : > { %14564 = vst [vmem:[#allocation91_spill] sm:$0xff] %v12845_v34  ;;  %v7161_v29 = vpop.f32.mrf.mxu1  ;;  %v8401_v30 = vmax.f32 %v8273_v16, 0.0  ;;  %v14573_v19 = vld [vmem:[#allocation104_spill] sm:$0xff]  ;;  %v14578_v16 = vld [vmem:[#allocation159_spill] sm:$0xff] }
 0x2dd   : > { %14568 = vst [vmem:[#allocation79_spill] sm:$0xff] %v12852_v20  ;;  %v7783_v44 = vpop.f32.mrf.mxu0  ;;  %v14580_v20 = vld [vmem:[#allocation98_spill] sm:$0xff] }
 0x2de   : > { %v8274_v45 = vadd.f32 %v7783_v44, %v14569_v63  ;;  %v7164_v33 = vpop.f32.mrf.mxu1  ;;  %7355 = vmatmul.mubr.bf16.gmra.mxu1 %v14571_v28  ;;  %v14576_v44 = vld [vmem:[#allocation37_spill] sm:$0xff] }
 0x2df   : > { %v7785_v2 = vpop.f32.mrf.mxu0  ;;  %v12858_v34 = vadd.f32 %v7164_v33, %v6761_v60  ;;  %9448 = vmatprep.mubr.msk.bf16.mxu1 %vm5602_vm6, %v14574_v59  ;;  %v14581_v59 = vld [vmem:[#allocation39_spill] sm:$0xff] }
 0x2e0   : > { %v8402_v4 = vmax.f32 %v8274_v45, 0.0  ;;  %v7166_v63 = vpop.f32.mrf.mxu1  ;;  %v6762_v2 = vadd.f32 %v12405_v50, %v14578_v16 }
 0x2e1   : > { %14572 = vst [vmem:[#allocation7_spill] sm:$0xff] %v12858_v34  ;;  %v7788_v6 = vpop.f32.mrf.mxu0  ;;  %7979 = vmatmul.mubr.bf16.gmra.mxu0 %v14573_v19 }
 0x2e2   : > { %v12863_v47 = vpack.c.bf16 %v8402_v4, %v8401_v30  ;;  %v8275_v29 = vadd.f32 %v7788_v6, %v14576_v44  ;;  %9529 = vmatprep.mubr.msk.bf16.mxu0 %vm5602_vm6, %v14577_v27  ;;  %v7167_v60 = vpop.f32.mrf.mxu1  ;;  %v6763_v30 = vadd.f32 %v12405_v50, %v14581_v59  ;;  %v14582_v44 = vld [vmem:[#allocation58_spill] sm:$0xff]  ;;  %v14585_v59 = vld [vmem:[#allocation40_spill] sm:$0xff] }
 0x2e3   : > { %v7790_v45 = vpop.f32.mrf.mxu0  ;;  %v12870_v33 = vadd.f32 %v7167_v60, %v6762_v2  ;;  %v14584_v2 = vld [vmem:[#allocation57_spill] sm:$0xff] }
 0x2e4   : > { %14575 = vst [vmem:[#allocation50_spill] sm:$0xff] %v12863_v47  ;;  %v7169_v19 = vpop.f32.mrf.mxu1  ;;  %v8403_v63 = vmax.f32 %v8275_v29, 0.0  ;;  %v14586_v29 = vld [vmem:[#allocation81_spill] sm:$0xff] }
 0x2e5   : > { %14579 = vst [vmem:[#allocation29_spill] sm:$0xff] %v12870_v33  ;;  %v7791_v34 = vpop.f32.mrf.mxu0  ;;  %v14589_v33 = vld [vmem:[#allocation84_spill] sm:$0xff] }
 0x2e6   : > { %v8276_v28 = vadd.f32 %v7791_v34, %v14580_v20  ;;  %v7172_v6 = vpop.f32.mrf.mxu1  ;;  %7363 = vmatmul.mubr.bf16.gmra.mxu1 %v14582_v44 }
 0x2e7   : > { %v7793_v4 = vpop.f32.mrf.mxu0  ;;  %v12876_v47 = vadd.f32 %v7172_v6, %v6763_v30  ;;  %9449 = vmatprep.mubr.msk.bf16.mxu1 %vm5602_vm6, %v14584_v2  ;;  %v14588_v6 = vld [vmem:[#allocation41_spill] sm:$0xff] }
 0x2e8   : > { %v8404_v27 = vmax.f32 %v8276_v28, 0.0  ;;  %v7174_v20 = vpop.f32.mrf.mxu1  ;;  %v6764_v28 = vadd.f32 %v12405_v50, %v14586_v29 }
 0x2e9   : > { %14583 = vst [vmem:[#allocation151_spill] sm:$0xff] %v12876_v47  ;;  %v7796_v16 = vpop.f32.mrf.mxu0  ;;  %7987 = vmatmul.mubr.bf16.gmra.mxu0 %v14459_v46  ;;  %v470_v20 = vld [vmem:[%s12536_s22 + $0x8] sm:$0xf] }
 0x2ea   : > { %v12881_v34 = vpack.c.bf16 %v8404_v27, %v8403_v63  ;;  %v8277_v45 = vadd.f32 %v7796_v16, %v14585_v59  ;;  %9530 = vmatprep.mubr.msk.bf16.mxu0 %vm5602_vm6, %v12082_v42  ;;  %v7175_v19 = vpop.f32.mrf.mxu1  ;;  %v6765_v63 = vadd.f32 %v12405_v50, %v14589_v33  ;;  %v471_v16 = vld [vmem:[%s12536_s22 + $0xc] sm:$0xf]  ;;  %v491_v29 = vmul.bf16 0.0, %v470_v20 }
 0x2eb   : > { %v7798_v60 = vpop.f32.mrf.mxu0  ;;  %v12888_v30 = vadd.f32 %v7175_v19, %v6764_v28  ;;  %v14590_v42 = vld [vmem:[#allocation60_spill] sm:$0xff]  ;;  %v14592_v19 = vld [vmem:[#allocation59_spill] sm:$0xff] }
 0x2ec   : > { %v7177_v4 = vpop.f32.mrf.mxu1  ;;  %v8405_v59 = vmax.f32 %v8277_v45, 0.0  ;;  %v492_v60 = vmul.bf16 0.0, %v471_v16 }
 0x2ed   : > { %14587 = vst [vmem:[#allocation94_spill] sm:$0xff] %v12888_v30  ;;  %v7799_v46 = vpop.f32.mrf.mxu0  ;;  %v14593_v4 = vld [vmem:[#allocation43_spill] sm:$0xff] }
 0x2ee   : > { %v8278_v47 = vadd.f32 %v7799_v46, %v14588_v6  ;;  %v7180_v2 = vpop.f32.mrf.mxu1  ;;  %7371 = vmatmul.mubr.bf16.gmra.mxu1 %v14590_v42  ;;  %v9218_v45 = vcombine.low %v491_v29, %v492_v60  ;;  %v14595_v30 = vld [vmem:[#allocation87_spill] sm:$0xff]  ;;  %v14596_v60 = vld [vmem:[#allocation64_spill] sm:$0xff] }
 0x2ef   : > { %v7801_v27 = vpop.f32.mrf.mxu0  ;;  %v12896_v62 = vadd.f32 %v7180_v2, %v6765_v63  ;;  %9450 = vmatprep.mubr.msk.bf16.mxu1 %vm5602_vm6, %v14592_v19 }
 0x2f0   : > { %v8406_v44 = vmax.f32 %v8278_v47, 0.0  ;;  %v7182_v33 = vpop.f32.mrf.mxu1  ;;  %v14594_v47 = vld [vmem:[#allocation162_spill] sm:$0xff]  ;;  %v1564_v20 = vshrl.u32 %v9218_v45, 16 }
 0x2f1   : > { %14591 = vst [vmem:[#allocation153_spill] sm:$0xff] %v12896_v62  ;;  %v7804_v28 = vpop.f32.mrf.mxu0  ;;  %7995 = vmatmul.mubr.bf16.gmra.mxu0 %v14468_v49  ;;  %v6766_v27 = vadd.f32 %v12405_v50, %v14594_v47  ;;  %v1567_v33 = vshll.u32 %v9218_v45, 16 }
 0x2f2   : > { %v12901_v46 = vpack.c.bf16 %v8406_v44, %v8405_v59  ;;  %v8279_v6 = vadd.f32 %v7804_v28, %v14593_v4  ;;  %9531 = vmatprep.mubr.msk.bf16.mxu0 %vm5602_vm6, %v14470_v3  ;;  %v7183_v63 = vpop.f32.mrf.mxu1  ;;  %v1566_v59 = vrot.slane %v1564_v20, 7  ;;  %v6767_v28 = vadd.f32 %v12405_v50, %v14595_v30  ;;  %v14600_v20 = vld [vmem:[#allocation82_spill] sm:$0xff] }
 0x2f3   : > { %v7806_v2 = vpop.f32.mrf.mxu0  ;;  %v12908_v16 = vadd.f32 %v7183_v63, %v6766_v27  ;;  %v14598_v63 = vld [vmem:[#allocation102_spill] sm:$0xff] }
 0x2f4   : > { %v7185_v62 = vpop.f32.mrf.mxu1  ;;  %v8407_v3 = vmax.f32 %v8279_v6, 0.0  ;;  %v1569_v2 = vor.u32 %v1567_v33, %v1566_v59 }
 0x2f5   : > { %v7807_v49 = vpop.f32.mrf.mxu0  ;;  %v14597_v62 = vld [vmem:[#allocation62_spill] sm:$0xff] }
 0x2f6   : > { %v8280_v44 = vadd.f32 %v7807_v49, %v12542_v52  ;;  %v7188_v29 = vpop.f32.mrf.mxu1  ;;  %7379 = vmatmul.mubr.bf16.gmra.mxu1 %v14596_v60  ;;  %v12926_v6 = vsel %vm631_vm0, %v12565_v10, %v1569_v2  ;;  %v6768_v49 = vadd.f32 %v12405_v50, %v14600_v20  ;;  %v12939_v10 = vld [vmem:[%s13808_s4] ss:$0 sm:$0xff] }
 0x2f7   : > { %v7809_v4 = vpop.f32.mrf.mxu0  ;;  %v12914_v19 = vadd.f32 %v7188_v29, %v6767_v28  ;;  %9451 = vmatprep.mubr.msk.bf16.mxu1 %vm5602_vm6, %v14597_v62  ;;  %14599 = vst [vmem:[#allocation32_spill] sm:$0xff] %v12926_v6  ;;  %v5247_v33 = vshll.u32 %v12926_v6, 16  ;;  %v14601_v50 = vld [vmem:[#allocation90_spill] sm:$0xff] }
 0x2f8   : > { %v8408_v47 = vmax.f32 %v8280_v44, 0.0  ;;  %v7190_v45 = vpop.f32.mrf.mxu1  ;;  %v6769_v2 = vadd.f32 %v12939_v10, %v14601_v50 }
 0x2f9   : > { %v7812_v27 = vpop.f32.mrf.mxu0  ;;  %8003 = vmatmul.mubr.bf16.gmra.mxu0 %v14474_v58  ;;  %v5243_v58 = vshrl.u32 %v12578_v23, 16 }
 0x2fa   : > { %v12919_v52 = vpack.c.bf16 %v8408_v47, %v8407_v3  ;;  %v8281_v30 = vadd.f32 %v7812_v27, %v14598_v63  ;;  %9532 = vmatprep.mubr.msk.bf16.mxu0 %vm5602_vm6, %v12133_v38  ;;  %v7191_v28 = vpop.f32.mrf.mxu1  ;;  %v5249_v47 = vrot.slane %v5247_v33, 1  ;;  %v14603_v33 = vld [vmem:[#allocation10_spill] sm:$0xff] }
 0x2fb   : > { %v7814_v44 = vpop.f32.mrf.mxu0  ;;  %v12932_v4 = vadd.f32 %v7191_v28, %v6768_v49  ;;  %v5245_v29 = vor.u32 %v5243_v58, %v12592_v48 }
 0x2fc   : > { %v7193_v38 = vpop.f32.mrf.mxu1  ;;  %v8409_v20 = vmax.f32 %v8281_v30, 0.0  ;;  %v14602_v44 = vld [vmem:[#allocation67_spill] sm:$0xff]  ;;  %v12958_v30 = vsel %vm9980_vm3, %v1566_v59, 0  ;;  %v6771_v59 = vadd.f32 %v12939_v10, %v14606_v13 }
 0x2fd   : > { %v7815_v3 = vpop.f32.mrf.mxu0  ;;  %v5250_v63 = vsel %vm4710_vm2, %v5245_v29, %v5249_v47  ;;  %14604 = vst [vmem:[#allocation100_spill] sm:$0xff] %v12958_v30  ;;  %v14605_v38 = vld [vmem:[#allocation27_spill] sm:$0xff] }
 0x2fe   : > { %v8282_v27 = vadd.f32 %v7815_v3, %v12572_v57  ;;  %v7196_v49 = vpop.f32.mrf.mxu1  ;;  %7387 = vmatmul.mubr.bf16.gmra.mxu1 %v14602_v44  ;;  %5391 = vrot.lane.b32.xlu0 %v5250_v63, %s9863_s21 }
 0x2ff   : > { %v7817_v45 = vpop.f32.mrf.mxu0  ;;  %v12946_v58 = vadd.f32 %v7196_v49, %v6769_v2  ;;  %9452 = vmatprep.mubr.msk.bf16.mxu1 %vm5602_vm6, %v14603_v33  ;;  %v5255_v2 = vshll.u32 %v12958_v30, 16 }
 0x300   : > { %v8410_v48 = vmax.f32 %v8282_v27, 0.0  ;;  %v7198_v3 = vpop.f32.mrf.mxu1  ;;  %v6770_v27 = vadd.f32 %v12939_v10, %v14605_v38 }
 0x301   : > { %v7820_v57 = vpop.f32.mrf.mxu0  ;;  %8011 = vmatmul.mubr.bf16.gmra.mxu0 %v12153_v11  ;;  %v5251_v11 = vshrl.u32 %v12926_v6, 16  ;;  %v5257_v49 = vrot.slane %v5255_v2, 1  ;;  %v14607_v6 = vld [vmem:[#allocation71_spill] sm:$0xff] }
 0x302   : > { %v12951_v28 = vpack.c.bf16 %v8410_v48, %v8409_v20  ;;  %v8283_v29 = vadd.f32 %v7820_v57, %v12585_v54  ;;  %9533 = vmatprep.mubr.msk.bf16.mxu0 %vm5602_vm6, %v12156_v12  ;;  %v7199_v45 = vpop.f32.mrf.mxu1 }
 0x303   : > { %v7822_v50 = vpop.f32.mrf.mxu0  ;;  %v12964_v63 = vadd.f32 %v7199_v45, %v6770_v27  ;;  %v5253_v54 = vor.u32 %v5251_v11, %v5249_v47  ;;  %v14608_v11 = vld [vmem:[#allocation66_spill] sm:$0xff] }
 0x304   : > { %v7201_v48 = vpop.f32.mrf.mxu1  ;;  %v8411_v38 = vmax.f32 %v8283_v29, 0.0  ;;  %v14609_v29 = vld [vmem:[#allocation89_spill] sm:$0xff] }
 0x305   : > { %v7823_v20 = vpop.f32.mrf.mxu0  ;;  %v5258_v3 = vsel %vm4710_vm2, %v5253_v54, %v5257_v49 }
 0x306   : > { %v8284_v12 = vadd.f32 %v7823_v20, %v12601_v61  ;;  %v7204_v50 = vpop.f32.mrf.mxu1  ;;  %7395 = vmatmul.mubr.bf16.gmra.mxu1 %v14607_v6  ;;  %5393 = vrot.lane.b32.xlu1 %v5258_v3, %s9863_s21  ;;  %v6772_v20 = vadd.f32 %v12939_v10, %v14609_v29 }
 0x307   : > { %v7825_v57 = vpop.f32.mrf.mxu0  ;;  %v12972_v27 = vadd.f32 %v7204_v50, %v6771_v59  ;;  %9453 = vmatprep.mubr.msk.bf16.mxu1 %vm5602_vm6, %v14608_v11  ;;  %v14611_v59 = vld [vmem:[#allocation95_spill] sm:$0xff] }
 0x308   : > { %v8412_v30 = vmax.f32 %v8284_v12, 0.0  ;;  %v7206_v2 = vpop.f32.mrf.mxu1 }
 0x309   : > { %v7828_v47 = vpop.f32.mrf.mxu0  ;;  %8019 = vmatmul.mubr.bf16.gmra.mxu0 %v14484_v55  ;;  %v14614_v2 = vld [vmem:[#allocation23_spill] sm:$0xff] }
 0x30a   : > { %v12977_v61 = vpack.c.bf16 %v8412_v30, %v8411_v38  ;;  %v8285_v45 = vadd.f32 %v7828_v47, %v12608_v56  ;;  %9534 = vmatprep.mubr.msk.bf16.mxu0 %vm5602_vm6, %v12180_v53  ;;  %v7207_v49 = vpop.f32.mrf.mxu1  ;;  %v6773_v30 = vadd.f32 %v12939_v10, %v14611_v59  ;;  %v14612_v38 = vld [vmem:[#allocation22_spill] sm:$0xff] }
 0x30b   : > { %v7830_v54 = vpop.f32.mrf.mxu0  ;;  %v12984_v48 = vadd.f32 %v7207_v49, %v6772_v20  ;;  %v14615_v20 = vld [vmem:[#allocation109_spill] sm:$0xff] }
 0x30c   : > { %v7209_v55 = vpop.f32.mrf.mxu1  ;;  %v8413_v3 = vmax.f32 %v8285_v45, 0.0  ;;  %v14616_v45 = vld [vmem:[#allocation31_spill] sm:$0xff] }
 0x30d   : > { %14610 = vst [vmem:[#allocation155_spill] sm:$0xff] %v12984_v48  ;;  %v7831_v12 = vpop.f32.mrf.mxu0  ;;  %v6774_v49 = vadd.f32 %v12939_v10, %v14616_v45 }
 0x30e   : > { %v8286_v13 = vadd.f32 %v7831_v12, %v12619_v21  ;;  %v7212_v56 = vpop.f32.mrf.mxu1  ;;  %7403 = vmatmul.mubr.bf16.gmra.mxu1 %v14612_v38 }
 0x30f   : > { %v7833_v57 = vpop.f32.mrf.mxu0  ;;  %v12990_v50 = vadd.f32 %v7212_v56, %v6773_v30  ;;  %9454 = vmatprep.mubr.msk.bf16.mxu1 %vm5602_vm6, %v14614_v2 }
 0x310   : > { %v8414_v53 = vmax.f32 %v8286_v13, 0.0  ;;  %v7214_v21 = vpop.f32.mrf.mxu1  ;;  %v14618_v57 = vld [vmem:[#allocation97_spill] sm:$0xff] }
 0x311   : > { %14613 = vst [vmem:[#allocation96_spill] sm:$0xff] %v12990_v50  ;;  %v7836_v47 = vpop.f32.mrf.mxu0  ;;  %8027 = vmatmul.mubr.bf16.gmra.mxu0 %v14491_v18  ;;  %v14619_v21 = vld [vmem:[#allocation11_spill] sm:$0xff] }
 0x312   : > { %v12995_v29 = vpack.c.bf16 %v8414_v53, %v8413_v3  ;;  %v8287_v54 = vadd.f32 %v7836_v47, %v14615_v20  ;;  %9535 = vmatprep.mubr.msk.bf16.mxu0 %vm5602_vm6, %v14494_v9  ;;  %v7215_v55 = vpop.f32.mrf.mxu1  ;;  %v6775_v3 = vadd.f32 %v12939_v10, %v14618_v57 }
 0x313   : > { %v7838_v12 = vpop.f32.mrf.mxu0  ;;  %v13002_v13 = vadd.f32 %v7215_v55, %v6774_v49  ;;  %v14621_v49 = vld [vmem:[#allocation73_spill] sm:$0xff]  ;;  %v14622_v55 = vld [vmem:[#allocation36_spill] sm:$0xff] }
 0x314   : > { %v7217_v18 = vpop.f32.mrf.mxu1  ;;  %v8415_v53 = vmax.f32 %v8287_v54, 0.0  ;;  %v6776_v54 = vadd.f32 %v12939_v10, %v14622_v55 }
 0x315   : > { %14617 = vst [vmem:[#allocation157_spill] sm:$0xff] %v13002_v13  ;;  %v7839_v59 = vpop.f32.mrf.mxu0  ;;  %v14626_v13 = vld [vmem:[#allocation99_spill] sm:$0xff] }
 0x316   : > { %v8288_v30 = vadd.f32 %v7839_v59, %v12637_v0  ;;  %v7220_v47 = vpop.f32.mrf.mxu1  ;;  %7411 = vmatmul.mubr.bf16.gmra.mxu1 %v14619_v21 }
 0x317   : > { %v7841_v56 = vpop.f32.mrf.mxu0  ;;  %v13008_v20 = vadd.f32 %v7220_v47, %v6775_v3  ;;  %9455 = vmatprep.mubr.msk.bf16.mxu1 %vm5602_vm6, %v14621_v49  ;;  %v14625_v47 = vld [vmem:[#allocation118_spill] sm:$0xff] }
 0x318   : > { %v8416_v9 = vmax.f32 %v8288_v30, 0.0  ;;  %v7222_v0 = vpop.f32.mrf.mxu1  ;;  %v14623_v30 = vld [vmem:[#allocation114_spill] sm:$0xff] }
 0x319   : > { %14620 = vst [vmem:[#allocation104_spill] sm:$0xff] %v13008_v20  ;;  %v7844_v45 = vpop.f32.mrf.mxu0  ;;  %8035 = vmatmul.mubr.bf16.gmra.mxu0 %v14498_v14 }
 0x31a   : > { %v13013_v12 = vpack.c.bf16 %v8416_v9, %v8415_v53  ;;  %9536 = vmatprep.mubr.msk.bf16.mxu0 %vm5602_vm6, %v11894_v24  ;;  %v7223_v18 = vpop.f32.mrf.mxu1  ;;  %v8289_v57 = vadd.f32 %v7844_v45, %v14623_v30  ;;  %v6777_v53 = vadd.f32 %v12939_v10, %v14626_v13  ;;  %v14627_v24 = vld [vmem:[#allocation74_spill] sm:$0xff]  ;;  %v14629_v45 = vld [vmem:[#allocation13_spill] sm:$0xff]  ;;  %v14630_v13 = vld [vmem:[#allocation163_spill] sm:$0xff] }
 0x31b   : > { %v7846_v59 = vpop.f32.mrf.mxu0  ;;  %v13020_v3 = vadd.f32 %v7223_v18, %v6776_v54  ;;  %v6778_v30 = vadd.f32 %v12939_v10, %v14630_v13 }
 0x31c   : > { %v7225_v14 = vpop.f32.mrf.mxu1  ;;  %v8417_v0 = vmax.f32 %v8289_v57, 0.0 }
 0x31d   : > { %14624 = vst [vmem:[#allocation37_spill] sm:$0xff] %v13020_v3  ;;  %v7847_v56 = vpop.f32.mrf.mxu0 }
 0x31e   : > { %v8290_v20 = vadd.f32 %v7847_v56, %v14625_v47  ;;  %v7228_v50 = vpop.f32.mrf.mxu1  ;;  %7419 = vmatmul.mubr.bf16.gmra.mxu1 %v14627_v24 }
 0x31f   : > { %v7849_v9 = vpop.f32.mrf.mxu0  ;;  %v13026_v55 = vadd.f32 %v7228_v50, %v6777_v53  ;;  %9456 = vmatprep.mubr.msk.bf16.mxu1 %vm5602_vm6, %v14629_v45 }
 0x320   : > { %v8418_v48 = vmax.f32 %v8290_v20, 0.0  ;;  %v7230_v18 = vpop.f32.mrf.mxu1  ;;  %v14631_v20 = vld [vmem:[#allocation127_spill] sm:$0xff]  ;;  %v14633_v9 = vld [vmem:[#allocation164_spill] sm:$0xff] }
 0x321   : > { %14628 = vst [vmem:[#allocation105_spill] sm:$0xff] %v13026_v55  ;;  %v7852_v59 = vpop.f32.mrf.mxu0  ;;  %8043 = vmatmul.mubr.bf16.gmra.mxu0 %v14505_v5 }
 0x322   : > { %v13031_v54 = vpack.c.bf16 %v8418_v48, %v8417_v0  ;;  %9537 = vmatprep.mubr.msk.bf16.mxu0 %vm5602_vm6, %v14508_v32  ;;  %v7231_v56 = vpop.f32.mrf.mxu1  ;;  %v8291_v50 = vadd.f32 %v7852_v59, %v14631_v20  ;;  %v6779_v48 = vadd.f32 %v12939_v10, %v14633_v9  ;;  %v14634_v32 = vld [vmem:[#allocation24_spill] sm:$0xff]  ;;  %v14636_v59 = vld [vmem:[#allocation78_spill] sm:$0xff] }
 0x323   : > { %v7854_v57 = vpop.f32.mrf.mxu0  ;;  %v13038_v14 = vadd.f32 %v7231_v56, %v6778_v30  ;;  %v14637_v56 = vld [vmem:[#allocation42_spill] sm:$0xff] }
 0x324   : > { %v7233_v5 = vpop.f32.mrf.mxu1  ;;  %v8419_v18 = vmax.f32 %v8291_v50, 0.0  ;;  %v6780_v20 = vadd.f32 %v12939_v10, %v14637_v56 }
 0x325   : > { %14632 = vst [vmem:[#allocation159_spill] sm:$0xff] %v13038_v14  ;;  %v7855_v47 = vpop.f32.mrf.mxu0  ;;  %v14638_v5 = vld [vmem:[#allocation130_spill] sm:$0xff] }
 0x326   : > { %v8292_v53 = vadd.f32 %v7855_v47, %v12673_v41  ;;  %v7236_v55 = vpop.f32.mrf.mxu1  ;;  %7427 = vmatmul.mubr.bf16.gmra.mxu1 %v14634_v32  ;;  %v14643_v32 = vld [vmem:[#allocation77_spill] sm:$0xff] }
 0x327   : > { %v7857_v0 = vpop.f32.mrf.mxu0  ;;  %v13044_v13 = vadd.f32 %v7236_v55, %v6779_v48  ;;  %9457 = vmatprep.mubr.msk.bf16.mxu1 %vm5602_vm6, %v14636_v59 }
 0x328   : > { %v8420_v3 = vmax.f32 %v8292_v53, 0.0  ;;  %v7238_v41 = vpop.f32.mrf.mxu1 }
 0x329   : > { %14635 = vst [vmem:[#allocation98_spill] sm:$0xff] %v13044_v13  ;;  %v7860_v57 = vpop.f32.mrf.mxu0  ;;  %8051 = vmatmul.mubr.bf16.gmra.mxu0 %v14512_v43  ;;  %v14640_v43 = vld [vmem:[#allocation3_spill] sm:$0xff]  ;;  %v14641_v13 = vld [vmem:[#allocation126_spill] sm:$0xff] }
 0x32a   : > { %v13049_v30 = vpack.c.bf16 %v8420_v3, %v8419_v18  ;;  %9538 = vmatprep.mubr.msk.bf16.mxu0 %vm5602_vm6, %v11936_v40  ;;  %v7239_v47 = vpop.f32.mrf.mxu1  ;;  %v8293_v55 = vadd.f32 %v7860_v57, %v14638_v5  ;;  %v1712_v48 = vadd.s32 1048, %v14640_v43  ;;  %v14642_v18 = vld [vmem:[#allocation110_spill] sm:$0xff] }
 0x32b   : > { %v7862_v50 = vpop.f32.mrf.mxu0  ;;  %v13056_v53 = vadd.f32 %v7239_v47, %v6780_v20  ;;  %v6781_v41 = vadd.f32 %v12939_v10, %v14642_v18  ;;  %v14645_v20 = vld [vmem:[#allocation15_spill] sm:$0xff] }
 0x32c   : > { %v7241_v0 = vpop.f32.mrf.mxu1  ;;  %v8421_v40 = vmax.f32 %v8293_v55, 0.0  ;;  %v2638_v47 = vand.u32 31, %v1712_v48 }
 0x32d   : > { %14639 = vst [vmem:[#allocation39_spill] sm:$0xff] %v13056_v53  ;;  %v7863_v9 = vpop.f32.mrf.mxu0  ;;  %v14650_v53 = vld [vmem:[#allocation16_spill] sm:$0xff] }
 0x32e   : > { %v8294_v3 = vadd.f32 %v7863_v9, %v14641_v13  ;;  %v7244_v59 = vpop.f32.mrf.mxu1  ;;  %7435 = vmatmul.mubr.bf16.gmra.mxu1 %v14643_v32  ;;  %vm4024_vm0 = vcmp.ne.s32.totalorder %v2638_v47, 31  ;;  %v14653_v47 = vld [vmem:[#allocation17_spill] sm:$0xff] }
 0x32f   : > { %v7865_v14 = vpop.f32.mrf.mxu0  ;;  %v13063_v50 = vadd.f32 %v7244_v59, %v6781_v41  ;;  %9458 = vmatprep.mubr.msk.bf16.mxu1 %vm5602_vm6, %v14645_v20  ;;  %v14647_v59 = vld [vmem:[#allocation134_spill] sm:$0xff] }
 0x330   : > { %v8422_v56 = vmax.f32 %v8294_v3, 0.0  ;;  %v7246_v13 = vpop.f32.mrf.mxu1  ;;  %v14646_v14 = vld [vmem:[#allocation38_spill] sm:$0xff] }
 0x331   : > { %14644 = vst [vmem:[#allocation40_spill] sm:$0xff] %v13063_v50  ;;  %v7868_v57 = vpop.f32.mrf.mxu0  ;;  %8059 = vmatmul.mubr.bf16.gmra.mxu0 %v12277_v1  ;;  %v6782_v55 = vadd.f32 %v12939_v10, %v14646_v14 }
 0x332   : > { %v13068_v5 = vpack.c.bf16 %v8422_v56, %v8421_v40  ;;  %9539 = vmatprep.mubr.msk.bf16.mxu0 %vm5602_vm6, %v11940_v22  ;;  %v7247_v0 = vpop.f32.mrf.mxu1  ;;  %v8295_v3 = vadd.f32 %v7868_v57, %v14647_v59  ;;  %v14649_v40 = vld [vmem:[#allocation4_spill] sm:$0xff] }
 0x333   : > { %v7870_v9 = vpop.f32.mrf.mxu0  ;;  %v13075_v18 = vadd.f32 %v7247_v0, %v6782_v55  ;;  %v6783_v56 = vadd.f32 %v12939_v10, %v14649_v40  ;;  %v14654_v0 = vld [vmem:[#allocation107_spill] sm:$0xff] }
 0x334   : > { %v7249_v41 = vpop.f32.mrf.mxu1  ;;  %v8423_v50 = vmax.f32 %v8295_v3, 0.0  ;;  %v14651_v9 = vmov 0.0   ;;  %v6784_v59 = vadd.f32 %v12939_v10, %v14654_v0 }
 0x335   : > { %14648 = vst [vmem:[#allocation81_spill] sm:$0xff] %v13075_v18  ;;  %v7871_v1 = vpop.f32.mrf.mxu0  ;;  %v9285_v20 = vsel %vm4024_vm0, 1.0, %v14651_v9  ;;  %v14657_v18 = vld [vmem:[#allocation44_spill] sm:$0xff] }
 0x336   : > { %v8296_v48 = vadd.f32 %v7871_v1, %v12709_v25  ;;  %v7252_v22 = vpop.f32.mrf.mxu1  ;;  %7443 = vmatmul.mubr.bf16.gmra.mxu1 %v14650_v53  ;;  %v14655_v1 = vmov 1.0  }
 0x337   : > { %v7873_v13 = vpop.f32.mrf.mxu0  ;;  %v13082_v32 = vadd.f32 %v7252_v22, %v6783_v56  ;;  %9459 = vmatprep.mubr.msk.bf16.mxu1 %vm5602_vm6, %v14653_v47  ;;  %v4366_v41 = vpack.c.bf16 %v9285_v20, %v14655_v1 }
 0x338   : > { %v8424_v14 = vmax.f32 %v8296_v48, 0.0  ;;  %v7254_v55 = vpop.f32.mrf.mxu1 }
 0x339   : > { %14652 = vst [vmem:[#allocation41_spill] sm:$0xff] %v13082_v32  ;;  %v7876_v57 = vpop.f32.mrf.mxu0  ;;  %8067 = vmatmul.mubr.bf16.gmra.mxu0 %v12296_v37  ;;  %v4566_v32 = vrot.slane %v4366_v41, 7  ;;  %v14660_v41 = vld [vmem:[#allocation116_spill] sm:$0xff] }
 0x33a   : > { %v8537_v25 = vpack.c.bf16 %v8424_v14, %v8423_v50  ;;  %9540 = vmatprep.mubr.msk.bf16.mxu0 %vm5602_vm6, %v12302_v31  ;;  %v7255_v48 = vpop.f32.mrf.mxu1  ;;  %v8297_v40 = vadd.f32 %v7876_v57, %v12716_v39  ;;  %v14656_v50 = vld [vmem:[#allocation115_spill] sm:$0xff]  ;;  %v1709_v31 = vadd.s32 1024, %v14640_v43  ;;  %v14659_v57 = vld [vmem:[#allocation33_spill] sm:$0xff] }
 0x33b   : > { %v7878_v3 = vpop.f32.mrf.mxu0  ;;  %v13093_v56 = vadd.f32 %v7255_v48, %v6784_v59  ;;  %v6785_v14 = vadd.f32 %v12939_v10, %v14656_v50 }
 0x33c   : > { %v7257_v13 = vpop.f32.mrf.mxu1  ;;  %v8425_v0 = vmax.f32 %v8297_v40, 0.0  ;;  %v6786_v40 = vadd.f32 %v12939_v10, %v14660_v41 }
 0x33d   : > { %v7879_v37 = vpop.f32.mrf.mxu0  ;;  %v2617_v13 = vand.u32 31, %v1709_v31 }
 0x33e   : > { %v8298_v22 = vadd.f32 %v7879_v37, %v12727_v26  ;;  %v7260_v3 = vpop.f32.mrf.mxu1  ;;  %7451 = vmatmul.mubr.bf16.gmra.mxu1 %v14657_v18 }
 0x33f   : > { %v7881_v55 = vpop.f32.mrf.mxu0  ;;  %v13100_v47 = vadd.f32 %v7260_v3, %v6785_v14  ;;  %9460 = vmatprep.mubr.msk.bf16.mxu1 %vm5602_vm6, %v14659_v57  ;;  %vm3477_vm2 = vcmp.ne.s32.totalorder %v2617_v13, 0 }
 0x340   : > { %v8426_v20 = vmax.f32 %v8298_v22, 0.0  ;;  %v7262_v59 = vpop.f32.mrf.mxu1  ;;  %v14661_v22 = vld [vmem:[#allocation21_spill] sm:$0xff] }
 0x341   : > { %14658 = vst [vmem:[#allocation84_spill] sm:$0xff] %v13100_v47  ;;  %v7884_v39 = vpop.f32.mrf.mxu0  ;;  %8075 = vmatmul.mubr.bf16.gmra.mxu0 %v12320_v36  ;;  %v4567_v50 = vsel %vm1574_vm1, %v14661_v22, %v4566_v32  ;;  %v8623_v36 = vsel %vm5602_vm6, %v12951_v28, 0  ;;  %v14665_v47 = vld [vmem:[#allocation19_spill] sm:$0xff] }
 0x342   : > { %v8538_v26 = vpack.c.bf16 %v8426_v20, %v8425_v0  ;;  %v8299_v48 = vadd.f32 %v7884_v39, %v12734_v35  ;;  %9541 = vmatprep.mubr.msk.bf16.mxu0 %vm5602_vm6, %v14530_v17  ;;  %v7263_v14 = vpop.f32.mrf.mxu1  ;;  %v14662_v17 = vld [vmem:[#allocation65_spill] sm:$0xff]  ;;  %v14663_v20 = vld [vmem:[#allocation34_spill] sm:$0xff]  ;;  %v14664_v39 = vld [vmem:[#allocation112_spill] sm:$0xff] }
 0x343   : > { %v7886_v37 = vpop.f32.mrf.mxu0  ;;  %v13115_v55 = vadd.f32 %v7263_v14, %v6786_v40  ;;  %v4706_v31 = vmul.bf16 %v4567_v50, %v14663_v20  ;;  %v6787_v59 = vadd.f32 %v12939_v10, %v14664_v39  ;;  %v14670_v39 = vld [vmem:[#allocation45_spill] sm:$0xff] }
 0x344   : > { %9671 = vmatprep.subr.msk.bf16.mxu1 %vm5602_vm6, %v8538_v26  ;;  %v7265_v0 = vpop.f32.mrf.mxu1  ;;  %v8427_v26 = vmax.f32 %v8299_v48, 0.0  ;;  %v9251_v48 = vsel %vm3477_vm2, 1.0, %v14651_v9 }
 0x345   : > { %v7887_v35 = vpop.f32.mrf.mxu0  ;;  %9576 = vmatpush3.bf16.xpose.msra.mxu1 %v8623_v36  ;;  %v14666_v36 = vld [vmem:[#allocation48_spill] sm:$0xff]  ;;  %v5594_v13 = vrot.slane %v4706_v31, 1 }
 0x346   : > { %v8300_v3 = vadd.f32 %v7887_v35, %v14662_v17  ;;  %9672 = vmatprep.subr.msk.bf16.mxu1 %vm5602_vm6, %v8537_v25  ;;  %v7268_v37 = vpop.f32.mrf.mxu1  ;;  %7459 = vmatmul.mubr.bf16.gmra.mxu1 %v14665_v47  ;;  %v14667_v35 = vld [vmem:[#allocation5_spill] sm:$0xff]  ;;  %v14669_v0 = vld [vmem:[#allocation136_spill] sm:$0xff] }
 0x347   : > { %v7889_v41 = vpop.f32.mrf.mxu0  ;;  %v13123_v40 = vadd.f32 %v7268_v37, %v6787_v59  ;;  %9461 = vmatprep.mubr.msk.bf16.mxu1 %vm5602_vm6, %v14667_v35  ;;  %v4569_v37 = vsel %vm1574_vm1, %v4566_v32, %v14661_v22 }
 0x348   : > { %v8428_v28 = vmax.f32 %v8300_v3, 0.0  ;;  %v7270_v50 = vpop.f32.mrf.mxu1  ;;  %v14671_v3 = vld [vmem:[#allocation119_spill] sm:$0xff]  ;;  %v4707_v32 = vmul.bf16 %v4569_v37, %v12578_v23 }
 0x349   : > { %v7892_v14 = vpop.f32.mrf.mxu0  ;;  %8083 = vmatmul.mubr.bf16.gmra.mxu0 %v14666_v36  ;;  %v6788_v59 = vadd.f32 %v12939_v10, %v14671_v3  ;;  %v3821_v50 = vpack.c.bf16 %v14655_v1, %v9251_v48  ;;  %v14674_v3 = vld [vmem:[#allocation18_spill] sm:$0xff] }
 0x34a   : > { %v13128_v25 = vpack.c.bf16 %v8428_v28, %v8427_v26  ;;  %v8301_v17 = vadd.f32 %v7892_v14, %v14669_v0  ;;  %9542 = vmatprep.mubr.msk.bf16.mxu0 %vm5602_vm6, %v14670_v39  ;;  %v7271_v36 = vpop.f32.mrf.mxu1  ;;  %v8620_v26 = vsel %vm5602_vm6, %v12919_v52, 0  ;;  %v14673_v39 = vld [vmem:[#allocation139_spill] sm:$0xff] }
 0x34b   : > { %v7894_v41 = vpop.f32.mrf.mxu0  ;;  %v13140_v28 = vadd.f32 %v7271_v36, %v6788_v59 }
 0x34c   : > { %14668 = vst [vmem:[#allocation60_spill] sm:$0xff] %v13128_v25  ;;  %v7273_v0 = vpop.f32.mrf.mxu1  ;;  %v13148_v41 = vsel %vm5464_vm5, %v14674_v3, %v5594_v13  ;;  %v14675_v25 = vld [vmem:[#allocation52_spill] sm:$0xff]  ;;  %v8429_v36 = vmax.f32 %v8301_v17, 0.0  ;;  %v5388_v17 = vpop.permute.xlu0 %5387 }
 0x34d   : > { %14672 = vst [vmem:[#allocation43_spill] sm:$0xff] %v13140_v28  ;;  %v7895_v14 = vpop.f32.mrf.mxu0  ;;  %9578 = vmatpush3.bf16.xpose.msra.mxu1 %v8620_v26  ;;  %v6789_v52 = vadd.f32 %v12939_v10, %v14675_v25  ;;  %v14676_v28 = vld [vmem:[#allocation83_spill] sm:$0xff]  ;;  %v14679_v25 = vld [vmem:[#allocation142_spill] sm:$0xff] }
 0x34e   : > { %v8302_v31 = vadd.f32 %v7895_v14, %v14673_v39  ;;  %9673 = vmatprep.subr.msk.bf16.mxu1 %vm5602_vm6, %v13068_v5  ;;  %v7276_v26 = vpop.f32.mrf.mxu1  ;;  %7467 = vmatmul.mubr.bf16.gmra.mxu1 %v14676_v28  ;;  %v14677_v5 = vld [vmem:[#allocation35_spill] sm:$0xff] }
 0x34f   : > { %v7897_v59 = vpop.f32.mrf.mxu0  ;;  %v13154_v0 = vadd.f32 %v7276_v26, %v6789_v52  ;;  %v3889_v39 = vmul.bf16 %v3821_v50, %v14677_v5  ;;  %9462 = vmatprep.mubr.msk.bf16.mxu1 %vm5602_vm6, %v13148_v41  ;;  %v14680_v52 = vld [vmem:[#allocation121_spill] sm:$0xff]  ;;  %v8617_v50 = vsel %vm5602_vm6, %v12901_v46, 0 }
 0x350   : > { %v8430_v48 = vmax.f32 %v8302_v31, 0.0  ;;  %v7278_v3 = vpop.f32.mrf.mxu1  ;;  %v13165_v31 = vrot.slane %v4707_v32, 1  ;;  %v6790_v26 = vadd.f32 %v12939_v10, %v14680_v52 }
 0x351   : > { %v7900_v14 = vpop.f32.mrf.mxu0  ;;  %8091 = vmatmul.mubr.bf16.gmra.mxu0 %v14543_v8  ;;  %v14681_v3 = vld [vmem:[#allocation26_spill] sm:$0xff] }
 0x352   : > { %v13160_v37 = vpack.c.bf16 %v8430_v48, %v8429_v36  ;;  %v8303_v59 = vadd.f32 %v7900_v14, %v14679_v25  ;;  %9543 = vmatprep.mubr.msk.bf16.mxu0 %vm5602_vm6, %v14545_v7  ;;  %v7279_v23 = vpop.f32.mrf.mxu1  ;;  %v13174_v36 = vsel %vm5602_vm6, %v3889_v39, %v5388_v17  ;;  %v13181_v32 = vsel %vm5464_vm5, %v5594_v13, %v13165_v31  ;;  %v14682_v25 = vld [vmem:[#allocation122_spill] sm:$0xff] }
 0x353   : > { %v7902_v8 = vpop.f32.mrf.mxu0  ;;  %v13171_v5 = vadd.f32 %v7279_v23, %v6790_v26  ;;  %v6791_v46 = vadd.f32 %v12939_v10, %v14682_v25 }
 0x354   : > { %14678 = vst [vmem:[#allocation162_spill] sm:$0xff] %v13160_v37  ;;  %v7281_v14 = vpop.f32.mrf.mxu1  ;;  %v8431_v52 = vmax.f32 %v8303_v59, 0.0  ;;  %v5390_v59 = vpop.permute.xlu1 %5389 }
 0x355   : > { %v7903_v48 = vpop.f32.mrf.mxu0  ;;  %9580 = vmatpush3.bf16.xpose.msra.mxu1 %v8617_v50 }
 0x356   : > { %v8304_v7 = vadd.f32 %v7903_v48, %v14681_v3  ;;  %9674 = vmatprep.subr.msk.bf16.mxu1 %vm5602_vm6, %v13049_v30  ;;  %v7284_v26 = vpop.f32.mrf.mxu1  ;;  %7475 = vmatmul.mubr.bf16.gmra.mxu1 %v13174_v36  ;;  %v3890_v30 = vmul.bf16 1.0|1.0, %v14663_v20  ;;  %v14683_v48 = vld [vmem:[#allocation76_spill] sm:$0xff] }
 0x357   : > { %v7905_v23 = vpop.f32.mrf.mxu0  ;;  %v13186_v17 = vadd.f32 %v7284_v26, %v6791_v46  ;;  %9463 = vmatprep.mubr.msk.bf16.mxu1 %vm5602_vm6, %v13181_v32  ;;  %v14684_v3 = vld [vmem:[#allocation124_spill] sm:$0xff] }
 0x358   : > { %v8432_v39 = vmax.f32 %v8304_v7, 0.0  ;;  %v7286_v50 = vpop.f32.mrf.mxu1  ;;  %v6792_v7 = vadd.f32 %v12939_v10, %v14684_v3  ;;  %v13204_v23 = vsel %vm5602_vm6, %v3890_v30, %v5390_v59 }
 0x359   : > { %v7908_v8 = vpop.f32.mrf.mxu0  ;;  %8099 = vmatmul.mubr.bf16.gmra.mxu0 %v14552_v51  ;;  %v8614_v51 = vsel %vm5602_vm6, %v12881_v34, 0  ;;  %v14687_v50 = vld [vmem:[#allocation30_spill] sm:$0xff] }
 0x35a   : > { %v13192_v13 = vpack.c.bf16 %v8432_v39, %v8431_v52  ;;  %v8305_v14 = vadd.f32 %v7908_v8, %v14683_v48  ;;  %9544 = vmatprep.mubr.msk.bf16.mxu0 %vm5602_vm6, %v14554_v15  ;;  %v7287_v46 = vpop.f32.mrf.mxu1  ;;  %v14686_v39 = vld [vmem:[#allocation20_spill] sm:$0xff]  ;;  %v13212_v15 = vld [vmem:[%s13809_s5] sm:$0x1]  ;;  %v6793_v34 = vadd.f32 %v12939_v10, %v14687_v50 }
 0x35b   : > { %v7910_v25 = vpop.f32.mrf.mxu0  ;;  %v13201_v20 = vadd.f32 %v7287_v46, %v6792_v7  ;;  %v14689_v46 = vld [vmem:[#allocation53_spill] sm:$0xff] }
 0x35c   : > { %v7289_v26 = vpop.f32.mrf.mxu1  ;;  %v8433_v3 = vmax.f32 %v8305_v14, 0.0  ;;  %v14692_v14 = vld [vmem:[#allocation9_spill] sm:$0xff] }
 0x35d   : > { %14685 = vst [vmem:[#allocation87_spill] sm:$0xff] %v13201_v20  ;;  %v7911_v52 = vpop.f32.mrf.mxu0  ;;  %9582 = vmatpush3.bf16.xpose.msra.mxu1 %v8614_v51  ;;  %v6794_v50 = vadd.f32 %v12939_v10, %v14692_v14 }
 0x35e   : > { %v8306_v8 = vadd.f32 %v7911_v52, %v14686_v39  ;;  %9675 = vmatprep.subr.msk.bf16.mxu1 %vm5602_vm6, %v13031_v54  ;;  %v7292_v30 = vpop.f32.mrf.mxu1  ;;  %7483 = vmatmul.mubr.bf16.gmra.mxu1 %v13204_v23  ;;  %v14690_v52 = vld [vmem:[#allocation146_spill] sm:$0xff]  ;;  %v14691_v39 = vld [vmem:[#allocation51_spill] sm:$0xff] }
 0x35f   : > { %v7913_v48 = vpop.f32.mrf.mxu0  ;;  %v13217_v7 = vadd.f32 %v7292_v30, %v6793_v34  ;;  %9591 = vmatprep.mubr.msk.bf16.mxu1 %vm5602_vm6, %v13212_v15 }
 0x360   : > { %v8434_v59 = vmax.f32 %v8306_v8, 0.0  ;;  %v7294_v51 = vpop.f32.mrf.mxu1  ;;  %v14693_v48 = vld [vmem:[#allocation50_spill] sm:$0xff] }
 0x361   : > { %14688 = vst [vmem:[#allocation64_spill] sm:$0xff] %v13217_v7  ;;  %v7916_v25 = vpop.f32.mrf.mxu0  ;;  %8107 = vmatmul.mubr.bf16.gmra.mxu0 %v14689_v46  ;;  %v8611_v30 = vsel %vm5602_vm6, %v14693_v48, 0 }
 0x362   : > { %v13222_v54 = vpack.c.bf16 %v8434_v59, %v8433_v3  ;;  %v8307_v26 = vadd.f32 %v7916_v25, %v14690_v52  ;;  %9545 = vmatprep.mubr.msk.bf16.mxu0 %vm5602_vm6, %v14691_v39  ;;  %v7295_v34 = vpop.f32.mrf.mxu1  ;;  %v14695_v59 = vld [vmem:[#allocation148_spill] sm:$0xff]  ;;  %v14696_v25 = vld [vmem:[#allocation129_spill] sm:$0xff] }
 0x363   : > { %v7918_v8 = vpop.f32.mrf.mxu0  ;;  %v13231_v46 = vadd.f32 %v7295_v34, %v6794_v50  ;;  %v6795_v52 = vadd.f32 %v12939_v10, %v14696_v25  ;;  %v14698_v50 = vld [vmem:[#allocation56_spill] sm:$0xff] }
 0x364   : > { %v7297_v3 = vpop.f32.mrf.mxu1  ;;  %v8435_v14 = vmax.f32 %v8307_v26, 0.0 }
 0x365   : > { %14694 = vst [vmem:[#allocation62_spill] sm:$0xff] %v13231_v46  ;;  %v7919_v7 = vpop.f32.mrf.mxu0  ;;  %9584 = vmatpush3.bf16.xpose.msra.mxu1 %v8611_v30  ;;  %v14699_v3 = vld [vmem:[#allocation49_spill] sm:$0xff]  ;;  %v14702_v46 = vld [vmem:[#allocation91_spill] sm:$0xff] }
 0x366   : > { %v8308_v51 = vadd.f32 %v7919_v7, %v14695_v59  ;;  %9676 = vmatprep.subr.msk.bf16.mxu1 %vm5602_vm6, %v13013_v12  ;;  %v7300_v8 = vpop.f32.mrf.mxu1  ;;  %v14700_v59 = vld [vmem:[#allocation8_spill] sm:$0xff] }
 0x367   : > { %v7921_v39 = vpop.f32.mrf.mxu0  ;;  %v13238_v37 = vadd.f32 %v7300_v8, %v6795_v52  ;;  %v14701_v12 = vld [vmem:[#allocation132_spill] sm:$0xff] }
 0x368   : > { %v8436_v20 = vmax.f32 %v8308_v51, 0.0  ;;  %v7302_v30 = vpop.f32.mrf.mxu1  ;;  %v6796_v25 = vadd.f32 %v12939_v10, %v14701_v12  ;;  %v8608_v51 = vsel %vm5602_vm6, %v14702_v46, 0 }
 0x369   : > { %14697 = vst [vmem:[#allocation102_spill] sm:$0xff] %v13238_v37  ;;  %v7924_v48 = vpop.f32.mrf.mxu0  ;;  %8115 = vmatmul.mubr.bf16.gmra.mxu0 %v14698_v50 }
 0x36a   : > { %v13241_v34 = vpack.c.bf16 %v8436_v20, %v8435_v14  ;;  %v8309_v7 = vadd.f32 %v7924_v48, %v14699_v3  ;;  %9546 = vmatprep.mubr.msk.bf16.mxu0 %vm5602_vm6, %v14700_v59  ;;  %v7303_v26 = vpop.f32.mrf.mxu1  ;;  %v14704_v14 = vld [vmem:[#allocation86_spill] sm:$0xff]  ;;  %v14705_v48 = vld [vmem:[#allocation137_spill] sm:$0xff] }
 0x36b   : > { %v7926_v39 = vpop.f32.mrf.mxu0  ;;  %v13250_v52 = vadd.f32 %v7303_v26, %v6796_v25  ;;  %v6797_v30 = vadd.f32 %v12939_v10, %v14705_v48  ;;  %v14707_v25 = vld [vmem:[#allocation58_spill] sm:$0xff] }
 0x36c   : > { %v7305_v20 = vpop.f32.mrf.mxu1  ;;  %v8437_v59 = vmax.f32 %v8309_v7, 0.0 }
 0x36d   : > { %14703 = vst [vmem:[#allocation82_spill] sm:$0xff] %v13250_v52  ;;  %v7927_v8 = vpop.f32.mrf.mxu0  ;;  %9586 = vmatpush3.bf16.xpose.msra.mxu1 %v8608_v51  ;;  %v14708_v20 = vld [vmem:[#allocation149_spill] sm:$0xff]  ;;  %v14711_v52 = vld [vmem:[#allocation46_spill] sm:$0xff] }
 0x36e   : > { %v8310_v50 = vadd.f32 %v7927_v8, %v14704_v14  ;;  %9677 = vmatprep.subr.msk.bf16.mxu1 %vm5602_vm6, %v12995_v29  ;;  %v7308_v12 = vpop.f32.mrf.mxu1  ;;  %v14709_v14 = vld [vmem:[#allocation57_spill] sm:$0xff]  ;;  %v14710_v29 = vld [vmem:[#allocation92_spill] sm:$0xff] }
 0x36f   : > { %v7929_v3 = vpop.f32.mrf.mxu0  ;;  %v13257_v37 = vadd.f32 %v7308_v12, %v6797_v30  ;;  %v6798_v48 = vadd.f32 %v12939_v10, %v14710_v29 }
 0x370   : > { %v8438_v39 = vmax.f32 %v8310_v50, 0.0  ;;  %v7310_v51 = vpop.f32.mrf.mxu1  ;;  %v8605_v50 = vsel %vm5602_vm6, %v14711_v52, 0 }
 0x371   : > { %14706 = vst [vmem:[#allocation90_spill] sm:$0xff] %v13257_v37  ;;  %v7932_v46 = vpop.f32.mrf.mxu0  ;;  %8123 = vmatmul.mubr.bf16.gmra.mxu0 %v14707_v25 }
 0x372   : > { %v13260_v26 = vpack.c.bf16 %v8438_v39, %v8437_v59  ;;  %v8311_v8 = vadd.f32 %v7932_v46, %v14708_v20  ;;  %9547 = vmatprep.mubr.msk.bf16.mxu0 %vm5602_vm6, %v14709_v14  ;;  %v7311_v7 = vpop.f32.mrf.mxu1  ;;  %v14713_v39 = vld [vmem:[#allocation79_spill] sm:$0xff]  ;;  %v14714_v46 = vld [vmem:[#allocation133_spill] sm:$0xff] }
 0x373   : > { %v7934_v3 = vpop.f32.mrf.mxu0  ;;  %v13269_v30 = vadd.f32 %v7311_v7, %v6798_v48  ;;  %v6799_v51 = vadd.f32 %v12939_v10, %v14714_v46 }
 0x374   : > { %v7313_v59 = vpop.f32.mrf.mxu1  ;;  %v8439_v14 = vmax.f32 %v8311_v8, 0.0 }
 0x375   : > { %14712 = vst [vmem:[#allocation67_spill] sm:$0xff] %v13269_v30  ;;  %v7935_v12 = vpop.f32.mrf.mxu0  ;;  %9588 = vmatpush3.bf16.xpose.msra.mxu1 %v8605_v50  ;;  %v14716_v50 = vld [vmem:[#allocation7_spill] sm:$0xff] }
 0x376   : > { %v8312_v25 = vadd.f32 %v7935_v12, %v14713_v39  ;;  %9678 = vmatprep.subr.msk.bf16.mxu1 %vm5602_vm6, %v12977_v61  ;;  %v7316_v29 = vpop.f32.mrf.mxu1  ;;  %v14717_v59 = vld [vmem:[#allocation59_spill] sm:$0xff]  ;;  %v14718_v61 = vld [vmem:[#allocation140_spill] sm:$0xff] }
 0x377   : > { %v7937_v20 = vpop.f32.mrf.mxu0  ;;  %v13276_v37 = vadd.f32 %v7316_v29, %v6799_v51  ;;  %v6800_v39 = vadd.f32 %v12939_v10, %v14718_v61 }
 0x378   : > { %v8440_v3 = vmax.f32 %v8312_v25, 0.0  ;;  %v7318_v7 = vpop.f32.mrf.mxu1  ;;  %v14719_v20 = vld [vmem:[#allocation88_spill] sm:$0xff] }
 0x379   : > { %14715 = vst [vmem:[#allocation10_spill] sm:$0xff] %v13276_v37  ;;  %v7940_v52 = vpop.f32.mrf.mxu0  ;;  %8131 = vmatmul.mubr.bf16.gmra.mxu0 %v14590_v42  ;;  %v8602_v25 = vsel %vm5602_vm6, %v14719_v20, 0  ;;  %v14721_v7 = vld [vmem:[#allocation69_spill] sm:$0xff] }
 0x37a   : > { %v13279_v48 = vpack.c.bf16 %v8440_v3, %v8439_v14  ;;  %v8313_v12 = vadd.f32 %v7940_v52, %v14716_v50  ;;  %9548 = vmatprep.mubr.msk.bf16.mxu0 %vm5602_vm6, %v14717_v59  ;;  %v7319_v8 = vpop.f32.mrf.mxu1  ;;  %v14720_v14 = vld [vmem:[#allocation29_spill] sm:$0xff]  ;;  %v6801_v52 = vadd.f32 %v12939_v10, %v14721_v7 }
 0x37b   : > { %v7942_v46 = vpop.f32.mrf.mxu0  ;;  %v13288_v51 = vadd.f32 %v7319_v8, %v6800_v39  ;;  %v14722_v8 = vld [vmem:[#allocation151_spill] sm:$0xff] }
 0x37c   : > { %v7321_v42 = vpop.f32.mrf.mxu1  ;;  %v8441_v59 = vmax.f32 %v8313_v12, 0.0 }
 0x37d   : > { %v7943_v29 = vpop.f32.mrf.mxu0  ;;  %9590 = vmatpush3.bf16.xpose.msra.mxu1 %v8602_v25 }
 0x37e   : > { %v8314_v3 = vadd.f32 %v7943_v29, %v14720_v14  ;;  %v7324_v37 = vpop.f32.mrf.mxu1  ;;  %v14723_v29 = vld [vmem:[#allocation70_spill] sm:$0xff] }
 0x37f   : > { %v7945_v50 = vpop.f32.mrf.mxu0  ;;  %v13293_v61 = vadd.f32 %v7324_v37, %v6801_v52  ;;  %v6802_v42 = vadd.f32 %v12939_v10, %v14723_v29  ;;  %v14726_v52 = vld [vmem:[#allocation144_spill] sm:$0xff] }
 0x380   : > { %v8442_v30 = vmax.f32 %v8314_v3, 0.0  ;;  %v7326_v39 = vpop.f32.mrf.mxu1 }
 0x381   : > { %v7948_v46 = vpop.f32.mrf.mxu0  ;;  %8139 = vmatmul.mubr.bf16.gmra.mxu0 %v14596_v60 }
 0x382   : > { %v13296_v20 = vpack.c.bf16 %v8442_v30, %v8441_v59  ;;  %v8315_v25 = vadd.f32 %v7948_v46, %v14722_v8  ;;  %9549 = vmatprep.mubr.msk.bf16.mxu0 %vm5602_vm6, %v14597_v62  ;;  %v7327_v12 = vpop.f32.mrf.mxu1  ;;  %v14725_v30 = vld [vmem:[#allocation94_spill] sm:$0xff]  ;;  %v6803_v62 = vadd.f32 %v12939_v10, %v14726_v52 }
 0x383   : > { %v7950_v14 = vpop.f32.mrf.mxu0  ;;  %v13305_v37 = vadd.f32 %v7327_v12, %v6802_v42  ;;  %v14727_v12 = vld [vmem:[#allocation153_spill] sm:$0xff] }
 0x384   : > { %9592 = vmatmul.mubr.msk.bf16.vlgmr.msra.gmra.mxu1 %vm5602_vm6, %v13212_v15  ;;  %v7329_v60 = vpop.f32.mrf.mxu1  ;;  %v8443_v59 = vmax.f32 %v8315_v25, 0.0 }
 0x385   : > { %14724 = vst [vmem:[#allocation27_spill] sm:$0xff] %v13305_v37  ;;  %v7951_v3 = vpop.f32.mrf.mxu0  ;;  %9609 = vmatprep.mubr.msk.bf16.mxu1 %vm5602_vm6, %v13212_v15 }
 0x386   : > { %v8316_v7 = vadd.f32 %v7951_v3, %v14725_v30  ;;  %v7332_v46 = vpop.f32.mrf.mxu1  ;;  %v14728_v3 = vld [vmem:[#allocation145_spill] sm:$0xff] }
 0x387   : > { %v7953_v50 = vpop.f32.mrf.mxu0  ;;  %v13312_v8 = vadd.f32 %v7332_v46, %v6803_v62  ;;  %v6804_v60 = vadd.f32 %v12939_v10, %v14728_v3 }
 0x388   : > { %v8444_v39 = vmax.f32 %v8316_v7, 0.0  ;;  %v7334_v14 = vpop.f32.mrf.mxu1 }
 0x389   : > { %v7956_v29 = vpop.f32.mrf.mxu0  ;;  %8147 = vmatmul.mubr.bf16.gmra.mxu0 %v14602_v44  ;;  %v14729_v44 = vld [vmem:[#allocation101_spill] sm:$0xff] }
 0x38a   : > { %v13315_v42 = vpack.c.bf16 %v8444_v39, %v8443_v59  ;;  %v8317_v37 = vadd.f32 %v7956_v29, %v14727_v12  ;;  %9550 = vmatprep.mubr.msk.bf16.mxu0 %vm5602_vm6, %v14603_v33  ;;  %v7335_v25 = vpop.f32.mrf.mxu1  ;;  %v6805_v59 = vadd.f32 %v12939_v10, %v14729_v44 }
 0x38b   : > { %v7958_v30 = vpop.f32.mrf.mxu0  ;;  %v13322_v52 = vadd.f32 %v7335_v25, %v6804_v60 }
 0x38c   : > { %v7337_v62 = vpop.f32.mrf.mxu1  ;;  %v8445_v39 = vmax.f32 %v8317_v37, 0.0 }
 0x38d   : > { %v7959_v7 = vpop.f32.mrf.mxu0 }
 0x38e   : > { %v8318_v50 = vadd.f32 %v7959_v7, %v12908_v16  ;;  %v7340_v29 = vpop.f32.mrf.mxu1  ;;  %v14730_v16 = vld [vmem:[#allocation6_spill] sm:$0xff] }
 0x38f   : > { %v7961_v46 = vpop.f32.mrf.mxu0  ;;  %v13327_v12 = vadd.f32 %v7340_v29, %v6805_v59  ;;  %v6806_v25 = vadd.f32 %v12939_v10, %v14730_v16 }
 0x390   : > { %v8446_v14 = vmax.f32 %v8318_v50, 0.0  ;;  %v7342_v60 = vpop.f32.mrf.mxu1 }
 0x391   : > { %v7964_v33 = vpop.f32.mrf.mxu0  ;;  %8155 = vmatmul.mubr.bf16.gmra.mxu0 %v14607_v6  ;;  %v14731_v6 = vld [vmem:[#allocation106_spill] sm:$0xff] }
 0x392   : > { %v13330_v3 = vpack.c.bf16 %v8446_v14, %v8445_v39  ;;  %v8319_v30 = vadd.f32 %v7964_v33, %v12914_v19  ;;  %9551 = vmatprep.mubr.msk.bf16.mxu0 %vm5602_vm6, %v14608_v11  ;;  %v7343_v37 = vpop.f32.mrf.mxu1  ;;  %v6807_v46 = vadd.f32 %v12939_v10, %v14731_v6 }
 0x393   : > { %v7966_v7 = vpop.f32.mrf.mxu0  ;;  %v13337_v62 = vadd.f32 %v7343_v37, %v6806_v25  ;;  %v14732_v25 = vld [vmem:[#allocation108_spill] sm:$0xff] }
 0x394   : > { %v7345_v44 = vpop.f32.mrf.mxu1  ;;  %v8447_v29 = vmax.f32 %v8319_v30, 0.0 }
 0x395   : > { %v7967_v50 = vpop.f32.mrf.mxu0 }
 0x396   : > { %v8320_v59 = vadd.f32 %v7967_v50, %v12932_v4  ;;  %v7348_v19 = vpop.f32.mrf.mxu1  ;;  %v6808_v4 = vadd.f32 %v12939_v10, %v14732_v25 }
 0x397   : > { %v7969_v39 = vpop.f32.mrf.mxu0  ;;  %v13342_v33 = vadd.f32 %v7348_v19, %v6807_v46 }
 0x398   : > { %v8448_v14 = vmax.f32 %v8320_v59, 0.0  ;;  %v7350_v16 = vpop.f32.mrf.mxu1 }
 0x399   : > { %v7972_v11 = vpop.f32.mrf.mxu0  ;;  %8163 = vmatmul.mubr.bf16.gmra.mxu0 %v14612_v38  ;;  %v14733_v38 = vld [vmem:[#allocation111_spill] sm:$0xff] }
 0x39a   : > { %v13345_v60 = vpack.c.bf16 %v8448_v14, %v8447_v29  ;;  %9552 = vmatprep.mubr.msk.bf16.mxu0 %vm5602_vm6, %v14614_v2  ;;  %v7351_v37 = vpop.f32.mrf.mxu1  ;;  %v8321_v30 = vadd.f32 %v7972_v11, %v12946_v58  ;;  %v6809_v46 = vadd.f32 %v12939_v10, %v14733_v38  ;;  %v14734_v11 = vld [vmem:[#allocation113_spill] sm:$0xff] }
 0x39b   : > { %v7974_v7 = vpop.f32.mrf.mxu0  ;;  %v13352_v50 = vadd.f32 %v7351_v37, %v6808_v4 }
 0x39c   : > { %v7353_v59 = vpop.f32.mrf.mxu1  ;;  %v8449_v29 = vmax.f32 %v8321_v30, 0.0 }
 0x39d   : > { %v7975_v44 = vpop.f32.mrf.mxu0 }
 0x39e   : > { %v8322_v6 = vadd.f32 %v7975_v44, %v12964_v63  ;;  %v7356_v19 = vpop.f32.mrf.mxu1  ;;  %v6810_v63 = vadd.f32 %v12939_v10, %v14734_v11 }
 0x39f   : > { %v7977_v39 = vpop.f32.mrf.mxu0  ;;  %v13357_v14 = vadd.f32 %v7356_v19, %v6809_v46 }
 0x3a0   : > { %v8450_v2 = vmax.f32 %v8322_v6, 0.0  ;;  %v7358_v58 = vpop.f32.mrf.mxu1  ;;  %v14736_v6 = vld [vmem:[#allocation155_spill] sm:$0xff] }
 0x3a1   : > { %v7980_v16 = vpop.f32.mrf.mxu0  ;;  %8171 = vmatmul.mubr.bf16.gmra.mxu0 %v14619_v21  ;;  %v14737_v21 = vld [vmem:[#allocation117_spill] sm:$0xff] }
 0x3a2   : > { %v13360_v25 = vpack.c.bf16 %v8450_v2, %v8449_v29  ;;  %9553 = vmatprep.mubr.msk.bf16.mxu0 %vm5602_vm6, %v14621_v49  ;;  %v7359_v7 = vpop.f32.mrf.mxu1  ;;  %v8323_v37 = vadd.f32 %v7980_v16, %v12972_v27  ;;  %v6811_v46 = vadd.f32 %v12939_v10, %v14737_v21  ;;  %v14739_v16 = vld [vmem:[#allocation54_spill] sm:$0xff]  ;;  %v14742_v21 = vld [vmem:[#allocation157_spill] sm:$0xff] }
 0x3a3   : > { %v7982_v4 = vpop.f32.mrf.mxu0  ;;  %v13367_v30 = vadd.f32 %v7359_v7, %v6810_v63  ;;  %v6812_v63 = vadd.f32 %v12939_v10, %v14739_v16 }
 0x3a4   : > { %v7361_v59 = vpop.f32.mrf.mxu1  ;;  %v8451_v29 = vmax.f32 %v8323_v37, 0.0 }
 0x3a5   : > { %14735 = vst [vmem:[#allocation93_spill] sm:$0xff] %v13367_v30  ;;  %v7983_v44 = vpop.f32.mrf.mxu0 }
 0x3a6   : > { %v8324_v38 = vadd.f32 %v7983_v44, %v14736_v6  ;;  %v7364_v19 = vpop.f32.mrf.mxu1  ;;  %v14740_v44 = vld [vmem:[#allocation96_spill] sm:$0xff] }
 0x3a7   : > { %v7985_v39 = vpop.f32.mrf.mxu0  ;;  %v13372_v2 = vadd.f32 %v7364_v19, %v6811_v46 }
 0x3a8   : > { %v8452_v49 = vmax.f32 %v8324_v38, 0.0  ;;  %v7366_v27 = vpop.f32.mrf.mxu1 }
 0x3a9   : > { %14738 = vst [vmem:[#allocation71_spill] sm:$0xff] %v13372_v2  ;;  %v7988_v58 = vpop.f32.mrf.mxu0  ;;  %8179 = vmatmul.mubr.bf16.gmra.mxu0 %v14627_v24  ;;  %v14743_v24 = vld [vmem:[#allocation120_spill] sm:$0xff] }
 0x3aa   : > { %v13375_v11 = vpack.c.bf16 %v8452_v49, %v8451_v29  ;;  %9554 = vmatprep.mubr.msk.bf16.mxu0 %vm5602_vm6, %v14629_v45  ;;  %v7367_v7 = vpop.f32.mrf.mxu1  ;;  %v8325_v37 = vadd.f32 %v7988_v58, %v14740_v44  ;;  %v6813_v39 = vadd.f32 %v12939_v10, %v14743_v24  ;;  %v14747_v10 = vld [vmem:[#allocation55_spill] sm:$0xff] }
 0x3ab   : > { %v7990_v4 = vpop.f32.mrf.mxu0  ;;  %v13382_v59 = vadd.f32 %v7367_v7, %v6812_v63  ;;  %v14746_v63 = vld [vmem:[#allocation78_spill] sm:$0xff] }
 0x3ac   : > { %v7369_v38 = vpop.f32.mrf.mxu1  ;;  %v8453_v19 = vmax.f32 %v8325_v37, 0.0  ;;  %v14745_v4 = vld [vmem:[#allocation24_spill] sm:$0xff]  ;;  %v13397_v7 = vld [vmem:[%s13808_s4] ss:$0 sm:$0xff] }
 0x3ad   : > { %14741 = vst [vmem:[#allocation66_spill] sm:$0xff] %v13382_v59  ;;  %v7991_v6 = vpop.f32.mrf.mxu0  ;;  %v6814_v44 = vadd.f32 %v13397_v7, %v14747_v10  ;;  %v14748_v38 = vld [vmem:[#allocation104_spill] sm:$0xff] }
 0x3ae   : > { %v8326_v46 = vadd.f32 %v7991_v6, %v14742_v21  ;;  %v7372_v49 = vpop.f32.mrf.mxu1 }
 0x3af   : > { %v7993_v29 = vpop.f32.mrf.mxu0  ;;  %v13387_v27 = vadd.f32 %v7372_v49, %v6813_v39  ;;  %v14751_v49 = vld [vmem:[#allocation123_spill] sm:$0xff] }
 0x3b0   : > { %v8454_v45 = vmax.f32 %v8326_v46, 0.0  ;;  %v7374_v58 = vpop.f32.mrf.mxu1  ;;  %v14750_v29 = vld [vmem:[#allocation37_spill] sm:$0xff] }
 0x3b1   : > { %14744 = vst [vmem:[#allocation89_spill] sm:$0xff] %v13387_v27  ;;  %v7996_v16 = vpop.f32.mrf.mxu0  ;;  %8187 = vmatmul.mubr.bf16.gmra.mxu0 %v14745_v4 }
 0x3b2   : > { %v13390_v2 = vpack.c.bf16 %v8454_v45, %v8453_v19  ;;  %9555 = vmatprep.mubr.msk.bf16.mxu0 %vm5602_vm6, %v14746_v63  ;;  %v7375_v6 = vpop.f32.mrf.mxu1  ;;  %v8327_v21 = vadd.f32 %v7996_v16, %v14748_v38  ;;  %v6815_v45 = vadd.f32 %v13397_v7, %v14751_v49 }
 0x3b3   : > { %v7998_v37 = vpop.f32.mrf.mxu0  ;;  %v13402_v46 = vadd.f32 %v7375_v6, %v6814_v44  ;;  %v14754_v44 = vld [vmem:[#allocation15_spill] sm:$0xff]  ;;  %v14755_v6 = vld [vmem:[#allocation125_spill] sm:$0xff] }
 0x3b4   : > { %v7377_v39 = vpop.f32.mrf.mxu1  ;;  %v8455_v58 = vmax.f32 %v8327_v21, 0.0  ;;  %v14753_v37 = vld [vmem:[#allocation77_spill] sm:$0xff]  ;;  %v6816_v38 = vadd.f32 %v13397_v7, %v14755_v6 }
 0x3b5   : > { %14749 = vst [vmem:[#allocation95_spill] sm:$0xff] %v13402_v46  ;;  %v7999_v24 = vpop.f32.mrf.mxu0 }
 0x3b6   : > { %v8328_v19 = vadd.f32 %v7999_v24, %v14750_v29  ;;  %v7380_v63 = vpop.f32.mrf.mxu1  ;;  %v14756_v29 = vld [vmem:[#allocation105_spill] sm:$0xff] }
 0x3b7   : > { %v8001_v4 = vpop.f32.mrf.mxu0  ;;  %v13407_v59 = vadd.f32 %v7380_v63, %v6815_v45 }
 0x3b8   : > { %v8456_v27 = vmax.f32 %v8328_v19, 0.0  ;;  %v7382_v16 = vpop.f32.mrf.mxu1  ;;  %v14757_v4 = vld [vmem:[#allocation159_spill] sm:$0xff] }
 0x3b9   : > { %14752 = vst [vmem:[#allocation22_spill] sm:$0xff] %v13407_v59  ;;  %v8004_v10 = vpop.f32.mrf.mxu0  ;;  %8195 = vmatmul.mubr.bf16.gmra.mxu0 %v14753_v37  ;;  %v14758_v59 = vld [vmem:[#allocation128_spill] sm:$0xff] }
 0x3ba   : > { %v8553_v30 = vpack.c.bf16 %v8456_v27, %v8455_v58  ;;  %9556 = vmatprep.mubr.msk.bf16.mxu0 %vm5602_vm6, %v14754_v44  ;;  %v7383_v39 = vpop.f32.mrf.mxu1  ;;  %v8329_v49 = vadd.f32 %v8004_v10, %v14756_v29  ;;  %v6817_v27 = vadd.f32 %v13397_v7, %v14758_v59  ;;  %v14760_v29 = vld [vmem:[#allocation17_spill] sm:$0xff] }
 0x3bb   : > { %v8006_v24 = vpop.f32.mrf.mxu0  ;;  %v13415_v21 = vadd.f32 %v7383_v39, %v6816_v38  ;;  %v14759_v38 = vld [vmem:[#allocation98_spill] sm:$0xff] }
 0x3bc   : > { %v7385_v45 = vpop.f32.mrf.mxu1  ;;  %v8457_v37 = vmax.f32 %v8329_v49, 0.0  ;;  %v8671_v49 = vsel %vm5602_vm6, %v13296_v20, 0 }
 0x3bd   : > { %v8007_v19 = vpop.f32.mrf.mxu0 }
 0x3be   : > { %v8330_v63 = vadd.f32 %v8007_v19, %v14757_v4  ;;  %v7388_v16 = vpop.f32.mrf.mxu1  ;;  %v14761_v19 = vld [vmem:[#allocation61_spill] sm:$0xff] }
 0x3bf   : > { %v8009_v58 = vpop.f32.mrf.mxu0  ;;  %v13420_v46 = vadd.f32 %v7388_v16, %v6817_v27  ;;  %v6818_v45 = vadd.f32 %v13397_v7, %v14761_v19  ;;  %v1716_v16 = vadd.s32 1080, %v14640_v43 }
 0x3c0   : > { %v8458_v44 = vmax.f32 %v8330_v63, 0.0  ;;  %v7390_v10 = vpop.f32.mrf.mxu1  ;;  %v14762_v58 = vld [vmem:[#allocation39_spill] sm:$0xff] }
 0x3c1   : > { %v8012_v6 = vpop.f32.mrf.mxu0  ;;  %8203 = vmatmul.mubr.bf16.gmra.mxu0 %v14650_v53 }
 0x3c2   : > { %v8554_v24 = vpack.c.bf16 %v8458_v44, %v8457_v37  ;;  %v8331_v39 = vadd.f32 %v8012_v6, %v14759_v38  ;;  %9557 = vmatprep.mubr.msk.bf16.mxu0 %vm5602_vm6, %v14760_v29  ;;  %v7391_v4 = vpop.f32.mrf.mxu1  ;;  %v14763_v44 = vld [vmem:[#allocation131_spill] sm:$0xff] }
 0x3c3   : > { %v8014_v59 = vpop.f32.mrf.mxu0  ;;  %v13431_v63 = vadd.f32 %v7391_v4, %v6818_v45  ;;  %v6819_v6 = vadd.f32 %v13397_v7, %v14763_v44  ;;  %v14764_v4 = vld [vmem:[#allocation40_spill] sm:$0xff] }
 0x3c4   : > { %9679 = vmatprep.subr.msk.bf16.mxu1 %vm5602_vm6, %v8554_v24  ;;  %v7393_v27 = vpop.f32.mrf.mxu1  ;;  %v8459_v38 = vmax.f32 %v8331_v39, 0.0 }
 0x3c5   : > { %v8015_v53 = vpop.f32.mrf.mxu0  ;;  %9594 = vmatpush3.bf16.xpose.msra.mxu1 %v8671_v49 }
 0x3c6   : > { %v8332_v37 = vadd.f32 %v8015_v53, %v14762_v58  ;;  %9680 = vmatprep.subr.msk.bf16.mxu1 %vm5602_vm6, %v8553_v30  ;;  %v7396_v24 = vpop.f32.mrf.mxu1  ;;  %v2666_v30 = vand.u32 31, %v1716_v16  ;;  %v14765_v53 = vld [vmem:[#allocation63_spill] sm:$0xff] }
 0x3c7   : > { %v8017_v10 = vpop.f32.mrf.mxu0  ;;  %v13438_v19 = vadd.f32 %v7396_v24, %v6819_v6  ;;  %v6820_v27 = vadd.f32 %v13397_v7, %v14765_v53 }
 0x3c8   : > { %v8460_v29 = vmax.f32 %v8332_v37, 0.0  ;;  %v7398_v59 = vpop.f32.mrf.mxu1  ;;  %v8668_v37 = vsel %vm5602_vm6, %v13279_v48, 0  ;;  %v14766_v10 = vld [vmem:[#allocation81_spill] sm:$0xff]  ;;  %vm4028_vm3 = vcmp.ne.s32.totalorder %v2666_v30, 31  ;;  %v14769_v30 = vld [vmem:[#allocation68_spill] sm:$0xff] }
 0x3c9   : > { %v8020_v20 = vpop.f32.mrf.mxu0  ;;  %8211 = vmatmul.mubr.bf16.gmra.mxu0 %v14657_v18  ;;  %v9286_v53 = vsel %vm4028_vm3, 1.0, %v14651_v9 }
 0x3ca   : > { %v13441_v45 = vpack.c.bf16 %v8460_v29, %v8459_v38  ;;  %v8333_v49 = vadd.f32 %v8020_v20, %v14764_v4  ;;  %9558 = vmatprep.mubr.msk.bf16.mxu0 %vm5602_vm6, %v14659_v57  ;;  %v7399_v58 = vpop.f32.mrf.mxu1  ;;  %v14767_v57 = vld [vmem:[#allocation135_spill] sm:$0xff] }
 0x3cb   : > { %v8022_v39 = vpop.f32.mrf.mxu0  ;;  %v13450_v44 = vadd.f32 %v7399_v58, %v6820_v27  ;;  %v6821_v16 = vadd.f32 %v13397_v7, %v14767_v57  ;;  %v14768_v58 = vld [vmem:[#allocation41_spill] sm:$0xff] }
 0x3cc   : > { %v7401_v6 = vpop.f32.mrf.mxu1  ;;  %v8461_v29 = vmax.f32 %v8333_v49, 0.0  ;;  %v6822_v49 = vadd.f32 %v13397_v7, %v14769_v30 }
 0x3cd   : > { %v8023_v18 = vpop.f32.mrf.mxu0  ;;  %9596 = vmatpush3.bf16.xpose.msra.mxu1 %v8668_v37  ;;  %v8665_v6 = vsel %vm5602_vm6, %v13260_v26, 0 }
 0x3ce   : > { %v8334_v38 = vadd.f32 %v8023_v18, %v14766_v10  ;;  %9681 = vmatprep.subr.msk.bf16.mxu1 %vm5602_vm6, %v13390_v2  ;;  %v7404_v20 = vpop.f32.mrf.mxu1 }
 0x3cf   : > { %v8025_v24 = vpop.f32.mrf.mxu0  ;;  %v13457_v4 = vadd.f32 %v7404_v20, %v6821_v16 }
 0x3d0   : > { %v8462_v59 = vmax.f32 %v8334_v38, 0.0  ;;  %v7406_v39 = vpop.f32.mrf.mxu1 }
 0x3d1   : > { %v8028_v48 = vpop.f32.mrf.mxu0  ;;  %8219 = vmatmul.mubr.bf16.gmra.mxu0 %v14665_v47  ;;  %v13471_v47 = vpack.c.bf16 %v9286_v53, %v14655_v1 }
 0x3d2   : > { %v13461_v27 = vpack.c.bf16 %v8462_v59, %v8461_v29  ;;  %v8335_v2 = vadd.f32 %v8028_v48, %v14768_v58  ;;  %9559 = vmatprep.mubr.msk.bf16.mxu0 %vm5602_vm6, %v14667_v35  ;;  %v7407_v18 = vpop.f32.mrf.mxu1  ;;  %v14770_v35 = vld [vmem:[#allocation138_spill] sm:$0xff]  ;;  %v1713_v48 = vadd.s32 1056, %v14640_v43 }
 0x3d3   : > { %v8030_v37 = vpop.f32.mrf.mxu0  ;;  %v13473_v10 = vadd.f32 %v7407_v18, %v6822_v49  ;;  %v6823_v24 = vadd.f32 %v13397_v7, %v14770_v35  ;;  %v4570_v53 = vrot.slane %v13471_v47, 7  ;;  %v8662_v47 = vsel %vm5602_vm6, %v13241_v34, 0 }
 0x3d4   : > { %v7409_v57 = vpop.f32.mrf.mxu1  ;;  %v8463_v20 = vmax.f32 %v8335_v2, 0.0  ;;  %v14772_v2 = vld [vmem:[#allocation72_spill] sm:$0xff] }
 0x3d5   : > { %v8031_v38 = vpop.f32.mrf.mxu0  ;;  %9598 = vmatpush3.bf16.xpose.msra.mxu1 %v8665_v6  ;;  %v6824_v37 = vadd.f32 %v13397_v7, %v14772_v2  ;;  %v14775_v2 = vld [vmem:[#allocation12_spill] sm:$0xff] }
 0x3d6   : > { %v8336_v16 = vadd.f32 %v8031_v38, %v13093_v56  ;;  %9682 = vmatprep.subr.msk.bf16.mxu1 %vm5602_vm6, %v13375_v11  ;;  %v7412_v59 = vpop.f32.mrf.mxu1  ;;  %v14771_v11 = vld [vmem:[#allocation84_spill] sm:$0xff]  ;;  %v2645_v38 = vand.u32 31, %v1713_v48 }
 0x3d7   : > { %v8033_v29 = vpop.f32.mrf.mxu0  ;;  %v13482_v39 = vadd.f32 %v7412_v59, %v6823_v24  ;;  %v14774_v59 = vld [vmem:[#allocation32_spill] sm:$0xff] }
 0x3d8   : > { %v8464_v26 = vmax.f32 %v8336_v16, 0.0  ;;  %v7414_v30 = vpop.f32.mrf.mxu1 }
 0x3d9   : > { %v8036_v58 = vpop.f32.mrf.mxu0  ;;  %8227 = vmatmul.mubr.bf16.gmra.mxu0 %v14676_v28  ;;  %v4571_v28 = vsel %vm1574_vm1, %v14661_v22, %v4570_v53  ;;  %vm3481_vm1 = vcmp.ne.s32.totalorder %v2645_v38, 0  ;;  %v8659_v38 = vsel %vm5602_vm6, %v13222_v54, 0  ;;  %v14778_v54 = vld [vmem:[#allocation100_spill] sm:$0xff] }
 0x3da   : > { %v13485_v56 = vpack.c.bf16 %v8464_v26, %v8463_v20  ;;  %v8337_v49 = vadd.f32 %v8036_v58, %v14771_v11  ;;  %9560 = vmatprep.mubr.msk.bf16.mxu0 %vm5602_vm6, %v13148_v41  ;;  %v7415_v6 = vpop.f32.mrf.mxu1  ;;  %v14773_v41 = vld [vmem:[#allocation141_spill] sm:$0xff]  ;;  %v4708_v34 = vmul.bf16 %v4571_v28, %v14774_v59 }
 0x3db   : > { %v8038_v18 = vpop.f32.mrf.mxu0  ;;  %v13496_v57 = vadd.f32 %v7415_v6, %v6824_v37  ;;  %v6825_v29 = vadd.f32 %v13397_v7, %v14773_v41  ;;  %v6826_v37 = vadd.f32 %v13397_v7, %v14775_v2  ;;  %v14779_v2 = vld [vmem:[#allocation103_spill] sm:$0xff] }
 0x3dc   : > { %v7417_v35 = vpop.f32.mrf.mxu1  ;;  %v8465_v26 = vmax.f32 %v8337_v49, 0.0  ;;  %v9252_v18 = vsel %vm3481_vm1, 1.0, %v14651_v9  ;;  %v5598_v6 = vrot.slane %v4708_v34, 1 }
 0x3dd   : > { %v8039_v16 = vpop.f32.mrf.mxu0  ;;  %9600 = vmatpush3.bf16.xpose.msra.mxu1 %v8662_v47 }
 0x3de   : > { %v8338_v24 = vadd.f32 %v8039_v16, %v13115_v55  ;;  %9683 = vmatprep.subr.msk.bf16.mxu1 %vm5602_vm6, %v13360_v25  ;;  %v7420_v48 = vpop.f32.mrf.mxu1 }
 0x3df   : > { %v8041_v20 = vpop.f32.mrf.mxu0  ;;  %v13504_v22 = vadd.f32 %v7420_v48, %v6825_v29  ;;  %v5599_v29 = vsel %vm5464_vm5, %v13165_v31, %v5598_v6  ;;  %v14780_v31 = vld [vmem:[#allocation75_spill] sm:$0xff] }
 0x3e0   : > { %v8466_v58 = vmax.f32 %v8338_v24, 0.0  ;;  %v7422_v55 = vpop.f32.mrf.mxu1  ;;  %v14777_v24 = vld [vmem:[#allocation143_spill] sm:$0xff]  ;;  %v4709_v20 = vmul.bf16 %v4570_v53, %v14778_v54  ;;  %v6828_v53 = vadd.f32 %v13397_v7, %v14780_v31 }
 0x3e1   : > { %v8044_v30 = vpop.f32.mrf.mxu0  ;;  %8235 = vmatmul.mubr.bf16.gmra.mxu0 %v13174_v36  ;;  %v6827_v9 = vadd.f32 %v13397_v7, %v14777_v24 }
 0x3e2   : > { %v13507_v11 = vpack.c.bf16 %v8466_v58, %v8465_v26  ;;  %v8339_v25 = vadd.f32 %v8044_v30, %v13123_v40  ;;  %9561 = vmatprep.mubr.msk.bf16.mxu0 %vm5602_vm6, %v13181_v32  ;;  %v7423_v47 = vpop.f32.mrf.mxu1  ;;  %v14776_v40 = vld [vmem:[#allocation43_spill] sm:$0xff]  ;;  %v3823_v32 = vpack.c.bf16 %v14655_v1, %v9252_v18  ;;  %v5600_v18 = vrot.slane %v4709_v20, 1 }
 0x3e3   : > { %v8046_v49 = vpop.f32.mrf.mxu0  ;;  %v13517_v36 = vadd.f32 %v7423_v47, %v6826_v37 }
 0x3e4   : > { %v7425_v16 = vpop.f32.mrf.mxu1  ;;  %v8467_v34 = vmax.f32 %v8339_v25, 0.0  ;;  %v3891_v37 = vmul.bf16 %v3823_v32, %v14779_v2  ;;  %v5392_v49 = vpop.permute.xlu0 %5391  ;;  %v14783_v2 = vld [vmem:[#allocation162_spill] sm:$0xff] }
 0x3e5   : > { %v8047_v28 = vpop.f32.mrf.mxu0  ;;  %9602 = vmatpush3.bf16.xpose.msra.mxu1 %v8659_v38  ;;  %v8656_v38 = vsel %vm5602_vm6, %v13192_v13, 0 }
 0x3e6   : > { %v8340_v35 = vadd.f32 %v8047_v28, %v14776_v40  ;;  %9684 = vmatprep.subr.msk.bf16.mxu1 %vm5602_vm6, %v13345_v60  ;;  %v7428_v26 = vpop.f32.mrf.mxu1  ;;  %v5869_v40 = vsel %vm5602_vm6, %v3891_v37, %v5392_v49  ;;  %v8653_v37 = vsel %vm5602_vm6, %v14783_v2, 0  ;;  %v14784_v49 = vld [vmem:[#allocation87_spill] sm:$0xff] }
 0x3e7   : > { %v8049_v41 = vpop.f32.mrf.mxu0  ;;  %v13528_v58 = vadd.f32 %v7428_v26, %v6827_v9  ;;  %v5601_v9 = vsel %vm5464_vm5, %v5598_v6, %v5600_v18  ;;  %v3892_v26 = vmul.bf16 1.0|1.0, %v14774_v59  ;;  %v14785_v18 = vld [vmem:[#allocation147_spill] sm:$0xff] }
 0x3e8   : > { %v8468_v48 = vmax.f32 %v8340_v35, 0.0  ;;  %v7430_v1 = vpop.f32.mrf.mxu1  ;;  %v14781_v35 = vld [vmem:[#allocation25_spill] sm:$0xff] }
 0x3e9   : > { %v8052_v30 = vpop.f32.mrf.mxu0  ;;  %8243 = vmatmul.mubr.bf16.gmra.mxu0 %v13204_v23  ;;  %v6829_v32 = vadd.f32 %v13397_v7, %v14781_v35  ;;  %v5394_v1 = vpop.permute.xlu1 %5393 }
 0x3ea   : > { %v13531_v60 = vpack.c.bf16 %v8468_v48, %v8467_v34  ;;  %v8341_v55 = vadd.f32 %v8052_v30, %v13154_v0  ;;  %9562 = vmatprep.mubr.msk.bf16.mxu0 %vm5602_vm6, %v5599_v29  ;;  %v7431_v47 = vpop.f32.mrf.mxu1  ;;  %v14782_v48 = vld [vmem:[#allocation14_spill] sm:$0xff]  ;;  %v5873_v59 = vsel %vm5602_vm6, %v3892_v26, %v5394_v1 }
 0x3eb   : > { %v8054_v25 = vpop.f32.mrf.mxu0  ;;  %v13540_v23 = vadd.f32 %v7431_v47, %v6828_v53  ;;  %v6830_v30 = vadd.f32 %v13397_v7, %v14782_v48  ;;  %v6831_v47 = vadd.f32 %v13397_v7, %v14785_v18 }
 0x3ec   : > { %v7433_v16 = vpop.f32.mrf.mxu1  ;;  %v8469_v41 = vmax.f32 %v8341_v55, 0.0 }
 0x3ed   : > { %v8055_v28 = vpop.f32.mrf.mxu0  ;;  %9604 = vmatpush3.bf16.xpose.msra.mxu1 %v8656_v38 }
 0x3ee   : > { %v8342_v0 = vadd.f32 %v8055_v28, %v13171_v5  ;;  %9685 = vmatprep.subr.msk.bf16.mxu1 %vm5602_vm6, %v13330_v3  ;;  %v7436_v13 = vpop.f32.mrf.mxu1 }
 0x3ef   : > { %v8057_v24 = vpop.f32.mrf.mxu0  ;;  %v13549_v54 = vadd.f32 %v7436_v13, %v6829_v32  ;;  %v14787_v13 = vld [vmem:[#allocation80_spill] sm:$0xff] }
 0x3f0   : > { %v8470_v29 = vmax.f32 %v8342_v0, 0.0  ;;  %v7438_v5 = vpop.f32.mrf.mxu1 }
 0x3f1   : > { %v8060_v20 = vpop.f32.mrf.mxu0  ;;  %8251 = vmatmul.mubr.bf16.gmra.mxu0 %v5869_v40  ;;  %v14788_v5 = vld [vmem:[#allocation60_spill] sm:$0xff] }
 0x3f2   : > { %v13551_v34 = vpack.c.bf16 %v8470_v29, %v8469_v41  ;;  %v8343_v3 = vadd.f32 %v8060_v20, %v13186_v17  ;;  %9563 = vmatprep.mubr.msk.bf16.mxu0 %vm5602_vm6, %v5601_v9  ;;  %v7439_v55 = vpop.f32.mrf.mxu1  ;;  %v14786_v9 = vld [vmem:[#allocation64_spill] sm:$0xff]  ;;  %v8650_v26 = vsel %vm5602_vm6, %v14788_v5, 0 }
 0x3f3   : > { %v8062_v6 = vpop.f32.mrf.mxu0  ;;  %v13560_v31 = vadd.f32 %v7439_v55, %v6830_v30  ;;  %v14790_v55 = vld [vmem:[#allocation150_spill] sm:$0xff] }
 0x3f4   : > { %v7441_v25 = vpop.f32.mrf.mxu1  ;;  %v8471_v28 = vmax.f32 %v8343_v3, 0.0  ;;  %v14789_v6 = vld [vmem:[#allocation62_spill] sm:$0xff]  ;;  %v6833_v2 = vadd.f32 %v13397_v7, %v14790_v55 }
 0x3f5   : > { %v8063_v53 = vpop.f32.mrf.mxu0  ;;  %9606 = vmatpush3.bf16.xpose.msra.mxu1 %v8653_v37 }
 0x3f6   : > { %v8344_v17 = vadd.f32 %v8063_v53, %v14784_v49  ;;  %9686 = vmatprep.subr.msk.bf16.mxu1 %vm5602_vm6, %v13315_v42  ;;  %v7444_v16 = vpop.f32.mrf.mxu1  ;;  %v6832_v42 = vadd.f32 %v13397_v7, %v14787_v13 }
 0x3f7   : > { %v8065_v38 = vpop.f32.mrf.mxu0  ;;  %v13568_v40 = vadd.f32 %v7444_v16, %v6831_v47  ;;  %v14792_v16 = vld [vmem:[#allocation28_spill] sm:$0xff] }
 0x3f8   : > { %v8472_v0 = vmax.f32 %v8344_v17, 0.0  ;;  %v7446_v24 = vpop.f32.mrf.mxu1  ;;  %v14791_v38 = vld [vmem:[#allocation102_spill] sm:$0xff] }
 0x3f9   : > { %v8068_v35 = vpop.f32.mrf.mxu0  ;;  %8259 = vmatmul.mubr.bf16.gmra.mxu0 %v5873_v59 }
 0x3fa   : > { %v13570_v32 = vpack.c.bf16 %v8472_v0, %v8471_v28  ;;  %v8345_v41 = vadd.f32 %v8068_v35, %v14786_v9  ;;  %v7447_v20 = vpop.f32.mrf.mxu1  ;;  %v6834_v0 = vadd.f32 %v13397_v7, %v14792_v16 }
 0x3fb   : > { %v8070_v29 = vpop.f32.mrf.mxu0  ;;  %v13577_v3 = vadd.f32 %v7447_v20, %v6832_v42  ;;  %v14793_v42 = vld [vmem:[#allocation82_spill] sm:$0xff]  ;;  %v14794_v20 = vld [vmem:[#allocation152_spill] sm:$0xff] }
 0x3fc   : > { %v7449_v30 = vpop.f32.mrf.mxu1  ;;  %v8473_v53 = vmax.f32 %v8345_v41, 0.0  ;;  %v6835_v5 = vadd.f32 %v13397_v7, %v14794_v20 }
 0x3fd   : > { %v8071_v48 = vpop.f32.mrf.mxu0  ;;  %9608 = vmatpush3.bf16.xpose.msra.mxu1 %v8650_v26 }
 0x3fe   : > { %v8346_v1 = vadd.f32 %v8071_v48, %v14789_v6  ;;  %v7452_v25 = vpop.f32.mrf.mxu1 }
 0x3ff   : > { %v8073_v37 = vpop.f32.mrf.mxu0  ;;  %v13582_v17 = vadd.f32 %v7452_v25, %v6833_v2 }
 0x400   : > { %v8474_v49 = vmax.f32 %v8346_v1, 0.0  ;;  %v7454_v47 = vpop.f32.mrf.mxu1 }
 0x401   : > { %v8076_v59 = vpop.f32.mrf.mxu0 }
 0x402   : > { %v13584_v18 = vpack.c.bf16 %v8474_v49, %v8473_v53  ;;  %v8347_v28 = vadd.f32 %v8076_v59, %v14791_v38  ;;  %v7455_v24 = vpop.f32.mrf.mxu1  ;;  %v14795_v53 = vld [vmem:[#allocation90_spill] sm:$0xff] }
 0x403   : > { %v8078_v35 = vpop.f32.mrf.mxu0  ;;  %v13591_v9 = vadd.f32 %v7455_v24, %v6834_v0  ;;  %v8588_v49 = vld [vmem:[#allocation2] sm:$0x1] }
 0x404   : > { %9610 = vmatmul.mubr.msk.bf16.vlgmr.msra.gmra.mxu1 %vm5602_vm6, %v13212_v15  ;;  %v7457_v13 = vpop.f32.mrf.mxu1  ;;  %v8475_v48 = vmax.f32 %v8347_v28, 0.0  ;;  %8591 = vperm.xlu0 %9733, %v8588_v49   ;;  %v14797_v35 = vld [vmem:[#allocation67_spill] sm:$0xff] }
 0x405   : > { %v8079_v41 = vpop.f32.mrf.mxu0  ;;  %9627 = vmatprep.mubr.msk.bf16.mxu1 %vm5602_vm6, %v13212_v15  ;;  %v14796_v15 = vld [vmem:[#allocation154_spill] sm:$0xff] }
 0x406   : > { %v8348_v29 = vadd.f32 %v8079_v41, %v14793_v42  ;;  %v7460_v30 = vpop.f32.mrf.mxu1  ;;  %v6836_v59 = vadd.f32 %v13397_v7, %v14796_v15  ;;  %v14798_v41 = vld [vmem:[#allocation156_spill] sm:$0xff] }
 0x407   : > { %v8081_v26 = vpop.f32.mrf.mxu0  ;;  %v13598_v1 = vadd.f32 %v7460_v30, %v6835_v5  ;;  %v6837_v13 = vadd.f32 %v13397_v7, %v14798_v41 }
 0x408   : > { %v8476_v6 = vmax.f32 %v8348_v29, 0.0  ;;  %v7462_v37 = vpop.f32.mrf.mxu1 }
 0x409   : > { %v8084_v55 = vpop.f32.mrf.mxu0 }
 0x40a   : > { %v13600_v2 = vpack.c.bf16 %v8476_v6, %v8475_v48  ;;  %v8349_v25 = vadd.f32 %v8084_v55, %v14795_v53  ;;  %v7463_v38 = vpop.f32.mrf.mxu1  ;;  %v14799_v55 = vld [vmem:[#allocation10_spill] sm:$0xff] }
 0x40b   : > { %v8086_v47 = vpop.f32.mrf.mxu0  ;;  %v13605_v16 = vadd.f32 %v7463_v38, %v6836_v59  ;;  %v14800_v53 = vld [vmem:[#allocation158_spill] sm:$0xff] }
 0x40c   : > { %v7465_v0 = vpop.f32.mrf.mxu1  ;;  %v8477_v29 = vmax.f32 %v8349_v25, 0.0  ;;  %v6838_v49 = vadd.f32 %v13397_v7, %v14800_v53 }
 0x40d   : > { %v8087_v28 = vpop.f32.mrf.mxu0  ;;  %v14801_v0 = vld [vmem:[#allocation160_spill] sm:$0xff] }
 0x40e   : > { %v8350_v24 = vadd.f32 %v8087_v28, %v14797_v35  ;;  %v7468_v20 = vpop.f32.mrf.mxu1  ;;  %v6839_v35 = vadd.f32 %v13397_v7, %v14801_v0 }
 0x40f   : > { %v8089_v42 = vpop.f32.mrf.mxu0  ;;  %v13610_v26 = vadd.f32 %v7468_v20, %v6837_v13 }
 0x410   : > { %v8478_v5 = vmax.f32 %v8350_v24, 0.0  ;;  %v7470_v6 = vpop.f32.mrf.mxu1 }
 0x411   : > { %v8092_v48 = vpop.f32.mrf.mxu0  ;;  %v14802_v6 = vld [vmem:[#allocation47_spill] sm:$0xff] }
 0x412   : > { %v13612_v30 = vpack.c.bf16 %v8478_v5, %v8477_v29  ;;  %v8351_v37 = vadd.f32 %v8092_v48, %v14799_v55  ;;  %v7471_v59 = vpop.f32.mrf.mxu1  ;;  %v6840_v55 = vadd.f32 %v13397_v7, %v14802_v6 }
 0x413   : > { %v8094_v15 = vpop.f32.mrf.mxu0  ;;  %v13617_v47 = vadd.f32 %v7471_v59, %v6838_v49 }
 0x414   : > { %v7473_v28 = vpop.f32.mrf.mxu1  ;;  %v8479_v41 = vmax.f32 %v8351_v37, 0.0  ;;  %v14803_v37 = vld [vmem:[#allocation27_spill] sm:$0xff] }
 0x415   : > { %v8095_v38 = vpop.f32.mrf.mxu0 }
 0x416   : > { %v8352_v25 = vadd.f32 %v8095_v38, %v13288_v51  ;;  %v7476_v13 = vpop.f32.mrf.mxu1 }
 0x417   : > { %v8097_v24 = vpop.f32.mrf.mxu0  ;;  %v13622_v29 = vadd.f32 %v7476_v13, %v6839_v35 }
 0x418   : > { %v8480_v42 = vmax.f32 %v8352_v25, 0.0  ;;  %v7478_v48 = vpop.f32.mrf.mxu1  ;;  %v14804_v25 = vld [vmem:[#allocation161_spill] sm:$0xff] }
 0x419   : > { %v8100_v20 = vpop.f32.mrf.mxu0  ;;  %v6841_v0 = vadd.f32 %v13397_v7, %v14804_v25 }
 0x41a   : > { %v13624_v5 = vpack.c.bf16 %v8480_v42, %v8479_v41  ;;  %v7479_v49 = vpop.f32.mrf.mxu1  ;;  %v8353_v51 = vadd.f32 %v8100_v20, %v13293_v61  ;;  %v14806_v61 = vld [vmem:[#allocation85_spill] sm:$0xff] }
 0x41b   : > { %v8102_v53 = vpop.f32.mrf.mxu0  ;;  %v13629_v15 = vadd.f32 %v7479_v49, %v6840_v55  ;;  %v6842_v20 = vadd.f32 %v13397_v7, %v14806_v61 }
 0x41c   : > { %v7481_v38 = vpop.f32.mrf.mxu1  ;;  %v8481_v24 = vmax.f32 %v8353_v51, 0.0 }
 0x41d   : > { %v8103_v59 = vpop.f32.mrf.mxu0 }
 0x41e   : > { %v8354_v28 = vadd.f32 %v8103_v59, %v14803_v37  ;;  %v7484_v41 = vpop.f32.mrf.mxu1 }
 0x41f   : > { %v8105_v35 = vpop.f32.mrf.mxu0  ;;  %v13634_v42 = vadd.f32 %v7484_v41, %v6841_v0 }
 0x420   : > { %v8482_v13 = vmax.f32 %v8354_v28, 0.0  ;;  %v7486_v53 = vpop.f32.mrf.mxu1 }
 0x421   : > { %14805 = vst [vmem:[#allocation23_spill] sm:$0xff] %v13634_v42  ;;  %v8108_v48 = vpop.f32.mrf.mxu0 }
 0x422   : > { %v13636_v6 = vpack.c.bf16 %v8482_v13, %v8481_v24  ;;  %v7487_v49 = vpop.f32.mrf.mxu1  ;;  %v8355_v59 = vadd.f32 %v8108_v48, %v13312_v8 }
 0x423   : > { %v8110_v55 = vpop.f32.mrf.mxu0  ;;  %v13641_v38 = vadd.f32 %v7487_v49, %v6842_v20 }
 0x424   : > { %v7489_v25 = vpop.f32.mrf.mxu1  ;;  %v8483_v0 = vmax.f32 %v8355_v59, 0.0 }
 0x425   : > { %v8111_v37 = vpop.f32.mrf.mxu0 }
 0x426   : > { %v8356_v51 = vadd.f32 %v8111_v37, %v13322_v52 }
 0x427   : > { %v8113_v28 = vpop.f32.mrf.mxu0 }
 0x428   : > { %v8484_v35 = vmax.f32 %v8356_v51, 0.0 }
 0x429   : > { %v8116_v41 = vpop.f32.mrf.mxu0 }
 0x42a   : > { %v8567_v24 = vpack.c.bf16 %v8484_v35, %v8483_v0  ;;  %v8357_v53 = vadd.f32 %v8116_v41, %v13327_v12 }
 0x42b   : > { %v8118_v13 = vpop.f32.mrf.mxu0 }
 0x42c   : > { %v8485_v55 = vmax.f32 %v8357_v53, 0.0 }
 0x42d   : > { %v8119_v42 = vpop.f32.mrf.mxu0 }
 0x42e   : > { %v8358_v7 = vadd.f32 %v8119_v42, %v13337_v62  ;;  %v14807_v42 = vld [vmem:[#allocation93_spill] sm:$0xff] }
 0x42f   : > { %v8121_v61 = vpop.f32.mrf.mxu0 }
 0x430   : > { %v8486_v8 = vmax.f32 %v8358_v7, 0.0 }
 0x431   : > { %v8124_v48 = vpop.f32.mrf.mxu0 }
 0x432   : > { %v8568_v20 = vpack.c.bf16 %v8486_v8, %v8485_v55  ;;  %v8359_v52 = vadd.f32 %v8124_v48, %v13342_v33  ;;  %v14808_v33 = vld [vmem:[#allocation71_spill] sm:$0xff] }
 0x433   : > { %v8126_v49 = vpop.f32.mrf.mxu0 }
 0x434   : > { %v8487_v25 = vmax.f32 %v8359_v52, 0.0 }
 0x435   : > { %v8127_v37 = vpop.f32.mrf.mxu0 }
 0x436   : > { %v8360_v59 = vadd.f32 %v8127_v37, %v13352_v50  ;;  %v8719_v50 = vsel %vm5602_vm6, %v13584_v18, 0  ;;  %v14809_v37 = vld [vmem:[#allocation66_spill] sm:$0xff]  ;;  %v14811_v18 = vld [vmem:[#allocation95_spill] sm:$0xff] }
 0x437   : > { %v8129_v51 = vpop.f32.mrf.mxu0 }
 0x438   : > { %v8488_v28 = vmax.f32 %v8360_v59, 0.0 }
 0x439   : > { %v8132_v0 = vpop.f32.mrf.mxu0 }
 0x43a   : > { %v8569_v35 = vpack.c.bf16 %v8488_v28, %v8487_v25  ;;  %v8361_v41 = vadd.f32 %v8132_v0, %v13357_v14 }
 0x43b   : > { %v8134_v12 = vpop.f32.mrf.mxu0 }
 0x43c   : > { %v8489_v7 = vmax.f32 %v8361_v41, 0.0  ;;  %v14810_v12 = vld [vmem:[#allocation89_spill] sm:$0xff] }
 0x43d   : > { %v8135_v62 = vpop.f32.mrf.mxu0 }
 0x43e   : > { %v8362_v13 = vadd.f32 %v8135_v62, %v14807_v42  ;;  %v8716_v42 = vsel %vm5602_vm6, %v13570_v32, 0 }
 0x43f   : > { %v8137_v53 = vpop.f32.mrf.mxu0 }
 0x440   : > { %v8490_v61 = vmax.f32 %v8362_v13, 0.0 }
 0x441   : > { %v8140_v55 = vpop.f32.mrf.mxu0 }
 0x442   : > { %v8570_v8 = vpack.c.bf16 %v8490_v61, %v8489_v7  ;;  %v8363_v48 = vadd.f32 %v8140_v55, %v14808_v33  ;;  %v14812_v33 = vld [vmem:[#allocation22_spill] sm:$0xff] }
 0x443   : > { %v8142_v49 = vpop.f32.mrf.mxu0 }
 0x444   : > { %9687 = vmatprep.subr.msk.bf16.mxu1 %vm5602_vm6, %v8570_v8  ;;  %v8491_v51 = vmax.f32 %v8363_v48, 0.0 }
 0x445   : > { %v8143_v52 = vpop.f32.mrf.mxu0  ;;  %9612 = vmatpush3.bf16.xpose.msra.mxu1 %v8719_v50  ;;  %v8713_v50 = vsel %vm5602_vm6, %v13551_v34, 0 }
 0x446   : > { %v8364_v14 = vadd.f32 %v8143_v52, %v14809_v37  ;;  %9688 = vmatprep.subr.msk.bf16.mxu1 %vm5602_vm6, %v8569_v35 }
 0x447   : > { %v8145_v59 = vpop.f32.mrf.mxu0 }
 0x448   : > { %v8492_v25 = vmax.f32 %v8364_v14, 0.0 }
 0x449   : > { %v8148_v28 = vpop.f32.mrf.mxu0 }
 0x44a   : > { %v13656_v0 = vpack.c.bf16 %v8492_v25, %v8491_v51  ;;  %v8365_v41 = vadd.f32 %v8148_v28, %v14810_v12  ;;  %v8710_v12 = vsel %vm5602_vm6, %v13531_v60, 0 }
 0x44b   : > { %v8150_v62 = vpop.f32.mrf.mxu0 }
 0x44c   : > { %v8493_v35 = vmax.f32 %v8365_v41, 0.0 }
 0x44d   : > { %v8151_v13 = vpop.f32.mrf.mxu0  ;;  %9614 = vmatpush3.bf16.xpose.msra.mxu1 %v8716_v42 }
 0x44e   : > { %v8366_v53 = vadd.f32 %v8151_v13, %v14811_v18  ;;  %9689 = vmatprep.subr.msk.bf16.mxu1 %vm5602_vm6, %v8568_v20 }
 0x44f   : > { %v8153_v7 = vpop.f32.mrf.mxu0 }
 0x450   : > { %v8494_v61 = vmax.f32 %v8366_v53, 0.0  ;;  %v8707_v53 = vsel %vm5602_vm6, %v13507_v11, 0 }
 0x451   : > { %v8156_v55 = vpop.f32.mrf.mxu0 }
 0x452   : > { %v13663_v8 = vpack.c.bf16 %v8494_v61, %v8493_v35  ;;  %v8367_v48 = vadd.f32 %v8156_v55, %v14812_v33 }
 0x453   : > { %v8158_v49 = vpop.f32.mrf.mxu0 }
 0x454   : > { %v8495_v20 = vmax.f32 %v8367_v48, 0.0  ;;  %v8704_v48 = vsel %vm5602_vm6, %v13485_v56, 0 }
 0x455   : > { %v8159_v52 = vpop.f32.mrf.mxu0  ;;  %9616 = vmatpush3.bf16.xpose.msra.mxu1 %v8713_v50 }
 0x456   : > { %v8368_v32 = vadd.f32 %v8159_v52, %v13415_v21  ;;  %9690 = vmatprep.subr.msk.bf16.mxu1 %vm5602_vm6, %v8567_v24 }
 0x457   : > { %v8161_v37 = vpop.f32.mrf.mxu0 }
 0x458   : > { %v8496_v14 = vmax.f32 %v8368_v32, 0.0 }
 0x459   : > { %v8164_v59 = vpop.f32.mrf.mxu0 }
 0x45a   : > { %v13670_v51 = vpack.c.bf16 %v8496_v14, %v8495_v20  ;;  %v8369_v25 = vadd.f32 %v8164_v59, %v13420_v46  ;;  %v8701_v20 = vsel %vm5602_vm6, %v13461_v27, 0 }
 0x45b   : > { %v8166_v28 = vpop.f32.mrf.mxu0 }
 0x45c   : > { %v8497_v24 = vmax.f32 %v8369_v25, 0.0 }
 0x45d   : > { %v8167_v41 = vpop.f32.mrf.mxu0  ;;  %9618 = vmatpush3.bf16.xpose.msra.mxu1 %v8710_v12 }
 0x45e   : > { %v8370_v34 = vadd.f32 %v8167_v41, %v13431_v63  ;;  %9691 = vmatprep.subr.msk.bf16.mxu1 %vm5602_vm6, %v13636_v6  ;;  %v8698_v41 = vsel %vm5602_vm6, %v13441_v45, 0  ;;  %v13714_v45 = vld [vmem:[%s13809_s5] sm:$0x1] }
 0x45f   : > { %v8169_v21 = vpop.f32.mrf.mxu0 }
 0x460   : > { %v8498_v62 = vmax.f32 %v8370_v34, 0.0 }
 0x461   : > { %v8172_v42 = vpop.f32.mrf.mxu0 }
 0x462   : > { %v13678_v13 = vpack.c.bf16 %v8498_v62, %v8497_v24  ;;  %v8371_v18 = vadd.f32 %v8172_v42, %v13438_v19 }
 0x463   : > { %v8174_v46 = vpop.f32.mrf.mxu0 }
 0x464   : > { %v8499_v6 = vmax.f32 %v8371_v18, 0.0 }
 0x465   : > { %v8175_v60 = vpop.f32.mrf.mxu0  ;;  %9620 = vmatpush3.bf16.xpose.msra.mxu1 %v8707_v53 }
 0x466   : > { %v8372_v7 = vadd.f32 %v8175_v60, %v13450_v44  ;;  %9692 = vmatprep.subr.msk.bf16.mxu1 %vm5602_vm6, %v13624_v5 }
 0x467   : > { %v8177_v63 = vpop.f32.mrf.mxu0 }
 0x468   : > { %v8500_v35 = vmax.f32 %v8372_v7, 0.0  ;;  %v8596_v7 = vsub.s32 0, %v14640_v43 }
 0x469   : > { %v8180_v61 = vpop.f32.mrf.mxu0 }
 0x46a   : > { %v13686_v55 = vpack.c.bf16 %v8500_v35, %v8499_v6  ;;  %v8373_v33 = vadd.f32 %v8180_v61, %v13457_v4 }
 0x46b   : > { %v8182_v19 = vpop.f32.mrf.mxu0 }
 0x46c   : > { %v8501_v5 = vmax.f32 %v8373_v33, 0.0 }
 0x46d   : > { %v8183_v11 = vpop.f32.mrf.mxu0  ;;  %9622 = vmatpush3.bf16.xpose.msra.mxu1 %v8704_v48 }
 0x46e   : > { %v8374_v49 = vadd.f32 %v8183_v11, %v13473_v10  ;;  %9693 = vmatprep.subr.msk.bf16.mxu1 %vm5602_vm6, %v13612_v30 }
 0x46f   : > { %v8185_v44 = vpop.f32.mrf.mxu0 }
 0x470   : > { %v8502_v50 = vmax.f32 %v8374_v49, 0.0 }
 0x471   : > { %v8188_v52 = vpop.f32.mrf.mxu0 }
 0x472   : > { %v13694_v32 = vpack.c.bf16 %v8502_v50, %v8501_v5  ;;  %v8375_v37 = vadd.f32 %v8188_v52, %v13482_v39 }
 0x473   : > { %v8190_v4 = vpop.f32.mrf.mxu0 }
 0x474   : > { %v8503_v30 = vmax.f32 %v8375_v37, 0.0 }
 0x475   : > { %v8191_v56 = vpop.f32.mrf.mxu0  ;;  %9624 = vmatpush3.bf16.xpose.msra.mxu1 %v8701_v20 }
 0x476   : > { %v8376_v14 = vadd.f32 %v8191_v56, %v13496_v57  ;;  %9694 = vmatprep.subr.msk.bf16.mxu1 %vm5602_vm6, %v13600_v2  ;;  %v8827_v57 = vpop.f32.mrf.mxu1 }
 0x477   : > { %v8193_v10 = vpop.f32.mrf.mxu0 }
 0x478   : > { %v8504_v59 = vmax.f32 %v8376_v14, 0.0  ;;  %v8829_v62 = vpop.f32.mrf.mxu1 }
 0x479   : > { %v8196_v25 = vpop.f32.mrf.mxu0 }
 0x47a   : > { %v13702_v28 = vpack.c.bf16 %v8504_v59, %v8503_v30  ;;  %v8377_v12 = vadd.f32 %v8196_v25, %v13504_v22  ;;  %v8831_v53 = vpop.f32.mrf.mxu1 }
 0x47b   : > { %v8198_v39 = vpop.f32.mrf.mxu0 }
 0x47c   : > { %v8505_v24 = vmax.f32 %v8377_v12, 0.0 }
 0x47d   : > { %v8199_v27 = vpop.f32.mrf.mxu0  ;;  %9626 = vmatpush3.bf16.xpose.msra.mxu1 %v8698_v41 }
 0x47e   : > { %v8378_v34 = vadd.f32 %v8199_v27, %v13517_v36  ;;  %v8832_v36 = vpop.f32.mrf.mxu1 }
 0x47f   : > { %v8201_v21 = vpop.f32.mrf.mxu0 }
 0x480   : > { %v8506_v2 = vmax.f32 %v8378_v34, 0.0 }
 0x481   : > { %v8204_v42 = vpop.f32.mrf.mxu0 }
 0x482   : > { %v13708_v18 = vpack.c.bf16 %v8506_v2, %v8505_v24  ;;  %v8379_v46 = vadd.f32 %v8204_v42, %v13528_v58  ;;  %v8592_v58 = vpop.permute.xlu0 %8591 }
 0x483   : > { %v8206_v22 = vpop.f32.mrf.mxu0  ;;  %v13722_v35 = vrot.slane %v8592_v58, %v8596_v7 }
 0x484   : > { %9628 = vmatmul.mubr.msk.bf16.vlgmr.msra.gmra.mxu1 %vm5602_vm6, %v13714_v45  ;;  %v8507_v61 = vmax.f32 %v8379_v46, 0.0 }
 0x485   : > { %v8207_v60 = vpop.f32.mrf.mxu0  ;;  %9645 = vmatprep.mubr.msk.bf16.mxu1 %vm5602_vm6, %v13714_v45  ;;  %v13725_v48 = vadd.f32 %v8827_v57, %v13722_v35  ;;  %v13728_v11 = vadd.f32 %v8829_v62, %v13722_v35 }
 0x486   : > { %v8380_v63 = vadd.f32 %v8207_v60, %v13540_v23 }
 0x487   : > { %v8209_v6 = vpop.f32.mrf.mxu0  ;;  %v8965_v23 = vcombine.low %v13725_v48, %v13728_v11  ;;  %v8755_v48 = vsel %vm5602_vm6, %v13678_v13, 0  ;;  %v8746_v13 = vsel %vm5602_vm6, %v13656_v0, 0 }
 0x488   : > { %v8508_v33 = vmax.f32 %v8380_v63, 0.0 }
 0x489   : > { %v8212_v19 = vpop.f32.mrf.mxu0 }
 0x48a   : > { %v13730_v49 = vpack.c.bf16 %v8508_v33, %v8507_v61  ;;  %v8381_v44 = vadd.f32 %v8212_v19, %v13549_v54 }
 0x48b   : > { %v8214_v5 = vpop.f32.mrf.mxu0 }
 0x48c   : > { %v8509_v4 = vmax.f32 %v8381_v44, 0.0 }
 0x48d   : > { %v8215_v50 = vpop.f32.mrf.mxu0 }
 0x48e   : > { %v8382_v52 = vadd.f32 %v8215_v50, %v13560_v31 }
 0x48f   : > { %v8217_v37 = vpop.f32.mrf.mxu0 }
 0x490   : > { %v8510_v20 = vmax.f32 %v8382_v52, 0.0 }
 0x491   : > { %v8220_v56 = vpop.f32.mrf.mxu0 }
 0x492   : > { %v13736_v14 = vpack.c.bf16 %v8510_v20, %v8509_v4  ;;  %v8383_v10 = vadd.f32 %v8220_v56, %v13568_v40 }
 0x493   : > { %v8222_v30 = vpop.f32.mrf.mxu0 }
 0x494   : > { %v8511_v12 = vmax.f32 %v8383_v10, 0.0 }
 0x495   : > { %v8223_v59 = vpop.f32.mrf.mxu0 }
 0x496   : > { %v8384_v25 = vadd.f32 %v8223_v59, %v13577_v3  ;;  %v14813_v59 = vld [vmem:[#allocation23_spill] sm:$0xff] }
 0x497   : > { %v8225_v54 = vpop.f32.mrf.mxu0 }
 0x498   : > { %v8512_v39 = vmax.f32 %v8384_v25, 0.0  ;;  %v9867_v54 = vmov 1966171168  }
 0x499   : > { %v8228_v41 = vpop.f32.mrf.mxu0 }
 0x49a   : > { %v13740_v27 = vpack.c.bf16 %v8512_v39, %v8511_v12  ;;  %v8385_v31 = vadd.f32 %v8228_v41, %v13582_v17  ;;  %v8970_v12 = vunpack.c.l.s4 %v9867_v54 }
 0x49b   : > { %v8230_v34 = vpop.f32.mrf.mxu0 }
 0x49c   : > { %v8513_v2 = vmax.f32 %v8385_v31, 0.0 }
 0x49d   : > { %v8231_v57 = vpop.f32.mrf.mxu0 }
 0x49e   : > { %v8386_v21 = vadd.f32 %v8231_v57, %v13591_v9 }
 0x49f   : > { %v8233_v24 = vpop.f32.mrf.mxu0 }
 0x4a0   : > { %v8514_v62 = vmax.f32 %v8386_v21, 0.0 }
 0x4a1   : > { %v8236_v40 = vpop.f32.mrf.mxu0 }
 0x4a2   : > { %v8582_v42 = vpack.c.bf16 %v8514_v62, %v8513_v2  ;;  %v8387_v3 = vadd.f32 %v8236_v40, %v13598_v1 }
 0x4a3   : > { %v8238_v46 = vpop.f32.mrf.mxu0 }
 0x4a4   : > { %v8515_v60 = vmax.f32 %v8387_v3, 0.0 }
 0x4a5   : > { %v8239_v53 = vpop.f32.mrf.mxu0 }
 0x4a6   : > { %v8388_v22 = vadd.f32 %v8239_v53, %v13605_v16 }
 0x4a7   : > { %v8241_v36 = vpop.f32.mrf.mxu0 }
 0x4a8   : > { %v8516_v7 = vmax.f32 %v8388_v22, 0.0 }
 0x4a9   : > { %v8244_v63 = vpop.f32.mrf.mxu0 }
 0x4aa   : > { %v8583_v58 = vpack.c.bf16 %v8516_v7, %v8515_v60  ;;  %v8389_v6 = vadd.f32 %v8244_v63, %v13610_v26  ;;  %v8758_v60 = vsel %vm5602_vm6, %v13686_v55, 0  ;;  %v8749_v55 = vsel %vm5602_vm6, %v13663_v8, 0 }
 0x4ab   : > { %v8246_v17 = vpop.f32.mrf.mxu0 }
 0x4ac   : > { %v8517_v19 = vmax.f32 %v8389_v6, 0.0 }
 0x4ad   : > { %v8247_v9 = vpop.f32.mrf.mxu0 }
 0x4ae   : > { %v8390_v61 = vadd.f32 %v8247_v9, %v13617_v47 }
 0x4af   : > { %v8249_v33 = vpop.f32.mrf.mxu0 }
 0x4b0   : > { %v8518_v44 = vmax.f32 %v8390_v61, 0.0 }
 0x4b1   : > { %v8252_v5 = vpop.f32.mrf.mxu0 }
 0x4b2   : > { %v8584_v50 = vpack.c.bf16 %v8518_v44, %v8517_v19  ;;  %v8391_v52 = vadd.f32 %v8252_v5, %v13622_v29  ;;  %v8971_v29 = vunpack.c.0.s8 %v8970_v12 }
 0x4b3   : > { %v8254_v1 = vpop.f32.mrf.mxu0 }
 0x4b4   : > { %v8519_v20 = vmax.f32 %v8391_v52, 0.0  ;;  %v8974_v2 = vsub.s32 %v8971_v29, %v14640_v43  ;;  %v8761_v43 = vsel %vm5602_vm6, %v13694_v32, 0 }
 0x4b5   : > { %v8255_v16 = vpop.f32.mrf.mxu0 }
 0x4b6   : > { %v8392_v37 = vadd.f32 %v8255_v16, %v13629_v15  ;;  %v8767_v15 = vsel %vm5602_vm6, %v13708_v18, 0  ;;  %v8975_v3 = vrot.slane %v8965_v23, %v8974_v2  ;;  %v8764_v18 = vsel %vm5602_vm6, %v13702_v28, 0 }
 0x4b7   : > { %v8257_v4 = vpop.f32.mrf.mxu0  ;;  %v8752_v28 = vsel %vm5602_vm6, %v13670_v51, 0 }
 0x4b8   : > { %v8520_v56 = vmax.f32 %v8392_v37, 0.0 }
 0x4b9   : > { %v8260_v10 = vpop.f32.mrf.mxu0 }
 0x4ba   : > { %v8585_v30 = vpack.c.bf16 %v8520_v56, %v8519_v20  ;;  %v8393_v25 = vadd.f32 %v8260_v10, %v14813_v59 }
 0x4bb   : > { %v8262_v26 = vpop.f32.mrf.mxu0 }
 0x4bc   : > { %v8521_v34 = vmax.f32 %v8393_v25, 0.0 }
 0x4bd   : > { %v8263_v47 = vpop.f32.mrf.mxu0 }
 0x4be   : > { %v8394_v39 = vadd.f32 %v8263_v47, %v13641_v38 }
 0x4bf   : > { %v8265_v41 = vpop.f32.mrf.mxu0 }
 0x4c0   : > { %v8522_v31 = vmax.f32 %v8394_v39, 0.0 }
 0x4c2   : > { %v8586_v57 = vpack.c.bf16 %v8522_v31, %v8521_v34 }
 0x4c4   : > { %9695 = vmatprep.subr.msk.bf16.mxu1 %vm5602_vm6, %v8586_v57  ;;  %v8868_v21 = vpop.f32.mrf.mxu1 }
 0x4c5   : > { %9630 = vmatpush3.bf16.xpose.msra.mxu1 %v8767_v15  ;;  %v8869_v24 = vadd.f32 %v8868_v21, %v13722_v35 }
 0x4c6   : > { %9696 = vmatprep.subr.msk.bf16.mxu1 %vm5602_vm6, %v8585_v30  ;;  %v8870_v62 = vpop.f32.mrf.mxu1 }
 0x4c7   : > { %v8871_v38 = vadd.f32 %v8870_v62, %v13722_v35 }
 0x4c8   : > { %v8872_v40 = vpop.f32.mrf.mxu1 }
 0x4c9   : > { %v8966_v46 = vcombine.low %v8869_v24, %v8871_v38 }
 0x4ca   : > { %v8873_v53 = vpop.f32.mrf.mxu1 }
 0x4cb   : > { %v8982_v22 = vrot.slane %v8966_v46, %v8974_v2 }
 0x4cd   : > { %9632 = vmatpush3.bf16.xpose.msra.mxu1 %v8764_v18  ;;  %v8997_v36 = vcombine.low %v8975_v3, %v8982_v22 }
 0x4ce   : > { %9697 = vmatprep.subr.msk.bf16.mxu1 %vm5602_vm6, %v8584_v50 }
 0x4cf   : > { %v9005_v61 = vrot.slane %v8997_v36, %v8974_v2 }
 0x4d5   : > { %9634 = vmatpush3.bf16.xpose.msra.mxu1 %v8761_v43 }
 0x4d6   : > { %9698 = vmatprep.subr.msk.bf16.mxu1 %vm5602_vm6, %v8583_v58 }
 0x4dd   : > { %9636 = vmatpush3.bf16.xpose.msra.mxu1 %v8758_v60 }
 0x4de   : > { %9699 = vmatprep.subr.msk.bf16.mxu1 %vm5602_vm6, %v8582_v42 }
 0x4e5   : > { %9638 = vmatpush3.bf16.xpose.msra.mxu1 %v8755_v48 }
 0x4e6   : > { %9700 = vmatprep.subr.msk.bf16.mxu1 %vm5602_vm6, %v13740_v27 }
 0x4ed   : > { %9640 = vmatpush3.bf16.xpose.msra.mxu1 %v8752_v28 }
 0x4ee   : > { %9701 = vmatprep.subr.msk.bf16.mxu1 %vm5602_vm6, %v13736_v14 }
 0x4f5   : > { %9642 = vmatpush3.bf16.xpose.msra.mxu1 %v8749_v55 }
 0x4f6   : > { %9702 = vmatprep.subr.msk.bf16.mxu1 %vm5602_vm6, %v13730_v49 }
 0x4fd   : > { %9644 = vmatpush3.bf16.xpose.msra.mxu1 %v8746_v13 }
 0x504   : > { %9646 = vmatmul.mubr.msk.bf16.vlgmr.msra.gmra.mxu1 %vm5602_vm6, %v13714_v45 }
 0x544   : > { %v8909_v32 = vpop.f32.mrf.mxu1 }
 0x545   : > { %v8910_v51 = vadd.f32 %v8909_v32, %v13722_v35 }
 0x546   : > { %v8911_v11 = vpop.f32.mrf.mxu1 }
 0x547   : > { %v8912_v23 = vadd.f32 %v8911_v11, %v13722_v35 }
 0x548   : > { %v8913_v14 = vpop.f32.mrf.mxu1 }
 0x549   : > { %v8967_v8 = vcombine.low %v8910_v51, %v8912_v23 }
 0x54a   : > { %v8914_v27 = vpop.f32.mrf.mxu1 }
 0x54b   : > { %v8989_v45 = vrot.slane %v8967_v8, %v8974_v2 }
 0x5c4   : > { %v8950_v42 = vpop.f32.mrf.mxu1 }
 0x5c5   : > { %v8951_v49 = vadd.f32 %v8950_v42, %v13722_v35 }
 0x5c6   : > { %v8952_v7 = vpop.f32.mrf.mxu1 }
 0x5c7   : > { %v8953_v0 = vadd.f32 %v8952_v7, %v13722_v35 }
 0x5c8   : > { %v8954_v63 = vpop.f32.mrf.mxu1 }
 0x5c9   : > { %v8968_v58 = vcombine.low %v8951_v49, %v8953_v0 }
 0x5ca   : > { %v8955_v17 = vpop.f32.mrf.mxu1 }
 0x5cb   : > { %v8996_v6 = vrot.slane %v8968_v58, %v8974_v2 }
 0x5cd   : > { %v8998_v9 = vcombine.low %v8989_v45, %v8996_v6 }
 0x5cf   : > { %v9012_v33 = vrot.slane %v8998_v9, %v8974_v2 }
 0x5d1   : > { %v9013_v19 = vcombine.low %v9005_v61, %v9012_v33 }
 0x5d3   : > { %9015 = vst [vmem:[%s440_s13] sm:$0xff] %v9013_v19 }
 0x5d4 PF: > { %s19_s28 = sadd.s32 1, %s9860_s28   ;;  %s14814_s26 = smov %s9856_s27 }
 0x5d5   : > { %p16_p5 = scmp.ge.s32.totalorder %s19_s28, 4   ;;  %s14815_s27 = smov %s14817_s6 }
 0x5d7   :  { %18 = sbr.rel (!%p16_p5) target bundleno = 3 (0x3), region = 86 }

</bundles_post_ra>
